<compile_context>
chip_gen: v5e
topology: v5e:2x2
jax: 0.10.0
libtpu: 0.0.40
codegen_flags: <defaults>
</compile_context>

<pallas_src>
import math
import functools

import jax
import jax.numpy as jnp
import numpy as np
from jax.experimental import pallas as pl
from jax.experimental.pallas import tpu as pltpu


# ----------------------------------------------------------------------------
# Pallas kernel: one G-head group per grid step.
# ----------------------------------------------------------------------------
def _cur_attention_kernel(idx_ref,                  # VMEM (G, 1, M) int32  selected q rows
                          q_ref, k_ref, v_ref,      # VMEM (G, N, D) bf16   (Q is UNscaled)
                          nr_ref, nc_ref,           # VMEM (G, M, D) bf16
                          bias_ref,                 # VMEM (G, 1, N) f32    additive mask bias
                          o_ref,                    # VMEM (N, G*D)         lane-packed output
                          *, num_iter, inv_sqrt_d):
    g, n, _ = q_ref.shape
    m = nr_ref.shape[1]

    q = q_ref[...]
    k = k_ref[...]
    v = v_ref[...]
    nr = nr_ref[...]
    nc = nc_ref[...]
    bias = bias_ref[...]
    idx = idx_ref[...]                              # (G, 1, M)

    # ---- logits: bf16 MXU matmuls, f32 accumulate; 1/sqrt(head_dim) folded in ----
    c = jnp.einsum('gnd,gmd->gnm', q, nc,
                   preferred_element_type=jnp.float32) * inv_sqrt_d          # (G, N, M)
    r = jnp.einsum('gmd,gnd->gmn', nr, k,
                   preferred_element_type=jnp.float32) * inv_sqrt_d + bias   # (G, M, N)
    u_logits = jnp.einsum('gmd,gld->gml', nr, nc,
                          preferred_element_type=jnp.float32) * inv_sqrt_d   # (G, M, M)

    def softmax_last(x, approx):
        x = x - jnp.max(x, axis=-1, keepdims=True)
        e = jnp.exp(x)
        return e * pl.reciprocal(jnp.sum(e, axis=-1, keepdims=True), approx=approx)

    kernel_1 = softmax_last(c, True)                 # (G, N, M) f32
    kernel_3 = softmax_last(r, True)                 # (G, M, N) f32
    # u == rows of kernel_1 gathered at index_q == softmax(nr @ nc^T).  Exact
    # reciprocal here: errors in u get amplified by the pseudo-inverse.
    u = softmax_last(u_logits, False)                # (G, M, M) f32

    # RV = kernel_3 @ V  (kernel_3 kept f32: its error is pinv-amplified)
    rv = jnp.einsum('gmn,gnd->gmd', kernel_3, v.astype(jnp.float32),
                    preferred_element_type=jnp.float32)                      # (G, M, D)

    # Constants hoisted out of the unrolled loops.
    eye = jnp.eye(m, dtype=jnp.float32)
    eye7, eye13, eye15 = 7.0 * eye, 13.0 * eye, 15.0 * eye
    row_ids = jax.lax.broadcasted_iota(jnp.int32, (n, m), 0)                 # (N, M)

    cols = []
    for gg in range(g):                              # static unroll: G independent chains
        u_g = u[gg]                                  # (M, M)
        rv_g = rv[gg]                                # (M, D)

        # ---- iterative_inv (Newton-Schulz pseudo-inverse), f32 ----
        denom = jnp.max(jnp.sum(u_g, axis=-2, keepdims=True), axis=-1, keepdims=True)
        v_mat = u_g.T / denom
        for _ in range(num_iter):
            kv = jnp.dot(u_g, v_mat, preferred_element_type=jnp.float32)
            t = eye7 - kv
            t = eye15 - jnp.dot(kv, t, preferred_element_type=jnp.float32)
            t = eye13 - jnp.dot(kv, t, preferred_element_type=jnp.float32)
            v_mat = 0.25 * jnp.dot(v_mat, t, preferred_element_type=jnp.float32)

        tmp_g = jnp.dot(v_mat, rv_g, preferred_element_type=jnp.float32)        # (M, D)
        x_g = jnp.dot(kernel_1[gg], tmp_g, preferred_element_type=jnp.float32)  # (N, D)

        # ---- copy_rv: X[index_q[m], :] = RV[m, :] via one-hot select ----
        onehot = (row_ids == idx[gg]).astype(jnp.float32)                    # (N, M)
        scatter = jnp.dot(onehot, rv_g, preferred_element_type=jnp.float32)  # (N, D)
        row_sel = jnp.sum(onehot, axis=-1, keepdims=True) > 0.5              # (N, 1)
        cols.append(jnp.where(row_sel, scatter, x_g))

    # Single lane-dense store: heads packed along lanes -> (N, G*D).
    o_ref[...] = jnp.concatenate(cols, axis=-1).astype(o_ref.dtype)


# ----------------------------------------------------------------------------
# Wrapper: random row selection + gathers (JAX glue) and the Pallas hot path.
# ----------------------------------------------------------------------------
def _pick_head_group(bh, d):
    """Largest head group dividing B*H, preferring a lane-dense G*D (mult of 128)."""
    for g in (16, 8, 4, 2, 1):
        if bh % g == 0 and (g * d) % 128 == 0:
            return g
    for g in (16, 8, 4, 2, 1):
        if bh % g == 0:
            return g
    return 1


def cur_attention(Q, K, V, mask, *, select_number=16, num_iter=4, select_key=None):
    """CURAttention.forward (select_mode='default', select_type='random', copy_rv=True)."""
    B, H, N, D = Q.shape
    M = select_number
    BH = B * H
    G = _pick_head_group(BH, D)
    out_dtype = Q.dtype

    mask_b = mask.astype(bool)                                               # (B, N)

    # select_type='random': random scores on unmasked positions, argsort descending,
    # keep first M.  Sort + gather stay in JAX glue (not a good fit for the kernel).
    if select_key is None:
        select_key = jax.random.PRNGKey(0)
    kq, kk = jax.random.split(select_key)
    neg = -jnp.finfo(jnp.float32).max
    score_q = jnp.where(mask_b[:, None, :], jax.random.uniform(kq, (B, H, N)), neg)
    score_k = jnp.where(mask_b[:, None, :], jax.random.uniform(kk, (B, H, N)), neg)
    index_q = jnp.argsort(-score_q, axis=-1)[..., :M].astype(jnp.int32)      # (B, H, M)
    index_k = jnp.argsort(-score_k, axis=-1)[..., :M].astype(jnp.int32)      # (B, H, M)

    # bf16 feeds (halves HBM traffic).  Q stays UNscaled; the 1/sqrt(head_dim)
    # factor is applied to the f32 logits inside the kernel.
    Qb = Q.astype(jnp.bfloat16)
    Kb = K.astype(jnp.bfloat16)
    Vb = V.astype(jnp.bfloat16)
    nc = jnp.take_along_axis(Kb, index_k[..., None], axis=2)                 # (B, H, M, D)
    nr = jnp.take_along_axis(Qb, index_q[..., None], axis=2)                 # (B, H, M, D)

    q2 = Qb.reshape(BH, N, D)
    k2 = Kb.reshape(BH, N, D)
    v2 = Vb.reshape(BH, N, D)
    nr2 = nr.reshape(BH, M, D)
    nc2 = nc.reshape(BH, M, D)
    bias = jnp.where(mask_b, 0.0, -1e30).astype(jnp.float32)                 # (B, N)
    bias2 = jnp.broadcast_to(bias[:, None, None, :], (B, H, 1, N)).reshape(BH, 1, N)
    idx2 = index_q.reshape(BH, 1, M)

    kernel = functools.partial(_cur_attention_kernel,
                               num_iter=num_iter, inv_sqrt_d=1.0 / math.sqrt(D))

    out_packed = pl.pallas_call(
        kernel,
        out_shape=jax.ShapeDtypeStruct((BH // G, N, G * D), out_dtype),
        grid_spec=pltpu.PrefetchScalarGridSpec(
            num_scalar_prefetch=0,
            grid=(BH // G,),
            in_specs=[
                pl.BlockSpec((G, 1, M), lambda i: (i, 0, 0)),    # index_q
                pl.BlockSpec((G, N, D), lambda i: (i, 0, 0)),    # Q (unscaled, bf16)
                pl.BlockSpec((G, N, D), lambda i: (i, 0, 0)),    # K
                pl.BlockSpec((G, N, D), lambda i: (i, 0, 0)),    # V
                pl.BlockSpec((G, M, D), lambda i: (i, 0, 0)),    # nr
                pl.BlockSpec((G, M, D), lambda i: (i, 0, 0)),    # nc
                pl.BlockSpec((G, 1, N), lambda i: (i, 0, 0)),    # mask bias
            ],
            out_specs=pl.BlockSpec((None, N, G * D), lambda i: (i, 0, 0)),
        ),
        compiler_params=pltpu.CompilerParams(dimension_semantics=("parallel",)),
    )(idx2, q2, k2, v2, nr2, nc2, bias2)

    # Unpack the lane-packed (BH//G, N, G*D) slab back to (B, H, N, D).
    out = (out_packed.reshape(BH // G, N, G, D)
           .transpose(0, 2, 1, 3)
           .reshape(B, H, N, D))
    return out, index_q, index_k


# ----------------------------------------------------------------------------
# Pure-JAX reference (same selected indices, f32 math) for correctness check.
# ----------------------------------------------------------------------------
def _iterative_inv_ref(mat, num_iter):
    eye = jnp.eye(mat.shape[-1], dtype=mat.dtype)
    k_mat = mat
    denom = jnp.max(jnp.sum(k_mat, axis=-2), axis=-1)[..., None, None]
    v_mat = (1.0 / denom) * jnp.swapaxes(k_mat, -1, -2)
    for _ in range(num_iter):
        kv = k_mat @ v_mat
        v_mat = (0.25 * v_mat) @ (13.0 * eye - kv @ (15.0 * eye - kv @ (7.0 * eye - kv)))
    return v_mat


def cur_attention_reference(Q, K, V, mask, index_q, index_k, num_iter):
    Qf = Q.astype(jnp.float32)
    Kf = K.astype(jnp.float32)
    Vf = V.astype(jnp.float32)
    B, H, N, D = Qf.shape
    Qs = Qf / math.sqrt(D)
    nc = jnp.take_along_axis(Kf, index_k[..., None], axis=2)
    nr = jnp.take_along_axis(Qs, index_q[..., None], axis=2)
    c = jnp.einsum('bhnd,bhmd->bhnm', Qs, nc)
    r = jnp.einsum('bhmd,bhnd->bhmn', nr, Kf)
    neg = -jnp.finfo(jnp.float32).max
    r = jnp.where(mask[:, None, None, :].astype(bool), r, neg)
    kernel_1 = jax.nn.softmax(c, axis=-1)
    u = jnp.take_along_axis(kernel_1, index_q[..., None], axis=2)
    kernel_3 = jax.nn.softmax(r, axis=-1)
    kernel_2_inv = _iterative_inv_ref(u, num_iter)
    RV = jnp.einsum('bhmn,bhnd->bhmd', kernel_3, Vf)
    X = jnp.einsum('bhnm,bhmd->bhnd', kernel_1, kernel_2_inv @ RV)
    # copy_rv (X.put_)
    b_idx = jnp.arange(B)[:, None, None]
    h_idx = jnp.arange(H)[None, :, None]
    X = X.at[b_idx, h_idx, index_q, :].set(RV)
    return X


if __name__ == "__main__":
    B, H, N, D = 2, 2, 128, 32        # batch, num_head, max_seq_len, head_dim
    M = 16                            # select_number (small for the test)
    NUM_ITER = 4

    key = jax.random.PRNGKey(0)
    kq, kk, kv, ksel = jax.random.split(key, 4)
    # bf16 activations (standard for TPU transformer stacks); the kernel keeps
    # softmax / Newton-Schulz / pinv-amplified matmuls in f32.
    Q = jax.random.normal(kq, (B, H, N, D), dtype=jnp.float32).astype(jnp.bfloat16)
    K = jax.random.normal(kk, (B, H, N, D), dtype=jnp.float32).astype(jnp.bfloat16)
    V = jax.random.normal(kv, (B, H, N, D), dtype=jnp.float32).astype(jnp.bfloat16)
    lengths = jnp.array([N, N - 16], dtype=jnp.int32)
    mask = jnp.arange(N)[None, :] < lengths[:, None]            # (B, N) bool

    X, index_q, index_k = cur_attention(
        Q, K, V, mask, select_number=M, num_iter=NUM_ITER, select_key=ksel)
    X = jax.block_until_ready(X)

    with jax.default_matmul_precision("float32"):
        X_ref = cur_attention_reference(Q, K, V, mask, index_q, index_k, NUM_ITER)
        X_ref = jax.block_until_ready(X_ref)

    np.testing.assert_allclose(np.asarray(X.astype(jnp.float32)),
                               np.asarray(X_ref), rtol=1e-2, atol=1e-2)

    print("KERNEL_OK")
</pallas_src>

<mosaic_0001>
module attributes {stable_mosaic.version = 11 : i64} {
  func.func @_cur_attention_kernel(%arg0: i32, %arg1: memref<4x1x16xi32, #tpu.memory_space<vmem>>, %arg2: memref<4x128x32xbf16, #tpu.memory_space<vmem>>, %arg3: memref<4x128x32xbf16, #tpu.memory_space<vmem>>, %arg4: memref<4x128x32xbf16, #tpu.memory_space<vmem>>, %arg5: memref<4x16x32xbf16, #tpu.memory_space<vmem>>, %arg6: memref<4x16x32xbf16, #tpu.memory_space<vmem>>, %arg7: memref<4x1x128xf32, #tpu.memory_space<vmem>>, %arg8: memref<1x128x128xbf16, #tpu.memory_space<vmem>>) attributes {dimension_semantics = [#tpu.dimension_semantics<parallel>], iteration_bounds = array<i64: 1>, scalar_prefetch = 0 : i64, scratch_operands = 0 : i64, tpu.core_type = #tpu.core_type<tc>, window_params = [{transform_indices = @transform_0, window_bounds = array<i64: 4, 1, 16>}, {transform_indices = @transform_1, window_bounds = array<i64: 4, 128, 32>}, {transform_indices = @transform_2, window_bounds = array<i64: 4, 128, 32>}, {transform_indices = @transform_3, window_bounds = array<i64: 4, 128, 32>}, {transform_indices = @transform_4, window_bounds = array<i64: 4, 16, 32>}, {transform_indices = @transform_5, window_bounds = array<i64: 4, 16, 32>}, {transform_indices = @transform_6, window_bounds = array<i64: 4, 1, 128>}, {transform_indices = @transform_7, window_bounds = array<i64: 1, 128, 128>}]} {
    %c0 = arith.constant 0 : index
    %c0_0 = arith.constant 0 : index
    %c0_1 = arith.constant 0 : index
    %0 = vector.load %arg2[%c0, %c0_0, %c0_1] : memref<4x128x32xbf16, #tpu.memory_space<vmem>>, vector<4x128x32xbf16>
    %c0_2 = arith.constant 0 : index
    %c0_3 = arith.constant 0 : index
    %c0_4 = arith.constant 0 : index
    %1 = vector.load %arg3[%c0_2, %c0_3, %c0_4] : memref<4x128x32xbf16, #tpu.memory_space<vmem>>, vector<4x128x32xbf16>
    %c0_5 = arith.constant 0 : index
    %c0_6 = arith.constant 0 : index
    %c0_7 = arith.constant 0 : index
    %2 = vector.load %arg4[%c0_5, %c0_6, %c0_7] : memref<4x128x32xbf16, #tpu.memory_space<vmem>>, vector<4x128x32xbf16>
    %c0_8 = arith.constant 0 : index
    %c0_9 = arith.constant 0 : index
    %c0_10 = arith.constant 0 : index
    %3 = vector.load %arg5[%c0_8, %c0_9, %c0_10] : memref<4x16x32xbf16, #tpu.memory_space<vmem>>, vector<4x16x32xbf16>
    %c0_11 = arith.constant 0 : index
    %c0_12 = arith.constant 0 : index
    %c0_13 = arith.constant 0 : index
    %4 = vector.load %arg6[%c0_11, %c0_12, %c0_13] : memref<4x16x32xbf16, #tpu.memory_space<vmem>>, vector<4x16x32xbf16>
    %c0_14 = arith.constant 0 : index
    %c0_15 = arith.constant 0 : index
    %c0_16 = arith.constant 0 : index
    %5 = vector.load %arg7[%c0_14, %c0_15, %c0_16] : memref<4x1x128xf32, #tpu.memory_space<vmem>>, vector<4x1x128xf32>
    %c0_17 = arith.constant 0 : index
    %c0_18 = arith.constant 0 : index
    %c0_19 = arith.constant 0 : index
    %6 = vector.load %arg1[%c0_17, %c0_18, %c0_19] : memref<4x1x16xi32, #tpu.memory_space<vmem>>, vector<4x1x16xi32>
    "tpu.trace_start"() <{level = 10 : i32, message = "gnd,gmd->gnm"}> : () -> ()
    %cst = arith.constant dense<0.000000e+00> : vector<4x128x16xf32>
    %7 = tpu.matmul %0, %4, %cst {dimension_numbers = #tpu.dot_dimension_numbers<[2], [2], [1], [1], [0, 0, 0, 1, 1, 1], [0], [0]>} : vector<4x128x32xbf16>, vector<4x16x32xbf16>, vector<4x128x16xf32> -> vector<4x128x16xf32>
    "tpu.trace_stop"() : () -> ()
    %cst_20 = arith.constant 0.176776692 : f32
    %8 = vector.broadcast %cst_20 : f32 to vector<4x128x16xf32>
    %9 = arith.mulf %7, %8 : vector<4x128x16xf32>
    "tpu.trace_start"() <{level = 10 : i32, message = "gmd,gnd->gmn"}> : () -> ()
    %cst_21 = arith.constant dense<0.000000e+00> : vector<4x16x128xf32>
    %10 = tpu.matmul %3, %1, %cst_21 {dimension_numbers = #tpu.dot_dimension_numbers<[2], [2], [1], [1], [0, 0, 0, 1, 1, 1], [0], [0]>} : vector<4x16x32xbf16>, vector<4x128x32xbf16>, vector<4x16x128xf32> -> vector<4x16x128xf32>
    "tpu.trace_stop"() : () -> ()
    %cst_22 = arith.constant 0.176776692 : f32
    %11 = vector.broadcast %cst_22 : f32 to vector<4x16x128xf32>
    %12 = arith.mulf %10, %11 : vector<4x16x128xf32>
    %13 = vector.broadcast %5 : vector<4x1x128xf32> to vector<4x16x128xf32>
    %14 = arith.addf %12, %13 : vector<4x16x128xf32>
    "tpu.trace_start"() <{level = 10 : i32, message = "gmd,gld->gml"}> : () -> ()
    %cst_23 = arith.constant dense<0.000000e+00> : vector<4x16x16xf32>
    %15 = tpu.matmul %3, %4, %cst_23 {dimension_numbers = #tpu.dot_dimension_numbers<[2], [2], [1], [1], [0, 0, 0, 1, 1, 1], [0], [0]>} : vector<4x16x32xbf16>, vector<4x16x32xbf16>, vector<4x16x16xf32> -> vector<4x16x16xf32>
    "tpu.trace_stop"() : () -> ()
    %cst_24 = arith.constant 0.176776692 : f32
    %16 = vector.broadcast %cst_24 : f32 to vector<4x16x16xf32>
    %17 = arith.mulf %15, %16 : vector<4x16x16xf32>
    %cst_25 = arith.constant dense<0xFF800000> : vector<4x128xf32>
    %18 = vector.multi_reduction <maximumf>, %9, %cst_25 [2] : vector<4x128x16xf32> to vector<4x128xf32>
    %19 = vector.shape_cast %18 : vector<4x128xf32> to vector<4x128x1xf32>
    %20 = vector.broadcast %19 : vector<4x128x1xf32> to vector<4x128x16xf32>
    %21 = arith.subf %9, %20 : vector<4x128x16xf32>
    %22 = math.exp %21 : vector<4x128x16xf32>
    %cst_26 = arith.constant dense<0.000000e+00> : vector<4x128xf32>
    %23 = vector.multi_reduction <add>, %22, %cst_26 [2] : vector<4x128x16xf32> to vector<4x128xf32>
    %24 = vector.shape_cast %23 : vector<4x128xf32> to vector<4x128x1xf32>
    %25 = tpu.reciprocal %24 {approx = true} : vector<4x128x1xf32> -> vector<4x128x1xf32>
    %26 = vector.broadcast %25 : vector<4x128x1xf32> to vector<4x128x16xf32>
    %27 = arith.mulf %22, %26 : vector<4x128x16xf32>
    %cst_27 = arith.constant dense<0xFF800000> : vector<4x16xf32>
    %28 = vector.multi_reduction <maximumf>, %14, %cst_27 [2] : vector<4x16x128xf32> to vector<4x16xf32>
    %29 = vector.shape_cast %28 : vector<4x16xf32> to vector<4x16x1xf32>
    %30 = vector.broadcast %29 : vector<4x16x1xf32> to vector<4x16x128xf32>
    %31 = arith.subf %14, %30 : vector<4x16x128xf32>
    %32 = math.exp %31 : vector<4x16x128xf32>
    %cst_28 = arith.constant dense<0.000000e+00> : vector<4x16xf32>
    %33 = vector.multi_reduction <add>, %32, %cst_28 [2] : vector<4x16x128xf32> to vector<4x16xf32>
    %34 = vector.shape_cast %33 : vector<4x16xf32> to vector<4x16x1xf32>
    %35 = tpu.reciprocal %34 {approx = true} : vector<4x16x1xf32> -> vector<4x16x1xf32>
    %36 = vector.broadcast %35 : vector<4x16x1xf32> to vector<4x16x128xf32>
    %37 = arith.mulf %32, %36 : vector<4x16x128xf32>
    %cst_29 = arith.constant dense<0xFF800000> : vector<4x16xf32>
    %38 = vector.multi_reduction <maximumf>, %17, %cst_29 [2] : vector<4x16x16xf32> to vector<4x16xf32>
    %39 = vector.shape_cast %38 : vector<4x16xf32> to vector<4x16x1xf32>
    %40 = vector.broadcast %39 : vector<4x16x1xf32> to vector<4x16x16xf32>
    %41 = arith.subf %17, %40 : vector<4x16x16xf32>
    %42 = math.exp %41 : vector<4x16x16xf32>
    %cst_30 = arith.constant dense<0.000000e+00> : vector<4x16xf32>
    %43 = vector.multi_reduction <add>, %42, %cst_30 [2] : vector<4x16x16xf32> to vector<4x16xf32>
    %44 = vector.shape_cast %43 : vector<4x16xf32> to vector<4x16x1xf32>
    %45 = tpu.reciprocal %44 : vector<4x16x1xf32> -> vector<4x16x1xf32>
    %46 = vector.broadcast %45 : vector<4x16x1xf32> to vector<4x16x16xf32>
    %47 = arith.mulf %42, %46 : vector<4x16x16xf32>
    %48 = arith.extf %2 : vector<4x128x32xbf16> to vector<4x128x32xf32>
    "tpu.trace_start"() <{level = 10 : i32, message = "gmn,gnd->gmd"}> : () -> ()
    %cst_31 = arith.constant dense<0.000000e+00> : vector<4x16x32xf32>
    %49 = tpu.matmul %37, %48, %cst_31 {dimension_numbers = #tpu.dot_dimension_numbers<[2], [1], [1], [2], [0, 0, 0, 1, 1, 2], [0], [0]>} : vector<4x16x128xf32>, vector<4x128x32xf32>, vector<4x16x32xf32> -> vector<4x16x32xf32>
    "tpu.trace_stop"() : () -> ()
    %50 = tpu.iota {dimensions = array<i32: 0>} : vector<16x16xi32>
    %51 = tpu.iota {dimensions = array<i32: 1>} : vector<16x16xi32>
    %c0_i32 = arith.constant 0 : i32
    %52 = vector.broadcast %c0_i32 : i32 to vector<16x16xi32>
    %53 = arith.addi %50, %52 : vector<16x16xi32>
    %54 = arith.cmpi eq, %53, %51 : vector<16x16xi32>
    %55 = arith.extui %54 : vector<16x16xi1> to vector<16x16xi32>
    %56 = arith.sitofp %55 : vector<16x16xi32> to vector<16x16xf32>
    %cst_32 = arith.constant 7.000000e+00 : f32
    %57 = vector.broadcast %cst_32 : f32 to vector<16x16xf32>
    %58 = arith.mulf %57, %56 : vector<16x16xf32>
    %cst_33 = arith.constant 1.300000e+01 : f32
    %59 = vector.broadcast %cst_33 : f32 to vector<16x16xf32>
    %60 = arith.mulf %59, %56 : vector<16x16xf32>
    %cst_34 = arith.constant 1.500000e+01 : f32
    %61 = vector.broadcast %cst_34 : f32 to vector<16x16xf32>
    %62 = arith.mulf %61, %56 : vector<16x16xf32>
    %63 = tpu.iota {dimensions = array<i32: 0>} : vector<128x16xi32>
    %64 = vector.extract_strided_slice %47 {offsets = [0, 0, 0], sizes = [1, 16, 16], strides = [1, 1, 1]} : vector<4x16x16xf32> to vector<1x16x16xf32>
    %65 = vector.shape_cast %64 : vector<1x16x16xf32> to vector<16x16xf32>
    %66 = vector.extract_strided_slice %49 {offsets = [0, 0, 0], sizes = [1, 16, 32], strides = [1, 1, 1]} : vector<4x16x32xf32> to vector<1x16x32xf32>
    %67 = vector.shape_cast %66 : vector<1x16x32xf32> to vector<16x32xf32>
    %cst_35 = arith.constant dense<0.000000e+00> : vector<16xf32>
    %68 = vector.multi_reduction <add>, %65, %cst_35 [0] : vector<16x16xf32> to vector<16xf32>
    %69 = vector.shape_cast %68 : vector<16xf32> to vector<1x16xf32>
    %cst_36 = arith.constant dense<0xFF800000> : vector<1xf32>
    %70 = vector.multi_reduction <maximumf>, %69, %cst_36 [1] : vector<1x16xf32> to vector<1xf32>
    %71 = vector.shape_cast %70 : vector<1xf32> to vector<1x1xf32>
    %72 = tpu.transpose %65, [1, 0] : vector<16x16xf32> -> vector<16x16xf32>
    %73 = vector.broadcast %71 : vector<1x1xf32> to vector<16x16xf32>
    %74 = arith.divf %72, %73 : vector<16x16xf32>
    %cst_37 = arith.constant dense<0.000000e+00> : vector<16x16xf32>
    %75 = tpu.matmul %65, %74, %cst_37 {dimension_numbers = #tpu.dot_dimension_numbers<[1], [0], [0], [1], [0, 0, 1, 1], [], []>} : vector<16x16xf32>, vector<16x16xf32>, vector<16x16xf32> -> vector<16x16xf32>
    %76 = arith.subf %58, %75 : vector<16x16xf32>
    %cst_38 = arith.constant dense<0.000000e+00> : vector<16x16xf32>
    %77 = tpu.matmul %75, %76, %cst_38 {dimension_numbers = #tpu.dot_dimension_numbers<[1], [0], [0], [1], [0, 0, 1, 1], [], []>} : vector<16x16xf32>, vector<16x16xf32>, vector<16x16xf32> -> vector<16x16xf32>
    %78 = arith.subf %62, %77 : vector<16x16xf32>
    %cst_39 = arith.constant dense<0.000000e+00> : vector<16x16xf32>
    %79 = tpu.matmul %75, %78, %cst_39 {dimension_numbers = #tpu.dot_dimension_numbers<[1], [0], [0], [1], [0, 0, 1, 1], [], []>} : vector<16x16xf32>, vector<16x16xf32>, vector<16x16xf32> -> vector<16x16xf32>
    %80 = arith.subf %60, %79 : vector<16x16xf32>
    %cst_40 = arith.constant dense<0.000000e+00> : vector<16x16xf32>
    %81 = tpu.matmul %74, %80, %cst_40 {dimension_numbers = #tpu.dot_dimension_numbers<[1], [0], [0], [1], [0, 0, 1, 1], [], []>} : vector<16x16xf32>, vector<16x16xf32>, vector<16x16xf32> -> vector<16x16xf32>
    %cst_41 = arith.constant 2.500000e-01 : f32
    %82 = vector.broadcast %cst_41 : f32 to vector<16x16xf32>
    %83 = arith.mulf %82, %81 : vector<16x16xf32>
    %cst_42 = arith.constant dense<0.000000e+00> : vector<16x16xf32>
    %84 = tpu.matmul %65, %83, %cst_42 {dimension_numbers = #tpu.dot_dimension_numbers<[1], [0], [0], [1], [0, 0, 1, 1], [], []>} : vector<16x16xf32>, vector<16x16xf32>, vector<16x16xf32> -> vector<16x16xf32>
    %85 = arith.subf %58, %84 : vector<16x16xf32>
    %cst_43 = arith.constant dense<0.000000e+00> : vector<16x16xf32>
    %86 = tpu.matmul %84, %85, %cst_43 {dimension_numbers = #tpu.dot_dimension_numbers<[1], [0], [0], [1], [0, 0, 1, 1], [], []>} : vector<16x16xf32>, vector<16x16xf32>, vector<16x16xf32> -> vector<16x16xf32>
    %87 = arith.subf %62, %86 : vector<16x16xf32>
    %cst_44 = arith.constant dense<0.000000e+00> : vector<16x16xf32>
    %88 = tpu.matmul %84, %87, %cst_44 {dimension_numbers = #tpu.dot_dimension_numbers<[1], [0], [0], [1], [0, 0, 1, 1], [], []>} : vector<16x16xf32>, vector<16x16xf32>, vector<16x16xf32> -> vector<16x16xf32>
    %89 = arith.subf %60, %88 : vector<16x16xf32>
    %cst_45 = arith.constant dense<0.000000e+00> : vector<16x16xf32>
    %90 = tpu.matmul %83, %89, %cst_45 {dimension_numbers = #tpu.dot_dimension_numbers<[1], [0], [0], [1], [0, 0, 1, 1], [], []>} : vector<16x16xf32>, vector<16x16xf32>, vector<16x16xf32> -> vector<16x16xf32>
    %cst_46 = arith.constant 2.500000e-01 : f32
    %91 = vector.broadcast %cst_46 : f32 to vector<16x16xf32>
    %92 = arith.mulf %91, %90 : vector<16x16xf32>
    %cst_47 = arith.constant dense<0.000000e+00> : vector<16x16xf32>
    %93 = tpu.matmul %65, %92, %cst_47 {dimension_numbers = #tpu.dot_dimension_numbers<[1], [0], [0], [1], [0, 0, 1, 1], [], []>} : vector<16x16xf32>, vector<16x16xf32>, vector<16x16xf32> -> vector<16x16xf32>
    %94 = arith.subf %58, %93 : vector<16x16xf32>
    %cst_48 = arith.constant dense<0.000000e+00> : vector<16x16xf32>
    %95 = tpu.matmul %93, %94, %cst_48 {dimension_numbers = #tpu.dot_dimension_numbers<[1], [0], [0], [1], [0, 0, 1, 1], [], []>} : vector<16x16xf32>, vector<16x16xf32>, vector<16x16xf32> -> vector<16x16xf32>
    %96 = arith.subf %62, %95 : vector<16x16xf32>
    %cst_49 = arith.constant dense<0.000000e+00> : vector<16x16xf32>
    %97 = tpu.matmul %93, %96, %cst_49 {dimension_numbers = #tpu.dot_dimension_numbers<[1], [0], [0], [1], [0, 0, 1, 1], [], []>} : vector<16x16xf32>, vector<16x16xf32>, vector<16x16xf32> -> vector<16x16xf32>
    %98 = arith.subf %60, %97 : vector<16x16xf32>
    %cst_50 = arith.constant dense<0.000000e+00> : vector<16x16xf32>
    %99 = tpu.matmul %92, %98, %cst_50 {dimension_numbers = #tpu.dot_dimension_numbers<[1], [0], [0], [1], [0, 0, 1, 1], [], []>} : vector<16x16xf32>, vector<16x16xf32>, vector<16x16xf32> -> vector<16x16xf32>
    %cst_51 = arith.constant 2.500000e-01 : f32
    %100 = vector.broadcast %cst_51 : f32 to vector<16x16xf32>
    %101 = arith.mulf %100, %99 : vector<16x16xf32>
    %cst_52 = arith.constant dense<0.000000e+00> : vector<16x16xf32>
    %102 = tpu.matmul %65, %101, %cst_52 {dimension_numbers = #tpu.dot_dimension_numbers<[1], [0], [0], [1], [0, 0, 1, 1], [], []>} : vector<16x16xf32>, vector<16x16xf32>, vector<16x16xf32> -> vector<16x16xf32>
    %103 = arith.subf %58, %102 : vector<16x16xf32>
    %cst_53 = arith.constant dense<0.000000e+00> : vector<16x16xf32>
    %104 = tpu.matmul %102, %103, %cst_53 {dimension_numbers = #tpu.dot_dimension_numbers<[1], [0], [0], [1], [0, 0, 1, 1], [], []>} : vector<16x16xf32>, vector<16x16xf32>, vector<16x16xf32> -> vector<16x16xf32>
    %105 = arith.subf %62, %104 : vector<16x16xf32>
    %cst_54 = arith.constant dense<0.000000e+00> : vector<16x16xf32>
    %106 = tpu.matmul %102, %105, %cst_54 {dimension_numbers = #tpu.dot_dimension_numbers<[1], [0], [0], [1], [0, 0, 1, 1], [], []>} : vector<16x16xf32>, vector<16x16xf32>, vector<16x16xf32> -> vector<16x16xf32>
    %107 = arith.subf %60, %106 : vector<16x16xf32>
    %cst_55 = arith.constant dense<0.000000e+00> : vector<16x16xf32>
    %108 = tpu.matmul %101, %107, %cst_55 {dimension_numbers = #tpu.dot_dimension_numbers<[1], [0], [0], [1], [0, 0, 1, 1], [], []>} : vector<16x16xf32>, vector<16x16xf32>, vector<16x16xf32> -> vector<16x16xf32>
    %cst_56 = arith.constant 2.500000e-01 : f32
    %109 = vector.broadcast %cst_56 : f32 to vector<16x16xf32>
    %110 = arith.mulf %109, %108 : vector<16x16xf32>
    %cst_57 = arith.constant dense<0.000000e+00> : vector<16x32xf32>
    %111 = tpu.matmul %110, %67, %cst_57 {dimension_numbers = #tpu.dot_dimension_numbers<[1], [0], [0], [1], [0, 0, 1, 1], [], []>} : vector<16x16xf32>, vector<16x32xf32>, vector<16x32xf32> -> vector<16x32xf32>
    %112 = vector.extract_strided_slice %27 {offsets = [0, 0, 0], sizes = [1, 128, 16], strides = [1, 1, 1]} : vector<4x128x16xf32> to vector<1x128x16xf32>
    %113 = vector.shape_cast %112 : vector<1x128x16xf32> to vector<128x16xf32>
    %cst_58 = arith.constant dense<0.000000e+00> : vector<128x32xf32>
    %114 = tpu.matmul %113, %111, %cst_58 {dimension_numbers = #tpu.dot_dimension_numbers<[1], [0], [0], [1], [0, 0, 1, 1], [], []>} : vector<128x16xf32>, vector<16x32xf32>, vector<128x32xf32> -> vector<128x32xf32>
    %115 = vector.extract_strided_slice %6 {offsets = [0, 0, 0], sizes = [1, 1, 16], strides = [1, 1, 1]} : vector<4x1x16xi32> to vector<1x1x16xi32>
    %116 = vector.shape_cast %115 : vector<1x1x16xi32> to vector<1x16xi32>
    %117 = vector.broadcast %116 : vector<1x16xi32> to vector<128x16xi32>
    %118 = arith.cmpi eq, %63, %117 : vector<128x16xi32>
    %119 = arith.extui %118 : vector<128x16xi1> to vector<128x16xi32>
    %120 = arith.sitofp %119 : vector<128x16xi32> to vector<128x16xf32>
    %cst_59 = arith.constant dense<0.000000e+00> : vector<128x32xf32>
    %121 = tpu.matmul %120, %67, %cst_59 {dimension_numbers = #tpu.dot_dimension_numbers<[1], [0], [0], [1], [0, 0, 1, 1], [], []>} : vector<128x16xf32>, vector<16x32xf32>, vector<128x32xf32> -> vector<128x32xf32>
    %cst_60 = arith.constant dense<0.000000e+00> : vector<128xf32>
    %122 = vector.multi_reduction <add>, %120, %cst_60 [1] : vector<128x16xf32> to vector<128xf32>
    %123 = vector.shape_cast %122 : vector<128xf32> to vector<128x1xf32>
    %cst_61 = arith.constant 5.000000e-01 : f32
    %124 = vector.broadcast %cst_61 : f32 to vector<128x1xf32>
    %125 = arith.cmpf ogt, %123, %124 : vector<128x1xf32>
    %126 = vector.shape_cast %125 : vector<128x1xi1> to vector<128x1xi1>
    %127 = vector.broadcast %126 : vector<128x1xi1> to vector<128x32xi1>
    %128 = arith.select %127, %121, %114 : vector<128x32xi1>, vector<128x32xf32>
    %129 = vector.extract_strided_slice %47 {offsets = [1, 0, 0], sizes = [1, 16, 16], strides = [1, 1, 1]} : vector<4x16x16xf32> to vector<1x16x16xf32>
    %130 = vector.shape_cast %129 : vector<1x16x16xf32> to vector<16x16xf32>
    %131 = vector.extract_strided_slice %49 {offsets = [1, 0, 0], sizes = [1, 16, 32], strides = [1, 1, 1]} : vector<4x16x32xf32> to vector<1x16x32xf32>
    %132 = vector.shape_cast %131 : vector<1x16x32xf32> to vector<16x32xf32>
    %cst_62 = arith.constant dense<0.000000e+00> : vector<16xf32>
    %133 = vector.multi_reduction <add>, %130, %cst_62 [0] : vector<16x16xf32> to vector<16xf32>
    %134 = vector.shape_cast %133 : vector<16xf32> to vector<1x16xf32>
    %cst_63 = arith.constant dense<0xFF800000> : vector<1xf32>
    %135 = vector.multi_reduction <maximumf>, %134, %cst_63 [1] : vector<1x16xf32> to vector<1xf32>
    %136 = vector.shape_cast %135 : vector<1xf32> to vector<1x1xf32>
    %137 = tpu.transpose %130, [1, 0] : vector<16x16xf32> -> vector<16x16xf32>
    %138 = vector.broadcast %136 : vector<1x1xf32> to vector<16x16xf32>
    %139 = arith.divf %137, %138 : vector<16x16xf32>
    %cst_64 = arith.constant dense<0.000000e+00> : vector<16x16xf32>
    %140 = tpu.matmul %130, %139, %cst_64 {dimension_numbers = #tpu.dot_dimension_numbers<[1], [0], [0], [1], [0, 0, 1, 1], [], []>} : vector<16x16xf32>, vector<16x16xf32>, vector<16x16xf32> -> vector<16x16xf32>
    %141 = arith.subf %58, %140 : vector<16x16xf32>
    %cst_65 = arith.constant dense<0.000000e+00> : vector<16x16xf32>
    %142 = tpu.matmul %140, %141, %cst_65 {dimension_numbers = #tpu.dot_dimension_numbers<[1], [0], [0], [1], [0, 0, 1, 1], [], []>} : vector<16x16xf32>, vector<16x16xf32>, vector<16x16xf32> -> vector<16x16xf32>
    %143 = arith.subf %62, %142 : vector<16x16xf32>
    %cst_66 = arith.constant dense<0.000000e+00> : vector<16x16xf32>
    %144 = tpu.matmul %140, %143, %cst_66 {dimension_numbers = #tpu.dot_dimension_numbers<[1], [0], [0], [1], [0, 0, 1, 1], [], []>} : vector<16x16xf32>, vector<16x16xf32>, vector<16x16xf32> -> vector<16x16xf32>
    %145 = arith.subf %60, %144 : vector<16x16xf32>
    %cst_67 = arith.constant dense<0.000000e+00> : vector<16x16xf32>
    %146 = tpu.matmul %139, %145, %cst_67 {dimension_numbers = #tpu.dot_dimension_numbers<[1], [0], [0], [1], [0, 0, 1, 1], [], []>} : vector<16x16xf32>, vector<16x16xf32>, vector<16x16xf32> -> vector<16x16xf32>
    %cst_68 = arith.constant 2.500000e-01 : f32
    %147 = vector.broadcast %cst_68 : f32 to vector<16x16xf32>
    %148 = arith.mulf %147, %146 : vector<16x16xf32>
    %cst_69 = arith.constant dense<0.000000e+00> : vector<16x16xf32>
    %149 = tpu.matmul %130, %148, %cst_69 {dimension_numbers = #tpu.dot_dimension_numbers<[1], [0], [0], [1], [0, 0, 1, 1], [], []>} : vector<16x16xf32>, vector<16x16xf32>, vector<16x16xf32> -> vector<16x16xf32>
    %150 = arith.subf %58, %149 : vector<16x16xf32>
    %cst_70 = arith.constant dense<0.000000e+00> : vector<16x16xf32>
    %151 = tpu.matmul %149, %150, %cst_70 {dimension_numbers = #tpu.dot_dimension_numbers<[1], [0], [0], [1], [0, 0, 1, 1], [], []>} : vector<16x16xf32>, vector<16x16xf32>, vector<16x16xf32> -> vector<16x16xf32>
    %152 = arith.subf %62, %151 : vector<16x16xf32>
    %cst_71 = arith.constant dense<0.000000e+00> : vector<16x16xf32>
    %153 = tpu.matmul %149, %152, %cst_71 {dimension_numbers = #tpu.dot_dimension_numbers<[1], [0], [0], [1], [0, 0, 1, 1], [], []>} : vector<16x16xf32>, vector<16x16xf32>, vector<16x16xf32> -> vector<16x16xf32>
    %154 = arith.subf %60, %153 : vector<16x16xf32>
    %cst_72 = arith.constant dense<0.000000e+00> : vector<16x16xf32>
    %155 = tpu.matmul %148, %154, %cst_72 {dimension_numbers = #tpu.dot_dimension_numbers<[1], [0], [0], [1], [0, 0, 1, 1], [], []>} : vector<16x16xf32>, vector<16x16xf32>, vector<16x16xf32> -> vector<16x16xf32>
    %cst_73 = arith.constant 2.500000e-01 : f32
    %156 = vector.broadcast %cst_73 : f32 to vector<16x16xf32>
    %157 = arith.mulf %156, %155 : vector<16x16xf32>
    %cst_74 = arith.constant dense<0.000000e+00> : vector<16x16xf32>
    %158 = tpu.matmul %130, %157, %cst_74 {dimension_numbers = #tpu.dot_dimension_numbers<[1], [0], [0], [1], [0, 0, 1, 1], [], []>} : vector<16x16xf32>, vector<16x16xf32>, vector<16x16xf32> -> vector<16x16xf32>
    %159 = arith.subf %58, %158 : vector<16x16xf32>
    %cst_75 = arith.constant dense<0.000000e+00> : vector<16x16xf32>
    %160 = tpu.matmul %158, %159, %cst_75 {dimension_numbers = #tpu.dot_dimension_numbers<[1], [0], [0], [1], [0, 0, 1, 1], [], []>} : vector<16x16xf32>, vector<16x16xf32>, vector<16x16xf32> -> vector<16x16xf32>
    %161 = arith.subf %62, %160 : vector<16x16xf32>
    %cst_76 = arith.constant dense<0.000000e+00> : vector<16x16xf32>
    %162 = tpu.matmul %158, %161, %cst_76 {dimension_numbers = #tpu.dot_dimension_numbers<[1], [0], [0], [1], [0, 0, 1, 1], [], []>} : vector<16x16xf32>, vector<16x16xf32>, vector<16x16xf32> -> vector<16x16xf32>
    %163 = arith.subf %60, %162 : vector<16x16xf32>
    %cst_77 = arith.constant dense<0.000000e+00> : vector<16x16xf32>
    %164 = tpu.matmul %157, %163, %cst_77 {dimension_numbers = #tpu.dot_dimension_numbers<[1], [0], [0], [1], [0, 0, 1, 1], [], []>} : vector<16x16xf32>, vector<16x16xf32>, vector<16x16xf32> -> vector<16x16xf32>
    %cst_78 = arith.constant 2.500000e-01 : f32
    %165 = vector.broadcast %cst_78 : f32 to vector<16x16xf32>
    %166 = arith.mulf %165, %164 : vector<16x16xf32>
    %cst_79 = arith.constant dense<0.000000e+00> : vector<16x16xf32>
    %167 = tpu.matmul %130, %166, %cst_79 {dimension_numbers = #tpu.dot_dimension_numbers<[1], [0], [0], [1], [0, 0, 1, 1], [], []>} : vector<16x16xf32>, vector<16x16xf32>, vector<16x16xf32> -> vector<16x16xf32>
    %168 = arith.subf %58, %167 : vector<16x16xf32>
    %cst_80 = arith.constant dense<0.000000e+00> : vector<16x16xf32>
    %169 = tpu.matmul %167, %168, %cst_80 {dimension_numbers = #tpu.dot_dimension_numbers<[1], [0], [0], [1], [0, 0, 1, 1], [], []>} : vector<16x16xf32>, vector<16x16xf32>, vector<16x16xf32> -> vector<16x16xf32>
    %170 = arith.subf %62, %169 : vector<16x16xf32>
    %cst_81 = arith.constant dense<0.000000e+00> : vector<16x16xf32>
    %171 = tpu.matmul %167, %170, %cst_81 {dimension_numbers = #tpu.dot_dimension_numbers<[1], [0], [0], [1], [0, 0, 1, 1], [], []>} : vector<16x16xf32>, vector<16x16xf32>, vector<16x16xf32> -> vector<16x16xf32>
    %172 = arith.subf %60, %171 : vector<16x16xf32>
    %cst_82 = arith.constant dense<0.000000e+00> : vector<16x16xf32>
    %173 = tpu.matmul %166, %172, %cst_82 {dimension_numbers = #tpu.dot_dimension_numbers<[1], [0], [0], [1], [0, 0, 1, 1], [], []>} : vector<16x16xf32>, vector<16x16xf32>, vector<16x16xf32> -> vector<16x16xf32>
    %cst_83 = arith.constant 2.500000e-01 : f32
    %174 = vector.broadcast %cst_83 : f32 to vector<16x16xf32>
    %175 = arith.mulf %174, %173 : vector<16x16xf32>
    %cst_84 = arith.constant dense<0.000000e+00> : vector<16x32xf32>
    %176 = tpu.matmul %175, %132, %cst_84 {dimension_numbers = #tpu.dot_dimension_numbers<[1], [0], [0], [1], [0, 0, 1, 1], [], []>} : vector<16x16xf32>, vector<16x32xf32>, vector<16x32xf32> -> vector<16x32xf32>
    %177 = vector.extract_strided_slice %27 {offsets = [1, 0, 0], sizes = [1, 128, 16], strides = [1, 1, 1]} : vector<4x128x16xf32> to vector<1x128x16xf32>
    %178 = vector.shape_cast %177 : vector<1x128x16xf32> to vector<128x16xf32>
    %cst_85 = arith.constant dense<0.000000e+00> : vector<128x32xf32>
    %179 = tpu.matmul %178, %176, %cst_85 {dimension_numbers = #tpu.dot_dimension_numbers<[1], [0], [0], [1], [0, 0, 1, 1], [], []>} : vector<128x16xf32>, vector<16x32xf32>, vector<128x32xf32> -> vector<128x32xf32>
    %180 = vector.extract_strided_slice %6 {offsets = [1, 0, 0], sizes = [1, 1, 16], strides = [1, 1, 1]} : vector<4x1x16xi32> to vector<1x1x16xi32>
    %181 = vector.shape_cast %180 : vector<1x1x16xi32> to vector<1x16xi32>
    %182 = vector.broadcast %181 : vector<1x16xi32> to vector<128x16xi32>
    %183 = arith.cmpi eq, %63, %182 : vector<128x16xi32>
    %184 = arith.extui %183 : vector<128x16xi1> to vector<128x16xi32>
    %185 = arith.sitofp %184 : vector<128x16xi32> to vector<128x16xf32>
    %cst_86 = arith.constant dense<0.000000e+00> : vector<128x32xf32>
    %186 = tpu.matmul %185, %132, %cst_86 {dimension_numbers = #tpu.dot_dimension_numbers<[1], [0], [0], [1], [0, 0, 1, 1], [], []>} : vector<128x16xf32>, vector<16x32xf32>, vector<128x32xf32> -> vector<128x32xf32>
    %cst_87 = arith.constant dense<0.000000e+00> : vector<128xf32>
    %187 = vector.multi_reduction <add>, %185, %cst_87 [1] : vector<128x16xf32> to vector<128xf32>
    %188 = vector.shape_cast %187 : vector<128xf32> to vector<128x1xf32>
    %cst_88 = arith.constant 5.000000e-01 : f32
    %189 = vector.broadcast %cst_88 : f32 to vector<128x1xf32>
    %190 = arith.cmpf ogt, %188, %189 : vector<128x1xf32>
    %191 = vector.shape_cast %190 : vector<128x1xi1> to vector<128x1xi1>
    %192 = vector.broadcast %191 : vector<128x1xi1> to vector<128x32xi1>
    %193 = arith.select %192, %186, %179 : vector<128x32xi1>, vector<128x32xf32>
    %194 = vector.extract_strided_slice %47 {offsets = [2, 0, 0], sizes = [1, 16, 16], strides = [1, 1, 1]} : vector<4x16x16xf32> to vector<1x16x16xf32>
    %195 = vector.shape_cast %194 : vector<1x16x16xf32> to vector<16x16xf32>
    %196 = vector.extract_strided_slice %49 {offsets = [2, 0, 0], sizes = [1, 16, 32], strides = [1, 1, 1]} : vector<4x16x32xf32> to vector<1x16x32xf32>
    %197 = vector.shape_cast %196 : vector<1x16x32xf32> to vector<16x32xf32>
    %cst_89 = arith.constant dense<0.000000e+00> : vector<16xf32>
    %198 = vector.multi_reduction <add>, %195, %cst_89 [0] : vector<16x16xf32> to vector<16xf32>
    %199 = vector.shape_cast %198 : vector<16xf32> to vector<1x16xf32>
    %cst_90 = arith.constant dense<0xFF800000> : vector<1xf32>
    %200 = vector.multi_reduction <maximumf>, %199, %cst_90 [1] : vector<1x16xf32> to vector<1xf32>
    %201 = vector.shape_cast %200 : vector<1xf32> to vector<1x1xf32>
    %202 = tpu.transpose %195, [1, 0] : vector<16x16xf32> -> vector<16x16xf32>
    %203 = vector.broadcast %201 : vector<1x1xf32> to vector<16x16xf32>
    %204 = arith.divf %202, %203 : vector<16x16xf32>
    %cst_91 = arith.constant dense<0.000000e+00> : vector<16x16xf32>
    %205 = tpu.matmul %195, %204, %cst_91 {dimension_numbers = #tpu.dot_dimension_numbers<[1], [0], [0], [1], [0, 0, 1, 1], [], []>} : vector<16x16xf32>, vector<16x16xf32>, vector<16x16xf32> -> vector<16x16xf32>
    %206 = arith.subf %58, %205 : vector<16x16xf32>
    %cst_92 = arith.constant dense<0.000000e+00> : vector<16x16xf32>
    %207 = tpu.matmul %205, %206, %cst_92 {dimension_numbers = #tpu.dot_dimension_numbers<[1], [0], [0], [1], [0, 0, 1, 1], [], []>} : vector<16x16xf32>, vector<16x16xf32>, vector<16x16xf32> -> vector<16x16xf32>
    %208 = arith.subf %62, %207 : vector<16x16xf32>
    %cst_93 = arith.constant dense<0.000000e+00> : vector<16x16xf32>
    %209 = tpu.matmul %205, %208, %cst_93 {dimension_numbers = #tpu.dot_dimension_numbers<[1], [0], [0], [1], [0, 0, 1, 1], [], []>} : vector<16x16xf32>, vector<16x16xf32>, vector<16x16xf32> -> vector<16x16xf32>
    %210 = arith.subf %60, %209 : vector<16x16xf32>
    %cst_94 = arith.constant dense<0.000000e+00> : vector<16x16xf32>
    %211 = tpu.matmul %204, %210, %cst_94 {dimension_numbers = #tpu.dot_dimension_numbers<[1], [0], [0], [1], [0, 0, 1, 1], [], []>} : vector<16x16xf32>, vector<16x16xf32>, vector<16x16xf32> -> vector<16x16xf32>
    %cst_95 = arith.constant 2.500000e-01 : f32
    %212 = vector.broadcast %cst_95 : f32 to vector<16x16xf32>
    %213 = arith.mulf %212, %211 : vector<16x16xf32>
    %cst_96 = arith.constant dense<0.000000e+00> : vector<16x16xf32>
    %214 = tpu.matmul %195, %213, %cst_96 {dimension_numbers = #tpu.dot_dimension_numbers<[1], [0], [0], [1], [0, 0, 1, 1], [], []>} : vector<16x16xf32>, vector<16x16xf32>, vector<16x16xf32> -> vector<16x16xf32>
    %215 = arith.subf %58, %214 : vector<16x16xf32>
    %cst_97 = arith.constant dense<0.000000e+00> : vector<16x16xf32>
    %216 = tpu.matmul %214, %215, %cst_97 {dimension_numbers = #tpu.dot_dimension_numbers<[1], [0], [0], [1], [0, 0, 1, 1], [], []>} : vector<16x16xf32>, vector<16x16xf32>, vector<16x16xf32> -> vector<16x16xf32>
    %217 = arith.subf %62, %216 : vector<16x16xf32>
    %cst_98 = arith.constant dense<0.000000e+00> : vector<16x16xf32>
    %218 = tpu.matmul %214, %217, %cst_98 {dimension_numbers = #tpu.dot_dimension_numbers<[1], [0], [0], [1], [0, 0, 1, 1], [], []>} : vector<16x16xf32>, vector<16x16xf32>, vector<16x16xf32> -> vector<16x16xf32>
    %219 = arith.subf %60, %218 : vector<16x16xf32>
    %cst_99 = arith.constant dense<0.000000e+00> : vector<16x16xf32>
    %220 = tpu.matmul %213, %219, %cst_99 {dimension_numbers = #tpu.dot_dimension_numbers<[1], [0], [0], [1], [0, 0, 1, 1], [], []>} : vector<16x16xf32>, vector<16x16xf32>, vector<16x16xf32> -> vector<16x16xf32>
    %cst_100 = arith.constant 2.500000e-01 : f32
    %221 = vector.broadcast %cst_100 : f32 to vector<16x16xf32>
    %222 = arith.mulf %221, %220 : vector<16x16xf32>
    %cst_101 = arith.constant dense<0.000000e+00> : vector<16x16xf32>
    %223 = tpu.matmul %195, %222, %cst_101 {dimension_numbers = #tpu.dot_dimension_numbers<[1], [0], [0], [1], [0, 0, 1, 1], [], []>} : vector<16x16xf32>, vector<16x16xf32>, vector<16x16xf32> -> vector<16x16xf32>
    %224 = arith.subf %58, %223 : vector<16x16xf32>
    %cst_102 = arith.constant dense<0.000000e+00> : vector<16x16xf32>
    %225 = tpu.matmul %223, %224, %cst_102 {dimension_numbers = #tpu.dot_dimension_numbers<[1], [0], [0], [1], [0, 0, 1, 1], [], []>} : vector<16x16xf32>, vector<16x16xf32>, vector<16x16xf32> -> vector<16x16xf32>
    %226 = arith.subf %62, %225 : vector<16x16xf32>
    %cst_103 = arith.constant dense<0.000000e+00> : vector<16x16xf32>
    %227 = tpu.matmul %223, %226, %cst_103 {dimension_numbers = #tpu.dot_dimension_numbers<[1], [0], [0], [1], [0, 0, 1, 1], [], []>} : vector<16x16xf32>, vector<16x16xf32>, vector<16x16xf32> -> vector<16x16xf32>
    %228 = arith.subf %60, %227 : vector<16x16xf32>
    %cst_104 = arith.constant dense<0.000000e+00> : vector<16x16xf32>
    %229 = tpu.matmul %222, %228, %cst_104 {dimension_numbers = #tpu.dot_dimension_numbers<[1], [0], [0], [1], [0, 0, 1, 1], [], []>} : vector<16x16xf32>, vector<16x16xf32>, vector<16x16xf32> -> vector<16x16xf32>
    %cst_105 = arith.constant 2.500000e-01 : f32
    %230 = vector.broadcast %cst_105 : f32 to vector<16x16xf32>
    %231 = arith.mulf %230, %229 : vector<16x16xf32>
    %cst_106 = arith.constant dense<0.000000e+00> : vector<16x16xf32>
    %232 = tpu.matmul %195, %231, %cst_106 {dimension_numbers = #tpu.dot_dimension_numbers<[1], [0], [0], [1], [0, 0, 1, 1], [], []>} : vector<16x16xf32>, vector<16x16xf32>, vector<16x16xf32> -> vector<16x16xf32>
    %233 = arith.subf %58, %232 : vector<16x16xf32>
    %cst_107 = arith.constant dense<0.000000e+00> : vector<16x16xf32>
    %234 = tpu.matmul %232, %233, %cst_107 {dimension_numbers = #tpu.dot_dimension_numbers<[1], [0], [0], [1], [0, 0, 1, 1], [], []>} : vector<16x16xf32>, vector<16x16xf32>, vector<16x16xf32> -> vector<16x16xf32>
    %235 = arith.subf %62, %234 : vector<16x16xf32>
    %cst_108 = arith.constant dense<0.000000e+00> : vector<16x16xf32>
    %236 = tpu.matmul %232, %235, %cst_108 {dimension_numbers = #tpu.dot_dimension_numbers<[1], [0], [0], [1], [0, 0, 1, 1], [], []>} : vector<16x16xf32>, vector<16x16xf32>, vector<16x16xf32> -> vector<16x16xf32>
    %237 = arith.subf %60, %236 : vector<16x16xf32>
    %cst_109 = arith.constant dense<0.000000e+00> : vector<16x16xf32>
    %238 = tpu.matmul %231, %237, %cst_109 {dimension_numbers = #tpu.dot_dimension_numbers<[1], [0], [0], [1], [0, 0, 1, 1], [], []>} : vector<16x16xf32>, vector<16x16xf32>, vector<16x16xf32> -> vector<16x16xf32>
    %cst_110 = arith.constant 2.500000e-01 : f32
    %239 = vector.broadcast %cst_110 : f32 to vector<16x16xf32>
    %240 = arith.mulf %239, %238 : vector<16x16xf32>
    %cst_111 = arith.constant dense<0.000000e+00> : vector<16x32xf32>
    %241 = tpu.matmul %240, %197, %cst_111 {dimension_numbers = #tpu.dot_dimension_numbers<[1], [0], [0], [1], [0, 0, 1, 1], [], []>} : vector<16x16xf32>, vector<16x32xf32>, vector<16x32xf32> -> vector<16x32xf32>
    %242 = vector.extract_strided_slice %27 {offsets = [2, 0, 0], sizes = [1, 128, 16], strides = [1, 1, 1]} : vector<4x128x16xf32> to vector<1x128x16xf32>
    %243 = vector.shape_cast %242 : vector<1x128x16xf32> to vector<128x16xf32>
    %cst_112 = arith.constant dense<0.000000e+00> : vector<128x32xf32>
    %244 = tpu.matmul %243, %241, %cst_112 {dimension_numbers = #tpu.dot_dimension_numbers<[1], [0], [0], [1], [0, 0, 1, 1], [], []>} : vector<128x16xf32>, vector<16x32xf32>, vector<128x32xf32> -> vector<128x32xf32>
    %245 = vector.extract_strided_slice %6 {offsets = [2, 0, 0], sizes = [1, 1, 16], strides = [1, 1, 1]} : vector<4x1x16xi32> to vector<1x1x16xi32>
    %246 = vector.shape_cast %245 : vector<1x1x16xi32> to vector<1x16xi32>
    %247 = vector.broadcast %246 : vector<1x16xi32> to vector<128x16xi32>
    %248 = arith.cmpi eq, %63, %247 : vector<128x16xi32>
    %249 = arith.extui %248 : vector<128x16xi1> to vector<128x16xi32>
    %250 = arith.sitofp %249 : vector<128x16xi32> to vector<128x16xf32>
    %cst_113 = arith.constant dense<0.000000e+00> : vector<128x32xf32>
    %251 = tpu.matmul %250, %197, %cst_113 {dimension_numbers = #tpu.dot_dimension_numbers<[1], [0], [0], [1], [0, 0, 1, 1], [], []>} : vector<128x16xf32>, vector<16x32xf32>, vector<128x32xf32> -> vector<128x32xf32>
    %cst_114 = arith.constant dense<0.000000e+00> : vector<128xf32>
    %252 = vector.multi_reduction <add>, %250, %cst_114 [1] : vector<128x16xf32> to vector<128xf32>
    %253 = vector.shape_cast %252 : vector<128xf32> to vector<128x1xf32>
    %cst_115 = arith.constant 5.000000e-01 : f32
    %254 = vector.broadcast %cst_115 : f32 to vector<128x1xf32>
    %255 = arith.cmpf ogt, %253, %254 : vector<128x1xf32>
    %256 = vector.shape_cast %255 : vector<128x1xi1> to vector<128x1xi1>
    %257 = vector.broadcast %256 : vector<128x1xi1> to vector<128x32xi1>
    %258 = arith.select %257, %251, %244 : vector<128x32xi1>, vector<128x32xf32>
    %259 = vector.extract_strided_slice %47 {offsets = [3, 0, 0], sizes = [1, 16, 16], strides = [1, 1, 1]} : vector<4x16x16xf32> to vector<1x16x16xf32>
    %260 = vector.shape_cast %259 : vector<1x16x16xf32> to vector<16x16xf32>
    %261 = vector.extract_strided_slice %49 {offsets = [3, 0, 0], sizes = [1, 16, 32], strides = [1, 1, 1]} : vector<4x16x32xf32> to vector<1x16x32xf32>
    %262 = vector.shape_cast %261 : vector<1x16x32xf32> to vector<16x32xf32>
    %cst_116 = arith.constant dense<0.000000e+00> : vector<16xf32>
    %263 = vector.multi_reduction <add>, %260, %cst_116 [0] : vector<16x16xf32> to vector<16xf32>
    %264 = vector.shape_cast %263 : vector<16xf32> to vector<1x16xf32>
    %cst_117 = arith.constant dense<0xFF800000> : vector<1xf32>
    %265 = vector.multi_reduction <maximumf>, %264, %cst_117 [1] : vector<1x16xf32> to vector<1xf32>
    %266 = vector.shape_cast %265 : vector<1xf32> to vector<1x1xf32>
    %267 = tpu.transpose %260, [1, 0] : vector<16x16xf32> -> vector<16x16xf32>
    %268 = vector.broadcast %266 : vector<1x1xf32> to vector<16x16xf32>
    %269 = arith.divf %267, %268 : vector<16x16xf32>
    %cst_118 = arith.constant dense<0.000000e+00> : vector<16x16xf32>
    %270 = tpu.matmul %260, %269, %cst_118 {dimension_numbers = #tpu.dot_dimension_numbers<[1], [0], [0], [1], [0, 0, 1, 1], [], []>} : vector<16x16xf32>, vector<16x16xf32>, vector<16x16xf32> -> vector<16x16xf32>
    %271 = arith.subf %58, %270 : vector<16x16xf32>
    %cst_119 = arith.constant dense<0.000000e+00> : vector<16x16xf32>
    %272 = tpu.matmul %270, %271, %cst_119 {dimension_numbers = #tpu.dot_dimension_numbers<[1], [0], [0], [1], [0, 0, 1, 1], [], []>} : vector<16x16xf32>, vector<16x16xf32>, vector<16x16xf32> -> vector<16x16xf32>
    %273 = arith.subf %62, %272 : vector<16x16xf32>
    %cst_120 = arith.constant dense<0.000000e+00> : vector<16x16xf32>
    %274 = tpu.matmul %270, %273, %cst_120 {dimension_numbers = #tpu.dot_dimension_numbers<[1], [0], [0], [1], [0, 0, 1, 1], [], []>} : vector<16x16xf32>, vector<16x16xf32>, vector<16x16xf32> -> vector<16x16xf32>
    %275 = arith.subf %60, %274 : vector<16x16xf32>
    %cst_121 = arith.constant dense<0.000000e+00> : vector<16x16xf32>
    %276 = tpu.matmul %269, %275, %cst_121 {dimension_numbers = #tpu.dot_dimension_numbers<[1], [0], [0], [1], [0, 0, 1, 1], [], []>} : vector<16x16xf32>, vector<16x16xf32>, vector<16x16xf32> -> vector<16x16xf32>
    %cst_122 = arith.constant 2.500000e-01 : f32
    %277 = vector.broadcast %cst_122 : f32 to vector<16x16xf32>
    %278 = arith.mulf %277, %276 : vector<16x16xf32>
    %cst_123 = arith.constant dense<0.000000e+00> : vector<16x16xf32>
    %279 = tpu.matmul %260, %278, %cst_123 {dimension_numbers = #tpu.dot_dimension_numbers<[1], [0], [0], [1], [0, 0, 1, 1], [], []>} : vector<16x16xf32>, vector<16x16xf32>, vector<16x16xf32> -> vector<16x16xf32>
    %280 = arith.subf %58, %279 : vector<16x16xf32>
    %cst_124 = arith.constant dense<0.000000e+00> : vector<16x16xf32>
    %281 = tpu.matmul %279, %280, %cst_124 {dimension_numbers = #tpu.dot_dimension_numbers<[1], [0], [0], [1], [0, 0, 1, 1], [], []>} : vector<16x16xf32>, vector<16x16xf32>, vector<16x16xf32> -> vector<16x16xf32>
    %282 = arith.subf %62, %281 : vector<16x16xf32>
    %cst_125 = arith.constant dense<0.000000e+00> : vector<16x16xf32>
    %283 = tpu.matmul %279, %282, %cst_125 {dimension_numbers = #tpu.dot_dimension_numbers<[1], [0], [0], [1], [0, 0, 1, 1], [], []>} : vector<16x16xf32>, vector<16x16xf32>, vector<16x16xf32> -> vector<16x16xf32>
    %284 = arith.subf %60, %283 : vector<16x16xf32>
    %cst_126 = arith.constant dense<0.000000e+00> : vector<16x16xf32>
    %285 = tpu.matmul %278, %284, %cst_126 {dimension_numbers = #tpu.dot_dimension_numbers<[1], [0], [0], [1], [0, 0, 1, 1], [], []>} : vector<16x16xf32>, vector<16x16xf32>, vector<16x16xf32> -> vector<16x16xf32>
    %cst_127 = arith.constant 2.500000e-01 : f32
    %286 = vector.broadcast %cst_127 : f32 to vector<16x16xf32>
    %287 = arith.mulf %286, %285 : vector<16x16xf32>
    %cst_128 = arith.constant dense<0.000000e+00> : vector<16x16xf32>
    %288 = tpu.matmul %260, %287, %cst_128 {dimension_numbers = #tpu.dot_dimension_numbers<[1], [0], [0], [1], [0, 0, 1, 1], [], []>} : vector<16x16xf32>, vector<16x16xf32>, vector<16x16xf32> -> vector<16x16xf32>
    %289 = arith.subf %58, %288 : vector<16x16xf32>
    %cst_129 = arith.constant dense<0.000000e+00> : vector<16x16xf32>
    %290 = tpu.matmul %288, %289, %cst_129 {dimension_numbers = #tpu.dot_dimension_numbers<[1], [0], [0], [1], [0, 0, 1, 1], [], []>} : vector<16x16xf32>, vector<16x16xf32>, vector<16x16xf32> -> vector<16x16xf32>
    %291 = arith.subf %62, %290 : vector<16x16xf32>
    %cst_130 = arith.constant dense<0.000000e+00> : vector<16x16xf32>
    %292 = tpu.matmul %288, %291, %cst_130 {dimension_numbers = #tpu.dot_dimension_numbers<[1], [0], [0], [1], [0, 0, 1, 1], [], []>} : vector<16x16xf32>, vector<16x16xf32>, vector<16x16xf32> -> vector<16x16xf32>
    %293 = arith.subf %60, %292 : vector<16x16xf32>
    %cst_131 = arith.constant dense<0.000000e+00> : vector<16x16xf32>
    %294 = tpu.matmul %287, %293, %cst_131 {dimension_numbers = #tpu.dot_dimension_numbers<[1], [0], [0], [1], [0, 0, 1, 1], [], []>} : vector<16x16xf32>, vector<16x16xf32>, vector<16x16xf32> -> vector<16x16xf32>
    %cst_132 = arith.constant 2.500000e-01 : f32
    %295 = vector.broadcast %cst_132 : f32 to vector<16x16xf32>
    %296 = arith.mulf %295, %294 : vector<16x16xf32>
    %cst_133 = arith.constant dense<0.000000e+00> : vector<16x16xf32>
    %297 = tpu.matmul %260, %296, %cst_133 {dimension_numbers = #tpu.dot_dimension_numbers<[1], [0], [0], [1], [0, 0, 1, 1], [], []>} : vector<16x16xf32>, vector<16x16xf32>, vector<16x16xf32> -> vector<16x16xf32>
    %298 = arith.subf %58, %297 : vector<16x16xf32>
    %cst_134 = arith.constant dense<0.000000e+00> : vector<16x16xf32>
    %299 = tpu.matmul %297, %298, %cst_134 {dimension_numbers = #tpu.dot_dimension_numbers<[1], [0], [0], [1], [0, 0, 1, 1], [], []>} : vector<16x16xf32>, vector<16x16xf32>, vector<16x16xf32> -> vector<16x16xf32>
    %300 = arith.subf %62, %299 : vector<16x16xf32>
    %cst_135 = arith.constant dense<0.000000e+00> : vector<16x16xf32>
    %301 = tpu.matmul %297, %300, %cst_135 {dimension_numbers = #tpu.dot_dimension_numbers<[1], [0], [0], [1], [0, 0, 1, 1], [], []>} : vector<16x16xf32>, vector<16x16xf32>, vector<16x16xf32> -> vector<16x16xf32>
    %302 = arith.subf %60, %301 : vector<16x16xf32>
    %cst_136 = arith.constant dense<0.000000e+00> : vector<16x16xf32>
    %303 = tpu.matmul %296, %302, %cst_136 {dimension_numbers = #tpu.dot_dimension_numbers<[1], [0], [0], [1], [0, 0, 1, 1], [], []>} : vector<16x16xf32>, vector<16x16xf32>, vector<16x16xf32> -> vector<16x16xf32>
    %cst_137 = arith.constant 2.500000e-01 : f32
    %304 = vector.broadcast %cst_137 : f32 to vector<16x16xf32>
    %305 = arith.mulf %304, %303 : vector<16x16xf32>
    %cst_138 = arith.constant dense<0.000000e+00> : vector<16x32xf32>
    %306 = tpu.matmul %305, %262, %cst_138 {dimension_numbers = #tpu.dot_dimension_numbers<[1], [0], [0], [1], [0, 0, 1, 1], [], []>} : vector<16x16xf32>, vector<16x32xf32>, vector<16x32xf32> -> vector<16x32xf32>
    %307 = vector.extract_strided_slice %27 {offsets = [3, 0, 0], sizes = [1, 128, 16], strides = [1, 1, 1]} : vector<4x128x16xf32> to vector<1x128x16xf32>
    %308 = vector.shape_cast %307 : vector<1x128x16xf32> to vector<128x16xf32>
    %cst_139 = arith.constant dense<0.000000e+00> : vector<128x32xf32>
    %309 = tpu.matmul %308, %306, %cst_139 {dimension_numbers = #tpu.dot_dimension_numbers<[1], [0], [0], [1], [0, 0, 1, 1], [], []>} : vector<128x16xf32>, vector<16x32xf32>, vector<128x32xf32> -> vector<128x32xf32>
    %310 = vector.extract_strided_slice %6 {offsets = [3, 0, 0], sizes = [1, 1, 16], strides = [1, 1, 1]} : vector<4x1x16xi32> to vector<1x1x16xi32>
    %311 = vector.shape_cast %310 : vector<1x1x16xi32> to vector<1x16xi32>
    %312 = vector.broadcast %311 : vector<1x16xi32> to vector<128x16xi32>
    %313 = arith.cmpi eq, %63, %312 : vector<128x16xi32>
    %314 = arith.extui %313 : vector<128x16xi1> to vector<128x16xi32>
    %315 = arith.sitofp %314 : vector<128x16xi32> to vector<128x16xf32>
    %cst_140 = arith.constant dense<0.000000e+00> : vector<128x32xf32>
    %316 = tpu.matmul %315, %262, %cst_140 {dimension_numbers = #tpu.dot_dimension_numbers<[1], [0], [0], [1], [0, 0, 1, 1], [], []>} : vector<128x16xf32>, vector<16x32xf32>, vector<128x32xf32> -> vector<128x32xf32>
    %cst_141 = arith.constant dense<0.000000e+00> : vector<128xf32>
    %317 = vector.multi_reduction <add>, %315, %cst_141 [1] : vector<128x16xf32> to vector<128xf32>
    %318 = vector.shape_cast %317 : vector<128xf32> to vector<128x1xf32>
    %cst_142 = arith.constant 5.000000e-01 : f32
    %319 = vector.broadcast %cst_142 : f32 to vector<128x1xf32>
    %320 = arith.cmpf ogt, %318, %319 : vector<128x1xf32>
    %321 = vector.shape_cast %320 : vector<128x1xi1> to vector<128x1xi1>
    %322 = vector.broadcast %321 : vector<128x1xi1> to vector<128x32xi1>
    %323 = arith.select %322, %316, %309 : vector<128x32xi1>, vector<128x32xf32>
    %324 = tpu.concatenate %128, %193, %258, %323 in 1 : vector<128x32xf32>, vector<128x32xf32>, vector<128x32xf32>, vector<128x32xf32> -> vector<128x128xf32>
    %325 = arith.truncf %324 : vector<128x128xf32> to vector<128x128xbf16>
    %c0_143 = arith.constant 0 : index
    %c0_144 = arith.constant 0 : index
    %c0_145 = arith.constant 0 : index
    %326 = vector.load %arg8[%c0_143, %c0_144, %c0_145] : memref<1x128x128xbf16, #tpu.memory_space<vmem>>, vector<1x128x128xbf16>
    %327 = vector.shape_cast %326 : vector<1x128x128xbf16> to vector<128x128xbf16>
    %328 = vector.shape_cast %325 : vector<128x128xbf16> to vector<1x128x128xbf16>
    tpu.vector_store %arg8[%c0_143, %c0_144, %c0_145], %328 {strides = array<i32>} : memref<1x128x128xbf16, #tpu.memory_space<vmem>>, vector<1x128x128xbf16>,
    return
  }
  func.func @transform_0(%arg0: i32) -> (i32, i32, i32) {
    %c0_i32 = arith.constant 0 : i32
    %c0_i32_0 = arith.constant 0 : i32
    %c0_i32_1 = arith.constant 0 : i32
    return %arg0, %c0_i32, %c0_i32_0 : i32, i32, i32
  }
  func.func @transform_1(%arg0: i32) -> (i32, i32, i32) {
    %c0_i32 = arith.constant 0 : i32
    %c0_i32_0 = arith.constant 0 : i32
    %c0_i32_1 = arith.constant 0 : i32
    return %arg0, %c0_i32, %c0_i32_0 : i32, i32, i32
  }
  func.func @transform_2(%arg0: i32) -> (i32, i32, i32) {
    %c0_i32 = arith.constant 0 : i32
    %c0_i32_0 = arith.constant 0 : i32
    %c0_i32_1 = arith.constant 0 : i32
    return %arg0, %c0_i32, %c0_i32_0 : i32, i32, i32
  }
  func.func @transform_3(%arg0: i32) -> (i32, i32, i32) {
    %c0_i32 = arith.constant 0 : i32
    %c0_i32_0 = arith.constant 0 : i32
    %c0_i32_1 = arith.constant 0 : i32
    return %arg0, %c0_i32, %c0_i32_0 : i32, i32, i32
  }
  func.func @transform_4(%arg0: i32) -> (i32, i32, i32) {
    %c0_i32 = arith.constant 0 : i32
    %c0_i32_0 = arith.constant 0 : i32
    %c0_i32_1 = arith.constant 0 : i32
    return %arg0, %c0_i32, %c0_i32_0 : i32, i32, i32
  }
  func.func @transform_5(%arg0: i32) -> (i32, i32, i32) {
    %c0_i32 = arith.constant 0 : i32
    %c0_i32_0 = arith.constant 0 : i32
    %c0_i32_1 = arith.constant 0 : i32
    return %arg0, %c0_i32, %c0_i32_0 : i32, i32, i32
  }
  func.func @transform_6(%arg0: i32) -> (i32, i32, i32) {
    %c0_i32 = arith.constant 0 : i32
    %c0_i32_0 = arith.constant 0 : i32
    %c0_i32_1 = arith.constant 0 : i32
    return %arg0, %c0_i32, %c0_i32_0 : i32, i32, i32
  }
  func.func @transform_7(%arg0: i32) -> (i32, i32, i32) {
    %c0_i32 = arith.constant 0 : i32
    %c0_i32_0 = arith.constant 0 : i32
    %c0_i32_1 = arith.constant 0 : i32
    return %arg0, %c0_i32, %c0_i32_0 : i32, i32, i32
  }
}

</mosaic_0001>

<bundles_post_ra>
// kernel: tpu_custom_call.1
= control target key start
LH: loop header
LB: loop body
LE: loop exit
PB: predicated region body
PF: predicated region fallthrough
CT: control target
= control target key end

     0   :  { %vm289_vm0 = vcmask 261120   ;;  %s10976_s0 = inlined_call_operand.vmem [shape: s32[4,1,16], index: 0, kind: input, shape index: {}]   ;;  %s10977_s1 = inlined_call_operand.vmem [shape: bf16[4,128,32], index: 1, kind: input, shape index: {}]   ;;  %s10978_s2 = inlined_call_operand.vmem [shape: bf16[4,128,32], index: 2, kind: input, shape index: {}]   ;;  %s10979_s3 = inlined_call_operand.vmem [shape: bf16[4,128,32], index: 3, kind: input, shape index: {}]   ;;  %s10980_s4 = inlined_call_operand.vmem [shape: bf16[4,16,32], index: 4, kind: input, shape index: {}]   ;;  %s10981_s5 = inlined_call_operand.vmem [shape: bf16[4,16,32], index: 5, kind: input, shape index: {}]   ;;  %s10982_s6 = inlined_call_operand.vmem [shape: f32[4,1,128], index: 6, kind: input, shape index: {}]   ;;  %s10983_s7 = inlined_call_operand.hbm [shape: bf16[1,128,128], index: 7, kind: output, shape index: {}]  }
   0x1   :  { %v7123_v0 = vld [vmem:[%s10981_s5] sm:$0xff]  ;;  %v7094_v1 = vld [vmem:[%s10978_s2 + $0x38] sm:$0xff]  ;;  %v7093_v4 = vld [vmem:[%s10978_s2 + $0x30] sm:$0xff] }
   0x2   :  { %v315_v2 = vsel %vm289_vm0, %v7123_v0, 0  ;;  %v863_v3 = vsel %vm289_vm0, %v7094_v1, 0  ;;  %v7055_v5 = vld [vmem:[%s10977_s1] sm:$0xff] }
   0x3   :  { %324 = vmatpush.bf16.xpose.msra.mxu0 %v315_v2  ;;  %7333 = vmatpush.bf16.xpose.msra.mxu2 %v315_v2 }
   0xb   :  { %865 = vmatpush.bf16.xpose.msrb.mxu0 %v863_v3 }
   0xc   :  { %12 = vsyncpa [#allocation3], 0  ;;  %v860_v6 = vsel %vm289_vm0, %v7093_v4, 0  ;;  %6433 = vmatmul.msk.bf16.vlgmr.msra.gmra.mxu0 %vm289_vm0, %v7055_v5  ;;  %v7092_v7 = vld [vmem:[%s10978_s2 + $0x28] sm:$0xff]  ;;  %v7091_v9 = vld [vmem:[%s10978_s2 + $0x20] sm:$0xff]  ;;  %vm1229_vm1 = vcmask 130048  }
   0xd   :  { %v857_v8 = vsel %vm289_vm0, %v7092_v7, 0  ;;  %v7056_v10 = vld [vmem:[%s10977_s1 + $0x8] sm:$0xff]  ;;  %v854_v11 = vsel %vm289_vm0, %v7091_v9, 0  ;;  %v7090_v12 = vld [vmem:[%s10978_s2 + $0x18] sm:$0xff]  ;;  %v7089_v14 = vld [vmem:[%s10978_s2 + $0x10] sm:$0xff]  ;;  %s7825_s24 = smov 64  }
   0xe   :  { %v851_v13 = vsel %vm289_vm0, %v7090_v12, 0  ;;  %v7057_v15 = vld [vmem:[%s10977_s1 + $0x10] sm:$0xff]  ;;  %v848_v16 = vsel %vm289_vm0, %v7089_v14, 0  ;;  %v7088_v17 = vld [vmem:[%s10978_s2 + $0x8] sm:$0xff]  ;;  %v7087_v19 = vld [vmem:[%s10978_s2] sm:$0xff]  ;;  %s6385_s27 = sshll.u32 %s10983_s7, 4  ;;  %s6386_s27 = int_to_ptr.hbm [resolvable:$true] %s6385_s27 }
   0xf   :  { %v845_v18 = vsel %vm289_vm0, %v7088_v17, 0  ;;  %v7058_v20 = vld [vmem:[%s10977_s1 + $0x18] sm:$0xff]  ;;  %v842_v21 = vsel %vm289_vm0, %v7087_v19, 0  ;;  %v7119_v22 = vld [vmem:[%s10980_s4] sm:$0xff]  ;;  %v7124_v23 = vld [vmem:[%s10981_s5 + $0x8] sm:$0xff]  ;;  %s7827_s28 = smov [#allocation2]  }
  0x10   :  { %v436_v24 = vsel %vm289_vm0, %v7124_v23, 0  ;;  %v7063_v25 = vld [vmem:[%s10977_s1 + $0x40] sm:$0xff]  ;;  %v7102_v26 = vld [vmem:[%s10978_s2 + $0x78] sm:$0xff]  ;;  %v7101_v29 = vld [vmem:[%s10978_s2 + $0x70] sm:$0xff]  ;;  %s6383_s29 = sshll.u32 %s7827_s28, 4  ;;  %s7828_s7 = smov 4   ;;  %s6384_s29 = int_to_ptr.vmem [resolvable:$true] %s6383_s29 }
  0x11   :  { %445 = vmatpush.bf16.xpose.msra.mxu1 %v436_v24  ;;  %7334 = vmatpush.bf16.xpose.msra.mxu3 %v436_v24  ;;  %v7059_v27 = vld [vmem:[%s10977_s1 + $0x20] sm:$0xff]  ;;  %v949_v28 = vsel %vm289_vm0, %v7102_v26, 0  ;;  %v946_v30 = vsel %vm289_vm0, %v7101_v29, 0  ;;  %v7064_v31 = vld [vmem:[%s10977_s1 + $0x48] sm:$0xff]  ;;  %v7065_v39 = vld [vmem:[%s10977_s1 + $0x50] sm:$0xff] }
  0x12   :  { %6437 = vmatmul.msk.bf16.vlgmr.msra.gmra.mxu2 %vm289_vm0, %v7059_v27  ;;  %v7100_v32 = vld [vmem:[%s10978_s2 + $0x68] sm:$0xff]  ;;  %v7099_v36 = vld [vmem:[%s10978_s2 + $0x60] sm:$0xff]  ;;  %v7098_v40 = vld [vmem:[%s10978_s2 + $0x58] sm:$0xff] }
  0x13   :  { %866 = vmatpush.bf16.xpose.msrb.mxu0 %v860_v6  ;;  %v7060_v33 = vld [vmem:[%s10977_s1 + $0x28] sm:$0xff]  ;;  %v943_v34 = vsel %vm289_vm0, %v7100_v32, 0  ;;  %v940_v37 = vsel %vm289_vm0, %v7099_v36, 0  ;;  %v7061_v41 = vld [vmem:[%s10977_s1 + $0x30] sm:$0xff]  ;;  %v937_v42 = vsel %vm289_vm0, %v7098_v40, 0  ;;  %v7066_v47 = vld [vmem:[%s10977_s1 + $0x58] sm:$0xff] }
  0x14   :  { %v7097_v44 = vld [vmem:[%s10978_s2 + $0x50] sm:$0xff]  ;;  %v7096_v48 = vld [vmem:[%s10978_s2 + $0x48] sm:$0xff]  ;;  %v7062_v49 = vld [vmem:[%s10977_s1 + $0x38] sm:$0xff] }
  0x15   :  { %v934_v45 = vsel %vm289_vm0, %v7097_v44, 0  ;;  %v931_v50 = vsel %vm289_vm0, %v7096_v48, 0  ;;  %v7095_v52 = vld [vmem:[%s10978_s2 + $0x40] sm:$0xff]  ;;  %v7125_v53 = vld [vmem:[%s10981_s5 + $0x10] sm:$0xff]  ;;  %v7120_v57 = vld [vmem:[%s10980_s4 + $0x8] sm:$0xff] }
  0x16   :  { %v928_v54 = vsel %vm289_vm0, %v7095_v52, 0  ;;  %v8008_v55 = vsel %vm289_vm0, %v7125_v53, 0  ;;  %v7071_v58 = vld [vmem:[%s10977_s1 + $0x80] sm:$0xff]  ;;  %v7072_v61 = vld [vmem:[%s10977_s1 + $0x88] sm:$0xff]  ;;  %v7110_v6 = vld [vmem:[%s10978_s2 + $0xb8] sm:$0xff] }
  0x17   :  { %566 = vmatpush.bf16.xpose.msrb.mxu2 %v8008_v55  ;;  %v7461_v62 = vld [vmem:[%s10982_s6] ss:$0 sm:$0xff]  ;;  %v1035_v7 = vsel %vm289_vm0, %v7110_v6, 0  ;;  %v7074_v14 = vld [vmem:[%s10977_s1 + $0x98] sm:$0xff]  ;;  %v7105_v29 = vld [vmem:[%s10978_s2 + $0x90] sm:$0xff] }
  0x18   :  { %6477 = vmatmul.msk.bf16.vlgmr.msra.gmra.mxu1 %vm289_vm0, %v7063_v25  ;;  %v7067_v9 = vld [vmem:[%s10977_s1 + $0x60] sm:$0xff]  ;;  %v7076_v32 = vld [vmem:[%s10977_s1 + $0xa8] sm:$0xff] }
  0x19   :  { %951 = vmatpush.bf16.xpose.msrb.mxu1 %v949_v28  ;;  %6481 = vmatmul.msk.bf16.vlgmr.msra.gmra.mxu3 %vm289_vm0, %v7067_v9  ;;  %v7075_v23 = vld [vmem:[%s10977_s1 + $0xa0] sm:$0xff]  ;;  %v7069_v28 = vld [vmem:[%s10977_s1 + $0x70] sm:$0xff]  ;;  %v7080_v9 = vld [vmem:[%s10977_s1 + $0xc8] sm:$0xff] }
  0x1a   :  { %v7103_v53 = vld [vmem:[%s10978_s2 + $0x80] sm:$0xff] }
  0x1b   :  { %867 = vmatpush.bf16.xpose.msrb.mxu0 %v857_v8 }
  0x1c   :  { %6434 = vmatmul.msk.bf16.gmra.mxu0 %vm289_vm0, %v7056_v10  ;;  %v7109_v10 = vld [vmem:[%s10978_s2 + $0xb0] sm:$0xff] }
  0x1f   :  { %1037 = vmatpush.bf16.xpose.msra.mxu2 %v1035_v7 }
  0x21   :  { %952 = vmatpush.bf16.xpose.msrb.mxu1 %v946_v30  ;;  %v1020_v30 = vsel %vm289_vm0, %v7105_v29, 0 }
  0x22   :  { %6438 = vmatmul.msk.bf16.gmra.mxu2 %vm289_vm0, %v7060_v33 }
  0x23   :  { %868 = vmatpush.bf16.xpose.msrb.mxu0 %v854_v11 }
  0x28   :  { %6478 = vmatmul.msk.bf16.gmra.mxu1 %vm289_vm0, %v7064_v31 }
  0x29   :  { %953 = vmatpush.bf16.xpose.msrb.mxu1 %v943_v34 }
  0x2b   :  { %869 = vmatpush.bf16.xpose.msrb.mxu0 %v851_v13  ;;  %v1032_v13 = vsel %vm289_vm0, %v7109_v10, 0 }
  0x2c   :  { %6435 = vmatmul.msk.bf16.gmra.mxu0 %vm289_vm0, %v7057_v15  ;;  %1038 = vmatpush.bf16.xpose.msra.mxu2 %v1032_v13 }
  0x31   :  { %954 = vmatpush.bf16.xpose.msrb.mxu1 %v940_v37 }
  0x32   :  { %6439 = vmatmul.msk.bf16.gmra.mxu2 %vm289_vm0, %v7061_v41 }
  0x33   :  { %870 = vmatpush.bf16.xpose.msrb.mxu0 %v848_v16 }
  0x38   :  { %6479 = vmatmul.msk.bf16.gmra.mxu1 %vm289_vm0, %v7065_v39  ;;  %v7077_v39 = vld [vmem:[%s10977_s1 + $0xb0] sm:$0xff] }
  0x39   :  { %955 = vmatpush.bf16.xpose.msrb.mxu1 %v937_v42 }
  0x3b   :  { %871 = vmatpush.bf16.xpose.msrb.mxu0 %v845_v18  ;;  %v7108_v18 = vld [vmem:[%s10978_s2 + $0xa8] sm:$0xff] }
  0x3c   :  { %6436 = vmatmul.msk.bf16.gmra.mxu0 %vm289_vm0, %v7058_v20  ;;  %v1029_v19 = vsel %vm289_vm0, %v7108_v18, 0  ;;  %v7068_v20 = vld [vmem:[%s10977_s1 + $0x68] sm:$0xff] }
  0x3d   :  { %1039 = vmatpush.bf16.xpose.msra.mxu2 %v1029_v19  ;;  %6482 = vmatmul.msk.bf16.gmra.mxu3 %vm289_vm0, %v7068_v20 }
  0x41   :  { %956 = vmatpush.bf16.xpose.msrb.mxu1 %v934_v45  ;;  %v7078_v45 = vld [vmem:[%s10977_s1 + $0xb8] sm:$0xff] }
  0x42   :  { %6440 = vmatmul.msk.bf16.gmra.mxu2 %vm289_vm0, %v7062_v49 }
  0x43   :  { %872 = vmatpush.bf16.xpose.msrb.mxu0 %v842_v21  ;;  %v7107_v21 = vld [vmem:[%s10978_s2 + $0xa0] sm:$0xff] }
  0x48   :  { %6480 = vmatmul.msk.bf16.gmra.mxu1 %vm289_vm0, %v7066_v47  ;;  %v7104_v47 = vld [vmem:[%s10978_s2 + $0x88] sm:$0xff] }
  0x49   :  { %957 = vmatpush.bf16.xpose.msrb.mxu1 %v931_v50  ;;  %v1017_v48 = vsel %vm289_vm0, %v7104_v47, 0  ;;  %v7070_v50 = vld [vmem:[%s10977_s1 + $0x78] sm:$0xff] }
  0x4b   :  { %1172 = vmatpush.bf16.xpose.msra.mxu0 %v315_v2  ;;  %v7073_v2 = vld [vmem:[%s10977_s1 + $0x90] sm:$0xff] }
  0x4c   :  { %6609 = vmatmul.msk.bf16.vlgmr.msrb.gmra.mxu0 %vm289_vm0, %v7119_v22 }
  0x4d   :  { %6483 = vmatmul.msk.bf16.gmra.mxu3 %vm289_vm0, %v7069_v28 }
  0x51   :  { %958 = vmatpush.bf16.xpose.msrb.mxu1 %v928_v54  ;;  %v1014_v54 = vsel %vm289_vm0, %v7103_v53, 0 }
  0x52   :  { %6521 = vmatmul.msk.bf16.vlgmr.msrb.gmra.mxu2 %vm289_vm0, %v7071_v58  ;;  %v7126_v58 = vld [vmem:[%s10981_s5 + $0x18] sm:$0xff] }
  0x58   :  { %6646 = vmatmul.msk.bf16.vlgmr.msrb.gmra.mxu1 %vm289_vm0, %v7120_v57 }
  0x59   :  { %1186 = vmatpush.bf16.xpose.msra.mxu1 %v436_v24  ;;  %v7106_v24 = vld [vmem:[%s10978_s2 + $0x98] sm:$0xff] }
  0x5a   :  { %v1023_v25 = vsel %vm289_vm0, %v7106_v24, 0  ;;  %v7081_v24 = vld [vmem:[%s10977_s1 + $0xd0] sm:$0xff] }
  0x5c   :  { %6721 = vmatmul.msk.bf16.vlgmr.msra.gmra.mxu0 %vm289_vm0, %v7119_v22  ;;  %v1026_v22 = vsel %vm289_vm0, %v7107_v21, 0 }
  0x5d   :  { %1040 = vmatpush.bf16.xpose.msra.mxu2 %v1026_v22  ;;  %6484 = vmatmul.msk.bf16.gmra.mxu3 %vm289_vm0, %v7070_v50  ;;  %v8194_v22 = vld [vmem:[%s10982_s6 + $0x1] ss:$0 sm:$0xff] }
  0x62   :  { %6522 = vmatmul.msk.bf16.gmra.mxu2 %vm289_vm0, %v7072_v61  ;;  %v7121_v61 = vld [vmem:[%s10980_s4 + $0x10] sm:$0xff] }
  0x65   :  { %1041 = vmatpush.bf16.xpose.msra.mxu2 %v1023_v25 }
  0x68   :  { %6722 = vmatmul.msk.bf16.vlgmr.msra.gmra.mxu1 %vm289_vm0, %v7120_v57 }
  0x6d   :  { %1042 = vmatpush.bf16.xpose.msra.mxu2 %v1020_v30 }
  0x72   :  { %6523 = vmatmul.msk.bf16.gmra.mxu2 %vm289_vm0, %v7073_v2 }
  0x75   :  { %1043 = vmatpush.bf16.xpose.msra.mxu2 %v1017_v48 }
  0x7d   :  { %1044 = vmatpush.bf16.xpose.msra.mxu2 %v1014_v54  ;;  %v7082_v54 = vld [vmem:[%s10977_s1 + $0xd8] sm:$0xff] }
  0x82   :  { %6524 = vmatmul.msk.bf16.gmra.mxu2 %vm289_vm0, %v7074_v14 }
  0x85   :  { %1200 = vmatpush.bf16.xpose.msrb.mxu2 %v8008_v55 }
  0x89   :  { %v7958_v35 = vpop.f32.mrf.mxu0 }
  0x91   :  { %v7964_v38 = vpop.f32.mrf.mxu0 }
  0x92   :  { %6525 = vmatmul.msk.bf16.gmra.mxu2 %vm289_vm0, %v7075_v23 }
  0x95   :  { %v8087_v26 = vpop.f32.mrf.mxu2  ;;  %v8089_v27 = vpop.f32.mrf.mxu1 }
  0x99   :  { %v7978_v43 = vpop.f32.mrf.mxu0 }
  0x9d   :  { %v8099_v31 = vpop.f32.mrf.mxu2  ;;  %v8104_v33 = vpop.f32.mrf.mxu1 }
  0xa1   :  { %v7984_v46 = vpop.f32.mrf.mxu0 }
  0xa2   :  { %6526 = vmatmul.msk.bf16.gmra.mxu2 %vm289_vm0, %v7076_v32  ;;  %v7118_v32 = vld [vmem:[%s10978_s2 + $0xf8] sm:$0xff] }
  0xa5   :  { %v8107_v34 = vpop.f32.mrf.mxu2  ;;  %v8109_v36 = vpop.f32.mrf.mxu1 }
  0xa9   :  { %v7998_v51 = vpop.f32.mrf.mxu0 }
  0xad   :  { %v8111_v37 = vpop.f32.mrf.mxu2  ;;  %v8117_v40 = vpop.f32.mrf.mxu1 }
  0xb1   :  { %v8011_v56 = vpop.f32.mrf.mxu0 }
  0xb2   :  { %6527 = vmatmul.msk.bf16.gmra.mxu2 %vm289_vm0, %v7077_v39 }
  0xb5   :  { %v8119_v41 = vpop.f32.mrf.mxu2  ;;  %v8123_v44 = vpop.f32.mrf.mxu1 }
  0xb9   :  { %v8021_v59 = vpop.f32.mrf.mxu0 }
  0xbd   :  { %v8121_v42 = vpop.f32.mrf.mxu2  ;;  %v8138_v52 = vpop.f32.mrf.mxu1 }
  0xc1   :  { %v8023_v60 = vpop.f32.mrf.mxu0 }
  0xc2   :  { %6528 = vmatmul.msk.bf16.gmra.mxu2 %vm289_vm0, %v7078_v45  ;;  %v7117_v45 = vld [vmem:[%s10978_s2 + $0xf0] sm:$0xff] }
  0xc3   :  { %v1118_v50 = vsel %vm289_vm0, %v7117_v45, 0 }
  0xc5   :  { %v8133_v49 = vpop.f32.mrf.mxu2 }
  0xc9   :  { %v874_v63 = vpop.f32.mrf.mxu0 }
  0xca   :  { %v1137_v0 = vmul.f32 0.17677669, %v874_v63  ;;  %v8157_v63 = vpop.f32.mrf.mxu1 }
  0xcc   :  { %v8033_v1 = vadd.f32 %v7461_v62, %v1137_v0  ;;  %v7079_v0 = vld [vmem:[%s10977_s1 + $0xc0] sm:$0xff] }
  0xcd   :  { %v8146_v57 = vpop.f32.mrf.mxu2 }
  0xce   :  { %1934 = vmax.xlane.f32.xlu2 %v8033_v1 }
  0xd1   :  { %v876_v3 = vpop.f32.mrf.mxu0 }
  0xd2   :  { %v1138_v4 = vmul.f32 0.17677669, %v876_v3  ;;  %6683 = vmatmul.msk.bf16.vlgmr.msra.gmra.mxu2 %vm289_vm0, %v7121_v61  ;;  %v8167_v2 = vpop.f32.mrf.mxu1 }
  0xd4   :  { %v8039_v5 = vadd.f32 %v7461_v62, %v1138_v4  ;;  %v8155_v62 = vsel %vm289_vm0, %v7126_v58, 0 }
  0xd5   :  { %687 = vmatpush.bf16.xpose.msrb.mxu3 %v8155_v62  ;;  %v8161_v55 = vpop.f32.mrf.mxu2 }
  0xd6   :  { %1936 = vmax.xlane.f32.xlu2 %v8039_v5  ;;  %11091 = vst [vmem:[#allocation5_spill] sm:$0xff] %v8161_v55 }
  0xd9   :  { %v1174_v8 = vpop.f32.mrf.mxu0 }
  0xda   :  { %v8053_v11 = vmul.f32 0.17677669, %v1174_v8  ;;  %v8178_v10 = vpop.f32.mrf.mxu1 }
  0xdc   :  { %v2006_v12 = vsel %vm1229_vm1, %v8053_v11, -inf  ;;  %6565 = vmatmul.msk.bf16.vlgmr.msrb.gmra.mxu3 %vm289_vm0, %v7079_v0  ;;  %v7116_v0 = vld [vmem:[%s10978_s2 + $0xe8] sm:$0xff] }
  0xdd   :  { %2007 = vmax.xlane.f32.xlu0 %v2006_v12  ;;  %v8169_v3 = vpop.f32.mrf.mxu2 }
  0xde   :  { %11092 = vst [vmem:[#allocation6_spill] sm:$0xff] %v8169_v3 }
  0xe1   :  { %v1176_v15 = vpop.f32.mrf.mxu0 }
  0xe2   :  { %v8062_v16 = vmul.f32 0.17677669, %v1176_v15  ;;  %6723 = vmatmul.msk.bf16.vlgmr.msrb.gmra.mxu2 %vm289_vm0, %v7121_v61  ;;  %v962_v19 = vpop.f32.mrf.mxu1  ;;  %v7301_v61 = vld [vmem:[%s10979_s3 + $0x38] sm:$0xff]  }
  0xe4   :  { %v2009_v17 = vsel %vm1229_vm1, %v8062_v16, -inf }
  0xe5   :  { %2010 = vmax.xlane.f32.xlu0 %v2009_v17  ;;  %v8173_v8 = vpop.f32.mrf.mxu2 }
  0xe6   :  { %11093 = vst [vmem:[#allocation7_spill] sm:$0xff] %v8173_v8 }
  0xec   :  { %6566 = vmatmul.msk.bf16.gmra.mxu3 %vm289_vm0, %v7080_v9  ;;  %v7300_v9 = vld [vmem:[%s10979_s3 + $0x30] sm:$0xff]  }
  0xed   :  { %v8185_v15 = vpop.f32.mrf.mxu2 }
  0xee   :  { %11094 = vst [vmem:[#allocation8_spill] sm:$0xff] %v8185_v15 }
  0xf5   :  { %v8196_v23 = vpop.f32.mrf.mxu2 }
  0xf6   :  { %11095 = vst [vmem:[#allocation9_spill] sm:$0xff] %v8196_v23 }
  0xfc   :  { %6567 = vmatmul.msk.bf16.gmra.mxu3 %vm289_vm0, %v7081_v24 }
  0xfd   :  { %v8218_v47 = vpop.f32.mrf.mxu2 }
  0xfe   :  { %11096 = vst [vmem:[#allocation10_spill] sm:$0xff] %v8218_v47 }
 0x105   :  { %v8228_v58 = vpop.f32.mrf.mxu2 }
 0x106   :  { %11097 = vst [vmem:[#allocation11_spill] sm:$0xff] %v8228_v58 }
 0x10c   :  { %6568 = vmatmul.msk.bf16.gmra.mxu3 %vm289_vm0, %v7082_v54 }
 0x141   :  { %v1935_v4 = vpop.xlane.xlu2 %1934 }
 0x142   :  { %v1950_v6 = vsub.f32 %v8033_v1, %v1935_v4  ;;  %v7158_v4 = vunpack.c.h.bf16 %v7301_v61 }
 0x144   :  { %v1958_v7 = vmul.f32 1.442695, %v1950_v6  ;;  %v7157_v6 = vunpack.c.l.bf16 %v7301_v61  ;;  %2262 = vmatpush.msrb.mxu0 %v7158_v4 }
 0x146   :  { %7469 = vpow2.f32 %v1958_v7  ;;  %v1115_v7 = vsel %vm289_vm0, %v7116_v0, 0  ;;  %2263 = vmatpush.msrb.mxu0 %v7157_v6  ;;  %v7296_v0 = vld [vmem:[%s10979_s3 + $0x10] sm:$0xff]  }
 0x147   :  { %v7138_v4 = vunpack.c.h.bf16 %v7296_v0 }
 0x149   :  { %v1937_v12 = vpop.xlane.xlu2 %1936 }
 0x14a   :  { %v1951_v13 = vsub.f32 %v8039_v5, %v1937_v12  ;;  %v1140_v5 = vmul.f32 0.17677669, %v962_v19  ;;  %v7299_v12 = vld [vmem:[%s10979_s3 + $0x28] sm:$0xff]  }
 0x14b   :  { %v7150_v19 = vunpack.c.h.bf16 %v7299_v12  ;;  %v7149_v24 = vunpack.c.l.bf16 %v7299_v12 }
 0x14c   :  { %v8182_v14 = vpop.eup %7469  ;;  %v1960_v1 = vmul.f32 1.442695, %v1951_v13  ;;  %v8203_v28 = vadd.f32 %v8194_v22, %v1140_v5  ;;  %v7115_v13 = vld [vmem:[%s10978_s2 + $0xe0] sm:$0xff]  ;;  %v8250_v5 = vpop.f32.mrf.mxu2 }
 0x14d   :  { %1974 = vadd.xlane.f32.xlu0 %v8182_v14  ;;  %11098 = vst [vmem:[#allocation12_spill] sm:$0xff] %v8250_v5 }
 0x14e   :  { %7471 = vpow2.f32 %v1960_v1  ;;  %v7154_v1 = vunpack.c.h.bf16 %v7300_v9 }
 0x150   :  { %v2008_v17 = vpop.xlane.xlu0 %2007  ;;  %2264 = vmatpush.msrb.mxu0 %v7154_v1  ;;  %v7085_v1 = vld [vmem:[%s10977_s1 + $0xf0] sm:$0xff] }
 0x151   :  { %v2030_v18 = vsub.f32 %v8053_v11, %v2008_v17  ;;  %v7153_v17 = vunpack.c.l.bf16 %v7300_v9 }
 0x153   :  { %v2038_v20 = vmul.f32 1.442695, %v2030_v18  ;;  %v8247_v18 = vpop.f32.mrf.mxu3  ;;  %2265 = vmatpush.msrb.mxu0 %v7153_v17 }
 0x154   :  { %v8188_v21 = vpop.eup %7471  ;;  %v8268_v61 = vpop.f32.mrf.mxu2 }
 0x155   :  { %7473 = vpow2.f32 %v2038_v20  ;;  %1976 = vadd.xlane.f32.xlu2 %v8188_v21  ;;  %v1112_v20 = vsel %vm289_vm0, %v7115_v13, 0  ;;  %2266 = vmatpush.msrb.mxu0 %v7150_v19  ;;  %11099 = vst [vmem:[#allocation13_spill] sm:$0xff] %v8268_v61 }
 0x157   :  { %2267 = vmatpush.msrb.mxu0 %v7149_v24  ;;  %v7295_v24 = vld [vmem:[%s10979_s3 + $0x8] sm:$0xff]  }
 0x158   :  { %v2011_v11 = vpop.xlane.xlu0 %2010 }
 0x159   :  { %v2031_v25 = vsub.f32 %v8062_v16, %v2011_v11  ;;  %v1121_v16 = vsel %vm289_vm0, %v7118_v32, 0  ;;  %v7083_v11 = vld [vmem:[%s10977_s1 + $0xe0] sm:$0xff] }
 0x15a   :  { %1123 = vmatpush.bf16.xpose.msra.mxu3 %v1121_v16  ;;  %v7114_v16 = vld [vmem:[%s10978_s2 + $0xd8] sm:$0xff] }
 0x15b   :  { %v8205_v29 = vpop.eup %7473  ;;  %v2040_v30 = vmul.f32 1.442695, %v2031_v25  ;;  %v7298_v25 = vld [vmem:[%s10979_s3 + $0x20] sm:$0xff]   ;;  %6569 = vmatmul.msk.bf16.gmra.mxu3 %vm289_vm0, %v7083_v11  ;;  %v8265_v45 = vpop.f32.mrf.mxu3  ;;  %v7134_v11 = vunpack.c.h.bf16 %v7295_v24 }
 0x15c   :  { %v2054_v39 = vsel %vm1229_vm1, %v8205_v29, 0.0  ;;  %v7145_v32 = vunpack.c.l.bf16 %v7298_v25  ;;  %v8278_v9 = vpop.f32.mrf.mxu2 }
 0x15d   :  { %7475 = vpow2.f32 %v2040_v30  ;;  %2055 = vadd.xlane.f32.xlu1 %v2054_v39  ;;  %1940 = vmax.xlane.f32.xlu2 %v8203_v28  ;;  %v7146_v30 = vunpack.c.h.bf16 %v7298_v25  ;;  %v7297_v39 = vld [vmem:[%s10979_s3 + $0x18] sm:$0xff]   ;;  %11100 = vst [vmem:[#allocation14_spill] sm:$0xff] %v8278_v9  ;;  %v7113_v25 = vld [vmem:[%s10978_s2 + $0xd0] sm:$0xff] }
 0x15e   :  { %v7141_v54 = vunpack.c.l.bf16 %v7297_v39 }
 0x15f   :  { %2268 = vmatpush.msrb.mxu0 %v7146_v30  ;;  %v7133_v30 = vunpack.c.l.bf16 %v7295_v24  ;;  %v7111_v24 = vld [vmem:[%s10978_s2 + $0xc0] sm:$0xff] }
 0x161   :  { %2269 = vmatpush.msrb.mxu0 %v7145_v32  ;;  %v7128_v32 = vld [vmem:[%s10979_s3] sm:$0xff]  }
 0x162   :  { %1124 = vmatpush.bf16.xpose.msra.mxu3 %v1118_v50  ;;  %v7142_v50 = vunpack.c.h.bf16 %v7297_v39  ;;  %v1106_v39 = vsel %vm289_vm0, %v7113_v25, 0 }
 0x163   :  { %v8220_v48 = vpop.eup %7475  ;;  %v8273_v6 = vpop.f32.mrf.mxu3 }
 0x164   :  { %v2057_v53 = vsel %vm1229_vm1, %v8220_v48, 0.0  ;;  %2270 = vmatpush.msrb.mxu0 %v7142_v50  ;;  %v8283_v13 = vpop.f32.mrf.mxu2 }
 0x165   :  { %2058 = vadd.xlane.f32.xlu1 %v2057_v53  ;;  %v1109_v53 = vsel %vm289_vm0, %v7114_v16, 0  ;;  %11102 = vst [vmem:[#allocation16_spill] sm:$0xff] %v8283_v13  ;;  %v7130_v16 = vunpack.c.h.bf16 %v7128_v32 }
 0x166   :  { %2271 = vmatpush.msrb.mxu0 %v7141_v54  ;;  %v7129_v54 = vunpack.c.l.bf16 %v7128_v32 }
 0x168   :  { %2272 = vmatpush.msrb.mxu0 %v7138_v4  ;;  %v7112_v4 = vld [vmem:[%s10978_s2 + $0xc8] sm:$0xff] }
 0x16a   :  { %1125 = vmatpush.bf16.xpose.msra.mxu3 %v1115_v7  ;;  %v7084_v7 = vld [vmem:[%s10977_s1 + $0xe8] sm:$0xff] }
 0x16b   :  { %6570 = vmatmul.msk.bf16.gmra.mxu3 %vm289_vm0, %v7084_v7  ;;  %v8281_v12 = vpop.f32.mrf.mxu3  ;;  %v1103_v7 = vsel %vm289_vm0, %v7112_v4, 0 }
 0x16c   :  { %11101 = vst [vmem:[#allocation15_spill] sm:$0xff] %v8281_v12  ;;  %v8291_v19 = vpop.f32.mrf.mxu2 }
 0x16d   :  { %11104 = vst [vmem:[#allocation18_spill] sm:$0xff] %v8291_v19 }
 0x172   :  { %1126 = vmatpush.bf16.xpose.msra.mxu3 %v1112_v20  ;;  %v7137_v20 = vunpack.c.l.bf16 %v7296_v0  ;;  %v7086_v0 = vld [vmem:[%s10977_s1 + $0xf8] sm:$0xff] }
 0x173   :  { %v8288_v17 = vpop.f32.mrf.mxu3 }
 0x174   :  { %11103 = vst [vmem:[#allocation17_spill] sm:$0xff] %v8288_v17  ;;  %2273 = vmatpush.msrb.mxu0 %v7137_v20 }
 0x176   :  { %2274 = vmatpush.msrb.mxu0 %v7134_v11  ;;  %v1100_v11 = vsel %vm289_vm0, %v7111_v24, 0 }
 0x178   :  { %2275 = vmatpush.msrb.mxu0 %v7133_v30  ;;  %v7122_v30 = vld [vmem:[%s10980_s4 + $0x18] sm:$0xff] }
 0x17a   :  { %1127 = vmatpush.bf16.xpose.msra.mxu3 %v1109_v53  ;;  %v8305_v53 = vpop.f32.mrf.mxu2  ;;  %2276 = vmatpush.msrb.mxu0 %v7130_v16 }
 0x17b   :  { %6571 = vmatmul.msk.bf16.gmra.mxu3 %vm289_vm0, %v7085_v1  ;;  %v8303_v50 = vpop.f32.mrf.mxu3  ;;  %11106 = vst [vmem:[#allocation20_spill] sm:$0xff] %v8305_v53 }
 0x17c   :  { %11105 = vst [vmem:[#allocation19_spill] sm:$0xff] %v8303_v50  ;;  %2277 = vmatpush.msrb.mxu0 %v7129_v54 }
 0x182   :  { %1128 = vmatpush.bf16.xpose.msra.mxu3 %v1106_v39  ;;  %v8317_v20 = vpop.f32.mrf.mxu2 }
 0x183   :  { %v8315_v1 = vpop.f32.mrf.mxu3  ;;  %11108 = vst [vmem:[#allocation22_spill] sm:$0xff] %v8317_v20 }
 0x184   :  { %11107 = vst [vmem:[#allocation21_spill] sm:$0xff] %v8315_v1 }
 0x18a   :  { %1129 = vmatpush.bf16.xpose.msra.mxu3 %v1103_v7  ;;  %v8329_v32 = vpop.f32.mrf.mxu2 }
 0x18b   :  { %6572 = vmatmul.msk.bf16.gmra.mxu3 %vm289_vm0, %v7086_v0  ;;  %v8324_v25 = vpop.f32.mrf.mxu3  ;;  %11110 = vst [vmem:[#allocation24_spill] sm:$0xff] %v8329_v32 }
 0x18c   :  { %11109 = vst [vmem:[#allocation23_spill] sm:$0xff] %v8324_v25 }
 0x192   :  { %1130 = vmatpush.bf16.xpose.msra.mxu3 %v1100_v11  ;;  %v8334_v54 = vpop.f32.mrf.mxu2 }
 0x193   :  { %v8332_v39 = vpop.f32.mrf.mxu3  ;;  %11112 = vst [vmem:[#allocation26_spill] sm:$0xff] %v8334_v54 }
 0x194   :  { %11111 = vst [vmem:[#allocation25_spill] sm:$0xff] %v8332_v39 }
 0x19a   :  { %1214 = vmatpush.bf16.xpose.msrb.mxu3 %v8155_v62  ;;  %v8340_v11 = vpop.f32.mrf.mxu2 }
 0x19b   :  { %6720 = vmatmul.msk.bf16.vlgmr.msra.gmra.mxu3 %vm289_vm0, %v7122_v30  ;;  %v8336_v4 = vpop.f32.mrf.mxu3 }
 0x19c   :  { %11113 = vst [vmem:[#allocation27_spill] sm:$0xff] %v8336_v4 }
 0x1a2   :  { %v1048_v19 = vpop.f32.mrf.mxu2 }
 0x1a3   :  { %v8342_v32 = vpop.f32.mrf.mxu3 }
 0x1a4   :  { %11114 = vst [vmem:[#allocation28_spill] sm:$0xff] %v8342_v32 }
 0x1ab   :  { %6724 = vmatmul.msk.bf16.vlgmr.msrb.gmra.mxu3 %vm289_vm0, %v7122_v30 }
 0x1c0   :  { %v1975_v16 = vpop.xlane.xlu0 %1974 }
 0x1c1   :  { %7477 = vrcp.f32 %v1975_v16 }
 0x1c7   :  { %v7478_v0 = vpop.eup %7477 }
 0x1c8   :  { %v1977_v62 = vpop.xlane.xlu2 %1976  ;;  %v1998_v7 = vmul.f32 %v7478_v0, %v8182_v14  ;;  %v8346_v0 = vpop.f32.mrf.mxu3 }
 0x1c9   :  { %7479 = vrcp.f32 %v1977_v62  ;;  %11115 = vst [vmem:[#allocation29_spill] sm:$0xff] %v8346_v0 }
 0x1ca   :  { %2278 = vmatmul.f32.vlgmr.msrb.gmra.mxu0 %v1998_v7 }
 0x1cf   :  { %v7480_v24 = vpop.eup %7479 }
 0x1d0   :  { %v2056_v39 = vpop.xlane.xlu1 %2055  ;;  %v1941_v20 = vpop.xlane.xlu2 %1940  ;;  %v1999_v16 = vmul.f32 %v7480_v24, %v8188_v21 }
 0x1d1   :  { %7481 = vrcp.f32 %v2056_v39  ;;  %v1953_v53 = vsub.f32 %v8203_v28, %v1941_v20  ;;  %v2089_v13 = vand.u32 2147483648, %v2056_v39  ;;  %v2087_v21 = vand.u32 2147483647, %v2056_v39 }
 0x1d2   :  { %2281 = vmatmul.f32.gmra.mxu0 %v1999_v16  ;;  %v1142_v28 = vmul.f32 0.17677669, %v1048_v19  ;;  %vm2083_vm3 = vweird.f32 %v2056_v39  ;;  %v8356_v16 = vpop.f32.mrf.mxu3 }
 0x1d3   :  { %v1964_v4 = vmul.f32 1.442695, %v1953_v53  ;;  %v8354_v53 = vld [vmem:[%s10982_s6 + $0x2] ss:$0 sm:$0xff]  ;;  %v2090_v24 = vor.u32 1.1754944e-38, %v2089_v13  ;;  %11116 = vst [vmem:[#allocation30_spill] sm:$0xff] %v8356_v16 }
 0x1d4   :  { %vm2088_vm5 = vcmp.eq.f32.partialorder %v2087_v21, 8.507059e+37  ;;  %v1162_v61 = vadd.f32 %v8354_v53, %v1142_v28 }
 0x1d5   :  { %7483 = vpow2.f32 %v1964_v4 }
 0x1d7   :  { %v7482_v14 = vpop.eup %7481 }
 0x1d8   :  { %v2079_v62 = vmul.f32 %v7482_v14, %v2056_v39  ;;  %v2059_v30 = vpop.xlane.xlu1 %2058  ;;  %vm2084_vm2 = vweird.f32 %v7482_v14 }
 0x1d9   :  { %7485 = vrcp.f32 %v2059_v30  ;;  %vm2085_vm4 = vmor %vm2083_vm3, %vm2084_vm2  ;;  %v2103_v58 = vand.u32 2147483648, %v2059_v30  ;;  %vm2097_vm7 = vweird.f32 %v2059_v30 }
 0x1da   :  { %v2080_v7 = vsub.f32 1.0, %v2079_v62 }
 0x1db   :  { %v8348_v32 = vpop.eup %7483  ;;  %v2104_v39 = vor.u32 1.1754944e-38, %v2103_v58 }
 0x1dc   :  { %v2081_v9 = vmul.f32 %v7482_v14, %v2080_v7  ;;  %1980 = vadd.xlane.f32.xlu2 %v8348_v32 }
 0x1de   :  { %v2082_v20 = vadd.f32 %v7482_v14, %v2081_v9  ;;  %v2101_v9 = vand.u32 2147483647, %v2059_v30 }
 0x1df   :  { %v7486_v4 = vpop.eup %7485 }
 0x1e0   :  { %v2086_v62 = vsel %vm2085_vm4, %v7482_v14, %v2082_v20  ;;  %v2093_v7 = vmul.f32 %v7486_v4, %v2059_v30  ;;  %vm2098_vm6 = vweird.f32 %v7486_v4  ;;  %vm2102_vm9 = vcmp.eq.f32.partialorder %v2101_v9, 8.507059e+37  ;;  %v8363_v20 = vpop.f32.mrf.mxu3 }
 0x1e1   :  { %v2091_v0 = vsel %vm2088_vm5, %v2090_v24, %v2086_v62  ;;  %vm2099_vm8 = vmor %vm2097_vm7, %vm2098_vm6  ;;  %11117 = vst [vmem:[#allocation31_spill] sm:$0xff] %v8363_v20  ;;  %v1139_v9 = vmul.f32 0.17677669, %v8178_v10 }
 0x1e2   :  { %v8360_v19 = vmul.f32 %v8205_v29, %v2091_v0  ;;  %v2094_v5 = vsub.f32 1.0, %v2093_v7 }
 0x1e4   :  { %v2095_v23 = vmul.f32 %v7486_v4, %v2094_v5  ;;  %2397 = vxpose.xlu0.b32.start [1/2] (short) (narrow) %v8360_v19, 16  ;;  %1944 = vmax.xlane.f32.xlu2 %v1162_v61  ;;  %v2385_v5 = vsel %vm1229_vm1, %v8360_v19, 0.0 }
 0x1e6   :  { %v2096_v13 = vadd.f32 %v7486_v4, %v2095_v23 }
 0x1e8   :  { %v2100_v14 = vsel %vm2099_vm8, %v7486_v4, %v2096_v13  ;;  %v8373_v4 = vpop.f32.mrf.mxu3 }
 0x1e9   :  { %v2105_v21 = vsel %vm2102_vm9, %v2104_v39, %v2100_v14  ;;  %11118 = vst [vmem:[#allocation32_spill] sm:$0xff] %v8373_v4  ;;  %v1159_v39 = vadd.f32 %v8194_v22, %v1139_v9 }
 0x1ea   :  { %v8366_v29 = vmul.f32 %v8220_v48, %v2105_v21 }
 0x1ec   :  { %2398 = vxpose.xlu0.b32.end [2/2] (short) (narrow) %v8366_v29, 16  ;;  %v2386_v0 = vsel %vm1229_vm1, %v8366_v29, 0.0 }
 0x1ed   :  { %v2387_v23 = vadd.f32 %v2386_v0, %v2385_v5 }
 0x1ef   :  { %v2388_v30 = vrot.slane %v2387_v23, 4 }
 0x1f0   :  { %v8377_v13 = vpop.f32.mrf.mxu3 }
 0x1f1   :  { %v2389_v28 = vadd.f32 %v2388_v30, %v2387_v23  ;;  %11119 = vst [vmem:[#allocation33_spill] sm:$0xff] %v8377_v13  ;;  %v1141_v13 = vmul.f32 0.17677669, %v8340_v11 }
 0x1f3   :  { %v2390_v58 = vrot.slane %v2389_v28, 2 }
 0x1f5   :  { %v2391_v24 = vadd.f32 %v2390_v58, %v2389_v28 }
 0x1f7   :  { %v2392_v62 = vrot.slane %v2391_v24, 1 }
 0x1f8   :  { %v8380_v14 = vpop.f32.mrf.mxu3 }
 0x1f9   :  { %v2393_v7 = vadd.f32 %v2392_v62, %v2391_v24  ;;  %11120 = vst [vmem:[#allocation34_spill] sm:$0xff] %v8380_v14 }
 0x1fb   :  { %v2394_v48 = vsel %vm1229_vm1, %v2393_v7, -inf }
 0x1fc   :  { %2395 = vmax.xlane.f32.xlu1 %v2394_v48 }
 0x200   :  { %v8382_v21 = vpop.f32.mrf.mxu3 }
 0x201   :  { %11121 = vst [vmem:[#allocation35_spill] sm:$0xff] %v8382_v21 }
 0x204   :  { %1938 = vmax.xlane.f32.xlu1 %v1159_v39 }
 0x208   :  { %v8384_v5 = vpop.f32.mrf.mxu3 }
 0x209   :  { %11122 = vst [vmem:[#allocation36_spill] sm:$0xff] %v8384_v5 }
 0x210   :  { %v8386_v0 = vpop.f32.mrf.mxu3 }
 0x211   :  { %11123 = vst [vmem:[#allocation37_spill] sm:$0xff] %v8386_v0 }
 0x218   :  { %v8388_v23 = vpop.f32.mrf.mxu3 }
 0x219   :  { %11124 = vst [vmem:[#allocation38_spill] sm:$0xff] %v8388_v23 }
 0x220   :  { %v8390_v30 = vpop.f32.mrf.mxu3 }
 0x221   :  { %11125 = vst [vmem:[#allocation39_spill] sm:$0xff] %v8390_v30  ;;  %v8406_v30 = vld [vmem:[%s10982_s6 + $0x3] ss:$0 sm:$0xff]  ;;  %s7826_s6 = smov 96  }
 0x228   :  { %v8392_v28 = vpop.f32.mrf.mxu3 }
 0x229   :  { %11126 = vst [vmem:[#allocation40_spill] sm:$0xff] %v8392_v28 }
 0x230   :  { %v8394_v10 = vpop.f32.mrf.mxu3 }
 0x231   :  { %11127 = vst [vmem:[#allocation41_spill] sm:$0xff] %v8394_v10 }
 0x238   :  { %v8398_v22 = vpop.f32.mrf.mxu3 }
 0x240   :  { %v1134_v48 = vpop.f32.mrf.mxu3 }
 0x241   :  { %v1144_v23 = vmul.f32 0.17677669, %v1134_v48 }
 0x243   :  { %v8409_v10 = vadd.f32 %v8406_v30, %v1144_v23  ;;  %v8417_v23 = vadd.f32 %v8354_v53, %v1141_v13  ;;  %v7309_v53 = vld [vmem:[%s10979_s3 + $0x78] sm:$0xff]  }
 0x244   :  { %v7189_v13 = vunpack.c.l.bf16 %v7309_v53 }
 0x248   :  { %v8621_v55 = vpop.f32.mrf.mxu3 }
 0x24f   :  { %v8396_v58 = vpop.xlane.xlu2 %1980 }
 0x257   :  { %v1945_v24 = vpop.xlane.xlu2 %1944 }
 0x258   :  { %v1955_v62 = vsub.f32 %v1162_v61, %v1945_v24 }
 0x25a   :  { %v1968_v7 = vmul.f32 1.442695, %v1955_v62 }
 0x25c   :  { %7487 = vpow2.f32 %v1968_v7 }
 0x262   :  { %v8400_v9 = vpop.eup %7487 }
 0x263   :  { %1984 = vadd.xlane.f32.xlu2 %v8400_v9 }
 0x26b   :  { %1948 = vmax.xlane.f32.xlu2 %v8409_v10 }
 0x26f   :  { %v2396_v5 = vpop.xlane.xlu1 %2395 }
 0x270   :  { %7489 = vrcp.f32 %v2396_v5  ;;  %v2440_v14 = vand.u32 2147483648, %v2396_v5  ;;  %vm2434_vm11 = vweird.f32 %v2396_v5 }
 0x276   :  { %v7490_v62 = vpop.eup %7489 }
 0x277   :  { %v1939_v61 = vpop.xlane.xlu1 %1938  ;;  %v2430_v28 = vmul.f32 %v7490_v62, %v2396_v5  ;;  %vm2435_vm10 = vweird.f32 %v7490_v62 }
 0x278   :  { %v1952_v24 = vsub.f32 %v1159_v39, %v1939_v61  ;;  %v2438_v39 = vand.u32 2147483647, %v2396_v5  ;;  %vm2436_vm12 = vmor %vm2434_vm11, %vm2435_vm10  ;;  %v2441_v61 = vor.u32 1.1754944e-38, %v2440_v14 }
 0x279   :  { %v2431_v21 = vsub.f32 1.0, %v2430_v28 }
 0x27a   :  { %v1962_v7 = vmul.f32 1.442695, %v1952_v24  ;;  %vm2439_vm13 = vcmp.eq.f32.partialorder %v2438_v39, 8.507059e+37 }
 0x27b   :  { %v2432_v0 = vmul.f32 %v7490_v62, %v2431_v21 }
 0x27c   :  { %7491 = vpow2.f32 %v1962_v7 }
 0x27d   :  { %v2433_v16 = vadd.f32 %v7490_v62, %v2432_v0  ;;  %v7307_v0 = vld [vmem:[%s10979_s3 + $0x68] sm:$0xff]  }
 0x27e   :  { %v7181_v39 = vunpack.c.l.bf16 %v7307_v0 }
 0x27f   :  { %v2437_v28 = vsel %vm2436_vm12, %v7490_v62, %v2433_v16  ;;  %v7190_v16 = vunpack.c.h.bf16 %v7309_v53  ;;  %v7182_v62 = vunpack.c.h.bf16 %v7307_v0  ;;  %v7303_v0 = vld [vmem:[%s10979_s3 + $0x48] sm:$0xff]  }
 0x280   :  { %v2442_v24 = vsel %vm2439_vm13, %v2441_v61, %v2437_v28  ;;  %v7306_v28 = vld [vmem:[%s10979_s3 + $0x60] sm:$0xff]   ;;  %v7305_v61 = vld [vmem:[%s10979_s3 + $0x58] sm:$0xff]  }
 0x281   :  { %2285 = vmatpush.msrb.mxu1 %v7190_v16  ;;  %v7174_v53 = vunpack.c.h.bf16 %v7305_v61  ;;  %v7304_v16 = vld [vmem:[%s10979_s3 + $0x50] sm:$0xff]  }
 0x282   :  { %v8412_v48 = vpop.eup %7491 }
 0x283   :  { %1978 = vadd.xlane.f32.xlu1 %v8412_v48  ;;  %2286 = vmatpush.msrb.mxu1 %v7189_v13  ;;  %v7173_v13 = vunpack.c.l.bf16 %v7305_v61 }
 0x288   :  { %v2413_v4 = vpop.trf.xlu0 }
 0x289   :  { %v8422_v21 = vmul.f32 %v2442_v24, %v2413_v4  ;;  %v7308_v4 = vld [vmem:[%s10979_s3 + $0x70] sm:$0xff]  }
 0x28a   :  { %v7186_v14 = vunpack.c.h.bf16 %v7308_v4  ;;  %v7185_v5 = vunpack.c.l.bf16 %v7308_v4  ;;  %v7170_v4 = vunpack.c.h.bf16 %v7304_v16 }
 0x28b   :  { %1942 = vmax.xlane.f32.xlu1 %v8417_v23 }
 0x28c   :  { %2287 = vmatpush.msrb.mxu1 %v7186_v14  ;;  %v7169_v14 = vunpack.c.l.bf16 %v7304_v16 }
 0x28e   :  { %2288 = vmatpush.msrb.mxu1 %v7185_v5 }
 0x290   :  { %v2414_v11 = vpop.trf.xlu0  ;;  %2289 = vmatpush.msrb.mxu1 %v7182_v62  ;;  %v7302_v62 = vld [vmem:[%s10979_s3 + $0x40] sm:$0xff]  }
 0x291   :  { %v8420_v7 = vmul.f32 %v2442_v24, %v2414_v11  ;;  %v7178_v24 = vunpack.c.h.bf16 %v7306_v28  ;;  %v7177_v11 = vunpack.c.l.bf16 %v7306_v28  ;;  %v7165_v28 = vunpack.c.l.bf16 %v7303_v0 }
 0x292   :  { %2290 = vmatpush.msrb.mxu1 %v7181_v39  ;;  %v7166_v39 = vunpack.c.h.bf16 %v7303_v0  ;;  %v7162_v61 = vunpack.c.h.bf16 %v7302_v62 }
 0x293   :  { %2465 = vmatpush.msra.mxu0 %v8420_v7 }
 0x294   :  { %2291 = vmatpush.msrb.mxu1 %v7178_v24  ;;  %v7161_v24 = vunpack.c.l.bf16 %v7302_v62 }
 0x295   :  { %2466 = vmatpush.msra.mxu0 %v8422_v21 }
 0x296   :  { %6727 = vmatmul.msk.f32.vlgmr.msra.gmra.mxu0 %vm1229_vm1, %v8360_v19  ;;  %2292 = vmatpush.msrb.mxu1 %v7177_v11 }
 0x298   :  { %2293 = vmatpush.msrb.mxu1 %v7174_v53 }
 0x29a   :  { %2294 = vmatpush.msrb.mxu1 %v7173_v13  ;;  %v8457_v13 = vpop.f32.mrf.mxu1 }
 0x29c   :  { %2295 = vmatpush.msrb.mxu1 %v7170_v4 }
 0x29e   :  { %6728 = vmatmul.msk.f32.gmra.mxu0 %vm1229_vm1, %v8366_v29  ;;  %2296 = vmatpush.msrb.mxu1 %v7169_v14 }
 0x2a0   :  { %2297 = vmatpush.msrb.mxu1 %v7166_v39 }
 0x2a2   :  { %2298 = vmatpush.msrb.mxu1 %v7165_v28  ;;  %v1190_v20 = vpop.f32.mrf.mxu1 }
 0x2a3   :  { %v8462_v14 = vmul.f32 0.17677669, %v1190_v20 }
 0x2a4   :  { %2299 = vmatpush.msrb.mxu1 %v7162_v61 }
 0x2a5   :  { %v2015_v0 = vsel %vm1229_vm1, %v8462_v14, -inf }
 0x2a6   :  { %2300 = vmatpush.msrb.mxu1 %v7161_v24  ;;  %v8469_v24 = vpop.f32.mrf.mxu0 }
 0x2a7   :  { %11128 = vst [vmem:[#allocation42_spill] sm:$0xff] %v8469_v24 }
 0x2d6   :  { %v8448_v5 = vpop.xlane.xlu2 %1984 }
 0x2de   :  { %v1949_v11 = vpop.xlane.xlu2 %1948 }
 0x2df   :  { %v1957_v53 = vsub.f32 %v8409_v10, %v1949_v11 }
 0x2e1   :  { %v1972_v16 = vmul.f32 1.442695, %v1957_v53 }
 0x2e3   :  { %7493 = vpow2.f32 %v1972_v16  ;;  %v2354_v16 = vlaneseq }
 0x2e9   :  { %v8459_v4 = vpop.eup %7493 }
 0x2ea   :  { %1988 = vadd.xlane.f32.xlu2 %v8459_v4 }
 0x2f2   :  { %2016 = vmax.xlane.f32.xlu2 %v2015_v0 }
 0x2f6   :  { %v1979_v62 = vpop.xlane.xlu1 %1978 }
 0x2f7   :  { %7495 = vrcp.f32 %v1979_v62  ;;  %v1143_v62 = vmul.f32 0.17677669, %v8398_v22  ;;  %v10984_v22 = vmov 0.0  }
 0x2f8   :  { %7497 = vrcp.f32 %v8396_v58  ;;  %v8476_v58 = vpop.f32.mrf.mxu0 }
 0x2f9   :  { %11129 = vst [vmem:[#allocation43_spill] sm:$0xff] %v8476_v58  ;;  %v7314_v58 = vld [vmem:[%s10979_s3 + $0xa0] sm:$0xff]  }
 0x2fa   :  { %v7210_v54 = vunpack.c.h.bf16 %v7314_v58 }
 0x2fd   :  { %v7496_v39 = vpop.eup %7495 }
 0x2fe   :  { %v1943_v10 = vpop.xlane.xlu1 %1942  ;;  %v2000_v28 = vmul.f32 %v7496_v39, %v8412_v48  ;;  %v7498_v20 = vpop.eup %7497  ;;  %v8478_v48 = vshrl.u32 %v2354_v16, 7 }
 0x2ff   :  { %v1954_v61 = vsub.f32 %v8417_v23, %v1943_v10  ;;  %v2001_v53 = vmul.f32 %v7498_v20, %v8348_v32  ;;  %v8481_v23 = vadd.f32 %v8406_v30, %v1143_v62  ;;  %v2358_v10 = vand.u32 127, %v2354_v16  ;;  %v7317_v62 = vld [vmem:[%s10979_s3 + $0xb8] sm:$0xff]  }
 0x300   :  { %2301 = vmatmul.f32.vlgmr.msrb.gmra.mxu1 %v2000_v28  ;;  %11130 = vst [vmem:[#allocation44_spill] sm:$0xff] %v8478_v48  ;;  %v8484_v39 = vadd.s32 8, %v8478_v48 }
 0x301   :  { %v1966_v11 = vmul.f32 1.442695, %v1954_v61  ;;  %vm2359_vm15 = vcmp.eq.s32.totalorder %v8478_v48, %v2358_v10 }
 0x302   :  { %11131 = vst [vmem:[#allocation45_spill] sm:$0xff] %v8484_v39  ;;  %vm2360_vm14 = vcmp.eq.s32.totalorder %v8484_v39, %v2358_v10  ;;  %v8495_v61 = vsel %vm2359_vm15, 1.0, %v10984_v22  ;;  %v7316_v10 = vld [vmem:[%s10979_s3 + $0xb0] sm:$0xff]  }
 0x303   :  { %7499 = vpow2.f32 %v1966_v11  ;;  %v8492_v28 = vsel %vm2360_vm14, 1.0, %v10984_v22  ;;  %v8501_v11 = vmul.f32 7.0, %v8495_v61  ;;  %v7222_v22 = vunpack.c.h.bf16 %v7317_v62 }
 0x304   :  { %v8498_v30 = vmul.f32 7.0, %v8492_v28  ;;  %v7218_v39 = vunpack.c.h.bf16 %v7316_v10  ;;  %v7217_v48 = vunpack.c.l.bf16 %v7316_v10 }
 0x305   :  { %2308 = vmatpush.msra.mxu2 %v7222_v22  ;;  %v7313_v22 = vld [vmem:[%s10979_s3 + $0x98] sm:$0xff]  }
 0x306   :  { %v7206_v47 = vunpack.c.h.bf16 %v7313_v22  ;;  %v7205_v10 = vunpack.c.l.bf16 %v7313_v22 }
 0x308   :  { %2304 = vmatmul.f32.gmra.mxu1 %v2001_v53 }
 0x309   :  { %v8472_v0 = vpop.eup %7499 }
 0x30a   :  { %1982 = vadd.xlane.f32.xlu1 %v8472_v0 }
 0x312   :  { %1946 = vmax.xlane.f32.xlu1 %v8481_v23 }
 0x313   :  { %v8488_v32 = vpop.f32.mrf.mxu0 }
 0x314   :  { %v2474_v16 = vsub.f32 %v8501_v11, %v8488_v32 }
 0x31b   :  { %v8503_v20 = vpop.f32.mrf.mxu0 }
 0x31c   :  { %v2475_v53 = vsub.f32 %v8498_v30, %v8503_v20 }
 0x31e   :  { %2496 = vmatpush.msra.mxu1 %v2475_v53  ;;  %v7221_v53 = vunpack.c.l.bf16 %v7317_v62  ;;  %v7209_v62 = vunpack.c.l.bf16 %v7314_v58  ;;  %v7310_v58 = vld [vmem:[%s10979_s3 + $0x80] sm:$0xff]  }
 0x320   :  { %2497 = vmatpush.msra.mxu1 %v2474_v16  ;;  %v7315_v16 = vld [vmem:[%s10979_s3 + $0xa8] sm:$0xff]   ;;  %2309 = vmatpush.msra.mxu2 %v7221_v53 }
 0x321   :  { %6729 = vmatmul.msk.f32.vlgmr.msra.gmra.mxu1 %vm1229_vm1, %v8488_v32  ;;  %v7214_v24 = vunpack.c.h.bf16 %v7315_v16  ;;  %v7213_v8 = vunpack.c.l.bf16 %v7315_v16  ;;  %v7194_v16 = vunpack.c.h.bf16 %v7310_v58 }
 0x322   :  { %2310 = vmatpush.msra.mxu2 %v7218_v39  ;;  %v7312_v39 = vld [vmem:[%s10979_s3 + $0x90] sm:$0xff]  }
 0x323   :  { %v7202_v53 = vunpack.c.h.bf16 %v7312_v39 }
 0x324   :  { %2311 = vmatpush.msra.mxu2 %v7217_v48  ;;  %v7311_v48 = vld [vmem:[%s10979_s3 + $0x88] sm:$0xff]  }
 0x326   :  { %2312 = vmatpush.msra.mxu2 %v7214_v24  ;;  %v7201_v24 = vunpack.c.l.bf16 %v7312_v39 }
 0x328   :  { %2313 = vmatpush.msra.mxu2 %v7213_v8  ;;  %v7198_v8 = vunpack.c.h.bf16 %v7311_v48 }
 0x329   :  { %6730 = vmatmul.msk.f32.gmra.mxu1 %vm1229_vm1, %v8503_v20 }
 0x32a   :  { %2314 = vmatpush.msra.mxu2 %v7210_v54  ;;  %v7197_v54 = vunpack.c.l.bf16 %v7311_v48 }
 0x32c   :  { %2315 = vmatpush.msra.mxu2 %v7209_v62 }
 0x32e   :  { %2316 = vmatpush.msra.mxu2 %v7206_v47  ;;  %v7193_v47 = vunpack.c.l.bf16 %v7310_v58 }
 0x330   :  { %2317 = vmatpush.msra.mxu2 %v7205_v10 }
 0x332   :  { %2318 = vmatpush.msra.mxu2 %v7202_v53 }
 0x334   :  { %2319 = vmatpush.msra.mxu2 %v7201_v24 }
 0x336   :  { %2320 = vmatpush.msra.mxu2 %v7198_v8 }
 0x338   :  { %2321 = vmatpush.msra.mxu2 %v7197_v54 }
 0x33a   :  { %2322 = vmatpush.msra.mxu2 %v7194_v16 }
 0x33c   :  { %2323 = vmatpush.msra.mxu2 %v7193_v47 }
 0x35d   :  { %v8538_v39 = vpop.xlane.xlu2 %1988 }
 0x365   :  { %v2017_v58 = vpop.xlane.xlu2 %2016 }
 0x366   :  { %v2033_v47 = vsub.f32 %v8462_v14, %v2017_v58  ;;  %v7322_v58 = vld [vmem:[%s10979_s3 + $0xe0] sm:$0xff]  }
 0x37d   :  { %v1983_v22 = vpop.xlane.xlu1 %1982  ;;  %v8542_v54 = vpop.f32.mrf.mxu1 }
 0x37e   :  { %7501 = vrcp.f32 %v1983_v22  ;;  %11132 = vst [vmem:[#allocation46_spill] sm:$0xff] %v8542_v54  ;;  %v8550_v22 = vmul.f32 0.17677669, %v8457_v13  ;;  %v7323_v13 = vld [vmem:[%s10979_s3 + $0xe8] sm:$0xff]  }
 0x37f   :  { %7503 = vrcp.f32 %v8448_v5 }
 0x384   :  { %v7502_v62 = vpop.eup %7501 }
 0x385   :  { %v2002_v10 = vmul.f32 %v7502_v62, %v8472_v0  ;;  %v1947_v53 = vpop.xlane.xlu1 %1946  ;;  %v7504_v8 = vpop.eup %7503  ;;  %v2044_v0 = vmul.f32 1.442695, %v2033_v47  ;;  %v7324_v62 = vld [vmem:[%s10979_s3 + $0xf0] sm:$0xff]   ;;  %v7245_v47 = vunpack.c.l.bf16 %v7323_v13 }
 0x386   :  { %v1956_v24 = vsub.f32 %v8481_v23, %v1947_v53  ;;  %v2003_v16 = vmul.f32 %v7504_v8, %v8400_v9  ;;  %v7325_v23 = vld [vmem:[%s10979_s3 + $0xf8] sm:$0xff]   ;;  %v8558_v14 = vpop.f32.mrf.mxu1  ;;  %v7250_v53 = vunpack.c.h.bf16 %v7324_v62  ;;  %v7246_v8 = vunpack.c.h.bf16 %v7323_v13  ;;  %v7320_v13 = vld [vmem:[%s10979_s3 + $0xd0] sm:$0xff]  }
 0x387   :  { %2324 = vmatmul.f32.vlgmr.msra.gmra.mxu2 %v2002_v10  ;;  %v7254_v9 = vunpack.c.h.bf16 %v7325_v23  ;;  %v7253_v10 = vunpack.c.l.bf16 %v7325_v23  ;;  %11133 = vst [vmem:[#allocation47_spill] sm:$0xff] %v8558_v14  ;;  %v7242_v23 = vunpack.c.h.bf16 %v7322_v58 }
 0x388   :  { %v1970_v48 = vmul.f32 1.442695, %v1956_v24  ;;  %v2012_v24 = vsel %vm1229_vm1, %v8550_v22, -inf }
 0x389   :  { %2331 = vmatpush.msra.mxu3 %v7254_v9 }
 0x38a   :  { %7505 = vpow2.f32 %v1970_v48  ;;  %v7249_v48 = vunpack.c.l.bf16 %v7324_v62  ;;  %v7321_v62 = vld [vmem:[%s10979_s3 + $0xd8] sm:$0xff]  }
 0x38b   :  { %7507 = vpow2.f32 %v2044_v0  ;;  %2332 = vmatpush.msra.mxu3 %v7253_v10  ;;  %v7241_v10 = vunpack.c.l.bf16 %v7322_v58 }
 0x38d   :  { %2333 = vmatpush.msra.mxu3 %v7250_v53  ;;  %v8576_v53 = vmul.f32 15.0, %v8492_v28 }
 0x38f   :  { %2327 = vmatmul.f32.gmra.mxu2 %v2003_v16  ;;  %2334 = vmatpush.msra.mxu3 %v7249_v48  ;;  %v8582_v48 = vmul.f32 15.0, %v8495_v61 }
 0x390   :  { %v8546_v5 = vpop.eup %7505 }
 0x391   :  { %1986 = vadd.xlane.f32.xlu1 %v8546_v5  ;;  %v8568_v16 = vpop.eup %7507  ;;  %2335 = vmatpush.msra.mxu3 %v7246_v8  ;;  %v7237_v8 = vunpack.c.l.bf16 %v7321_v62 }
 0x392   :  { %v2063_v9 = vsel %vm1229_vm1, %v8568_v16, 0.0 }
 0x393   :  { %2336 = vmatpush.msra.mxu3 %v7245_v47  ;;  %v7234_v47 = vunpack.c.h.bf16 %v7320_v13 }
 0x395   :  { %2337 = vmatpush.msra.mxu3 %v7242_v23  ;;  %v7233_v23 = vunpack.c.l.bf16 %v7320_v13 }
 0x397   :  { %2338 = vmatpush.msra.mxu3 %v7241_v10 }
 0x399   :  { %2013 = vmax.xlane.f32.xlu1 %v2012_v24  ;;  %v7238_v24 = vunpack.c.h.bf16 %v7321_v62 }
 0x39b   :  { %2339 = vmatpush.msra.mxu3 %v7238_v24 }
 0x39d   :  { %2340 = vmatpush.msra.mxu3 %v7237_v8 }
 0x39e   :  { %v2499_v0 = vpop.f32.mrf.mxu1 }
 0x39f   :  { %v2505_v58 = vsub.f32 %v8582_v48, %v2499_v0  ;;  %2341 = vmatpush.msra.mxu3 %v7234_v47 }
 0x3a1   :  { %2064 = vadd.xlane.f32.xlu1 %v2063_v9  ;;  %v7319_v9 = vld [vmem:[%s10979_s3 + $0xc8] sm:$0xff]   ;;  %2342 = vmatpush.msra.mxu3 %v7233_v23 }
 0x3a2   :  { %v7229_v62 = vunpack.c.l.bf16 %v7319_v9 }
 0x3a6   :  { %v2502_v54 = vpop.f32.mrf.mxu1 }
 0x3a7   :  { %v2506_v14 = vsub.f32 %v8576_v53, %v2502_v54  ;;  %v7230_v54 = vunpack.c.h.bf16 %v7319_v9 }
 0x3a9   :  { %2521 = vmatpush.msrb.mxu2 %v2506_v14  ;;  %2343 = vmatpush.msra.mxu3 %v7230_v54  ;;  %v7318_v14 = vld [vmem:[%s10979_s3 + $0xc0] sm:$0xff]  }
 0x3aa   :  { %v7226_v0 = vunpack.c.h.bf16 %v7318_v14 }
 0x3ab   :  { %2522 = vmatpush.msrb.mxu2 %v2505_v58  ;;  %2344 = vmatpush.msra.mxu3 %v7229_v62 }
 0x3ac   :  { %6731 = vmatmul.msk.f32.vlgmr.msrb.gmra.mxu2 %vm1229_vm1, %v8488_v32  ;;  %v7225_v32 = vunpack.c.l.bf16 %v7318_v14 }
 0x3ad   :  { %2345 = vmatpush.msra.mxu3 %v7226_v0 }
 0x3af   :  { %2346 = vmatpush.msra.mxu3 %v7225_v32  ;;  %v8613_v32 = vmul.f32 13.0, %v8495_v61 }
 0x3b4   :  { %6732 = vmatmul.msk.f32.gmra.mxu2 %vm1229_vm1, %v8503_v20  ;;  %v8596_v20 = vpop.f32.mrf.mxu2 }
 0x3bc   :  { %v8601_v9 = vpop.f32.mrf.mxu2 }
 0x404   :  { %v1987_v10 = vpop.xlane.xlu1 %1986 }
 0x405   :  { %7509 = vrcp.f32 %v1987_v10 }
 0x406   :  { %7511 = vrcp.f32 %v8538_v39 }
 0x40a   :  { %v8605_v0 = vpop.f32.mrf.mxu2 }
 0x40b   :  { %v7510_v24 = vpop.eup %7509  ;;  %11134 = vst [vmem:[#allocation48_spill] sm:$0xff] %v8605_v0 }
 0x40c   :  { %v2004_v13 = vmul.f32 %v7510_v24, %v8546_v5  ;;  %v2014_v8 = vpop.xlane.xlu1 %2013  ;;  %v7512_v23 = vpop.eup %7511 }
 0x40d   :  { %v2032_v47 = vsub.f32 %v8550_v22, %v2014_v8  ;;  %v2005_v54 = vmul.f32 %v7512_v23, %v8459_v4  ;;  %v8610_v22 = vmul.f32 13.0, %v8492_v28 }
 0x40e   :  { %2347 = vmatmul.f32.vlgmr.msra.gmra.mxu3 %v2004_v13 }
 0x40f   :  { %v2042_v58 = vmul.f32 1.442695, %v2032_v47 }
 0x411   :  { %7513 = vpow2.f32 %v2042_v58 }
 0x412   :  { %v8607_v39 = vpop.f32.mrf.mxu2 }
 0x413   :  { %11135 = vst [vmem:[#allocation49_spill] sm:$0xff] %v8607_v39 }
 0x414   :  { %v2065_v13 = vpop.xlane.xlu1 %2064 }
 0x415   :  { %7515 = vrcp.f32 %v2065_v13  ;;  %vm2125_vm3 = vweird.f32 %v2065_v13 }
 0x416   :  { %2350 = vmatmul.f32.gmra.mxu3 %v2005_v54 }
 0x417   :  { %v7514_v62 = vpop.eup %7513 }
 0x418   :  { %v2060_v14 = vsel %vm1229_vm1, %v7514_v62, 0.0 }
 0x419   :  { %2061 = vadd.xlane.f32.xlu0 %v2060_v14  ;;  %v2131_v14 = vand.u32 2147483648, %v2065_v13 }
 0x41b   :  { %v7516_v28 = vpop.eup %7515 }
 0x41c   :  { %v2121_v8 = vmul.f32 %v7516_v28, %v2065_v13  ;;  %vm2126_vm2 = vweird.f32 %v7516_v28 }
 0x41d   :  { %vm2127_vm4 = vmor %vm2125_vm3, %vm2126_vm2 }
 0x41e   :  { %v2122_v47 = vsub.f32 1.0, %v2121_v8 }
 0x420   :  { %v2123_v58 = vmul.f32 %v7516_v28, %v2122_v47 }
 0x422   :  { %v2124_v23 = vadd.f32 %v7516_v28, %v2123_v58 }
 0x42f   :  { %v2524_v5 = vpop.f32.mrf.mxu2 }
 0x430   :  { %v2530_v4 = vsub.f32 %v8613_v32, %v2524_v5  ;;  %v2129_v5 = vand.u32 2147483647, %v2065_v13 }
 0x432   :  { %vm2130_vm5 = vcmp.eq.f32.partialorder %v2129_v5, 8.507059e+37 }
 0x437   :  { %v2527_v10 = vpop.f32.mrf.mxu2 }
 0x438   :  { %v2531_v24 = vsub.f32 %v8610_v22, %v2527_v10 }
 0x43a   :  { %2552 = vmatpush.msrb.mxu3 %v2531_v24 }
 0x43c   :  { %2553 = vmatpush.msrb.mxu3 %v2530_v4  ;;  %v2132_v4 = vor.u32 1.1754944e-38, %v2131_v14 }
 0x43d   :  { %6733 = vmatmul.msk.f32.vlgmr.msrb.gmra.mxu3 %vm1229_vm1, %v8422_v21  ;;  %v2128_v21 = vsel %vm2127_vm4, %v7516_v28, %v2124_v23 }
 0x43e   :  { %v2133_v8 = vsel %vm2130_vm5, %v2132_v4, %v2128_v21 }
 0x43f   :  { %v8624_v15 = vmul.f32 %v8568_v16, %v2133_v8 }
 0x441   :  { %11136 = vst [vmem:[#allocation50_spill] sm:$0xff] %v8624_v15  ;;  %v3316_v5 = vsel %vm1229_vm1, %v8624_v15, 0.0 }
 0x445   :  { %6734 = vmatmul.msk.f32.gmra.mxu3 %vm1229_vm1, %v8420_v7 }
 0x48c   :  { %v2062_v61 = vpop.xlane.xlu0 %2061 }
 0x48d   :  { %7517 = vrcp.f32 %v2062_v61  ;;  %v2117_v7 = vand.u32 2147483648, %v2062_v61  ;;  %v2115_v39 = vand.u32 2147483647, %v2062_v61  ;;  %vm2111_vm7 = vweird.f32 %v2062_v61 }
 0x48f   :  { %v2118_v58 = vor.u32 1.1754944e-38, %v2117_v7  ;;  %vm2116_vm9 = vcmp.eq.f32.partialorder %v2115_v39, 8.507059e+37  ;;  %v1225_v7 = vmul.f32 0.17677669, %v8596_v20  ;;  %v8656_v20 = vmul.f32 0.17677669, %v8011_v56 }
 0x491   :  { %v2018_v8 = vsel %vm1229_vm1, %v1225_v7, -inf }
 0x493   :  { %v7518_v54 = vpop.eup %7517 }
 0x494   :  { %v2107_v10 = vmul.f32 %v7518_v54, %v2062_v61  ;;  %vm2112_vm6 = vweird.f32 %v7518_v54 }
 0x495   :  { %vm2113_vm8 = vmor %vm2111_vm7, %vm2112_vm6 }
 0x496   :  { %v2108_v24 = vsub.f32 1.0, %v2107_v10  ;;  %v8633_v10 = vpop.f32.mrf.mxu3 }
 0x498   :  { %v2109_v0 = vmul.f32 %v7518_v54, %v2108_v24 }
 0x49a   :  { %v2110_v47 = vadd.f32 %v7518_v54, %v2109_v0 }
 0x49c   :  { %v2114_v13 = vsel %vm2113_vm8, %v7518_v54, %v2110_v47 }
 0x49d   :  { %v2119_v28 = vsel %vm2116_vm9, %v2118_v58, %v2114_v13  ;;  %v1226_v58 = vmul.f32 0.17677669, %v8601_v9  ;;  %v1245_v9 = vsel %vm1229_vm1, %v8656_v20, -inf }
 0x49e   :  { %v8626_v23 = vmul.f32 %v7514_v62, %v2119_v28  ;;  %v8636_v24 = vpop.f32.mrf.mxu3 }
 0x49f   :  { %11138 = vst [vmem:[#allocation52_spill] sm:$0xff] %v8636_v24  ;;  %v2021_v13 = vsel %vm1229_vm1, %v1226_v58, -inf }
 0x4a0   :  { %11137 = vst [vmem:[#allocation51_spill] sm:$0xff] %v8626_v23  ;;  %3327 = vxpose.xlu1.b32.start [1/2] (short) (narrow) %v8626_v23, 16  ;;  %v3315_v14 = vsel %vm1229_vm1, %v8626_v23, 0.0 }
 0x4a1   :  { %v3317_v0 = vadd.f32 %v3316_v5, %v3315_v14 }
 0x4a3   :  { %v3318_v61 = vrot.slane %v3317_v0, 4 }
 0x4a5   :  { %v3319_v21 = vadd.f32 %v3318_v61, %v3317_v0  ;;  %v8661_v61 = vmul.f32 0.17677669, %v8121_v42 }
 0x4a6   :  { %v8641_v47 = vpop.f32.mrf.mxu3 }
 0x4a7   :  { %v3320_v16 = vrot.slane %v3319_v21, 2  ;;  %11139 = vst [vmem:[#allocation53_spill] sm:$0xff] %v8641_v47 }
 0x4a8   :  { %3328 = vxpose.xlu1.b32.end [2/2] (short) (narrow) %v8624_v15, 16 }
 0x4a9   :  { %v3321_v39 = vadd.f32 %v3320_v16, %v3319_v21  ;;  %v1269_v21 = vsel %vm1229_vm1, %v8661_v61, -inf  ;;  %v8666_v16 = vmul.f32 0.17677669, %v8133_v49 }
 0x4ab   :  { %v3322_v54 = vrot.slane %v3321_v39, 1 }
 0x4ad   :  { %v3323_v62 = vadd.f32 %v3322_v54, %v3321_v39  ;;  %v1272_v39 = vsel %vm1229_vm1, %v8666_v16, -inf }
 0x4af   :  { %v3324_v4 = vsel %vm1229_vm1, %v3323_v62, -inf }
 0x4b0   :  { %3325 = vmax.xlane.f32.xlu2 %v3324_v4 }
 0x4b8   :  { %2019 = vmax.xlane.f32.xlu2 %v2018_v8 }
 0x4c0   :  { %v2555_v28 = vpop.f32.mrf.mxu3  ;;  %2022 = vmax.xlane.f32.xlu2 %v2021_v13 }
 0x4c1   :  { %v8647_v0 = vmul.f32 0.25, %v2555_v28 }
 0x4c8   :  { %v2558_v14 = vpop.f32.mrf.mxu3 }
 0x4c9   :  { %v8645_v5 = vmul.f32 0.25, %v2558_v14 }
 0x4cb   :  { %2577 = vmatpush.msrb.mxu0 %v8645_v5 }
 0x4cd   :  { %2578 = vmatpush.msrb.mxu0 %v8647_v0 }
 0x4ce   :  { %6735 = vmatmul.msk.f32.vlgmr.msrb.gmra.mxu0 %vm1229_vm1, %v8360_v19 }
 0x4d6   :  { %6736 = vmatmul.msk.f32.gmra.mxu0 %vm1229_vm1, %v8366_v29 }
 0x508   :  { %1246 = vmax.xlane.f32.xlu1 %v1245_v9 }
 0x510   :  { %1270 = vmax.xlane.f32.xlu1 %v1269_v21 }
 0x518   :  { %1273 = vmax.xlane.f32.xlu1 %v1272_v39 }
 0x523   :  { %v8670_v56 = vpop.xlane.xlu2 %3325 }
 0x524   :  { %11140 = vst [vmem:[#allocation54_spill] sm:$0xff] %v8670_v56 }
 0x52b   :  { %v2020_v54 = vpop.xlane.xlu2 %2019 }
 0x52c   :  { %v2034_v62 = vsub.f32 %v1225_v7, %v2020_v54  ;;  %v729_v7 = vmul.f32 0.17677669, %v7958_v35 }
 0x52e   :  { %v2046_v4 = vmul.f32 1.442695, %v2034_v62  ;;  %v1230_v21 = vsel %vm1229_vm1, %v729_v7, -inf  ;;  %v8690_v62 = vmul.f32 0.17677669, %v7978_v43 }
 0x52f   :  { %v8703_v43 = vmul.f32 0.17677669, %v7984_v46 }
 0x530   :  { %7519 = vpow2.f32 %v2046_v4 }
 0x533   :  { %v2023_v8 = vpop.xlane.xlu2 %2022 }
 0x534   :  { %v2035_v42 = vsub.f32 %v1226_v58, %v2023_v8  ;;  %v8683_v58 = vmul.f32 0.17677669, %v7964_v38  ;;  %v1236_v38 = vsel %vm1229_vm1, %v8690_v62, -inf }
 0x536   :  { %v8672_v13 = vpop.eup %7519  ;;  %v2048_v28 = vmul.f32 1.442695, %v2035_v42  ;;  %v1233_v54 = vsel %vm1229_vm1, %v8683_v58, -inf  ;;  %v1239_v42 = vsel %vm1229_vm1, %v8703_v43, -inf }
 0x537   :  { %v2066_v14 = vsel %vm1229_vm1, %v8672_v13, 0.0 }
 0x538   :  { %7521 = vpow2.f32 %v2048_v28  ;;  %2067 = vadd.xlane.f32.xlu2 %v2066_v14  ;;  %v8710_v28 = vmul.f32 0.17677669, %v7998_v51 }
 0x53a   :  { %v1242_v14 = vsel %vm1229_vm1, %v8710_v28, -inf }
 0x53e   :  { %v8676_v49 = vpop.eup %7521 }
 0x53f   :  { %v2069_v9 = vsel %vm1229_vm1, %v8676_v49, 0.0 }
 0x540   :  { %2070 = vadd.xlane.f32.xlu2 %v2069_v9  ;;  %v8715_v9 = vmul.f32 0.17677669, %v8021_v59 }
 0x542   :  { %v1248_v46 = vsel %vm1229_vm1, %v8715_v9, -inf }
 0x548   :  { %1231 = vmax.xlane.f32.xlu2 %v1230_v21 }
 0x54b   :  { %v8685_v39 = vpop.f32.mrf.mxu0 }
 0x54c   :  { %v2586_v8 = vsub.f32 %v8501_v11, %v8685_v39 }
 0x550   :  { %1234 = vmax.xlane.f32.xlu2 %v1233_v54 }
 0x553   :  { %v8692_v4 = vpop.f32.mrf.mxu0 }
 0x554   :  { %v2587_v35 = vsub.f32 %v8498_v30, %v8692_v4 }
 0x556   :  { %2608 = vmatpush.msrb.mxu1 %v2587_v35 }
 0x558   :  { %2609 = vmatpush.msrb.mxu1 %v2586_v8  ;;  %1237 = vmax.xlane.f32.xlu2 %v1236_v38 }
 0x559   :  { %6737 = vmatmul.msk.f32.vlgmr.msrb.gmra.mxu1 %vm1229_vm1, %v8685_v39 }
 0x560   :  { %1240 = vmax.xlane.f32.xlu2 %v1239_v42 }
 0x561   :  { %6738 = vmatmul.msk.f32.gmra.mxu1 %vm1229_vm1, %v8692_v4 }
 0x568   :  { %1243 = vmax.xlane.f32.xlu2 %v1242_v14 }
 0x570   :  { %1249 = vmax.xlane.f32.xlu2 %v1248_v46 }
 0x5ab   :  { %v2068_v21 = vpop.xlane.xlu2 %2067 }
 0x5ac   :  { %7523 = vrcp.f32 %v2068_v21  ;;  %v2145_v47 = vand.u32 2147483648, %v2068_v21  ;;  %vm2139_vm11 = vweird.f32 %v2068_v21  ;;  %v2143_v14 = vand.u32 2147483647, %v2068_v21 }
 0x5ae   :  { %v2146_v3 = vor.u32 1.1754944e-38, %v2145_v47  ;;  %vm2144_vm13 = vcmp.eq.f32.partialorder %v2143_v14, 8.507059e+37 }
 0x5b2   :  { %v7524_v54 = vpop.eup %7523 }
 0x5b3   :  { %v2135_v35 = vmul.f32 %v7524_v54, %v2068_v21  ;;  %v2071_v8 = vpop.xlane.xlu2 %2070  ;;  %vm2140_vm10 = vweird.f32 %v7524_v54 }
 0x5b4   :  { %7525 = vrcp.f32 %v2071_v8  ;;  %vm2141_vm12 = vmor %vm2139_vm11, %vm2140_vm10  ;;  %v2159_v25 = vand.u32 2147483648, %v2071_v8  ;;  %vm2153_vm15 = vweird.f32 %v2071_v8 }
 0x5b5   :  { %v2136_v38 = vsub.f32 1.0, %v2135_v35  ;;  %v2157_v35 = vand.u32 2147483647, %v2071_v8 }
 0x5b6   :  { %v2160_v17 = vor.u32 1.1754944e-38, %v2159_v25 }
 0x5b7   :  { %v2137_v51 = vmul.f32 %v7524_v54, %v2136_v38  ;;  %vm2158_vm3 = vcmp.eq.f32.partialorder %v2157_v35, 8.507059e+37 }
 0x5b9   :  { %v2138_v42 = vadd.f32 %v7524_v54, %v2137_v51 }
 0x5ba   :  { %v7526_v24 = vpop.eup %7525 }
 0x5bb   :  { %v2149_v59 = vmul.f32 %v7526_v24, %v2071_v8  ;;  %v1232_v15 = vpop.xlane.xlu2 %1231  ;;  %v2142_v56 = vsel %vm2141_vm12, %v7524_v54, %v2138_v42  ;;  %vm2154_vm14 = vweird.f32 %v7526_v24 }
 0x5bc   :  { %v1422_v23 = vsub.f32 %v729_v7, %v1232_v15  ;;  %v2147_v38 = vsel %vm2144_vm13, %v2146_v3, %v2142_v56  ;;  %vm2155_vm2 = vmor %vm2153_vm15, %vm2154_vm14 }
 0x5bd   :  { %v2150_v46 = vsub.f32 1.0, %v2149_v59  ;;  %v8720_v21 = vmul.f32 %v8672_v13, %v2147_v38 }
 0x5be   :  { %v1486_v1 = vmul.f32 1.442695, %v1422_v23 }
 0x5bf   :  { %v2151_v50 = vmul.f32 %v7526_v24, %v2150_v46  ;;  %11141 = vst [vmem:[#allocation55_spill] sm:$0xff] %v8720_v21 }
 0x5c0   :  { %7527 = vpow2.f32 %v1486_v1  ;;  %v4245_v1 = vsel %vm1229_vm1, %v8720_v21, 0.0 }
 0x5c1   :  { %v2152_v51 = vadd.f32 %v7526_v24, %v2151_v50 }
 0x5c3   :  { %v2156_v12 = vsel %vm2155_vm2, %v7526_v24, %v2152_v51  ;;  %v1235_v15 = vpop.xlane.xlu2 %1234  ;;  %v8735_v24 = vmul.f32 0.17677669, %v8023_v60  ;;  %v8745_v60 = vmul.f32 0.17677669, %v8087_v26 }
 0x5c4   :  { %v2161_v7 = vsel %vm2158_vm3, %v2160_v17, %v2156_v12  ;;  %v1423_v47 = vsub.f32 %v8683_v58, %v1235_v15 }
 0x5c5   :  { %v8724_v23 = vmul.f32 %v8676_v49, %v2161_v7  ;;  %v1251_v14 = vsel %vm1229_vm1, %v8735_v24, -inf }
 0x5c6   :  { %v8726_v54 = vpop.eup %7527  ;;  %v1488_v3 = vmul.f32 1.442695, %v1423_v47  ;;  %v1254_v47 = vsel %vm1229_vm1, %v8745_v60, -inf }
 0x5c7   :  { %11142 = vst [vmem:[#allocation56_spill] sm:$0xff] %v8724_v23  ;;  %v1614_v50 = vsel %vm1229_vm1, %v8726_v54, 0.0  ;;  %v4246_v25 = vsel %vm1229_vm1, %v8724_v23, 0.0 }
 0x5c8   :  { %7529 = vpow2.f32 %v1488_v3  ;;  %1615 = vadd.xlane.f32.xlu2 %v1614_v50  ;;  %v4247_v12 = vadd.f32 %v4246_v25, %v4245_v1 }
 0x5ca   :  { %v4248_v17 = vrot.slane %v4247_v12, 4 }
 0x5cb   :  { %v1238_v56 = vpop.xlane.xlu2 %1237 }
 0x5cc   :  { %v1424_v13 = vsub.f32 %v8690_v62, %v1238_v56  ;;  %v4249_v49 = vadd.f32 %v4248_v17, %v4247_v12  ;;  %v8760_v17 = vpop.trf.xlu1 }
 0x5ce   :  { %v8738_v58 = vpop.eup %7529  ;;  %v1490_v8 = vmul.f32 1.442695, %v1424_v13  ;;  %v4250_v59 = vrot.slane %v4249_v49, 2  ;;  %v738_v13 = vmul.f32 0.17677669, %v8099_v31 }
 0x5cf   :  { %v1617_v42 = vsel %vm1229_vm1, %v8738_v58, 0.0 }
 0x5d0   :  { %7531 = vpow2.f32 %v1490_v8  ;;  %1618 = vadd.xlane.f32.xlu0 %v1617_v42  ;;  %1252 = vmax.xlane.f32.xlu2 %v1251_v14  ;;  %v4251_v35 = vadd.f32 %v4250_v59, %v4249_v49  ;;  %v1257_v42 = vsel %vm1229_vm1, %v738_v13, -inf  ;;  %v739_v59 = vmul.f32 0.17677669, %v8107_v34 }
 0x5d1   :  { %v740_v34 = vmul.f32 0.17677669, %v8111_v37 }
 0x5d2   :  { %v4252_v3 = vrot.slane %v4251_v35, 1  ;;  %v1260_v31 = vsel %vm1229_vm1, %v739_v59, -inf }
 0x5d3   :  { %v1241_v46 = vpop.xlane.xlu2 %1240 }
 0x5d4   :  { %v1425_v62 = vsub.f32 %v8703_v43, %v1241_v46  ;;  %v4253_v26 = vadd.f32 %v4252_v3, %v4251_v35  ;;  %v8769_v46 = vpop.trf.xlu1 }
 0x5d6   :  { %v8748_v38 = vpop.eup %7531  ;;  %v1492_v51 = vmul.f32 1.442695, %v1425_v62  ;;  %v2611_v15 = vpop.f32.mrf.mxu1  ;;  %v4254_v12 = vsel %vm1229_vm1, %v4253_v26, -inf  ;;  %v8788_v26 = vmul.f32 0.17677669, %v8119_v41 }
 0x5d7   :  { %v1620_v7 = vsel %vm1229_vm1, %v8748_v38, 0.0  ;;  %v2617_v56 = vsub.f32 %v8582_v48, %v2611_v15  ;;  %v1263_v15 = vsel %vm1229_vm1, %v740_v34, -inf }
 0x5d8   :  { %7533 = vpow2.f32 %v1492_v51  ;;  %1621 = vadd.xlane.f32.xlu0 %v1620_v7  ;;  %1255 = vmax.xlane.f32.xlu2 %v1254_v47  ;;  %v1266_v37 = vsel %vm1229_vm1, %v8788_v26, -inf }
 0x5db   :  { %v1244_v49 = vpop.xlane.xlu2 %1243 }
 0x5dc   :  { %v1426_v8 = vsub.f32 %v8710_v28, %v1244_v49  ;;  %v1247_v35 = vpop.xlane.xlu1 %1246 }
 0x5de   :  { %v8754_v50 = vpop.eup %7533  ;;  %v2614_v1 = vpop.f32.mrf.mxu1  ;;  %v1494_v14 = vmul.f32 1.442695, %v1426_v8 }
 0x5df   :  { %v2618_v43 = vsub.f32 %v8576_v53, %v2614_v1  ;;  %v1623_v25 = vsel %vm1229_vm1, %v8754_v50, 0.0 }
 0x5e0   :  { %1624 = vadd.xlane.f32.xlu0 %v1623_v25  ;;  %4255 = vmax.xlane.f32.xlu2 %v4254_v12  ;;  %7535 = vpow2.f32 %v1494_v14 }
 0x5e1   :  { %2633 = vmatpush.msra.mxu2 %v2618_v43 }
 0x5e3   :  { %2634 = vmatpush.msra.mxu2 %v2617_v56 }
 0x5e4   :  { %6739 = vmatmul.msk.f32.vlgmr.msra.gmra.mxu2 %vm1229_vm1, %v8685_v39  ;;  %v1427_v39 = vsub.f32 %v8656_v20, %v1247_v35 }
 0x5e6   :  { %v8774_v62 = vpop.eup %7535  ;;  %v1496_v51 = vmul.f32 1.442695, %v1427_v39 }
 0x5e7   :  { %v1626_v28 = vsel %vm1229_vm1, %v8774_v62, 0.0 }
 0x5e8   :  { %1258 = vmax.xlane.f32.xlu2 %v1257_v42  ;;  %7537 = vpow2.f32 %v1496_v51  ;;  %v8805_v42 = vmul.f32 0.17677669, %v8146_v57 }
 0x5ec   :  { %6740 = vmatmul.msk.f32.gmra.mxu2 %vm1229_vm1, %v8692_v4  ;;  %v1250_v4 = vpop.xlane.xlu2 %1249 }
 0x5ed   :  { %v1428_v47 = vsub.f32 %v8715_v9, %v1250_v4 }
 0x5ee   :  { %v8781_v7 = vpop.eup %7537 }
 0x5ef   :  { %v1629_v3 = vsel %vm1229_vm1, %v8781_v7, 0.0  ;;  %v1498_v20 = vmul.f32 1.442695, %v1428_v47 }
 0x5f0   :  { %1261 = vmax.xlane.f32.xlu2 %v1260_v31  ;;  %v1275_v31 = vsel %vm1229_vm1, %v8805_v42, -inf }
 0x5f1   :  { %7539 = vpow2.f32 %v1498_v20 }
 0x5f7   :  { %v8793_v1 = vpop.eup %7539 }
 0x5f8   :  { %1627 = vadd.xlane.f32.xlu2 %v1626_v28  ;;  %v1632_v9 = vsel %vm1229_vm1, %v8793_v1, 0.0 }
 0x600   :  { %1264 = vmax.xlane.f32.xlu2 %v1263_v15 }
 0x608   :  { %1630 = vadd.xlane.f32.xlu2 %v1629_v3 }
 0x609   :  { %4257 = vxpose.xlu0.b32.start [1/2] (short) (narrow) %v8720_v21, 16 }
 0x610   :  { %1267 = vmax.xlane.f32.xlu2 %v1266_v37 }
 0x611   :  { %4258 = vxpose.xlu0.b32.end [2/2] (short) (narrow) %v8724_v23, 16  ;;  %v8961_v23 = vmul.f32 0.17677669, %v8273_v6 }
 0x618   :  { %1633 = vadd.xlane.f32.xlu2 %v1632_v9 }
 0x63b   :  { %v8797_v43 = vpop.xlane.xlu2 %1615 }
 0x643   :  { %v1253_v25 = vpop.xlane.xlu2 %1252 }
 0x644   :  { %v1429_v12 = vsub.f32 %v8735_v24, %v1253_v25 }
 0x646   :  { %v1500_v41 = vmul.f32 1.442695, %v1429_v12  ;;  %v1271_v12 = vpop.xlane.xlu1 %1270 }
 0x648   :  { %7541 = vpow2.f32 %v1500_v41 }
 0x64b   :  { %v1256_v56 = vpop.xlane.xlu2 %1255 }
 0x64c   :  { %v1430_v37 = vsub.f32 %v8745_v60, %v1256_v56  ;;  %v1435_v60 = vsub.f32 %v8661_v61, %v1271_v12 }
 0x64e   :  { %v8800_v49 = vpop.eup %7541  ;;  %v1502_v41 = vmul.f32 1.442695, %v1430_v37  ;;  %v1274_v61 = vpop.xlane.xlu1 %1273 }
 0x64f   :  { %v1635_v8 = vsel %vm1229_vm1, %v8800_v49, 0.0 }
 0x650   :  { %1636 = vadd.xlane.f32.xlu2 %v1635_v8 }
 0x653   :  { %v8807_v14 = vpop.xlane.xlu2 %4255 }
 0x654   :  { %11143 = vst [vmem:[#allocation57_spill] sm:$0xff] %v8807_v14 }
 0x658   :  { %1276 = vmax.xlane.f32.xlu2 %v1275_v31 }
 0x65b   :  { %v1259_v35 = vpop.xlane.xlu2 %1258 }
 0x65c   :  { %v1431_v24 = vsub.f32 %v738_v13, %v1259_v35  ;;  %v1512_v35 = vmul.f32 1.442695, %v1435_v60 }
 0x65e   :  { %v1504_v39 = vmul.f32 1.442695, %v1431_v24 }
 0x660   :  { %7543 = vpow2.f32 %v1504_v39 }
 0x663   :  { %v1262_v28 = vpop.xlane.xlu2 %1261 }
 0x664   :  { %v1432_v51 = vsub.f32 %v739_v59, %v1262_v28 }
 0x666   :  { %v8811_v15 = vpop.eup %7543  ;;  %v1506_v4 = vmul.f32 1.442695, %v1432_v51 }
 0x667   :  { %11144 = vst [vmem:[#allocation58_spill] sm:$0xff] %v8811_v15  ;;  %v2636_v47 = vpop.f32.mrf.mxu2  ;;  %v1641_v57 = vsel %vm1229_vm1, %v8811_v15, 0.0 }
 0x668   :  { %7545 = vpow2.f32 %v1506_v4  ;;  %1642 = vadd.xlane.f32.xlu1 %v1641_v57  ;;  %v2642_v25 = vsub.f32 %v8613_v32, %v2636_v47  ;;  %v1436_v57 = vsub.f32 %v8666_v16, %v1274_v61  ;;  %v1227_v16 = vmul.f32 0.17677669, %v8621_v55 }
 0x669   :  { %7547 = vpow2.f32 %v1502_v41  ;;  %v1228_v55 = vmul.f32 0.17677669, %v8633_v10 }
 0x66a   :  { %v2024_v12 = vsel %vm1229_vm1, %v1227_v16, -inf }
 0x66b   :  { %v8815_v3 = vpop.xlane.xlu2 %1627 }
 0x66e   :  { %v8817_v20 = vpop.eup %7545 }
 0x66f   :  { %11145 = vst [vmem:[#allocation59_spill] sm:$0xff] %v8817_v20  ;;  %v2639_v13 = vpop.f32.mrf.mxu2  ;;  %v1644_v9 = vsel %vm1229_vm1, %v8817_v20, 0.0  ;;  %v8829_v39 = vpop.eup %7547 }
 0x670   :  { %v2643_v59 = vsub.f32 %v8610_v22, %v2639_v13  ;;  %1645 = vadd.xlane.f32.xlu2 %v1644_v9  ;;  %11146 = vst [vmem:[#allocation60_spill] sm:$0xff] %v8829_v39  ;;  %v1514_v13 = vmul.f32 1.442695, %v1436_v57 }
 0x672   :  { %2664 = vmatpush.msra.mxu3 %v2643_v59 }
 0x673   :  { %v1265_v8 = vpop.xlane.xlu2 %1264 }
 0x674   :  { %v1433_v31 = vsub.f32 %v740_v34, %v1265_v8  ;;  %2665 = vmatpush.msra.mxu3 %v2642_v25 }
 0x675   :  { %6741 = vmatmul.msk.f32.vlgmr.msra.gmra.mxu3 %vm1229_vm1, %v8647_v0  ;;  %v1638_v0 = vsel %vm1229_vm1, %v8829_v39, 0.0 }
 0x676   :  { %v1508_v56 = vmul.f32 1.442695, %v1433_v31 }
 0x678   :  { %7549 = vpow2.f32 %v1508_v56 }
 0x679   :  { %7551 = vpow2.f32 %v1512_v35 }
 0x67b   :  { %v8827_v24 = vpop.xlane.xlu2 %1630 }
 0x67d   :  { %6742 = vmatmul.msk.f32.gmra.mxu3 %vm1229_vm1, %v8645_v5 }
 0x67e   :  { %v8833_v28 = vpop.eup %7549 }
 0x67f   :  { %11147 = vst [vmem:[#allocation61_spill] sm:$0xff] %v8833_v28  ;;  %v1647_v34 = vsel %vm1229_vm1, %v8833_v28, 0.0  ;;  %v8839_v4 = vpop.eup %7551 }
 0x680   :  { %1648 = vadd.xlane.f32.xlu1 %v1647_v34  ;;  %11148 = vst [vmem:[#allocation62_spill] sm:$0xff] %v8839_v4  ;;  %v1653_v37 = vsel %vm1229_vm1, %v8839_v4, 0.0 }
 0x682   :  { %1639 = vadd.xlane.f32.xlu0 %v1638_v0  ;;  %v2027_v0 = vsel %vm1229_vm1, %v1228_v55, -inf }
 0x683   :  { %v1268_v51 = vpop.xlane.xlu2 %1267 }
 0x684   :  { %v1434_v47 = vsub.f32 %v8788_v26, %v1268_v51 }
 0x686   :  { %v1510_v5 = vmul.f32 1.442695, %v1434_v47 }
 0x688   :  { %7553 = vpow2.f32 %v1510_v5  ;;  %1654 = vadd.xlane.f32.xlu1 %v1653_v37 }
 0x689   :  { %7555 = vpow2.f32 %v1514_v13 }
 0x68b   :  { %v8855_v41 = vpop.xlane.xlu2 %1633 }
 0x68e   :  { %v8845_v9 = vpop.eup %7553 }
 0x68f   :  { %11149 = vst [vmem:[#allocation63_spill] sm:$0xff] %v8845_v9  ;;  %v1650_v59 = vsel %vm1229_vm1, %v8845_v9, 0.0  ;;  %v8849_v25 = vpop.eup %7555 }
 0x690   :  { %1651 = vadd.xlane.f32.xlu2 %v1650_v59  ;;  %11150 = vst [vmem:[#allocation64_spill] sm:$0xff] %v8849_v25  ;;  %v1656_v26 = vsel %vm1229_vm1, %v8849_v25, 0.0 }
 0x698   :  { %1657 = vadd.xlane.f32.xlu2 %v1656_v26 }
 0x6a0   :  { %2025 = vmax.xlane.f32.xlu2 %v2024_v12 }
 0x6c3   :  { %v8857_v8 = vpop.xlane.xlu2 %1636 }
 0x6cb   :  { %v1277_v31 = vpop.xlane.xlu2 %1276 }
 0x6cc   :  { %v1437_v60 = vsub.f32 %v8805_v42, %v1277_v31  ;;  %v8887_v31 = vmul.f32 0.17677669, %v8089_v27 }
 0x6ce   :  { %v1516_v56 = vmul.f32 1.442695, %v1437_v60  ;;  %v1278_v60 = vsel %vm1229_vm1, %v8887_v31, -inf }
 0x6d0   :  { %7557 = vpow2.f32 %v1516_v56  ;;  %v8892_v56 = vmul.f32 0.17677669, %v8109_v36 }
 0x6d6   :  { %v8860_v35 = vpop.eup %7557 }
 0x6d7   :  { %11151 = vst [vmem:[#allocation65_spill] sm:$0xff] %v8860_v35  ;;  %v1659_v34 = vsel %vm1229_vm1, %v8860_v35, 0.0  ;;  %v1308_v35 = vsel %vm1229_vm1, %v8961_v23, -inf }
 0x6d8   :  { %1660 = vadd.xlane.f32.xlu1 %v1659_v34 }
 0x6db   :  { %v8896_v34 = vpop.xlane.xlu1 %1642 }
 0x6e0   :  { %2028 = vmax.xlane.f32.xlu1 %v2027_v0  ;;  %v8899_v0 = vmul.f32 0.17677669, %v8123_v44 }
 0x6e2   :  { %v1290_v27 = vsel %vm1229_vm1, %v8899_v0, -inf }
 0x6e3   :  { %v8866_v51 = vpop.xlane.xlu2 %1645 }
 0x6e4   :  { %11152 = vst [vmem:[#allocation66_spill] sm:$0xff] %v8866_v51 }
 0x6f8   :  { %v2667_v61 = vpop.f32.mrf.mxu3 }
 0x6f9   :  { %v8870_v42 = vmul.f32 0.25, %v2667_v61  ;;  %v8903_v61 = vpop.xlane.xlu1 %1648 }
 0x6fa   :  { %11155 = vst [vmem:[#allocation69_spill] sm:$0xff] %v8903_v61 }
 0x700   :  { %v2670_v47 = vpop.f32.mrf.mxu3 }
 0x701   :  { %v8868_v57 = vmul.f32 0.25, %v2670_v47  ;;  %v8905_v47 = vpop.xlane.xlu1 %1654 }
 0x702   :  { %11156 = vst [vmem:[#allocation70_spill] sm:$0xff] %v8905_v47 }
 0x703   :  { %2689 = vmatpush.msra.mxu0 %v8868_v57  ;;  %v8873_v5 = vpop.xlane.xlu2 %1651 }
 0x704   :  { %11153 = vst [vmem:[#allocation67_spill] sm:$0xff] %v8873_v5 }
 0x705   :  { %2690 = vmatpush.msra.mxu0 %v8870_v42 }
 0x706   :  { %6743 = vmatmul.msk.f32.vlgmr.msra.gmra.mxu0 %vm1229_vm1, %v8360_v19 }
 0x70b   :  { %v8878_v10 = vpop.xlane.xlu2 %1657 }
 0x70c   :  { %11154 = vst [vmem:[#allocation68_spill] sm:$0xff] %v8878_v10 }
 0x70e   :  { %6744 = vmatmul.msk.f32.gmra.mxu0 %vm1229_vm1, %v8366_v29 }
 0x713   :  { %v2026_v37 = vpop.xlane.xlu2 %2025 }
 0x714   :  { %v2036_v13 = vsub.f32 %v1227_v16, %v2026_v37  ;;  %v1284_v16 = vsel %vm1229_vm1, %v8892_v56, -inf }
 0x716   :  { %v2050_v59 = vmul.f32 1.442695, %v2036_v13 }
 0x718   :  { %7559 = vpow2.f32 %v2050_v59 }
 0x71e   :  { %v8882_v26 = vpop.eup %7559 }
 0x71f   :  { %v2072_v12 = vsel %vm1229_vm1, %v8882_v26, 0.0 }
 0x720   :  { %2073 = vadd.xlane.f32.xlu2 %v2072_v12 }
 0x728   :  { %1279 = vmax.xlane.f32.xlu2 %v1278_v60  ;;  %v8914_v60 = vmul.f32 0.17677669, %v8104_v33  ;;  %v8929_v33 = vmul.f32 0.17677669, %v8157_v63 }
 0x730   :  { %1285 = vmax.xlane.f32.xlu2 %v1284_v16  ;;  %v1281_v16 = vsel %vm1229_vm1, %v8914_v60, -inf }
 0x738   :  { %1291 = vmax.xlane.f32.xlu2 %v1290_v27  ;;  %v8919_v27 = vmul.f32 0.17677669, %v8117_v40  ;;  %v8934_v40 = vmul.f32 0.17677669, %v8167_v2 }
 0x74b   :  { %v8907_v37 = vpop.xlane.xlu1 %1660 }
 0x74c   :  { %11157 = vst [vmem:[#allocation71_spill] sm:$0xff] %v8907_v37  ;;  %v11158_v37 = vld [vmem:[#allocation15_spill] sm:$0xff] }
 0x74d   :  { %v8966_v4 = vmul.f32 0.17677669, %v11158_v37  ;;  %v11161_v37 = vld [vmem:[#allocation19_spill] sm:$0xff] }
 0x753   :  { %v2029_v36 = vpop.xlane.xlu1 %2028 }
 0x754   :  { %v2037_v13 = vsub.f32 %v1228_v55, %v2029_v36  ;;  %v1287_v55 = vsel %vm1229_vm1, %v8919_v27, -inf  ;;  %v8924_v36 = vmul.f32 0.17677669, %v8138_v52  ;;  %v1299_v52 = vsel %vm1229_vm1, %v8934_v40, -inf }
 0x756   :  { %v2052_v59 = vmul.f32 1.442695, %v2037_v13  ;;  %v1293_v13 = vsel %vm1229_vm1, %v8924_v36, -inf }
 0x758   :  { %7561 = vpow2.f32 %v2052_v59  ;;  %v1296_v59 = vsel %vm1229_vm1, %v8929_v33, -inf }
 0x75e   :  { %v8909_v12 = vpop.eup %7561 }
 0x75f   :  { %v2075_v44 = vsel %vm1229_vm1, %v8909_v12, 0.0 }
 0x760   :  { %2076 = vadd.xlane.f32.xlu1 %v2075_v44 }
 0x768   :  { %1282 = vmax.xlane.f32.xlu1 %v1281_v16  ;;  %v8941_v16 = vmul.f32 0.17677669, %v8247_v18  ;;  %v8954_v18 = vmul.f32 0.17677669, %v8265_v45 }
 0x76a   :  { %v1302_v2 = vsel %vm1229_vm1, %v8941_v16, -inf }
 0x770   :  { %1288 = vmax.xlane.f32.xlu1 %v1287_v55 }
 0x778   :  { %1294 = vmax.xlane.f32.xlu1 %v1293_v13 }
 0x780   :  { %1297 = vmax.xlane.f32.xlu1 %v1296_v59 }
 0x783   :  { %v8936_v44 = vpop.f32.mrf.mxu0 }
 0x784   :  { %v2698_v13 = vsub.f32 %v8501_v11, %v8936_v44 }
 0x788   :  { %1300 = vmax.xlane.f32.xlu1 %v1299_v52  ;;  %v1305_v52 = vsel %vm1229_vm1, %v8954_v18, -inf }
 0x78b   :  { %v8943_v55 = vpop.f32.mrf.mxu0 }
 0x78c   :  { %v2699_v63 = vsub.f32 %v8498_v30, %v8943_v55 }
 0x78e   :  { %2720 = vmatpush.msra.mxu1 %v2699_v63 }
 0x790   :  { %2721 = vmatpush.msra.mxu1 %v2698_v13  ;;  %1303 = vmax.xlane.f32.xlu1 %v1302_v2 }
 0x791   :  { %6745 = vmatmul.msk.f32.vlgmr.msra.gmra.mxu1 %vm1229_vm1, %v8936_v44 }
 0x793   :  { %v2074_v59 = vpop.xlane.xlu2 %2073 }
 0x794   :  { %7563 = vrcp.f32 %v2074_v59  ;;  %v2173_v21 = vand.u32 2147483648, %v2074_v59  ;;  %v2171_v45 = vand.u32 2147483647, %v2074_v59  ;;  %vm2167_vm5 = vweird.f32 %v2074_v59 }
 0x796   :  { %vm2172_vm7 = vcmp.eq.f32.partialorder %v2171_v45, 8.507059e+37  ;;  %v11163_v45 = vld [vmem:[#allocation23_spill] sm:$0xff] }
 0x798   :  { %1306 = vmax.xlane.f32.xlu1 %v1305_v52  ;;  %v2174_v52 = vor.u32 1.1754944e-38, %v2173_v21 }
 0x799   :  { %6746 = vmatmul.msk.f32.gmra.mxu1 %vm1229_vm1, %v8943_v55 }
 0x79a   :  { %v7564_v63 = vpop.eup %7563 }
 0x79b   :  { %v2163_v13 = vmul.f32 %v7564_v63, %v2074_v59  ;;  %vm2168_vm4 = vweird.f32 %v7564_v63 }
 0x79c   :  { %vm2169_vm6 = vmor %vm2167_vm5, %vm2168_vm4 }
 0x79d   :  { %v2164_v2 = vsub.f32 1.0, %v2163_v13 }
 0x79f   :  { %v2165_v14 = vmul.f32 %v7564_v63, %v2164_v2  ;;  %v1311_v2 = vsel %vm1229_vm1, %v8966_v4, -inf }
 0x7a0   :  { %1309 = vmax.xlane.f32.xlu1 %v1308_v35  ;;  %v11160_v35 = vld [vmem:[#allocation17_spill] sm:$0xff] }
 0x7a1   :  { %v2166_v25 = vadd.f32 %v7564_v63, %v2165_v14  ;;  %v8975_v14 = vmul.f32 0.17677669, %v11160_v35 }
 0x7a3   :  { %v2170_v10 = vsel %vm2169_vm6, %v7564_v63, %v2166_v25  ;;  %v1314_v21 = vsel %vm1229_vm1, %v8975_v14, -inf  ;;  %v8980_v25 = vmul.f32 0.17677669, %v11161_v37 }
 0x7a4   :  { %v2175_v6 = vsel %vm2172_vm7, %v2174_v52, %v2170_v10  ;;  %v8990_v52 = vmul.f32 0.17677669, %v11163_v45 }
 0x7a5   :  { %v8969_v13 = vmul.f32 %v8882_v26, %v2175_v6  ;;  %v1317_v10 = vsel %vm1229_vm1, %v8980_v25, -inf  ;;  %v11162_v26 = vld [vmem:[#allocation21_spill] sm:$0xff] }
 0x7a6   :  { %v8985_v59 = vmul.f32 0.17677669, %v11162_v26  ;;  %v1323_v6 = vsel %vm1229_vm1, %v8990_v52, -inf }
 0x7a7   :  { %11159 = vst [vmem:[#allocation15_spill] sm:$0xff] %v8969_v13  ;;  %5187 = vxpose.xlu0.b32.start [1/2] (short) (narrow) %v8969_v13, 16 }
 0x7a8   :  { %1312 = vmax.xlane.f32.xlu1 %v1311_v2  ;;  %v1320_v63 = vsel %vm1229_vm1, %v8985_v59, -inf }
 0x7b0   :  { %1315 = vmax.xlane.f32.xlu1 %v1314_v21 }
 0x7b8   :  { %1318 = vmax.xlane.f32.xlu1 %v1317_v10 }
 0x7c0   :  { %1321 = vmax.xlane.f32.xlu1 %v1320_v63 }
 0x7c8   :  { %1324 = vmax.xlane.f32.xlu1 %v1323_v6 }
 0x7d3   :  { %v2077_v2 = vpop.xlane.xlu1 %2076 }
 0x7d4   :  { %7565 = vrcp.f32 %v2077_v2  ;;  %v2187_v9 = vand.u32 2147483648, %v2077_v2  ;;  %v2185_v47 = vand.u32 2147483647, %v2077_v2  ;;  %vm2181_vm9 = vweird.f32 %v2077_v2 }
 0x7d6   :  { %v2188_v63 = vor.u32 1.1754944e-38, %v2187_v9  ;;  %vm2186_vm11 = vcmp.eq.f32.partialorder %v2185_v47, 8.507059e+37 }
 0x7da   :  { %v7566_v35 = vpop.eup %7565 }
 0x7db   :  { %v2177_v21 = vmul.f32 %v7566_v35, %v2077_v2  ;;  %v1283_v37 = vpop.xlane.xlu1 %1282  ;;  %vm2182_vm8 = vweird.f32 %v7566_v35 }
 0x7dc   :  { %vm2183_vm10 = vmor %vm2181_vm9, %vm2182_vm8  ;;  %v1439_v51 = vsub.f32 %v8914_v60, %v1283_v37 }
 0x7dd   :  { %v2178_v10 = vsub.f32 1.0, %v2177_v21  ;;  %v5175_v21 = vsel %vm1229_vm1, %v8969_v13, 0.0 }
 0x7df   :  { %v2179_v26 = vmul.f32 %v7566_v35, %v2178_v10 }
 0x7e1   :  { %v2180_v28 = vadd.f32 %v7566_v35, %v2179_v26  ;;  %v1280_v26 = vpop.xlane.xlu2 %1279 }
 0x7e3   :  { %v2184_v45 = vsel %vm2183_vm10, %v7566_v35, %v2180_v28  ;;  %v1289_v5 = vpop.xlane.xlu1 %1288  ;;  %v1438_v28 = vsub.f32 %v8887_v31, %v1280_v26 }
 0x7e4   :  { %v2189_v20 = vsel %vm2186_vm11, %v2188_v63, %v2184_v45  ;;  %v1441_v60 = vsub.f32 %v8919_v27, %v1289_v5 }
 0x7e5   :  { %v8995_v6 = vmul.f32 %v8909_v12, %v2189_v20  ;;  %v1518_v63 = vmul.f32 1.442695, %v1438_v28 }
 0x7e7   :  { %11164 = vst [vmem:[#allocation17_spill] sm:$0xff] %v8995_v6  ;;  %5188 = vxpose.xlu0.b32.end [2/2] (short) (narrow) %v8995_v6, 16  ;;  %v5176_v10 = vsel %vm1229_vm1, %v8995_v6, 0.0  ;;  %7567 = vpow2.f32 %v1518_v63  ;;  %v1520_v6 = vmul.f32 1.442695, %v1439_v51 }
 0x7e8   :  { %v5177_v61 = vadd.f32 %v5176_v10, %v5175_v21 }
 0x7e9   :  { %v1286_v21 = vpop.xlane.xlu2 %1285  ;;  %7569 = vpow2.f32 %v1520_v6 }
 0x7ea   :  { %v5178_v2 = vrot.slane %v5177_v61, 4 }
 0x7eb   :  { %v1295_v15 = vpop.xlane.xlu1 %1294 }
 0x7ec   :  { %v5179_v9 = vadd.f32 %v5178_v2, %v5177_v61  ;;  %v1440_v61 = vsub.f32 %v8892_v56, %v1286_v21 }
 0x7ed   :  { %v9005_v10 = vpop.eup %7567 }
 0x7ee   :  { %v5180_v47 = vrot.slane %v5179_v9, 2  ;;  %11165 = vst [vmem:[#allocation19_spill] sm:$0xff] %v9005_v10  ;;  %v1662_v31 = vsel %vm1229_vm1, %v9005_v10, 0.0  ;;  %v1522_v26 = vmul.f32 1.442695, %v1440_v61 }
 0x7ef   :  { %v9010_v2 = vpop.eup %7569 }
 0x7f0   :  { %v5181_v35 = vadd.f32 %v5180_v47, %v5179_v9  ;;  %11166 = vst [vmem:[#allocation21_spill] sm:$0xff] %v9010_v2  ;;  %7571 = vpow2.f32 %v1522_v26  ;;  %v1665_v51 = vsel %vm1229_vm1, %v9010_v2, 0.0 }
 0x7f1   :  { %v1292_v37 = vpop.xlane.xlu2 %1291 }
 0x7f2   :  { %v5182_v20 = vrot.slane %v5181_v35, 1  ;;  %v1442_v6 = vsub.f32 %v8899_v0, %v1292_v37 }
 0x7f3   :  { %v1298_v12 = vpop.xlane.xlu1 %1297 }
 0x7f4   :  { %v5183_v45 = vadd.f32 %v5182_v20, %v5181_v35  ;;  %v1526_v63 = vmul.f32 1.442695, %v1442_v6 }
 0x7f6   :  { %v5184_v13 = vsel %vm1229_vm1, %v5183_v45, -inf  ;;  %v9015_v28 = vpop.eup %7571  ;;  %v1443_v45 = vsub.f32 %v8924_v36, %v1295_v15  ;;  %v1444_v15 = vsub.f32 %v8929_v33, %v1298_v12 }
 0x7f7   :  { %5185 = vmax.xlane.f32.xlu2 %v5184_v13  ;;  %v1524_v13 = vmul.f32 1.442695, %v1441_v60  ;;  %11167 = vst [vmem:[#allocation23_spill] sm:$0xff] %v9015_v28  ;;  %v1668_v35 = vsel %vm1229_vm1, %v9015_v28, 0.0 }
 0x7f8   :  { %v1528_v26 = vmul.f32 1.442695, %v1443_v45  ;;  %v1530_v6 = vmul.f32 1.442695, %v1444_v15 }
 0x7f9   :  { %7573 = vpow2.f32 %v1524_v13 }
 0x7fa   :  { %7575 = vpow2.f32 %v1526_v63 }
 0x7fb   :  { %v1301_v39 = vpop.xlane.xlu1 %1300 }
 0x7fc   :  { %v1445_v33 = vsub.f32 %v8934_v40, %v1301_v39 }
 0x7fe   :  { %v1532_v12 = vmul.f32 1.442695, %v1445_v33 }
 0x7ff   :  { %1663 = vadd.xlane.f32.xlu2 %v1662_v31  ;;  %v9020_v20 = vpop.eup %7573 }
 0x800   :  { %11168 = vst [vmem:[#allocation72_spill] sm:$0xff] %v9020_v20  ;;  %v1671_v0 = vsel %vm1229_vm1, %v9020_v20, 0.0 }
 0x803   :  { %v1304_v9 = vpop.xlane.xlu1 %1303 }
 0x804   :  { %v1446_v45 = vsub.f32 %v8941_v16, %v1304_v9 }
 0x806   :  { %v1534_v39 = vmul.f32 1.442695, %v1446_v45  ;;  %v11179_v45 = vld [vmem:[#allocation6_spill] sm:$0xff] }
 0x807   :  { %1666 = vadd.xlane.f32.xlu2 %v1665_v51  ;;  %v9028_v51 = vpop.eup %7575 }
 0x808   :  { %11169 = vst [vmem:[#allocation73_spill] sm:$0xff] %v9028_v51  ;;  %v1674_v13 = vsel %vm1229_vm1, %v9028_v51, 0.0 }
 0x80b   :  { %v1307_v56 = vpop.xlane.xlu1 %1306 }
 0x80e   :  { %v2723_v47 = vpop.f32.mrf.mxu1 }
 0x80f   :  { %1669 = vadd.xlane.f32.xlu2 %v1668_v35  ;;  %v2729_v60 = vsub.f32 %v8582_v48, %v2723_v47 }
 0x813   :  { %v1310_v5 = vpop.xlane.xlu1 %1309 }
 0x814   :  { %v1448_v27 = vsub.f32 %v8961_v23, %v1310_v5 }
 0x816   :  { %v1538_v21 = vmul.f32 1.442695, %v1448_v27  ;;  %v2726_v61 = vpop.f32.mrf.mxu1 }
 0x817   :  { %v2730_v31 = vsub.f32 %v8576_v53, %v2726_v61  ;;  %1672 = vadd.xlane.f32.xlu2 %v1671_v0  ;;  %v1447_v0 = vsub.f32 %v8954_v18, %v1307_v56 }
 0x818   :  { %7577 = vpow2.f32 %v1538_v21 }
 0x819   :  { %2745 = vmatpush.msrb.mxu2 %v2730_v31  ;;  %7579 = vpow2.f32 %v1528_v26  ;;  %v1536_v9 = vmul.f32 1.442695, %v1447_v0 }
 0x81a   :  { %7581 = vpow2.f32 %v1530_v6 }
 0x81b   :  { %2746 = vmatpush.msrb.mxu2 %v2729_v60  ;;  %v1313_v23 = vpop.xlane.xlu1 %1312  ;;  %7583 = vpow2.f32 %v1532_v12 }
 0x81c   :  { %6747 = vmatmul.msk.f32.vlgmr.msrb.gmra.mxu2 %vm1229_vm1, %v8936_v44  ;;  %v1449_v12 = vsub.f32 %v8966_v4, %v1313_v23 }
 0x81e   :  { %v9033_v36 = vpop.eup %7577 }
 0x81f   :  { %11170 = vst [vmem:[#allocation74_spill] sm:$0xff] %v9033_v36  ;;  %1675 = vadd.xlane.f32.xlu2 %v1674_v13  ;;  %v1692_v37 = vsel %vm1229_vm1, %v9033_v36, 0.0  ;;  %v9039_v47 = vpop.eup %7579 }
 0x820   :  { %1693 = vadd.xlane.f32.xlu1 %v1692_v37  ;;  %11171 = vst [vmem:[#allocation75_spill] sm:$0xff] %v9039_v47  ;;  %v1677_v44 = vsel %vm1229_vm1, %v9039_v47, 0.0  ;;  %v9046_v63 = vpop.eup %7581 }
 0x821   :  { %11172 = vst [vmem:[#allocation76_spill] sm:$0xff] %v9046_v63  ;;  %v9052_v40 = vpop.eup %7583 }
 0x822   :  { %11173 = vst [vmem:[#allocation77_spill] sm:$0xff] %v9052_v40 }
 0x823   :  { %v1316_v35 = vpop.xlane.xlu1 %1315 }
 0x824   :  { %6748 = vmatmul.msk.f32.gmra.mxu2 %vm1229_vm1, %v8943_v55  ;;  %v1680_v55 = vsel %vm1229_vm1, %v9046_v63, 0.0  ;;  %v1450_v13 = vsub.f32 %v8975_v14, %v1316_v35 }
 0x826   :  { %v1542_v37 = vmul.f32 1.442695, %v1450_v13 }
 0x827   :  { %1678 = vadd.xlane.f32.xlu2 %v1677_v44 }
 0x82b   :  { %v1319_v5 = vpop.xlane.xlu1 %1318 }
 0x82c   :  { %v1451_v27 = vsub.f32 %v8980_v25, %v1319_v5  ;;  %v1683_v25 = vsel %vm1229_vm1, %v9052_v40, 0.0  ;;  %v1540_v5 = vmul.f32 1.442695, %v1449_v12 }
 0x82e   :  { %v1544_v21 = vmul.f32 1.442695, %v1451_v27 }
 0x82f   :  { %1681 = vadd.xlane.f32.xlu2 %v1680_v55  ;;  %v11181_v55 = vld [vmem:[#allocation8_spill] sm:$0xff] }
 0x830   :  { %7585 = vpow2.f32 %v1544_v21  ;;  %v9080_v21 = vmul.f32 0.17677669, %v11179_v45 }
 0x831   :  { %7587 = vpow2.f32 %v1534_v39  ;;  %v9089_v39 = vmul.f32 0.17677669, %v11181_v55  ;;  %v11189_v55 = vld [vmem:[#allocation11_spill] sm:$0xff] }
 0x832   :  { %7589 = vpow2.f32 %v1536_v9  ;;  %v11183_v9 = vld [vmem:[#allocation5_spill] sm:$0xff] }
 0x833   :  { %v1322_v61 = vpop.xlane.xlu1 %1321 }
 0x834   :  { %v1452_v33 = vsub.f32 %v8985_v59, %v1322_v61  ;;  %v1329_v59 = vsel %vm1229_vm1, %v9080_v21, -inf }
 0x836   :  { %v9055_v31 = vpop.eup %7585  ;;  %v1546_v35 = vmul.f32 1.442695, %v1452_v33 }
 0x837   :  { %11174 = vst [vmem:[#allocation78_spill] sm:$0xff] %v9055_v31  ;;  %1684 = vadd.xlane.f32.xlu2 %v1683_v25  ;;  %v1701_v16 = vsel %vm1229_vm1, %v9055_v31, 0.0  ;;  %v9061_v26 = vpop.eup %7587  ;;  %v1335_v25 = vsel %vm1229_vm1, %v9089_v39, -inf }
 0x838   :  { %1702 = vadd.xlane.f32.xlu1 %v1701_v16  ;;  %11175 = vst [vmem:[#allocation79_spill] sm:$0xff] %v9061_v26  ;;  %v1686_v56 = vsel %vm1229_vm1, %v9061_v26, 0.0  ;;  %v9067_v6 = vpop.eup %7589 }
 0x839   :  { %11176 = vst [vmem:[#allocation80_spill] sm:$0xff] %v9067_v6 }
 0x83b   :  { %v1325_v60 = vpop.xlane.xlu1 %1324 }
 0x83c   :  { %v1453_v15 = vsub.f32 %v8990_v52, %v1325_v60  ;;  %v1689_v52 = vsel %vm1229_vm1, %v9067_v6, 0.0  ;;  %v9100_v60 = vmul.f32 0.17677669, %v11183_v9  ;;  %v11190_v9 = vld [vmem:[#allocation12_spill] sm:$0xff] }
 0x83e   :  { %v1548_v18 = vmul.f32 1.442695, %v1453_v15  ;;  %v11184_v15 = vld [vmem:[#allocation10_spill] sm:$0xff] }
 0x83f   :  { %1687 = vadd.xlane.f32.xlu2 %v1686_v56  ;;  %v9103_v13 = vmul.f32 0.17677669, %v11184_v15  ;;  %v9134_v15 = vmul.f32 0.17677669, %v11190_v9  ;;  %v11195_v9 = vld [vmem:[#allocation16_spill] sm:$0xff] }
 0x840   :  { %7591 = vpow2.f32 %v1548_v18  ;;  %v11185_v18 = vld [vmem:[#allocation26_spill] sm:$0xff] }
 0x841   :  { %7593 = vpow2.f32 %v1542_v37  ;;  %v9106_v56 = vmul.f32 0.17677669, %v11185_v18  ;;  %v1326_v37 = vsel %vm1229_vm1, %v9100_v60, -inf  ;;  %v1341_v33 = vsel %vm1229_vm1, %v9103_v13, -inf }
 0x842   :  { %7595 = vpow2.f32 %v1546_v35 }
 0x843   :  { %7597 = vpow2.f32 %v1540_v5  ;;  %v1371_v12 = vsel %vm1229_vm1, %v9106_v56, -inf  ;;  %v11187_v5 = vld [vmem:[#allocation9_spill] sm:$0xff] }
 0x844   :  { %v9120_v45 = vmul.f32 0.17677669, %v11187_v5  ;;  %v11193_v5 = vld [vmem:[#allocation14_spill] sm:$0xff] }
 0x846   :  { %v9070_v44 = vpop.eup %7591 }
 0x847   :  { %11177 = vst [vmem:[#allocation81_spill] sm:$0xff] %v9070_v44  ;;  %1690 = vadd.xlane.f32.xlu2 %v1689_v52  ;;  %v1707_v14 = vsel %vm1229_vm1, %v9070_v44, 0.0  ;;  %v9077_v27 = vpop.eup %7593  ;;  %v11186_v52 = vld [vmem:[#allocation7_spill] sm:$0xff]  ;;  %v11197_v44 = vld [vmem:[#allocation18_spill] sm:$0xff] }
 0x848   :  { %1708 = vadd.xlane.f32.xlu1 %v1707_v14  ;;  %11178 = vst [vmem:[#allocation82_spill] sm:$0xff] %v9077_v27  ;;  %v1698_v4 = vsel %vm1229_vm1, %v9077_v27, 0.0  ;;  %v9086_v23 = vpop.eup %7595  ;;  %v9115_v14 = vmul.f32 0.17677669, %v11186_v52 }
 0x849   :  { %11180 = vst [vmem:[#allocation6_spill] sm:$0xff] %v9086_v23  ;;  %v9091_v61 = vpop.eup %7597  ;;  %v1704_v0 = vsel %vm1229_vm1, %v9086_v23, 0.0 }
 0x84a   :  { %11182 = vst [vmem:[#allocation8_spill] sm:$0xff] %v9091_v61  ;;  %v1695_v16 = vsel %vm1229_vm1, %v9091_v61, 0.0  ;;  %v1332_v35 = vsel %vm1229_vm1, %v9115_v14, -inf }
 0x84f   :  { %1699 = vadd.xlane.f32.xlu2 %v1698_v4 }
 0x850   :  { %1330 = vmax.xlane.f32.xlu1 %v1329_v59  ;;  %v1338_v59 = vsel %vm1229_vm1, %v9120_v45, -inf }
 0x857   :  { %1705 = vadd.xlane.f32.xlu2 %v1704_v0  ;;  %v9127_v0 = vmul.f32 0.17677669, %v11189_v55 }
 0x858   :  { %1336 = vmax.xlane.f32.xlu1 %v1335_v25  ;;  %1696 = vadd.xlane.f32.xlu0 %v1695_v16 }
 0x859   :  { %v1344_v16 = vsel %vm1229_vm1, %v9127_v0, -inf }
 0x85f   :  { %1327 = vmax.xlane.f32.xlu2 %v1326_v37  ;;  %v1347_v37 = vsel %vm1229_vm1, %v9134_v15, -inf }
 0x860   :  { %1342 = vmax.xlane.f32.xlu1 %v1341_v33  ;;  %1372 = vmax.xlane.f32.xlu0 %v1371_v12  ;;  %v11191_v33 = vld [vmem:[#allocation13_spill] sm:$0xff] }
 0x861   :  { %v9141_v12 = vmul.f32 0.17677669, %v11191_v33 }
 0x867   :  { %1333 = vmax.xlane.f32.xlu2 %v1332_v35  ;;  %v1350_v35 = vsel %vm1229_vm1, %v9141_v12, -inf }
 0x86a   :  { %v9122_v4 = vpop.xlane.xlu2 %5185 }
 0x86b   :  { %11188 = vst [vmem:[#allocation5_spill] sm:$0xff] %v9122_v4 }
 0x86f   :  { %1339 = vmax.xlane.f32.xlu2 %v1338_v59  ;;  %v9148_v59 = vmul.f32 0.17677669, %v11193_v5 }
 0x872   :  { %v9129_v25 = vpop.xlane.xlu2 %1663 }
 0x877   :  { %1345 = vmax.xlane.f32.xlu2 %v1344_v16  ;;  %v1353_v16 = vsel %vm1229_vm1, %v9148_v59, -inf }
 0x87a   :  { %v9136_v18 = vpop.xlane.xlu2 %1666 }
 0x87f   :  { %1348 = vmax.xlane.f32.xlu2 %v1347_v37  ;;  %v9155_v37 = vmul.f32 0.17677669, %v11195_v9 }
 0x881   :  { %v1356_v4 = vsel %vm1229_vm1, %v9155_v37, -inf }
 0x882   :  { %v9143_v52 = vpop.xlane.xlu2 %1669 }
 0x883   :  { %11192 = vst [vmem:[#allocation10_spill] sm:$0xff] %v9143_v52 }
 0x887   :  { %1351 = vmax.xlane.f32.xlu2 %v1350_v35  ;;  %v9162_v35 = vmul.f32 0.17677669, %v11197_v44 }
 0x889   :  { %v1359_v23 = vsel %vm1229_vm1, %v9162_v35, -inf }
 0x88a   :  { %v9150_v55 = vpop.xlane.xlu2 %1672 }
 0x88b   :  { %11194 = vst [vmem:[#allocation26_spill] sm:$0xff] %v9150_v55 }
 0x88f   :  { %1354 = vmax.xlane.f32.xlu2 %v1353_v16  ;;  %v11199_v16 = vld [vmem:[#allocation20_spill] sm:$0xff] }
 0x890   :  { %v9169_v27 = vmul.f32 0.17677669, %v11199_v16  ;;  %v11203_v16 = vld [vmem:[#allocation24_spill] sm:$0xff] }
 0x892   :  { %v9157_v33 = vpop.xlane.xlu2 %1675  ;;  %v1362_v61 = vsel %vm1229_vm1, %v9169_v27, -inf }
 0x893   :  { %11196 = vst [vmem:[#allocation7_spill] sm:$0xff] %v9157_v33 }
 0x897   :  { %1357 = vmax.xlane.f32.xlu2 %v1356_v4  ;;  %v11201_v4 = vld [vmem:[#allocation22_spill] sm:$0xff] }
 0x898   :  { %v9177_v6 = vmul.f32 0.17677669, %v11201_v4 }
 0x89a   :  { %v9164_v5 = vpop.xlane.xlu2 %1678 }
 0x89b   :  { %11198 = vst [vmem:[#allocation9_spill] sm:$0xff] %v9164_v5 }
 0x89f   :  { %v2748_v31 = vpop.f32.mrf.mxu2  ;;  %1360 = vmax.xlane.f32.xlu2 %v1359_v23  ;;  %v1365_v23 = vsel %vm1229_vm1, %v9177_v6, -inf }
 0x8a0   :  { %v2754_v26 = vsub.f32 %v8613_v32, %v2748_v31 }
 0x8a2   :  { %v9171_v9 = vpop.xlane.xlu2 %1681 }
 0x8a3   :  { %11200 = vst [vmem:[#allocation11_spill] sm:$0xff] %v9171_v9 }
 0x8a7   :  { %v2751_v36 = vpop.f32.mrf.mxu2  ;;  %1363 = vmax.xlane.f32.xlu2 %v1362_v61  ;;  %v9187_v61 = vmul.f32 0.17677669, %v11203_v16 }
 0x8a8   :  { %v2755_v44 = vsub.f32 %v8610_v22, %v2751_v36 }
 0x8a9   :  { %v1368_v31 = vsel %vm1229_vm1, %v9187_v61, -inf }
 0x8aa   :  { %2776 = vmatpush.msrb.mxu3 %v2755_v44  ;;  %v9180_v40 = vpop.xlane.xlu2 %1684 }
 0x8ab   :  { %11202 = vst [vmem:[#allocation12_spill] sm:$0xff] %v9180_v40 }
 0x8ac   :  { %2777 = vmatpush.msrb.mxu3 %v2754_v26  ;;  %v9195_v26 = vpop.xlane.xlu1 %1693 }
 0x8ad   :  { %6749 = vmatmul.msk.f32.vlgmr.msrb.gmra.mxu3 %vm1229_vm1, %v8870_v42  ;;  %11205 = vst [vmem:[#allocation14_spill] sm:$0xff] %v9195_v26 }
 0x8af   :  { %1366 = vmax.xlane.f32.xlu2 %v1365_v23  ;;  %v9203_v23 = vpop.xlane.xlu0 %1618 }
 0x8b2   :  { %v9189_v36 = vpop.xlane.xlu2 %1687 }
 0x8b3   :  { %11204 = vst [vmem:[#allocation13_spill] sm:$0xff] %v9189_v36 }
 0x8b4   :  { %v9199_v42 = vpop.xlane.xlu1 %1702 }
 0x8b5   :  { %6750 = vmatmul.msk.f32.gmra.mxu3 %vm1229_vm1, %v8868_v57  ;;  %11207 = vst [vmem:[#allocation18_spill] sm:$0xff] %v9199_v42 }
 0x8b7   :  { %1369 = vmax.xlane.f32.xlu2 %v1368_v31  ;;  %v9209_v63 = vpop.xlane.xlu0 %1621 }
 0x8ba   :  { %v9197_v44 = vpop.xlane.xlu2 %1690 }
 0x8bb   :  { %11206 = vst [vmem:[#allocation16_spill] sm:$0xff] %v9197_v44 }
 0x8bc   :  { %v9205_v16 = vpop.xlane.xlu1 %1708 }
 0x8bd   :  { %11209 = vst [vmem:[#allocation22_spill] sm:$0xff] %v9205_v16 }
 0x8bf   :  { %v9213_v9 = vpop.xlane.xlu0 %1624 }
 0x8c2   :  { %v9201_v4 = vpop.xlane.xlu2 %1699 }
 0x8c3   :  { %11208 = vst [vmem:[#allocation20_spill] sm:$0xff] %v9201_v4 }
 0x8c4   :  { %v1331_v57 = vpop.xlane.xlu1 %1330 }
 0x8c5   :  { %v1455_v26 = vsub.f32 %v9080_v21, %v1331_v57 }
 0x8c7   :  { %v1552_v44 = vmul.f32 1.442695, %v1455_v26  ;;  %v9222_v21 = vpop.trf.xlu0 }
 0x8ca   :  { %v9207_v36 = vpop.xlane.xlu2 %1705 }
 0x8cb   :  { %11210 = vst [vmem:[#allocation24_spill] sm:$0xff] %v9207_v36 }
 0x8cc   :  { %v1337_v5 = vpop.xlane.xlu1 %1336 }
 0x8d2   :  { %v1328_v40 = vpop.xlane.xlu2 %1327 }
 0x8d3   :  { %v1454_v31 = vsub.f32 %v9100_v60, %v1328_v40 }
 0x8d5   :  { %v1550_v47 = vmul.f32 1.442695, %v1454_v31 }
 0x8d7   :  { %7599 = vpow2.f32 %v1550_v47  ;;  %v1457_v47 = vsub.f32 %v9089_v39, %v1337_v5  ;;  %v1343_v39 = vpop.xlane.xlu1 %1342 }
 0x8d8   :  { %7601 = vpow2.f32 %v1552_v44 }
 0x8d9   :  { %v1556_v44 = vmul.f32 1.442695, %v1457_v47 }
 0x8da   :  { %v1334_v42 = vpop.xlane.xlu2 %1333 }
 0x8db   :  { %v1456_v16 = vsub.f32 %v9115_v14, %v1334_v42 }
 0x8dd   :  { %v9215_v4 = vpop.eup %7599  ;;  %v1554_v51 = vmul.f32 1.442695, %v1456_v16  ;;  %v9230_v16 = vpop.trf.xlu0 }
 0x8de   :  { %11211 = vst [vmem:[#allocation83_spill] sm:$0xff] %v9215_v4  ;;  %v1710_v36 = vsel %vm1229_vm1, %v9215_v4, 0.0  ;;  %v9220_v60 = vpop.eup %7601  ;;  %v11246_v4 = vld [vmem:[#allocation38_spill] sm:$0xff] }
 0x8df   :  { %1711 = vadd.xlane.f32.xlu1 %v1710_v36  ;;  %11212 = vst [vmem:[#allocation84_spill] sm:$0xff] %v9220_v60  ;;  %7603 = vpow2.f32 %v1554_v51  ;;  %v1713_v26 = vsel %vm1229_vm1, %v9220_v60, 0.0 }
 0x8e0   :  { %7605 = vpow2.f32 %v1556_v44 }
 0x8e2   :  { %v1340_v40 = vpop.xlane.xlu2 %1339 }
 0x8e3   :  { %v1458_v36 = vsub.f32 %v9120_v45, %v1340_v40 }
 0x8e5   :  { %v9227_v42 = vpop.eup %7603  ;;  %v1558_v31 = vmul.f32 1.442695, %v1458_v36  ;;  %v9237_v47 = vpop.xlane.xlu0 %1639 }
 0x8e6   :  { %11213 = vst [vmem:[#allocation85_spill] sm:$0xff] %v9227_v42  ;;  %v1716_v57 = vsel %vm1229_vm1, %v9227_v42, 0.0  ;;  %v9234_v5 = vpop.eup %7605 }
 0x8e7   :  { %1714 = vadd.xlane.f32.xlu1 %v1713_v26  ;;  %11214 = vst [vmem:[#allocation86_spill] sm:$0xff] %v9234_v5  ;;  %v1459_v26 = vsub.f32 %v9103_v13, %v1343_v39  ;;  %7607 = vpow2.f32 %v1558_v31  ;;  %v1719_v44 = vsel %vm1229_vm1, %v9234_v5, 0.0 }
 0x8e9   :  { %v1560_v45 = vmul.f32 1.442695, %v1459_v26 }
 0x8ea   :  { %v1346_v14 = vpop.xlane.xlu2 %1345 }
 0x8eb   :  { %7609 = vpow2.f32 %v1560_v45  ;;  %v1460_v36 = vsub.f32 %v9127_v0, %v1346_v14 }
 0x8ed   :  { %v9241_v60 = vpop.eup %7607  ;;  %v1562_v13 = vmul.f32 1.442695, %v1460_v36 }
 0x8ee   :  { %11215 = vst [vmem:[#allocation87_spill] sm:$0xff] %v9241_v60  ;;  %v1722_v42 = vsel %vm1229_vm1, %v9241_v60, 0.0 }
 0x8ef   :  { %1717 = vadd.xlane.f32.xlu1 %v1716_v57  ;;  %v9244_v57 = vpop.trf.xlu0  ;;  %7611 = vpow2.f32 %v1562_v13 }
 0x8f0   :  { %11216 = vst [vmem:[#allocation88_spill] sm:$0xff] %v9244_v57  ;;  %v9381_v57 = vmul.f32 0.17677669, %v11246_v4 }
 0x8f1   :  { %v9248_v39 = vpop.eup %7609 }
 0x8f2   :  { %v1349_v51 = vpop.xlane.xlu2 %1348  ;;  %11217 = vst [vmem:[#allocation89_spill] sm:$0xff] %v9248_v39  ;;  %v1725_v45 = vsel %vm1229_vm1, %v9248_v39, 0.0  ;;  %v11245_v39 = vld [vmem:[#allocation36_spill] sm:$0xff] }
 0x8f3   :  { %v1461_v26 = vsub.f32 %v9134_v15, %v1349_v51 }
 0x8f5   :  { %v1564_v14 = vmul.f32 1.442695, %v1461_v26 }
 0x8f7   :  { %1720 = vadd.xlane.f32.xlu1 %v1719_v44  ;;  %v9254_v0 = vpop.trf.xlu0 }
 0x8f8   :  { %11218 = vst [vmem:[#allocation90_spill] sm:$0xff] %v9254_v0  ;;  %v1410_v0 = vsel %vm1229_vm1, %v9381_v57, -inf }
 0x8fa   :  { %v1352_v40 = vpop.xlane.xlu2 %1351 }
 0x8ff   :  { %1723 = vadd.xlane.f32.xlu1 %v1722_v42  ;;  %v9256_v42 = vpop.eup %7611 }
 0x900   :  { %11219 = vst [vmem:[#allocation91_spill] sm:$0xff] %v9256_v42  ;;  %v1728_v15 = vsel %vm1229_vm1, %v9256_v42, 0.0 }
 0x902   :  { %v1355_v31 = vpop.xlane.xlu2 %1354 }
 0x903   :  { %v1463_v5 = vsub.f32 %v9148_v59, %v1355_v31  ;;  %v1462_v59 = vsub.f32 %v9141_v12, %v1352_v40 }
 0x905   :  { %v1568_v44 = vmul.f32 1.442695, %v1463_v5  ;;  %v9265_v5 = vpop.xlane.xlu0 %1696  ;;  %v1566_v13 = vmul.f32 1.442695, %v1462_v59 }
 0x906   :  { %11221 = vst [vmem:[#allocation93_spill] sm:$0xff] %v9265_v5 }
 0x907   :  { %7613 = vpow2.f32 %v1568_v44  ;;  %1726 = vadd.xlane.f32.xlu1 %v1725_v45 }
 0x908   :  { %7615 = vpow2.f32 %v1564_v14 }
 0x909   :  { %7617 = vpow2.f32 %v1566_v13 }
 0x90a   :  { %v1358_v60 = vpop.xlane.xlu2 %1357 }
 0x90b   :  { %v1464_v45 = vsub.f32 %v9155_v37, %v1358_v60 }
 0x90d   :  { %v9258_v36 = vpop.eup %7613  ;;  %v1570_v14 = vmul.f32 1.442695, %v1464_v45 }
 0x90e   :  { %11220 = vst [vmem:[#allocation92_spill] sm:$0xff] %v9258_v36  ;;  %v1737_v51 = vsel %vm1229_vm1, %v9258_v36, 0.0  ;;  %v9267_v26 = vpop.eup %7615 }
 0x90f   :  { %1729 = vadd.xlane.f32.xlu1 %v1728_v15  ;;  %1738 = vadd.xlane.f32.xlu2 %v1737_v51  ;;  %11222 = vst [vmem:[#allocation94_spill] sm:$0xff] %v9267_v26  ;;  %v1731_v40 = vsel %vm1229_vm1, %v9267_v26, 0.0  ;;  %v1373_v15 = vpop.xlane.xlu0 %1372  ;;  %v9273_v36 = vpop.eup %7617 }
 0x910   :  { %11223 = vst [vmem:[#allocation95_spill] sm:$0xff] %v9273_v36  ;;  %v1734_v37 = vsel %vm1229_vm1, %v9273_v36, 0.0  ;;  %v11242_v36 = vld [vmem:[#allocation35_spill] sm:$0xff] }
 0x912   :  { %v1361_v31 = vpop.xlane.xlu2 %1360 }
 0x913   :  { %v1465_v44 = vsub.f32 %v9162_v35, %v1361_v31  ;;  %v1469_v35 = vsub.f32 %v9106_v56, %v1373_v15 }
 0x915   :  { %v1572_v12 = vmul.f32 1.442695, %v1465_v44  ;;  %v1580_v31 = vmul.f32 1.442695, %v1469_v35 }
 0x917   :  { %7619 = vpow2.f32 %v1572_v12  ;;  %1732 = vadd.xlane.f32.xlu1 %v1731_v40 }
 0x918   :  { %7621 = vpow2.f32 %v1570_v14 }
 0x91a   :  { %v1364_v51 = vpop.xlane.xlu2 %1363 }
 0x91b   :  { %v1466_v59 = vsub.f32 %v9169_v27, %v1364_v51 }
 0x91d   :  { %v9276_v42 = vpop.eup %7619  ;;  %v1574_v13 = vmul.f32 1.442695, %v1466_v59 }
 0x91e   :  { %11224 = vst [vmem:[#allocation96_spill] sm:$0xff] %v9276_v42  ;;  %v1743_v60 = vsel %vm1229_vm1, %v9276_v42, 0.0  ;;  %v9283_v45 = vpop.eup %7621 }
 0x91f   :  { %7623 = vpow2.f32 %v1574_v13  ;;  %1735 = vadd.xlane.f32.xlu1 %v1734_v37  ;;  %1744 = vadd.xlane.f32.xlu0 %v1743_v60  ;;  %11225 = vst [vmem:[#allocation97_spill] sm:$0xff] %v9283_v45  ;;  %v1740_v40 = vsel %vm1229_vm1, %v9283_v45, 0.0 }
 0x920   :  { %7625 = vpow2.f32 %v1580_v31  ;;  %v11229_v31 = vld [vmem:[#allocation25_spill] sm:$0xff] }
 0x922   :  { %v1367_v44 = vpop.xlane.xlu2 %1366 }
 0x923   :  { %v1467_v27 = vsub.f32 %v9177_v6, %v1367_v44  ;;  %v9302_v44 = vmul.f32 0.17677669, %v11229_v31  ;;  %v11233_v31 = vld [vmem:[#allocation27_spill] sm:$0xff] }
 0x925   :  { %v9286_v12 = vpop.eup %7623  ;;  %v1576_v56 = vmul.f32 1.442695, %v1467_v27  ;;  %v11230_v27 = vld [vmem:[#allocation28_spill] sm:$0xff] }
 0x926   :  { %11226 = vst [vmem:[#allocation98_spill] sm:$0xff] %v9286_v12  ;;  %v1746_v14 = vsel %vm1229_vm1, %v9286_v12, 0.0  ;;  %v9292_v51 = vpop.eup %7625 }
 0x927   :  { %7627 = vpow2.f32 %v1576_v56  ;;  %1741 = vadd.xlane.f32.xlu1 %v1740_v40  ;;  %1747 = vadd.xlane.f32.xlu2 %v1746_v14  ;;  %11227 = vst [vmem:[#allocation99_spill] sm:$0xff] %v9292_v51  ;;  %v1755_v13 = vsel %vm1229_vm1, %v9292_v51, 0.0  ;;  %v9305_v56 = vmul.f32 0.17677669, %v11230_v27  ;;  %v1374_v14 = vsel %vm1229_vm1, %v9302_v44, -inf  ;;  %v11234_v51 = vld [vmem:[#allocation29_spill] sm:$0xff] }
 0x928   :  { %v9321_v27 = vmul.f32 0.17677669, %v11233_v31 }
 0x929   :  { %v1380_v40 = vsel %vm1229_vm1, %v9305_v56, -inf }
 0x92a   :  { %v1370_v15 = vpop.xlane.xlu2 %1369 }
 0x92b   :  { %v1468_v59 = vsub.f32 %v9187_v61, %v1370_v15 }
 0x92d   :  { %v9295_v35 = vpop.eup %7627  ;;  %v1578_v6 = vmul.f32 1.442695, %v1468_v59 }
 0x92e   :  { %11228 = vst [vmem:[#allocation100_spill] sm:$0xff] %v9295_v35  ;;  %v1749_v37 = vsel %vm1229_vm1, %v9295_v35, 0.0  ;;  %v9324_v35 = vmul.f32 0.17677669, %v11234_v51  ;;  %v1377_v51 = vsel %vm1229_vm1, %v9321_v27, -inf }
 0x92f   :  { %7629 = vpow2.f32 %v1578_v6  ;;  %1756 = vadd.xlane.f32.xlu2 %v1755_v13  ;;  %1750 = vadd.xlane.f32.xlu1 %v1749_v37  ;;  %v11232_v13 = vld [vmem:[#allocation31_spill] sm:$0xff] }
 0x930   :  { %v2779_v60 = vpop.f32.mrf.mxu3  ;;  %v9318_v37 = vmul.f32 0.17677669, %v11232_v13 }
 0x931   :  { %v9326_v12 = vmul.f32 0.25, %v2779_v60  ;;  %v11236_v60 = vld [vmem:[#allocation42_spill] sm:$0xff] }
 0x935   :  { %v9307_v61 = vpop.eup %7629 }
 0x936   :  { %11231 = vst [vmem:[#allocation25_spill] sm:$0xff] %v9307_v61  ;;  %v1752_v15 = vsel %vm1229_vm1, %v9307_v61, 0.0  ;;  %v11239_v61 = vld [vmem:[#allocation32_spill] sm:$0xff] }
 0x937   :  { %1381 = vmax.xlane.f32.xlu2 %v1380_v40  ;;  %1375 = vmax.xlane.f32.xlu1 %v1374_v14  ;;  %v1389_v40 = vsel %vm1229_vm1, %v9318_v37, -inf  ;;  %v11235_v14 = vld [vmem:[#allocation43_spill] sm:$0xff]  ;;  %v9347_v42 = vmul.f32 0.17677669, %v11239_v61  ;;  %v11241_v61 = vld [vmem:[#allocation33_spill] sm:$0xff] }
 0x938   :  { %1753 = vadd.xlane.f32.xlu0 %v1752_v15  ;;  %v2782_v59 = vpop.f32.mrf.mxu3  ;;  %v1383_v15 = vsel %vm1229_vm1, %v9324_v35, -inf  ;;  %v9361_v45 = vmul.f32 0.17677669, %v11241_v61 }
 0x939   :  { %v9315_v6 = vmul.f32 0.25, %v2782_v59  ;;  %v11237_v59 = vld [vmem:[#allocation34_spill] sm:$0xff] }
 0x93a   :  { %v9341_v13 = vmul.f32 0.17677669, %v11237_v59  ;;  %v11240_v59 = vld [vmem:[#allocation37_spill] sm:$0xff] }
 0x93b   :  { %2801 = vmatpush.msrb.mxu0 %v9315_v6 }
 0x93d   :  { %2802 = vmatpush.msrb.mxu0 %v9326_v12 }
 0x93e   :  { %6751 = vmatmul.msk.f32.vlgmr.msrb.gmra.mxu0 %vm1229_vm1, %v8360_v19  ;;  %v11238_v19 = vld [vmem:[#allocation30_spill] sm:$0xff] }
 0x93f   :  { %2919 = vmatpush.msra.mxu0 %v11235_v14  ;;  %1390 = vmax.xlane.f32.xlu2 %v1389_v40  ;;  %v9344_v31 = vmul.f32 0.17677669, %v11238_v19  ;;  %v1398_v40 = vsel %vm1229_vm1, %v9341_v13, -inf  ;;  %v9358_v19 = vmul.f32 0.17677669, %v11240_v59 }
 0x940   :  { %1384 = vmax.xlane.f32.xlu1 %v1383_v15  ;;  %1378 = vmax.xlane.f32.xlu0 %v1377_v51  ;;  %v1392_v15 = vsel %vm1229_vm1, %v9347_v42, -inf }
 0x941   :  { %2920 = vmatpush.msra.mxu0 %v11236_v60  ;;  %v1386_v51 = vsel %vm1229_vm1, %v9344_v31, -inf }
 0x946   :  { %6752 = vmatmul.msk.f32.gmra.mxu0 %vm1229_vm1, %v8366_v29  ;;  %v9364_v29 = vmul.f32 0.17677669, %v11242_v36  ;;  %v9378_v36 = vmul.f32 0.17677669, %v11245_v39 }
 0x947   :  { %1399 = vmax.xlane.f32.xlu2 %v1398_v40  ;;  %v1407_v40 = vsel %vm1229_vm1, %v9358_v19, -inf }
 0x948   :  { %1393 = vmax.xlane.f32.xlu1 %v1392_v15  ;;  %1387 = vmax.xlane.f32.xlu0 %v1386_v51  ;;  %v1401_v26 = vsel %vm1229_vm1, %v9364_v29, -inf  ;;  %v1395_v15 = vsel %vm1229_vm1, %v9361_v45, -inf  ;;  %v11243_v51 = vld [vmem:[#allocation40_spill] sm:$0xff] }
 0x949   :  { %v9373_v59 = vmul.f32 0.17677669, %v11243_v51  ;;  %v11248_v51 = vld [vmem:[#allocation39_spill] sm:$0xff] }
 0x94a   :  { %v9392_v39 = vmul.f32 0.17677669, %v11248_v51 }
 0x94f   :  { %1408 = vmax.xlane.f32.xlu2 %v1407_v40  ;;  %v1416_v40 = vsel %vm1229_vm1, %v9373_v59, -inf }
 0x950   :  { %1402 = vmax.xlane.f32.xlu1 %v1401_v26  ;;  %1396 = vmax.xlane.f32.xlu0 %v1395_v15  ;;  %v1404_v26 = vsel %vm1229_vm1, %v9378_v36, -inf }
 0x952   :  { %v9375_v61 = vpop.xlane.xlu1 %1711 }
 0x953   :  { %11244 = vst [vmem:[#allocation28_spill] sm:$0xff] %v9375_v61  ;;  %v11249_v61 = vld [vmem:[#allocation41_spill] sm:$0xff] }
 0x954   :  { %v9395_v4 = vmul.f32 0.17677669, %v11249_v61 }
 0x956   :  { %v1419_v5 = vsel %vm1229_vm1, %v9395_v4, -inf }
 0x957   :  { %1417 = vmax.xlane.f32.xlu2 %v1416_v40  ;;  %v1413_v40 = vsel %vm1229_vm1, %v9392_v39, -inf }
 0x958   :  { %1411 = vmax.xlane.f32.xlu1 %v1410_v0  ;;  %1405 = vmax.xlane.f32.xlu0 %v1404_v26 }
 0x95a   :  { %v9389_v15 = vpop.xlane.xlu1 %1714 }
 0x95b   :  { %11247 = vst [vmem:[#allocation31_spill] sm:$0xff] %v9389_v15 }
 0x960   :  { %1420 = vmax.xlane.f32.xlu1 %v1419_v5  ;;  %1414 = vmax.xlane.f32.xlu0 %v1413_v40 }
 0x962   :  { %v9401_v20 = vpop.xlane.xlu1 %1717 }
 0x963   :  { %11250 = vst [vmem:[#allocation27_spill] sm:$0xff] %v9401_v20 }
 0x96a   :  { %v9403_v0 = vpop.xlane.xlu1 %1720 }
 0x96b   :  { %11251 = vst [vmem:[#allocation29_spill] sm:$0xff] %v9403_v0 }
 0x972   :  { %v9405_v26 = vpop.xlane.xlu1 %1723 }
 0x973   :  { %11252 = vst [vmem:[#allocation43_spill] sm:$0xff] %v9405_v26 }
 0x97a   :  { %v9407_v15 = vpop.xlane.xlu1 %1726 }
 0x97b   :  { %11253 = vst [vmem:[#allocation42_spill] sm:$0xff] %v9407_v15 }
 0x982   :  { %v9409_v51 = vpop.xlane.xlu1 %1729  ;;  %v9413_v33 = vpop.xlane.xlu2 %1738 }
 0x983   :  { %11254 = vst [vmem:[#allocation34_spill] sm:$0xff] %v9409_v51 }
 0x984   :  { %11256 = vst [vmem:[#allocation32_spill] sm:$0xff] %v9413_v33 }
 0x98a   :  { %v9411_v61 = vpop.xlane.xlu1 %1732 }
 0x98b   :  { %11255 = vst [vmem:[#allocation30_spill] sm:$0xff] %v9411_v61 }
 0x992   :  { %v9415_v28 = vpop.xlane.xlu1 %1735  ;;  %v9425_v0 = vpop.xlane.xlu0 %1744 }
 0x993   :  { %11257 = vst [vmem:[#allocation37_spill] sm:$0xff] %v9415_v28 }
 0x994   :  { %11262 = vst [vmem:[#allocation38_spill] sm:$0xff] %v9425_v0 }
 0x99a   :  { %v9417_v55 = vpop.xlane.xlu1 %1741  ;;  %v9419_v5 = vpop.xlane.xlu2 %1747 }
 0x99b   :  { %11258 = vst [vmem:[#allocation33_spill] sm:$0xff] %v9417_v55 }
 0x99c   :  { %11259 = vst [vmem:[#allocation35_spill] sm:$0xff] %v9419_v5 }
 0x9a2   :  { %v9421_v40 = vpop.xlane.xlu1 %1750  ;;  %v9423_v20 = vpop.xlane.xlu2 %1756 }
 0x9a3   :  { %11260 = vst [vmem:[#allocation40_spill] sm:$0xff] %v9421_v40 }
 0x9a4   :  { %11261 = vst [vmem:[#allocation36_spill] sm:$0xff] %v9423_v20 }
 0x9aa   :  { %v1376_v26 = vpop.xlane.xlu1 %1375  ;;  %v1382_v15 = vpop.xlane.xlu2 %1381 }
 0x9ab   :  { %v1470_v51 = vsub.f32 %v9302_v44, %v1376_v26  ;;  %v9428_v2 = vpop.xlane.xlu0 %1753  ;;  %v1472_v33 = vsub.f32 %v9305_v56, %v1382_v15 }
 0x9ac   :  { %11263 = vst [vmem:[#allocation39_spill] sm:$0xff] %v9428_v2 }
 0x9ad   :  { %v1582_v61 = vmul.f32 1.442695, %v1470_v51  ;;  %v1586_v28 = vmul.f32 1.442695, %v1472_v33 }
 0x9af   :  { %7631 = vpow2.f32 %v1582_v61 }
 0x9b0   :  { %7633 = vpow2.f32 %v1586_v28 }
 0x9b2   :  { %v1391_v55 = vpop.xlane.xlu2 %1390 }
 0x9b3   :  { %v1385_v5 = vpop.xlane.xlu1 %1384  ;;  %v1379_v52 = vpop.xlane.xlu0 %1378  ;;  %v1475_v40 = vsub.f32 %v9318_v37, %v1391_v55 }
 0x9b4   :  { %v1473_v20 = vsub.f32 %v9324_v35, %v1385_v5  ;;  %v1471_v0 = vsub.f32 %v9321_v27, %v1379_v52 }
 0x9b5   :  { %v9434_v10 = vpop.eup %7631  ;;  %v1592_v44 = vmul.f32 1.442695, %v1475_v40 }
 0x9b6   :  { %11264 = vst [vmem:[#allocation41_spill] sm:$0xff] %v9434_v10  ;;  %v9436_v26 = vpop.eup %7633  ;;  %v1588_v2 = vmul.f32 1.442695, %v1473_v20  ;;  %v1584_v56 = vmul.f32 1.442695, %v1471_v0  ;;  %v1758_v33 = vsel %vm1229_vm1, %v9434_v10, 0.0 }
 0x9b7   :  { %11265 = vst [vmem:[#allocation101_spill] sm:$0xff] %v9436_v26  ;;  %7635 = vpow2.f32 %v1592_v44  ;;  %1759 = vadd.xlane.f32.xlu0 %v1758_v33  ;;  %v1764_v28 = vsel %vm1229_vm1, %v9436_v26, 0.0 }
 0x9b8   :  { %7637 = vpow2.f32 %v1588_v2  ;;  %1765 = vadd.xlane.f32.xlu1 %v1764_v28 }
 0x9b9   :  { %7639 = vpow2.f32 %v1584_v56 }
 0x9ba   :  { %v1400_v55 = vpop.xlane.xlu2 %1399 }
 0x9bb   :  { %v1394_v52 = vpop.xlane.xlu1 %1393  ;;  %v1388_v35 = vpop.xlane.xlu0 %1387  ;;  %v1478_v37 = vsub.f32 %v9341_v13, %v1400_v55 }
 0x9bc   :  { %v1476_v27 = vsub.f32 %v9347_v42, %v1394_v52  ;;  %v1474_v20 = vsub.f32 %v9344_v31, %v1388_v35  ;;  %v9445_v15 = vpop.f32.mrf.mxu0 }
 0x9bd   :  { %v9447_v0 = vpop.eup %7635  ;;  %v1598_v51 = vmul.f32 1.442695, %v1478_v37 }
 0x9be   :  { %11266 = vst [vmem:[#allocation102_spill] sm:$0xff] %v9447_v0  ;;  %v9449_v61 = vpop.eup %7637  ;;  %v1594_v5 = vmul.f32 1.442695, %v1476_v27  ;;  %v1590_v2 = vmul.f32 1.442695, %v1474_v20  ;;  %v1773_v40 = vsel %vm1229_vm1, %v9447_v0, 0.0 }
 0x9bf   :  { %11267 = vst [vmem:[#allocation103_spill] sm:$0xff] %v9449_v61  ;;  %v9453_v44 = vpop.eup %7639  ;;  %7641 = vpow2.f32 %v1598_v51  ;;  %v1767_v42 = vsel %vm1229_vm1, %v9449_v61, 0.0  ;;  %v11329_v0 = vld [vmem:[#allocation72_spill] sm:$0xff] }
 0x9c0   :  { %11268 = vst [vmem:[#allocation104_spill] sm:$0xff] %v9453_v44  ;;  %7643 = vpow2.f32 %v1594_v5  ;;  %1768 = vadd.xlane.f32.xlu0 %v1767_v42  ;;  %v1761_v13 = vsel %vm1229_vm1, %v9453_v44, 0.0  ;;  %1774 = vadd.xlane.f32.xlu1 %v1773_v40 }
 0x9c1   :  { %7645 = vpow2.f32 %v1590_v2  ;;  %1762 = vadd.xlane.f32.xlu2 %v1761_v13 }
 0x9c2   :  { %v1409_v31 = vpop.xlane.xlu2 %1408 }
 0x9c3   :  { %v1403_v56 = vpop.xlane.xlu1 %1402  ;;  %v1397_v33 = vpop.xlane.xlu0 %1396  ;;  %v1481_v28 = vsub.f32 %v9358_v19, %v1409_v31 }
 0x9c4   :  { %v1479_v55 = vsub.f32 %v9364_v29, %v1403_v56  ;;  %v1477_v52 = vsub.f32 %v9361_v45, %v1397_v33  ;;  %v9462_v35 = vpop.f32.mrf.mxu0  ;;  %v2810_v29 = vsub.f32 %v8501_v11, %v9445_v15 }
 0x9c5   :  { %v9464_v37 = vpop.eup %7641  ;;  %v1604_v27 = vmul.f32 1.442695, %v1481_v28  ;;  %v2811_v20 = vsub.f32 %v8498_v30, %v9462_v35 }
 0x9c6   :  { %11269 = vst [vmem:[#allocation105_spill] sm:$0xff] %v9464_v37  ;;  %v9468_v51 = vpop.eup %7643  ;;  %v1600_v5 = vmul.f32 1.442695, %v1479_v55  ;;  %v1596_v2 = vmul.f32 1.442695, %v1477_v52  ;;  %v1782_v40 = vsel %vm1229_vm1, %v9464_v37, 0.0 }
 0x9c7   :  { %11270 = vst [vmem:[#allocation106_spill] sm:$0xff] %v9468_v51  ;;  %v9472_v19 = vpop.eup %7645  ;;  %7647 = vpow2.f32 %v1604_v27  ;;  %2832 = vmatpush.msrb.mxu1 %v2811_v20  ;;  %v1776_v45 = vsel %vm1229_vm1, %v9468_v51, 0.0 }
 0x9c8   :  { %11271 = vst [vmem:[#allocation107_spill] sm:$0xff] %v9472_v19  ;;  %7649 = vpow2.f32 %v1600_v5  ;;  %1777 = vadd.xlane.f32.xlu0 %v1776_v45  ;;  %v1770_v42 = vsel %vm1229_vm1, %v9472_v19, 0.0  ;;  %1783 = vadd.xlane.f32.xlu1 %v1782_v40 }
 0x9c9   :  { %7651 = vpow2.f32 %v1596_v2  ;;  %1771 = vadd.xlane.f32.xlu2 %v1770_v42  ;;  %2833 = vmatpush.msrb.mxu1 %v2810_v29 }
 0x9ca   :  { %6753 = vmatmul.msk.f32.vlgmr.msrb.gmra.mxu1 %vm1229_vm1, %v9445_v15  ;;  %v1418_v13 = vpop.xlane.xlu2 %1417 }
 0x9cb   :  { %v1412_v31 = vpop.xlane.xlu1 %1411  ;;  %v1406_v56 = vpop.xlane.xlu0 %1405  ;;  %v1484_v33 = vsub.f32 %v9373_v59, %v1418_v13 }
 0x9cc   :  { %v1482_v28 = vsub.f32 %v9381_v57, %v1412_v31  ;;  %v1480_v55 = vsub.f32 %v9378_v36, %v1406_v56 }
 0x9cd   :  { %v9485_v52 = vpop.eup %7647  ;;  %v1610_v27 = vmul.f32 1.442695, %v1484_v33 }
 0x9ce   :  { %11272 = vst [vmem:[#allocation108_spill] sm:$0xff] %v9485_v52  ;;  %v9487_v20 = vpop.eup %7649  ;;  %v1606_v5 = vmul.f32 1.442695, %v1482_v28  ;;  %v1602_v2 = vmul.f32 1.442695, %v1480_v55  ;;  %v1791_v40 = vsel %vm1229_vm1, %v9485_v52, 0.0 }
 0x9cf   :  { %11273 = vst [vmem:[#allocation109_spill] sm:$0xff] %v9487_v20  ;;  %v9491_v45 = vpop.eup %7651  ;;  %7653 = vpow2.f32 %v1610_v27  ;;  %v1785_v59 = vsel %vm1229_vm1, %v9487_v20, 0.0  ;;  %v11326_v20 = vld [vmem:[#allocation23_spill] sm:$0xff] }
 0x9d0   :  { %11274 = vst [vmem:[#allocation110_spill] sm:$0xff] %v9491_v45  ;;  %7655 = vpow2.f32 %v1606_v5  ;;  %1786 = vadd.xlane.f32.xlu0 %v1785_v59  ;;  %v1779_v57 = vsel %vm1229_vm1, %v9491_v45, 0.0  ;;  %1792 = vadd.xlane.f32.xlu1 %v1791_v40 }
 0x9d1   :  { %7657 = vpow2.f32 %v1602_v2  ;;  %1780 = vadd.xlane.f32.xlu2 %v1779_v57 }
 0x9d2   :  { %6754 = vmatmul.msk.f32.gmra.mxu1 %vm1229_vm1, %v9462_v35 }
 0x9d3   :  { %v1421_v36 = vpop.xlane.xlu1 %1420  ;;  %v1415_v29 = vpop.xlane.xlu0 %1414 }
 0x9d4   :  { %v1485_v42 = vsub.f32 %v9395_v4, %v1421_v36  ;;  %v1483_v13 = vsub.f32 %v9392_v39, %v1415_v29 }
 0x9d5   :  { %v9501_v31 = vpop.eup %7653 }
 0x9d6   :  { %11275 = vst [vmem:[#allocation111_spill] sm:$0xff] %v9501_v31  ;;  %v9503_v56 = vpop.eup %7655  ;;  %v1612_v33 = vmul.f32 1.442695, %v1485_v42  ;;  %v1608_v28 = vmul.f32 1.442695, %v1483_v13  ;;  %v1800_v55 = vsel %vm1229_vm1, %v9501_v31, 0.0 }
 0x9d7   :  { %11276 = vst [vmem:[#allocation112_spill] sm:$0xff] %v9503_v56  ;;  %v9507_v27 = vpop.eup %7657  ;;  %v1794_v5 = vsel %vm1229_vm1, %v9503_v56, 0.0  ;;  %v11280_v13 = vld [vmem:[#allocation54_spill] sm:$0xff] }
 0x9d8   :  { %11277 = vst [vmem:[#allocation113_spill] sm:$0xff] %v9507_v27  ;;  %7659 = vpow2.f32 %v1612_v33  ;;  %1795 = vadd.xlane.f32.xlu0 %v1794_v5  ;;  %v1788_v4 = vsel %vm1229_vm1, %v9507_v27, 0.0  ;;  %1801 = vadd.xlane.f32.xlu1 %v1800_v55  ;;  %vm3364_vm13 = vweird.f32 %v11280_v13  ;;  %v11325_v27 = vld [vmem:[#allocation26_spill] sm:$0xff] }
 0x9d9   :  { %7661 = vpow2.f32 %v1608_v28  ;;  %1789 = vadd.xlane.f32.xlu2 %v1788_v4 }
 0x9da   :  { %7663 = vrcp.f32 %v11280_v13 }
 0x9db   :  { %7665 = vrcp.f32 %v8797_v43 }
 0x9dc   :  { %7667 = vrcp.f32 %v9203_v23 }
 0x9dd   :  { %7669 = vrcp.f32 %v9209_v63 }
 0x9de   :  { %v9513_v39 = vpop.eup %7659  ;;  %7671 = vrcp.f32 %v9213_v9 }
 0x9df   :  { %11278 = vst [vmem:[#allocation114_spill] sm:$0xff] %v9513_v39  ;;  %v9515_v2 = vpop.eup %7661  ;;  %v1803_v40 = vsel %vm1229_vm1, %v9513_v39, 0.0  ;;  %v11286_v39 = vld [vmem:[#allocation47_spill] sm:$0xff]  ;;  %7673 = vrcp.f32 %v8815_v3 }
 0x9e0   :  { %11279 = vst [vmem:[#allocation115_spill] sm:$0xff] %v9515_v2  ;;  %1804 = vadd.xlane.f32.xlu0 %v1803_v40  ;;  %v1797_v59 = vsel %vm1229_vm1, %v9515_v2, 0.0  ;;  %v7664_v33 = vpop.eup %7663  ;;  %v11287_v2 = vld [vmem:[#allocation46_spill] sm:$0xff]  ;;  %7675 = vrcp.f32 %v8827_v24 }
 0x9e1   :  { %1798 = vadd.xlane.f32.xlu2 %v1797_v59  ;;  %v3360_v28 = vmul.f32 %v7664_v33, %v11280_v13  ;;  %vm3365_vm12 = vweird.f32 %v7664_v33  ;;  %v3370_v59 = vand.u32 2147483648, %v11280_v13  ;;  %7677 = vrcp.f32 %v8855_v41 }
 0x9e2   :  { %vm3366_vm14 = vmor %vm3364_vm13, %vm3365_vm12  ;;  %7679 = vrcp.f32 %v8857_v8 }
 0x9e3   :  { %v3361_v55 = vsub.f32 1.0, %v3360_v28  ;;  %v11282_v28 = vld [vmem:[#allocation50_spill] sm:$0xff]  ;;  %7681 = vrcp.f32 %v9237_v47  ;;  %v11288_v47 = vld [vmem:[#allocation60_spill] sm:$0xff] }
 0x9e4   :  { %7683 = vrcp.f32 %v8896_v34  ;;  %v11290_v34 = vld [vmem:[#allocation58_spill] sm:$0xff] }
 0x9e5   :  { %v3362_v4 = vmul.f32 %v7664_v33, %v3361_v55 }
 0x9e7   :  { %v3363_v40 = vadd.f32 %v7664_v33, %v3362_v4 }
 0xa47   :  { %v2835_v57 = vpop.f32.mrf.mxu1 }
 0xa48   :  { %v2841_v42 = vsub.f32 %v8582_v48, %v2835_v57  ;;  %v3371_v57 = vor.u32 1.1754944e-38, %v3370_v59  ;;  %v9569_v59 = vld [vmem:[%s10976_s0] ss:$0 sm:$0xff] }
 0xa4f   :  { %v2838_v36 = vpop.f32.mrf.mxu1 }
 0xa50   :  { %v2842_v29 = vsub.f32 %v8576_v53, %v2838_v36 }
 0xa52   :  { %2857 = vmatpush.msra.mxu2 %v2842_v29 }
 0xa54   :  { %2858 = vmatpush.msra.mxu2 %v2841_v42 }
 0xa55   :  { %6755 = vmatmul.msk.f32.vlgmr.msra.gmra.mxu2 %vm1229_vm1, %v9445_v15  ;;  %v3367_v15 = vsel %vm3366_vm14, %v7664_v33, %v3363_v40  ;;  %v11281_v33 = vld [vmem:[#allocation51_spill] sm:$0xff] }
 0xa56   :  { %3152 = vmatpush.msrb.mxu2 %v11235_v14  ;;  %v3368_v14 = vand.u32 2147483647, %v11280_v13 }
 0xa58   :  { %3153 = vmatpush.msrb.mxu2 %v11236_v60  ;;  %vm3369_vm15 = vcmp.eq.f32.partialorder %v3368_v14, 8.507059e+37  ;;  %v11283_v14 = vld [vmem:[#allocation44_spill] sm:$0xff] }
 0xa59   :  { %v3372_v29 = vsel %vm3369_vm15, %v3371_v57, %v3367_v15  ;;  %vm3042_vm2 = vcmp.eq.s32.totalorder %v11283_v14, %v9569_v59 }
 0xa5a   :  { %v9537_v42 = vmul.f32 %v3372_v29, %v8769_v46  ;;  %v9542_v13 = vmul.f32 %v3372_v29, %v8760_v17  ;;  %v9581_v29 = vadd.s32 16, %v11283_v14 }
 0xa5c   :  { %vm3044_vm4 = vcmp.eq.s32.totalorder %v9581_v29, %v9569_v59 }
 0xa5d   :  { %6756 = vmatmul.msk.f32.gmra.mxu2 %vm1229_vm1, %v9462_v35 }
 0xad8   :  { %v2860_v5 = vpop.f32.mrf.mxu2 }
 0xad9   :  { %v2866_v36 = vsub.f32 %v8613_v32, %v2860_v5 }
 0xae0   :  { %v2863_v60 = vpop.f32.mrf.mxu2 }
 0xae1   :  { %v2867_v35 = vsub.f32 %v8610_v22, %v2863_v60  ;;  %v11284_v60 = vmov 0.0  }
 0xae2   :  { %v6777_v15 = vsel %vm3042_vm2, 1.0, %v11284_v60 }
 0xae3   :  { %2888 = vmatpush.msra.mxu3 %v2867_v35  ;;  %6793 = vmatmul.msk.f32.vlgmr.msrb.gmra.mxu2 %vm1229_vm1, %v6777_v15  ;;  %v11285_v35 = vld [vmem:[#allocation45_spill] sm:$0xff] }
 0xae4   :  { %vm3043_vm3 = vcmp.eq.s32.totalorder %v11285_v35, %v9569_v59 }
 0xae5   :  { %2889 = vmatpush.msra.mxu3 %v2866_v36  ;;  %v6778_v57 = vsel %vm3043_vm3, 1.0, %v11284_v60  ;;  %v3203_v36 = vsel %vm1229_vm1, %v6777_v15, 0.0  ;;  %v9598_v15 = vadd.s32 32, %v11283_v14 }
 0xae6   :  { %6757 = vmatmul.msk.f32.vlgmr.msra.gmra.mxu3 %vm1229_vm1, %v9326_v12  ;;  %3204 = vadd.xlane.f32.xlu2 %v3203_v36 }
 0xae7   :  { %3395 = vmatpush.msrb.mxu3 %v9537_v42  ;;  %vm3046_vm6 = vcmp.eq.s32.totalorder %v9598_v15, %v9569_v59 }
 0xae8   :  { %v6781_v36 = vsel %vm3046_vm6, 1.0, %v11284_v60 }
 0xae9   :  { %3396 = vmatpush.msrb.mxu3 %v9542_v13 }
 0xaeb   :  { %6794 = vmatmul.msk.f32.gmra.mxu2 %vm1229_vm1, %v6778_v57 }
 0xaee   :  { %6758 = vmatmul.msk.f32.gmra.mxu3 %vm1229_vm1, %v9315_v6 }
 0xaf6   :  { %6809 = vmatmul.msk.f32.vlgmr.msrb.gmra.mxu3 %vm1229_vm1, %v11281_v33 }
 0xafe   :  { %6810 = vmatmul.msk.f32.gmra.mxu3 %vm1229_vm1, %v11282_v28 }
 0xb69   :  { %v2891_v46 = vpop.f32.mrf.mxu3 }
 0xb6a   :  { %v2897_v55 = vmul.f32 0.25, %v2891_v46  ;;  %v6779_v46 = vsel %vm3044_vm4, 1.0, %v11284_v60 }
 0xb6b   :  { %6795 = vmatmul.msk.f32.gmra.mxu2 %vm1229_vm1, %v6779_v46 }
 0xb6c   :  { %6759 = vmatmul.msk.f32.vlgmr.msra.gmra.mxu0 %vm1229_vm1, %v2897_v55  ;;  %v3206_v55 = vsel %vm1229_vm1, %v6778_v57, 0.0  ;;  %v7666_v57 = vpop.eup %7665 }
 0xb6d   :  { %3207 = vadd.xlane.f32.xlu1 %v3206_v55  ;;  %v1870_v43 = vmul.f32 %v7666_v57, %v8726_v54  ;;  %v7668_v31 = vpop.eup %7667 }
 0xb6e   :  { %v1871_v54 = vmul.f32 %v7668_v31, %v8738_v58  ;;  %v7670_v57 = vpop.eup %7669 }
 0xb6f   :  { %v1872_v58 = vmul.f32 %v7670_v57, %v8748_v38 }
 0xb71   :  { %v2894_v12 = vpop.f32.mrf.mxu3 }
 0xb72   :  { %v2898_v17 = vmul.f32 0.25, %v2894_v12  ;;  %v9589_v12 = vadd.s32 24, %v11283_v14 }
 0xb74   :  { %6760 = vmatmul.msk.f32.gmra.mxu0 %vm1229_vm1, %v2898_v17  ;;  %vm3045_vm5 = vcmp.eq.s32.totalorder %v9589_v12, %v9569_v59 }
 0xb75   :  { %v6780_v17 = vsel %vm3045_vm5, 1.0, %v11284_v60 }
 0xb76   :  { %6796 = vmatmul.msk.f32.gmra.mxu2 %vm1229_vm1, %v6780_v17 }
 0xb79   :  { %v9554_v5 = vpop.f32.mrf.mxu3 }
 0xb7a   :  { %v3404_v40 = vsub.f32 %v8501_v11, %v9554_v5 }
 0xb7e   :  { %6797 = vmatmul.msk.f32.gmra.mxu2 %vm1229_vm1, %v6781_v36 }
 0xb81   :  { %v9556_v4 = vpop.f32.mrf.mxu3 }
 0xb82   :  { %v3405_v6 = vsub.f32 %v8498_v30, %v9556_v4 }
 0xb84   :  { %3426 = vmatpush.msrb.mxu0 %v3405_v6 }
 0xb86   :  { %3427 = vmatpush.msrb.mxu0 %v3404_v40  ;;  %v3209_v40 = vsel %vm1229_vm1, %v6779_v46, 0.0  ;;  %v3212_v46 = vsel %vm1229_vm1, %v6780_v17, 0.0  ;;  %v3215_v17 = vsel %vm1229_vm1, %v6781_v36, 0.0  ;;  %v9633_v36 = vadd.s32 56, %v11283_v14 }
 0xb87   :  { %6811 = vmatmul.msk.f32.vlgmr.msrb.gmra.mxu0 %vm1229_vm1, %v9554_v5  ;;  %3210 = vadd.xlane.f32.xlu0 %v3209_v40  ;;  %v9609_v40 = vadd.s32 40, %v11283_v14 }
 0xb88   :  { %3213 = vadd.xlane.f32.xlu2 %v3212_v46  ;;  %3216 = vadd.xlane.f32.xlu1 %v3215_v17  ;;  %vm3049_vm9 = vcmp.eq.s32.totalorder %v9633_v36, %v9569_v59  ;;  %v9645_v17 = vadd.s32 64, %v11283_v14 }
 0xb89   :  { %vm3047_vm7 = vcmp.eq.s32.totalorder %v9609_v40, %v9569_v59  ;;  %v6784_v46 = vsel %vm3049_vm9, 1.0, %v11284_v60 }
 0xb8a   :  { %v6782_v23 = vsel %vm3047_vm7, 1.0, %v11284_v60  ;;  %vm3050_vm10 = vcmp.eq.s32.totalorder %v9645_v17, %v9569_v59 }
 0xb8b   :  { %6798 = vmatmul.msk.f32.gmra.mxu2 %vm1229_vm1, %v6782_v23  ;;  %v3218_v31 = vsel %vm1229_vm1, %v6782_v23, 0.0 }
 0xb8f   :  { %6812 = vmatmul.msk.f32.gmra.mxu0 %vm1229_vm1, %v9556_v4  ;;  %3219 = vadd.xlane.f32.xlu0 %v3218_v31 }
 0xbe9   :  { %v2922_v6 = vpop.f32.mrf.mxu0 }
 0xbf1   :  { %v2925_v55 = vpop.f32.mrf.mxu0 }
 0xbf2   :  { %2990 = vmatpush.msra.mxu1 %v2925_v55 }
 0xbf4   :  { %2991 = vmatpush.msra.mxu1 %v2922_v6  ;;  %v9622_v6 = vadd.s32 48, %v11283_v14 }
 0xbf5   :  { %6761 = vmatmul.msk.f32.vlgmr.msra.gmra.mxu1 %vm1229_vm1, %v1870_v43  ;;  %v7672_v43 = vpop.eup %7671 }
 0xbf6   :  { %3849 = vmatpush.msrb.mxu1 %v11286_v39  ;;  %vm3048_vm8 = vcmp.eq.s32.totalorder %v9622_v6, %v9569_v59  ;;  %v1873_v38 = vmul.f32 %v7672_v43, %v8754_v50  ;;  %v7674_v3 = vpop.eup %7673  ;;  %v6785_v50 = vsel %vm3050_vm10, 1.0, %v11284_v60 }
 0xbf7   :  { %v6783_v55 = vsel %vm3048_vm8, 1.0, %v11284_v60  ;;  %v7676_v31 = vpop.eup %7675  ;;  %v3227_v24 = vsel %vm1229_vm1, %v6785_v50, 0.0 }
 0xbf8   :  { %3850 = vmatpush.msrb.mxu1 %v11287_v2  ;;  %6799 = vmatmul.msk.f32.gmra.mxu2 %vm1229_vm1, %v6783_v55  ;;  %v3221_v23 = vsel %vm1229_vm1, %v6783_v55, 0.0  ;;  %v1874_v55 = vmul.f32 %v7674_v3, %v8774_v62  ;;  %v1875_v62 = vmul.f32 %v7676_v31, %v8781_v7 }
 0xbf9   :  { %3222 = vadd.xlane.f32.xlu2 %v3221_v23  ;;  %3228 = vadd.xlane.f32.xlu0 %v3227_v24  ;;  %v9694_v23 = vadd.s32 96, %v11283_v14 }
 0xbfb   :  { %vm3054_vm14 = vcmp.eq.s32.totalorder %v9694_v23, %v9569_v59 }
 0xbfc   :  { %v6789_v3 = vsel %vm3054_vm14, 1.0, %v11284_v60 }
 0xbfd   :  { %6762 = vmatmul.msk.f32.gmra.mxu1 %vm1229_vm1, %v1871_v54  ;;  %v3239_v24 = vsel %vm1229_vm1, %v6789_v3, 0.0 }
 0xc00   :  { %6800 = vmatmul.msk.f32.gmra.mxu2 %vm1229_vm1, %v6784_v46 }
 0xc04   :  { %v3429_v63 = vpop.f32.mrf.mxu0 }
 0xc05   :  { %6763 = vmatmul.msk.f32.gmra.mxu1 %vm1229_vm1, %v1872_v58  ;;  %v3435_v57 = vsub.f32 %v8582_v48, %v3429_v63  ;;  %v3224_v58 = vsel %vm1229_vm1, %v6784_v46, 0.0  ;;  %v9659_v63 = vadd.s32 72, %v11283_v14  ;;  %v7678_v46 = vpop.eup %7677 }
 0xc06   :  { %3225 = vadd.xlane.f32.xlu1 %v3224_v58  ;;  %v1876_v7 = vmul.f32 %v7678_v46, %v8793_v1  ;;  %v9716_v46 = vadd.s32 112, %v11283_v14 }
 0xc07   :  { %vm3051_vm11 = vcmp.eq.s32.totalorder %v9659_v63, %v9569_v59 }
 0xc08   :  { %6801 = vmatmul.msk.f32.gmra.mxu2 %vm1229_vm1, %v6785_v50  ;;  %v6786_v43 = vsel %vm3051_vm11, 1.0, %v11284_v60  ;;  %vm3056_vm2 = vcmp.eq.s32.totalorder %v9716_v46, %v9569_v59 }
 0xc09   :  { %v3230_v41 = vsel %vm1229_vm1, %v6786_v43, 0.0 }
 0xc0a   :  { %3231 = vadd.xlane.f32.xlu2 %v3230_v41  ;;  %v11291_v41 = vld [vmem:[#allocation69_spill] sm:$0xff] }
 0xc0c   :  { %v3432_v9 = vpop.f32.mrf.mxu0 }
 0xc0d   :  { %v3436_v54 = vsub.f32 %v8576_v53, %v3432_v9  ;;  %6764 = vmatmul.msk.f32.gmra.mxu1 %vm1229_vm1, %v1873_v38  ;;  %v7680_v9 = vpop.eup %7679 }
 0xc0e   :  { %v1877_v1 = vmul.f32 %v7680_v9, %v8800_v49  ;;  %v11292_v9 = vld [vmem:[#allocation59_spill] sm:$0xff] }
 0xc0f   :  { %3451 = vmatpush.msra.mxu3 %v3436_v54 }
 0xc10   :  { %6802 = vmatmul.msk.f32.gmra.mxu2 %vm1229_vm1, %v6786_v43  ;;  %v11289_v43 = vld [vmem:[#allocation66_spill] sm:$0xff] }
 0xc11   :  { %3452 = vmatpush.msra.mxu3 %v3435_v57  ;;  %v7682_v57 = vpop.eup %7681  ;;  %7685 = vrcp.f32 %v11289_v43  ;;  %v11295_v43 = vld [vmem:[#allocation70_spill] sm:$0xff] }
 0xc12   :  { %6813 = vmatmul.msk.f32.vlgmr.msra.gmra.mxu3 %vm1229_vm1, %v9554_v5  ;;  %v9672_v5 = vadd.s32 80, %v11283_v14  ;;  %v1878_v49 = vmul.f32 %v7682_v57, %v11288_v47  ;;  %v7684_v58 = vpop.eup %7683  ;;  %3240 = vadd.xlane.f32.xlu2 %v3239_v24  ;;  %7687 = vrcp.f32 %v11291_v41  ;;  %v11293_v47 = vld [vmem:[#allocation67_spill] sm:$0xff]  ;;  %v11298_v41 = vld [vmem:[#allocation62_spill] sm:$0xff] }
 0xc13   :  { %7689 = vrcp.f32 %v11293_v47 }
 0xc14   :  { %vm3052_vm12 = vcmp.eq.s32.totalorder %v9672_v5, %v9569_v59  ;;  %7691 = vrcp.f32 %v11295_v43 }
 0xc15   :  { %6765 = vmatmul.msk.f32.gmra.mxu1 %vm1229_vm1, %v1874_v55  ;;  %v6787_v38 = vsel %vm3052_vm12, 1.0, %v11284_v60  ;;  %v9705_v55 = vadd.s32 104, %v11283_v14 }
 0xc16   :  { %v3233_v8 = vsel %vm1229_vm1, %v6787_v38, 0.0 }
 0xc17   :  { %3234 = vadd.xlane.f32.xlu1 %v3233_v8  ;;  %vm3055_vm15 = vcmp.eq.s32.totalorder %v9705_v55, %v9569_v59  ;;  %v9727_v8 = vadd.s32 120, %v11283_v14 }
 0xc18   :  { %6803 = vmatmul.msk.f32.gmra.mxu2 %vm1229_vm1, %v6787_v38  ;;  %v6790_v31 = vsel %vm3055_vm15, 1.0, %v11284_v60  ;;  %v7686_v38 = vpop.eup %7685 }
 0xc19   :  { %vm3057_vm3 = vcmp.eq.s32.totalorder %v9727_v8, %v9569_v59  ;;  %v7688_v57 = vpop.eup %7687 }
 0xc1a   :  { %6814 = vmatmul.msk.f32.gmra.mxu3 %vm1229_vm1, %v9556_v4  ;;  %v9683_v4 = vadd.s32 88, %v11283_v14 }
 0xc1c   :  { %vm3053_vm13 = vcmp.eq.s32.totalorder %v9683_v4, %v9569_v59 }
 0xc1d   :  { %6766 = vmatmul.msk.f32.gmra.mxu1 %vm1229_vm1, %v1875_v62  ;;  %v6788_v54 = vsel %vm3053_vm13, 1.0, %v11284_v60  ;;  %v1879_v62 = vmul.f32 %v7684_v58, %v11290_v34  ;;  %v11296_v34 = vld [vmem:[#allocation63_spill] sm:$0xff] }
 0xc1e   :  { %v3236_v50 = vsel %vm1229_vm1, %v6788_v54, 0.0 }
 0xc1f   :  { %3237 = vadd.xlane.f32.xlu0 %v3236_v50 }
 0xc20   :  { %6804 = vmatmul.msk.f32.gmra.mxu2 %vm1229_vm1, %v6788_v54  ;;  %v1880_v54 = vmul.f32 %v7686_v38, %v11292_v9  ;;  %v11297_v38 = vld [vmem:[#allocation68_spill] sm:$0xff] }
 0xc21   :  { %7693 = vrcp.f32 %v11297_v38 }
 0xc25   :  { %6767 = vmatmul.msk.f32.gmra.mxu1 %vm1229_vm1, %v1876_v7  ;;  %v6791_v7 = vsel %vm3056_vm2, 1.0, %v11284_v60 }
 0xc26   :  { %v3245_v58 = vsel %vm1229_vm1, %v6791_v7, 0.0 }
 0xc27   :  { %3246 = vadd.xlane.f32.xlu0 %v3245_v58 }
 0xc28   :  { %6805 = vmatmul.msk.f32.gmra.mxu2 %vm1229_vm1, %v6789_v3  ;;  %v6792_v3 = vsel %vm3057_vm3, 1.0, %v11284_v60 }
 0xc29   :  { %v3248_v59 = vsel %vm1229_vm1, %v6792_v3, 0.0 }
 0xc2a   :  { %3249 = vadd.xlane.f32.xlu2 %v3248_v59 }
 0xc2d   :  { %6768 = vmatmul.msk.f32.gmra.mxu1 %vm1229_vm1, %v1877_v1  ;;  %v3242_v1 = vsel %vm1229_vm1, %v6790_v31, 0.0 }
 0xc2e   :  { %3243 = vadd.xlane.f32.xlu1 %v3242_v1  ;;  %v11300_v1 = vld [vmem:[#allocation64_spill] sm:$0xff] }
 0xc30   :  { %6806 = vmatmul.msk.f32.gmra.mxu2 %vm1229_vm1, %v6790_v31  ;;  %v7690_v31 = vpop.eup %7689 }
 0xc31   :  { %v7692_v24 = vpop.eup %7691 }
 0xc32   :  { %v1883_v9 = vmul.f32 %v7692_v24, %v11298_v41 }
 0xc35   :  { %6769 = vmatmul.msk.f32.gmra.mxu1 %vm1229_vm1, %v1878_v49  ;;  %v11294_v49 = vld [vmem:[#allocation61_spill] sm:$0xff] }
 0xc36   :  { %v1881_v50 = vmul.f32 %v7688_v57, %v11294_v49  ;;  %v11301_v49 = vld [vmem:[#allocation65_spill] sm:$0xff] }
 0xc38   :  { %6807 = vmatmul.msk.f32.gmra.mxu2 %vm1229_vm1, %v6791_v7  ;;  %v11299_v7 = vld [vmem:[#allocation71_spill] sm:$0xff] }
 0xc39   :  { %7695 = vrcp.f32 %v11299_v7 }
 0xc3d   :  { %6770 = vmatmul.msk.f32.gmra.mxu1 %vm1229_vm1, %v1879_v62  ;;  %v1882_v62 = vmul.f32 %v7690_v31, %v11296_v34 }
 0xc40   :  { %6808 = vmatmul.msk.f32.gmra.mxu2 %vm1229_vm1, %v6792_v3 }
 0xc45   :  { %6771 = vmatmul.msk.f32.gmra.mxu1 %vm1229_vm1, %v1880_v54  ;;  %v7694_v54 = vpop.eup %7693 }
 0xc46   :  { %v1884_v57 = vmul.f32 %v7694_v54, %v11300_v1  ;;  %v7696_v47 = vpop.eup %7695 }
 0xc47   :  { %v1885_v3 = vmul.f32 %v7696_v47, %v11301_v49 }
 0xc4d   :  { %6772 = vmatmul.msk.f32.gmra.mxu1 %vm1229_vm1, %v1881_v50 }
 0xc55   :  { %6773 = vmatmul.msk.f32.gmra.mxu1 %vm1229_vm1, %v1882_v62 }
 0xc5d   :  { %6774 = vmatmul.msk.f32.gmra.mxu1 %vm1229_vm1, %v1883_v9 }
 0xc65   :  { %6775 = vmatmul.msk.f32.gmra.mxu1 %vm1229_vm1, %v1884_v57 }
 0xc6d   :  { %6776 = vmatmul.msk.f32.gmra.mxu1 %vm1229_vm1, %v1885_v3 }
 0xc95   :  { %v3454_v50 = vpop.f32.mrf.mxu3 }
 0xc96   :  { %v3460_v43 = vsub.f32 %v8613_v32, %v3454_v50 }
 0xc9d   :  { %v3457_v58 = vpop.f32.mrf.mxu3 }
 0xc9e   :  { %v3461_v31 = vsub.f32 %v8610_v22, %v3457_v58 }
 0xca0   :  { %3482 = vmatpush.msra.mxu0 %v3461_v31 }
 0xca2   :  { %3483 = vmatpush.msra.mxu0 %v3460_v43 }
 0xca3   :  { %6815 = vmatmul.msk.f32.vlgmr.msra.gmra.mxu0 %vm1229_vm1, %v9542_v13 }
 0xcab   :  { %6816 = vmatmul.msk.f32.gmra.mxu0 %vm1229_vm1, %v9537_v42 }
 0xd20   :  { %v3485_v34 = vpop.f32.mrf.mxu0 }
 0xd21   :  { %v3491_v24 = vmul.f32 0.25, %v3485_v34 }
 0xd28   :  { %v3488_v62 = vpop.f32.mrf.mxu0 }
 0xd29   :  { %v3492_v59 = vmul.f32 0.25, %v3488_v62 }
 0xd2b   :  { %3507 = vmatpush.msrb.mxu3 %v3492_v59 }
 0xd2d   :  { %3508 = vmatpush.msrb.mxu3 %v3491_v24 }
 0xd2e   :  { %6817 = vmatmul.msk.f32.vlgmr.msrb.gmra.mxu3 %vm1229_vm1, %v11281_v33 }
 0xd36   :  { %6818 = vmatmul.msk.f32.gmra.mxu3 %vm1229_vm1, %v11282_v28 }
 0xdb1   :  { %v3510_v38 = vpop.f32.mrf.mxu3 }
 0xdb2   :  { %v3516_v13 = vsub.f32 %v8501_v11, %v3510_v38 }
 0xdb9   :  { %v3513_v41 = vpop.f32.mrf.mxu3 }
 0xdba   :  { %v3517_v9 = vsub.f32 %v8498_v30, %v3513_v41 }
 0xdbc   :  { %3538 = vmatpush.msrb.mxu0 %v3517_v9 }
 0xdbe   :  { %3539 = vmatpush.msrb.mxu0 %v3516_v13 }
 0xdbf   :  { %6819 = vmatmul.msk.f32.vlgmr.msrb.gmra.mxu0 %vm1229_vm1, %v3510_v38 }
 0xdc7   :  { %6820 = vmatmul.msk.f32.gmra.mxu0 %vm1229_vm1, %v3513_v41 }
 0xe3c   :  { %v3541_v42 = vpop.f32.mrf.mxu0 }
 0xe3d   :  { %v3547_v1 = vsub.f32 %v8582_v48, %v3541_v42 }
 0xe44   :  { %v3544_v54 = vpop.f32.mrf.mxu0 }
 0xe45   :  { %v3548_v7 = vsub.f32 %v8576_v53, %v3544_v54 }
 0xe47   :  { %3563 = vmatpush.msra.mxu3 %v3548_v7 }
 0xe49   :  { %3564 = vmatpush.msra.mxu3 %v3547_v1 }
 0xe4a   :  { %6821 = vmatmul.msk.f32.vlgmr.msra.gmra.mxu3 %vm1229_vm1, %v3510_v38 }
 0xe52   :  { %6822 = vmatmul.msk.f32.gmra.mxu3 %vm1229_vm1, %v3513_v41 }
 0xecd   :  { %v3566_v57 = vpop.f32.mrf.mxu3 }
 0xece   :  { %v3572_v3 = vsub.f32 %v8613_v32, %v3566_v57 }
 0xed5   :  { %v3569_v47 = vpop.f32.mrf.mxu3 }
 0xed6   :  { %v3573_v49 = vsub.f32 %v8610_v22, %v3569_v47 }
 0xed8   :  { %3594 = vmatpush.msra.mxu0 %v3573_v49 }
 0xeda   :  { %3595 = vmatpush.msra.mxu0 %v3572_v3 }
 0xedb   :  { %6823 = vmatmul.msk.f32.vlgmr.msra.gmra.mxu0 %vm1229_vm1, %v3491_v24 }
 0xee3   :  { %6824 = vmatmul.msk.f32.gmra.mxu0 %vm1229_vm1, %v3492_v59 }
 0xf58   :  { %v3597_v50 = vpop.f32.mrf.mxu0 }
 0xf59   :  { %v3603_v43 = vmul.f32 0.25, %v3597_v50 }
 0xf60   :  { %v3600_v58 = vpop.f32.mrf.mxu0 }
 0xf61   :  { %v3604_v31 = vmul.f32 0.25, %v3600_v58 }
 0xf63   :  { %3619 = vmatpush.msrb.mxu3 %v3604_v31 }
 0xf65   :  { %3620 = vmatpush.msrb.mxu3 %v3603_v43 }
 0xf66   :  { %6825 = vmatmul.msk.f32.vlgmr.msrb.gmra.mxu3 %vm1229_vm1, %v11281_v33 }
 0xf6e   :  { %6826 = vmatmul.msk.f32.gmra.mxu3 %vm1229_vm1, %v11282_v28 }
 0xfe9   :  { %v3622_v34 = vpop.f32.mrf.mxu3 }
 0xfea   :  { %v3628_v24 = vsub.f32 %v8501_v11, %v3622_v34 }
 0xff1   :  { %v3625_v62 = vpop.f32.mrf.mxu3 }
 0xff2   :  { %v3629_v38 = vsub.f32 %v8498_v30, %v3625_v62 }
 0xff4   :  { %3650 = vmatpush.msrb.mxu0 %v3629_v38 }
 0xff6   :  { %3651 = vmatpush.msrb.mxu0 %v3628_v24 }
 0xff7   :  { %6827 = vmatmul.msk.f32.vlgmr.msrb.gmra.mxu0 %vm1229_vm1, %v3622_v34 }
 0xfff   :  { %6828 = vmatmul.msk.f32.gmra.mxu0 %vm1229_vm1, %v3625_v62 }
0x1074   :  { %v3653_v59 = vpop.f32.mrf.mxu0 }
0x1075   :  { %v3659_v13 = vsub.f32 %v8582_v48, %v3653_v59 }
0x107c   :  { %v3656_v41 = vpop.f32.mrf.mxu0 }
0x107d   :  { %v3660_v9 = vsub.f32 %v8576_v53, %v3656_v41 }
0x107f   :  { %3675 = vmatpush.msra.mxu3 %v3660_v9 }
0x1081   :  { %3676 = vmatpush.msra.mxu3 %v3659_v13 }
0x1082   :  { %6829 = vmatmul.msk.f32.vlgmr.msra.gmra.mxu3 %vm1229_vm1, %v3622_v34 }
0x108a   :  { %6830 = vmatmul.msk.f32.gmra.mxu3 %vm1229_vm1, %v3625_v62 }
0x1105   :  { %v3678_v42 = vpop.f32.mrf.mxu3 }
0x1106   :  { %v3684_v1 = vsub.f32 %v8613_v32, %v3678_v42 }
0x110d   :  { %v3681_v54 = vpop.f32.mrf.mxu3 }
0x110e   :  { %v3685_v7 = vsub.f32 %v8610_v22, %v3681_v54 }
0x1110   :  { %3706 = vmatpush.msra.mxu0 %v3685_v7 }
0x1112   :  { %3707 = vmatpush.msra.mxu0 %v3684_v1 }
0x1113   :  { %6831 = vmatmul.msk.f32.vlgmr.msra.gmra.mxu0 %vm1229_vm1, %v3603_v43 }
0x111b   :  { %6832 = vmatmul.msk.f32.gmra.mxu0 %vm1229_vm1, %v3604_v31 }
0x1190   :  { %v3709_v57 = vpop.f32.mrf.mxu0 }
0x1191   :  { %v3715_v3 = vmul.f32 0.25, %v3709_v57 }
0x1198   :  { %v3712_v47 = vpop.f32.mrf.mxu0 }
0x1199   :  { %v3716_v49 = vmul.f32 0.25, %v3712_v47 }
0x119b   :  { %3731 = vmatpush.msrb.mxu3 %v3716_v49 }
0x119d   :  { %3732 = vmatpush.msrb.mxu3 %v3715_v3 }
0x119e   :  { %6833 = vmatmul.msk.f32.vlgmr.msrb.gmra.mxu3 %vm1229_vm1, %v11281_v33 }
0x11a6   :  { %6834 = vmatmul.msk.f32.gmra.mxu3 %vm1229_vm1, %v11282_v28  ;;  %v11302_v28 = vld [vmem:[#allocation57_spill] sm:$0xff] }
0x11a7   :  { %7697 = vrcp.f32 %v11302_v28  ;;  %v4300_v54 = vand.u32 2147483648, %v11302_v28  ;;  %vm4294_vm5 = vweird.f32 %v11302_v28 }
0x11a8   :  { %7699 = vrcp.f32 %v9129_v25  ;;  %v11318_v25 = vld [vmem:[#allocation19_spill] sm:$0xff] }
0x11a9   :  { %v4301_v57 = vor.u32 1.1754944e-38, %v4300_v54  ;;  %7701 = vrcp.f32 %v9136_v18 }
0x11ad   :  { %v7698_v24 = vpop.eup %7697 }
0x11ae   :  { %v4290_v59 = vmul.f32 %v7698_v24, %v11302_v28  ;;  %vm4295_vm4 = vweird.f32 %v7698_v24 }
0x11af   :  { %vm4296_vm6 = vmor %vm4294_vm5, %vm4295_vm4 }
0x11b0   :  { %v4291_v41 = vsub.f32 1.0, %v4290_v59 }
0x11b2   :  { %v4292_v13 = vmul.f32 %v7698_v24, %v4291_v41 }
0x11b4   :  { %v4293_v42 = vadd.f32 %v7698_v24, %v4292_v13 }
0x11b6   :  { %v4297_v7 = vsel %vm4296_vm6, %v7698_v24, %v4293_v42 }
0x1221   :  { %v3734_v50 = vpop.f32.mrf.mxu3 }
0x1222   :  { %v3740_v43 = vsub.f32 %v8501_v11, %v3734_v50 }
0x1229   :  { %v3737_v58 = vpop.f32.mrf.mxu3 }
0x122a   :  { %v3741_v34 = vsub.f32 %v8498_v30, %v3737_v58 }
0x122c   :  { %3762 = vmatpush.msrb.mxu0 %v3741_v34 }
0x122e   :  { %3763 = vmatpush.msrb.mxu0 %v3740_v43  ;;  %v11303_v43 = vld [vmem:[#allocation55_spill] sm:$0xff] }
0x122f   :  { %6835 = vmatmul.msk.f32.vlgmr.msrb.gmra.mxu0 %vm1229_vm1, %v3734_v50 }
0x1237   :  { %6836 = vmatmul.msk.f32.gmra.mxu0 %vm1229_vm1, %v3737_v58 }
0x12ac   :  { %v3765_v31 = vpop.f32.mrf.mxu0 }
0x12ad   :  { %v3771_v33 = vsub.f32 %v8582_v48, %v3765_v31  ;;  %v11304_v31 = vld [vmem:[#allocation56_spill] sm:$0xff] }
0x12b4   :  { %v3768_v62 = vpop.f32.mrf.mxu0 }
0x12b5   :  { %v3772_v38 = vsub.f32 %v8576_v53, %v3768_v62 }
0x12b7   :  { %3787 = vmatpush.msra.mxu3 %v3772_v38 }
0x12b9   :  { %3788 = vmatpush.msra.mxu3 %v3771_v33 }
0x12ba   :  { %6837 = vmatmul.msk.f32.vlgmr.msra.gmra.mxu3 %vm1229_vm1, %v3734_v50 }
0x12bb   :  { %4082 = vmatpush.msrb.mxu3 %v11286_v39  ;;  %v4298_v39 = vand.u32 2147483647, %v11302_v28 }
0x12bd   :  { %4083 = vmatpush.msrb.mxu3 %v11287_v2  ;;  %vm4299_vm7 = vcmp.eq.f32.partialorder %v4298_v39, 8.507059e+37 }
0x12be   :  { %v4302_v50 = vsel %vm4299_vm7, %v4301_v57, %v4297_v7 }
0x12bf   :  { %v9813_v34 = vmul.f32 %v4302_v50, %v9222_v21 }
0x12c2   :  { %6838 = vmatmul.msk.f32.gmra.mxu3 %vm1229_vm1, %v3737_v58  ;;  %v9809_v58 = vmul.f32 %v4302_v50, %v9230_v16  ;;  %v9822_v16 = vpop.f32.mrf.mxu1 }
0x12c3   :  { %11305 = vst [vmem:[#allocation54_spill] sm:$0xff] %v9822_v16 }
0x12ca   :  { %v9824_v62 = vpop.f32.mrf.mxu1 }
0x12cb   :  { %11306 = vst [vmem:[#allocation51_spill] sm:$0xff] %v9824_v62 }
0x133d   :  { %v3790_v9 = vpop.f32.mrf.mxu3 }
0x133e   :  { %v3796_v47 = vsub.f32 %v8613_v32, %v3790_v9 }
0x1345   :  { %v3793_v2 = vpop.f32.mrf.mxu3 }
0x1346   :  { %v3797_v1 = vsub.f32 %v8610_v22, %v3793_v2 }
0x1348   :  { %3818 = vmatpush.msra.mxu0 %v3797_v1 }
0x134a   :  { %3819 = vmatpush.msra.mxu0 %v3796_v47 }
0x134b   :  { %6839 = vmatmul.msk.f32.vlgmr.msra.gmra.mxu0 %vm1229_vm1, %v3715_v3  ;;  %v9826_v3 = vpop.f32.mrf.mxu1 }
0x134c   :  { %4325 = vmatpush.msrb.mxu0 %v9809_v58  ;;  %11307 = vst [vmem:[#allocation50_spill] sm:$0xff] %v9826_v3 }
0x134e   :  { %4326 = vmatpush.msrb.mxu0 %v9813_v34 }
0x1353   :  { %6840 = vmatmul.msk.f32.gmra.mxu0 %vm1229_vm1, %v3716_v49  ;;  %v9828_v21 = vpop.f32.mrf.mxu1 }
0x1354   :  { %11308 = vst [vmem:[#allocation44_spill] sm:$0xff] %v9828_v21 }
0x135b   :  { %6891 = vmatmul.msk.f32.vlgmr.msrb.gmra.mxu0 %vm1229_vm1, %v11303_v43  ;;  %v9831_v24 = vpop.f32.mrf.mxu1 }
0x1363   :  { %6892 = vmatmul.msk.f32.gmra.mxu0 %vm1229_vm1, %v11304_v31  ;;  %v9836_v41 = vpop.f32.mrf.mxu1 }
0x136b   :  { %v9844_v54 = vpop.f32.mrf.mxu1 }
0x1373   :  { %v9850_v39 = vpop.f32.mrf.mxu1 }
0x137b   :  { %v9852_v2 = vpop.f32.mrf.mxu1 }
0x1383   :  { %v9854_v7 = vpop.f32.mrf.mxu1 }
0x138b   :  { %v9856_v1 = vpop.f32.mrf.mxu1 }
0x138c   :  { %11309 = vst [vmem:[#allocation45_spill] sm:$0xff] %v9856_v1 }
0x1393   :  { %v9858_v57 = vpop.f32.mrf.mxu1 }
0x1394   :  { %11310 = vst [vmem:[#allocation47_spill] sm:$0xff] %v9858_v57 }
0x139b   :  { %v9860_v47 = vpop.f32.mrf.mxu1 }
0x139c   :  { %11311 = vst [vmem:[#allocation46_spill] sm:$0xff] %v9860_v47 }
0x13a3   :  { %v9862_v50 = vpop.f32.mrf.mxu1 }
0x13a4   :  { %11312 = vst [vmem:[#allocation60_spill] sm:$0xff] %v9862_v50 }
0x13c8   :  { %v3821_v38 = vpop.f32.mrf.mxu0 }
0x13c9   :  { %v3827_v33 = vmul.f32 0.25, %v3821_v38  ;;  %v9867_v38 = vld [vmem:[%s10976_s0 + $0x1] ss:$0 sm:$0xff] }
0x13ca   :  { %vm3972_vm8 = vcmp.eq.s32.totalorder %v11283_v14, %v9867_v38  ;;  %vm3975_vm9 = vcmp.eq.s32.totalorder %v9589_v12, %v9867_v38  ;;  %vm3973_vm10 = vcmp.eq.s32.totalorder %v11285_v35, %v9867_v38  ;;  %vm3978_vm11 = vcmp.eq.s32.totalorder %v9622_v6, %v9867_v38 }
0x13cb   :  { %6841 = vmatmul.msk.f32.vlgmr.msrb.gmra.mxu1 %vm1229_vm1, %v3827_v33  ;;  %v6859_v33 = vsel %vm3972_vm8, 1.0, %v11284_v60  ;;  %vm3974_vm12 = vcmp.eq.s32.totalorder %v9581_v29, %v9867_v38  ;;  %vm3981_vm13 = vcmp.eq.s32.totalorder %v9659_v63, %v9867_v38  ;;  %vm3976_vm14 = vcmp.eq.s32.totalorder %v9598_v15, %v9867_v38 }
0x13cc   :  { %6875 = vmatmul.msk.f32.vlgmr.msrb.gmra.mxu3 %vm1229_vm1, %v6859_v33  ;;  %v6861_v1 = vsel %vm3974_vm12, 1.0, %v11284_v60  ;;  %v9906_v62 = vsel %vm3981_vm13, 1.0, %v11284_v60  ;;  %vm3977_vm15 = vcmp.eq.s32.totalorder %v9609_v40, %v9867_v38  ;;  %vm3984_vm2 = vcmp.eq.s32.totalorder %v9694_v23, %v9867_v38 }
0x13cd   :  { %v9926_v16 = vsel %vm3984_vm2, 1.0, %v11284_v60  ;;  %vm3979_vm3 = vcmp.eq.s32.totalorder %v9633_v36, %v9867_v38  ;;  %vm3980_vm4 = vcmp.eq.s32.totalorder %v9645_v17, %v9867_v38  ;;  %vm3987_vm5 = vcmp.eq.s32.totalorder %v9727_v8, %v9867_v38 }
0x13ce   :  { %v4169_v18 = vsel %vm1229_vm1, %v9926_v16, 0.0  ;;  %v9954_v3 = vsel %vm3987_vm5, 1.0, %v11284_v60  ;;  %vm3982_vm6 = vcmp.eq.s32.totalorder %v9672_v5, %v9867_v38  ;;  %vm3983_vm7 = vcmp.eq.s32.totalorder %v9683_v4, %v9867_v38 }
0x13d0   :  { %v3824_v28 = vpop.f32.mrf.mxu0 }
0x13d1   :  { %v3828_v49 = vmul.f32 0.25, %v3824_v28  ;;  %v4133_v28 = vsel %vm1229_vm1, %v6859_v33, 0.0  ;;  %v6860_v33 = vsel %vm3973_vm10, 1.0, %v11284_v60  ;;  %vm3986_vm10 = vcmp.eq.s32.totalorder %v9716_v46, %v9867_v38 }
0x13d2   :  { %4134 = vadd.xlane.f32.xlu1 %v4133_v28  ;;  %v9889_v28 = vsel %vm3978_vm11, 1.0, %v11284_v60 }
0x13d3   :  { %6842 = vmatmul.msk.f32.gmra.mxu1 %vm1229_vm1, %v3828_v49  ;;  %v9874_v49 = vpop.f32.mrf.mxu1 }
0x13d4   :  { %11313 = vst [vmem:[#allocation66_spill] sm:$0xff] %v9874_v49  ;;  %6876 = vmatmul.msk.f32.gmra.mxu3 %vm1229_vm1, %v6860_v33  ;;  %v4151_v49 = vsel %vm1229_vm1, %v9889_v28, 0.0 }
0x13d8   :  { %v9834_v59 = vpop.f32.mrf.mxu0 }
0x13d9   :  { %v4334_v42 = vsub.f32 %v8501_v11, %v9834_v59 }
0x13db   :  { %v9891_v47 = vpop.f32.mrf.mxu1 }
0x13dc   :  { %11315 = vst [vmem:[#allocation69_spill] sm:$0xff] %v9891_v47  ;;  %6877 = vmatmul.msk.f32.gmra.mxu3 %vm1229_vm1, %v6861_v1  ;;  %v4139_v47 = vsel %vm1229_vm1, %v6861_v1, 0.0  ;;  %v6863_v1 = vsel %vm3976_vm14, 1.0, %v11284_v60 }
0x13dd   :  { %4140 = vadd.xlane.f32.xlu2 %v4139_v47  ;;  %v4145_v47 = vsel %vm1229_vm1, %v6863_v1, 0.0 }
0x13e0   :  { %v9838_v9 = vpop.f32.mrf.mxu0 }
0x13e1   :  { %v4335_v13 = vsub.f32 %v8498_v30, %v9838_v9 }
0x13e3   :  { %4356 = vmatpush.msra.mxu1 %v4335_v13  ;;  %v6862_v13 = vsel %vm3975_vm9, 1.0, %v11284_v60  ;;  %vm3985_vm9 = vcmp.eq.s32.totalorder %v9705_v55, %v9867_v38  ;;  %v11328_v38 = vld [vmem:[#allocation7_spill] sm:$0xff] }
0x13e4   :  { %v4142_v50 = vsel %vm1229_vm1, %v6862_v13, 0.0  ;;  %6878 = vmatmul.msk.f32.gmra.mxu3 %vm1229_vm1, %v6862_v13 }
0x13e5   :  { %4357 = vmatpush.msra.mxu1 %v4334_v42  ;;  %v9879_v42 = vpop.f32.mrf.mxu2  ;;  %4143 = vadd.xlane.f32.xlu1 %v4142_v50  ;;  %v4136_v50 = vsel %vm1229_vm1, %v6860_v33, 0.0  ;;  %v4160_v33 = vsel %vm1229_vm1, %v9906_v62, 0.0 }
0x13e6   :  { %6893 = vmatmul.msk.f32.vlgmr.msra.gmra.mxu1 %vm1229_vm1, %v9834_v59  ;;  %11314 = vst [vmem:[#allocation58_spill] sm:$0xff] %v9879_v42  ;;  %4137 = vadd.xlane.f32.xlu0 %v4136_v50  ;;  %v7700_v50 = vpop.eup %7699 }
0x13e7   :  { %v1886_v13 = vmul.f32 %v7700_v50, %v11318_v25  ;;  %v9936_v50 = vsel %vm3979_vm3, 1.0, %v11284_v60 }
0x13ec   :  { %6879 = vmatmul.msk.f32.gmra.mxu3 %vm1229_vm1, %v6863_v1  ;;  %v9951_v1 = vsel %vm3980_vm4, 1.0, %v11284_v60 }
0x13ed   :  { %v9895_v57 = vpop.f32.mrf.mxu2  ;;  %4152 = vadd.xlane.f32.xlu1 %v4151_v49 }
0x13ee   :  { %6894 = vmatmul.msk.f32.gmra.mxu1 %vm1229_vm1, %v9838_v9  ;;  %11316 = vst [vmem:[#allocation59_spill] sm:$0xff] %v9895_v57  ;;  %4146 = vadd.xlane.f32.xlu0 %v4145_v47  ;;  %v7702_v47 = vpop.eup %7701 }
0x13f5   :  { %4161 = vadd.xlane.f32.xlu1 %v4160_v33  ;;  %v9911_v57 = vpop.f32.mrf.mxu2  ;;  %v6864_v33 = vsel %vm3977_vm15, 1.0, %v11284_v60 }
0x13f6   :  { %11317 = vst [vmem:[#allocation67_spill] sm:$0xff] %v9911_v57  ;;  %v4148_v21 = vsel %vm1229_vm1, %v6864_v33, 0.0  ;;  %v11321_v57 = vld [vmem:[#allocation48_spill] sm:$0xff]  ;;  %6880 = vmatmul.msk.f32.gmra.mxu3 %vm1229_vm1, %v6864_v33 }
0x13f7   :  { %4149 = vadd.xlane.f32.xlu2 %v4148_v21  ;;  %v11322_v21 = vld [vmem:[#allocation10_spill] sm:$0xff] }
0x13f8   :  { %7703 = vrcp.f32 %v11322_v21  ;;  %v9970_v21 = vpop.xlane.xlu2 %1762 }
0x13f9   :  { %11324 = vst [vmem:[#allocation70_spill] sm:$0xff] %v9970_v21  ;;  %7705 = vrcp.f32 %v11325_v27  ;;  %v10000_v27 = vsel %vm3985_vm9, 1.0, %v11284_v60 }
0x13fa   :  { %7707 = vrcp.f32 %v11328_v38 }
0x13fd   :  { %4170 = vadd.xlane.f32.xlu1 %v4169_v18  ;;  %v9941_v25 = vpop.f32.mrf.mxu2 }
0x13fe   :  { %11320 = vst [vmem:[#allocation61_spill] sm:$0xff] %v9941_v25  ;;  %v4157_v25 = vsel %vm1229_vm1, %v9951_v1, 0.0  ;;  %v7704_v56 = vpop.eup %7703  ;;  %6881 = vmatmul.msk.f32.gmra.mxu3 %vm1229_vm1, %v9889_v28 }
0x13ff   :  { %4158 = vadd.xlane.f32.xlu2 %v4157_v25  ;;  %v1888_v37 = vmul.f32 %v7704_v56, %v11326_v20  ;;  %v10009_v20 = vsel %vm3986_vm10, 1.0, %v11284_v60  ;;  %v7706_v56 = vpop.eup %7705 }
0x1400   :  { %v1889_v28 = vmul.f32 %v7706_v56, %v11329_v0  ;;  %v7708_v38 = vpop.eup %7707 }
0x1406   :  { %6882 = vmatmul.msk.f32.gmra.mxu3 %vm1229_vm1, %v9936_v50 }
0x140e   :  { %6883 = vmatmul.msk.f32.gmra.mxu3 %vm1229_vm1, %v9951_v1 }
0x1416   :  { %6884 = vmatmul.msk.f32.gmra.mxu3 %vm1229_vm1, %v9906_v62 }
0x1448   :  { %v3852_v49 = vpop.f32.mrf.mxu1 }
0x1450   :  { %v3855_v42 = vpop.f32.mrf.mxu1 }
0x1451   :  { %3920 = vmatpush.msra.mxu2 %v3855_v42  ;;  %v11319_v42 = vld [vmem:[#allocation49_spill] sm:$0xff] }
0x1453   :  { %3921 = vmatpush.msra.mxu2 %v3852_v49  ;;  %v4154_v49 = vsel %vm1229_vm1, %v9936_v50, 0.0 }
0x1454   :  { %6843 = vmatmul.msk.f32.vlgmr.msra.gmra.mxu2 %vm1229_vm1, %v1886_v13  ;;  %4155 = vadd.xlane.f32.xlu0 %v4154_v49  ;;  %v11323_v13 = vld [vmem:[#allocation21_spill] sm:$0xff]  ;;  %v4178_v49 = vsel %vm1229_vm1, %v9954_v3, 0.0 }
0x1455   :  { %4779 = vmatpush.msrb.mxu2 %v11319_v42  ;;  %v1887_v18 = vmul.f32 %v7702_v47, %v11323_v13  ;;  %v9968_v47 = vld [vmem:[%s10976_s0 + $0x2] ss:$0 sm:$0xff]  ;;  %4179 = vadd.xlane.f32.xlu1 %v4178_v49  ;;  %v9973_v13 = vsel %vm3982_vm6, 1.0, %v11284_v60  ;;  %v9987_v49 = vpop.f32.mrf.mxu2 }
0x1456   :  { %v4163_v25 = vsel %vm1229_vm1, %v9973_v13, 0.0  ;;  %vm4904_vm8 = vcmp.eq.s32.totalorder %v9581_v29, %v9968_v47  ;;  %vm4907_vm11 = vcmp.eq.s32.totalorder %v9609_v40, %v9968_v47  ;;  %vm4902_vm12 = vcmp.eq.s32.totalorder %v11283_v14, %v9968_v47  ;;  %6885 = vmatmul.msk.f32.gmra.mxu3 %vm1229_vm1, %v9973_v13 }
0x1457   :  { %4780 = vmatpush.msrb.mxu2 %v11321_v57  ;;  %v9984_v52 = vsel %vm4904_vm8, 1.0, %v11284_v60  ;;  %vm4903_vm13 = vcmp.eq.s32.totalorder %v11285_v35, %v9968_v47  ;;  %v10031_v0 = vsel %vm4902_vm12, 1.0, %v11284_v60  ;;  %vm4910_vm14 = vcmp.eq.s32.totalorder %v9645_v17, %v9968_v47 }
0x1458   :  { %v5069_v45 = vsel %vm1229_vm1, %v9984_v52, 0.0  ;;  %v10041_v56 = vsel %vm4903_vm13, 1.0, %v11284_v60  ;;  %vm4905_vm15 = vcmp.eq.s32.totalorder %v9589_v12, %v9968_v47  ;;  %vm4906_vm2 = vcmp.eq.s32.totalorder %v9598_v15, %v9968_v47 }
0x1459   :  { %vm4913_vm3 = vcmp.eq.s32.totalorder %v9683_v4, %v9968_v47  ;;  %vm4908_vm4 = vcmp.eq.s32.totalorder %v9622_v6, %v9968_v47  ;;  %vm4909_vm5 = vcmp.eq.s32.totalorder %v9633_v36, %v9968_v47  ;;  %vm4916_vm6 = vcmp.eq.s32.totalorder %v9716_v46, %v9968_v47 }
0x145a   :  { %vm4912_vm8 = vcmp.eq.s32.totalorder %v9672_v5, %v9968_v47  ;;  %vm4914_vm10 = vcmp.eq.s32.totalorder %v9694_v23, %v9968_v47  ;;  %vm4917_vm13 = vcmp.eq.s32.totalorder %v9727_v8, %v9968_v47 }
0x145c   :  { %6844 = vmatmul.msk.f32.gmra.mxu2 %vm1229_vm1, %v1887_v18  ;;  %v9979_v18 = vsel %vm3983_vm7, 1.0, %v11284_v60  ;;  %4164 = vadd.xlane.f32.xlu0 %v4163_v25  ;;  %v10011_v25 = vpop.xlane.xlu2 %1771  ;;  %vm4911_vm7 = vcmp.eq.s32.totalorder %v9659_v63, %v9968_v47 }
0x145d   :  { %v4166_v33 = vsel %vm1229_vm1, %v9979_v18, 0.0  ;;  %5070 = vadd.xlane.f32.xlu1 %v5069_v45  ;;  %11327 = vst [vmem:[#allocation63_spill] sm:$0xff] %v10011_v25  ;;  %v10014_v45 = vsel %vm4907_vm11, 1.0, %v11284_v60  ;;  %v10022_v61 = vpop.f32.mrf.mxu2  ;;  %vm4915_vm11 = vcmp.eq.s32.totalorder %v9705_v55, %v9968_v47 }
0x145e   :  { %4167 = vadd.xlane.f32.xlu2 %v4166_v33  ;;  %v4175_v33 = vsel %vm1229_vm1, %v10009_v20, 0.0  ;;  %v5078_v19 = vsel %vm1229_vm1, %v10014_v45, 0.0  ;;  %6886 = vmatmul.msk.f32.gmra.mxu3 %vm1229_vm1, %v9979_v18 }
0x1463   :  { %v4359_v51 = vpop.f32.mrf.mxu1 }
0x1464   :  { %6845 = vmatmul.msk.f32.gmra.mxu2 %vm1229_vm1, %v1888_v37  ;;  %v4172_v37 = vsel %vm1229_vm1, %v10000_v27, 0.0 }
0x1465   :  { %4173 = vadd.xlane.f32.xlu0 %v4172_v37  ;;  %5079 = vadd.xlane.f32.xlu1 %v5078_v19  ;;  %v4365_v37 = vsub.f32 %v8582_v48, %v4359_v51  ;;  %v10044_v19 = vsel %vm4910_vm14, 1.0, %v11284_v60  ;;  %v11333_v51 = vld [vmem:[#allocation73_spill] sm:$0xff] }
0x1466   :  { %4176 = vadd.xlane.f32.xlu2 %v4175_v33  ;;  %11330 = vst [vmem:[#allocation68_spill] sm:$0xff] %v10044_v19  ;;  %v11331_v33 = vld [vmem:[#allocation9_spill] sm:$0xff]  ;;  %v1890_v50 = vmul.f32 %v7708_v38, %v11333_v51  ;;  %v5087_v25 = vsel %vm1229_vm1, %v10044_v19, 0.0  ;;  %v10073_v38 = vsel %vm4906_vm2, 1.0, %v11284_v60  ;;  %v10078_v51 = vpop.xlane.xlu0 %1759  ;;  %6887 = vmatmul.msk.f32.gmra.mxu3 %vm1229_vm1, %v9926_v16 }
0x1467   :  { %7709 = vrcp.f32 %v11331_v33  ;;  %11335 = vst [vmem:[#allocation64_spill] sm:$0xff] %v10078_v51  ;;  %v5075_v1 = vsel %vm1229_vm1, %v10073_v38, 0.0  ;;  %v11344_v51 = vld [vmem:[#allocation76_spill] sm:$0xff] }
0x146b   :  { %v4362_v26 = vpop.f32.mrf.mxu1 }
0x146c   :  { %v4366_v44 = vsub.f32 %v8576_v53, %v4362_v26  ;;  %6846 = vmatmul.msk.f32.gmra.mxu2 %vm1229_vm1, %v1889_v28  ;;  %v5063_v26 = vsel %vm1229_vm1, %v10031_v0, 0.0  ;;  %v10047_v28 = vpop.xlane.xlu2 %1780 }
0x146d   :  { %11332 = vst [vmem:[#allocation62_spill] sm:$0xff] %v10047_v28  ;;  %5064 = vadd.xlane.f32.xlu0 %v5063_v26  ;;  %5088 = vadd.xlane.f32.xlu1 %v5087_v25  ;;  %v7710_v33 = vpop.eup %7709  ;;  %v11337_v25 = vld [vmem:[#allocation75_spill] sm:$0xff] }
0x146e   :  { %4381 = vmatpush.msra.mxu0 %v4366_v44  ;;  %v5066_v44 = vsel %vm1229_vm1, %v10041_v56, 0.0  ;;  %v1891_v28 = vmul.f32 %v7710_v33, %v11337_v25  ;;  %v11341_v25 = vld [vmem:[#allocation12_spill] sm:$0xff]  ;;  %v10117_v62 = vpop.xlane.xlu0 %1768  ;;  %6888 = vmatmul.msk.f32.gmra.mxu3 %vm1229_vm1, %v10000_v27 }
0x146f   :  { %5067 = vadd.xlane.f32.xlu2 %v5066_v44  ;;  %v10076_v44 = vsel %vm4913_vm3, 1.0, %v11284_v60  ;;  %11343 = vst [vmem:[#allocation19_spill] sm:$0xff] %v10117_v62 }
0x1470   :  { %4382 = vmatpush.msra.mxu0 %v4365_v37  ;;  %v10066_v37 = vsel %vm4905_vm15, 1.0, %v11284_v60  ;;  %11334 = vst [vmem:[#allocation71_spill] sm:$0xff] %v10076_v44  ;;  %v5096_v10 = vsel %vm1229_vm1, %v10076_v44, 0.0 }
0x1471   :  { %6895 = vmatmul.msk.f32.vlgmr.msra.gmra.mxu0 %vm1229_vm1, %v9834_v59  ;;  %v10063_v59 = vpop.f32.mrf.mxu2  ;;  %v5072_v26 = vsel %vm1229_vm1, %v10066_v37, 0.0 }
0x1474   :  { %6847 = vmatmul.msk.f32.gmra.mxu2 %vm1229_vm1, %v1890_v50  ;;  %v11336_v50 = vld [vmem:[#allocation11_spill] sm:$0xff]  ;;  %v10088_v21 = vpop.xlane.xlu2 %1789 }
0x1475   :  { %7711 = vrcp.f32 %v11336_v50  ;;  %5073 = vadd.xlane.f32.xlu0 %v5072_v26  ;;  %11338 = vst [vmem:[#allocation65_spill] sm:$0xff] %v10088_v21  ;;  %5097 = vadd.xlane.f32.xlu1 %v5096_v10  ;;  %v10105_v26 = vsel %vm4909_vm5, 1.0, %v11284_v60  ;;  %v10115_v21 = vpop.xlane.xlu1 %1765 }
0x1476   :  { %11339 = vst [vmem:[#allocation57_spill] sm:$0xff] %v10105_v26  ;;  %7713 = vrcp.f32 %v11341_v25  ;;  %v5084_v10 = vsel %vm1229_vm1, %v10105_v26, 0.0  ;;  %6889 = vmatmul.msk.f32.gmra.mxu3 %vm1229_vm1, %v10009_v20 }
0x1477   :  { %5076 = vadd.xlane.f32.xlu2 %v5075_v1  ;;  %v10110_v1 = vsel %vm4916_vm6, 1.0, %v11284_v60  ;;  %11342 = vst [vmem:[#allocation56_spill] sm:$0xff] %v10115_v21  ;;  %v11349_v21 = vld [vmem:[#allocation77_spill] sm:$0xff] }
0x1478   :  { %11340 = vst [vmem:[#allocation55_spill] sm:$0xff] %v10110_v1  ;;  %v5105_v19 = vsel %vm1229_vm1, %v10110_v1, 0.0 }
0x1479   :  { %6896 = vmatmul.msk.f32.gmra.mxu0 %vm1229_vm1, %v9838_v9  ;;  %v10098_v9 = vsel %vm4908_vm4, 1.0, %v11284_v60  ;;  %v10107_v50 = vpop.f32.mrf.mxu2 }
0x147b   :  { %v7712_v33 = vpop.eup %7711 }
0x147c   :  { %6848 = vmatmul.msk.f32.gmra.mxu2 %vm1229_vm1, %v1891_v28  ;;  %v5081_v28 = vsel %vm1229_vm1, %v10098_v9, 0.0  ;;  %v1892_v44 = vmul.f32 %v7712_v33, %v11344_v51  ;;  %v10132_v25 = vpop.xlane.xlu2 %1798  ;;  %v10135_v51 = vsel %vm4911_vm7, 1.0, %v11284_v60  ;;  %v10142_v33 = vsel %vm4912_vm8, 1.0, %v11284_v60 }
0x147d   :  { %5082 = vadd.xlane.f32.xlu0 %v5081_v28  ;;  %v10130_v28 = vld [vmem:[%s10976_s0 + $0x3] ss:$0 sm:$0xff]  ;;  %11345 = vst [vmem:[#allocation49_spill] sm:$0xff] %v10132_v25  ;;  %5106 = vadd.xlane.f32.xlu1 %v5105_v19  ;;  %v5093_v13 = vsel %vm1229_vm1, %v10142_v33, 0.0  ;;  %v10157_v26 = vpop.xlane.xlu1 %1774  ;;  %s7824_s0 = smov 32  }
0x147e   :  { %11346 = vst [vmem:[#allocation48_spill] sm:$0xff] %v10135_v51  ;;  %vm5833_vm9 = vcmp.eq.s32.totalorder %v11285_v35, %v10130_v28  ;;  %v11348_v19 = vld [vmem:[#allocation13_spill] sm:$0xff]  ;;  %v10159_v35 = vpop.xlane.xlu0 %1777  ;;  %vm5836_vm12 = vcmp.eq.s32.totalorder %v9598_v15, %v10130_v28  ;;  %v11354_v15 = vld [vmem:[#allocation16_spill] sm:$0xff]  ;;  %vm5832_vm14 = vcmp.eq.s32.totalorder %v11283_v14, %v10130_v28  ;;  %vm5839_vm15 = vcmp.eq.s32.totalorder %v9633_v36, %v10130_v28 }
0x147f   :  { %5085 = vadd.xlane.f32.xlu2 %v5084_v10  ;;  %v7714_v10 = vpop.eup %7713  ;;  %v10147_v62 = vsel %vm5833_vm9, 1.0, %v11284_v60  ;;  %7715 = vrcp.f32 %v11348_v19  ;;  %11350 = vst [vmem:[#allocation21_spill] sm:$0xff] %v10157_v26  ;;  %v10212_v14 = vsel %vm5832_vm14, 1.0, %v11284_v60  ;;  %vm5834_vm2 = vcmp.eq.s32.totalorder %v9581_v29, %v10130_v28  ;;  %6890 = vmatmul.msk.f32.gmra.mxu3 %vm1229_vm1, %v9954_v3  ;;  %v11387_v3 = vld [vmem:[#allocation82_spill] sm:$0xff] }
0x1480   :  { %11347 = vst [vmem:[#allocation10_spill] sm:$0xff] %v10147_v62  ;;  %v1893_v1 = vmul.f32 %v7714_v10, %v11349_v21  ;;  %v10178_v10 = vsel %vm4915_vm11, 1.0, %v11284_v60  ;;  %7717 = vrcp.f32 %v11354_v15  ;;  %vm5835_vm3 = vcmp.eq.s32.totalorder %v9589_v12, %v10130_v28 }
0x1481   :  { %v10150_v25 = vpop.f32.mrf.mxu2  ;;  %11351 = vst [vmem:[#allocation26_spill] sm:$0xff] %v10159_v35  ;;  %vm5842_vm4 = vcmp.eq.s32.totalorder %v9672_v5, %v10130_v28  ;;  %vm5837_vm5 = vcmp.eq.s32.totalorder %v9609_v40, %v10130_v28  ;;  %vm5838_vm6 = vcmp.eq.s32.totalorder %v9622_v6, %v10130_v28  ;;  %vm5845_vm7 = vcmp.eq.s32.totalorder %v9705_v55, %v10130_v28 }
0x1482   :  { %11360 = vst [vmem:[#allocation75_spill] sm:$0xff] %v10212_v14  ;;  %v10245_v5 = vsel %vm5842_vm4, 1.0, %v11284_v60  ;;  %v10274_v40 = vsel %vm5838_vm6, 1.0, %v11284_v60  ;;  %v10279_v55 = vsel %vm5845_vm7, 1.0, %v11284_v60  ;;  %vm5840_vm8 = vcmp.eq.s32.totalorder %v9645_v17, %v10130_v28  ;;  %v11383_v17 = vld [vmem:[#allocation18_spill] sm:$0xff] }
0x1483   :  { %11367 = vst [vmem:[#allocation16_spill] sm:$0xff] %v10245_v5  ;;  %vm5841_vm9 = vcmp.eq.s32.totalorder %v9659_v63, %v10130_v28  ;;  %vm5844_vm11 = vcmp.eq.s32.totalorder %v9694_v23, %v10130_v28 }
0x1484   :  { %6849 = vmatmul.msk.f32.gmra.mxu2 %vm1229_vm1, %v1892_v44  ;;  %v5090_v44 = vsel %vm1229_vm1, %v10135_v51, 0.0  ;;  %v5996_v51 = vsel %vm1229_vm1, %v10147_v62, 0.0  ;;  %v10168_v21 = vpop.xlane.xlu2 %3204  ;;  %11375 = vst [vmem:[#allocation116_spill] sm:$0xff] %v10279_v55 }
0x1485   :  { %5091 = vadd.xlane.f32.xlu0 %v5090_v44  ;;  %11352 = vst [vmem:[#allocation23_spill] sm:$0xff] %v10168_v21  ;;  %5997 = vadd.xlane.f32.xlu1 %v5996_v51  ;;  %v10171_v44 = vsel %vm4914_vm10, 1.0, %v11284_v60  ;;  %v7716_v19 = vpop.eup %7715  ;;  %v5102_v51 = vsel %vm1229_vm1, %v10178_v10, 0.0  ;;  %v11355_v21 = vld [vmem:[#allocation79_spill] sm:$0xff]  ;;  %vm5843_vm10 = vcmp.eq.s32.totalorder %v9683_v4, %v10130_v28 }
0x1486   :  { %v1894_v35 = vmul.f32 %v7716_v19, %v11355_v21  ;;  %v10201_v21 = vsel %vm4917_vm13, 1.0, %v11284_v60  ;;  %v10203_v19 = vpop.xlane.xlu1 %1783  ;;  %v10205_v15 = vpop.xlane.xlu0 %1786  ;;  %vm5847_vm13 = vcmp.eq.s32.totalorder %v9727_v8, %v10130_v28 }
0x1487   :  { %5094 = vadd.xlane.f32.xlu2 %v5093_v13  ;;  %v10181_v13 = vsel %vm5836_vm12, 1.0, %v11284_v60  ;;  %11357 = vst [vmem:[#allocation9_spill] sm:$0xff] %v10201_v21  ;;  %v5108_v47 = vsel %vm1229_vm1, %v10201_v21, 0.0  ;;  %v7718_v36 = vpop.eup %7717  ;;  %vm5846_vm12 = vcmp.eq.s32.totalorder %v9716_v46, %v10130_v28 }
0x1488   :  { %11353 = vst [vmem:[#allocation7_spill] sm:$0xff] %v10181_v13  ;;  %v6005_v18 = vsel %vm1229_vm1, %v10181_v13, 0.0 }
0x1489   :  { %v10189_v26 = vpop.f32.mrf.mxu2  ;;  %11358 = vst [vmem:[#allocation73_spill] sm:$0xff] %v10203_v19 }
0x148a   :  { %11359 = vst [vmem:[#allocation11_spill] sm:$0xff] %v10205_v15 }
0x148c   :  { %6850 = vmatmul.msk.f32.gmra.mxu2 %vm1229_vm1, %v1893_v1  ;;  %v5099_v1 = vsel %vm1229_vm1, %v10171_v44, 0.0 }
0x148d   :  { %5100 = vadd.xlane.f32.xlu0 %v5099_v1  ;;  %v10198_v1 = vpop.xlane.xlu2 %3213  ;;  %6006 = vadd.xlane.f32.xlu1 %v6005_v18  ;;  %v5993_v18 = vsel %vm1229_vm1, %v10212_v14, 0.0 }
0x148e   :  { %11356 = vst [vmem:[#allocation72_spill] sm:$0xff] %v10198_v1  ;;  %v11363_v1 = vld [vmem:[#allocation80_spill] sm:$0xff] }
0x148f   :  { %5103 = vadd.xlane.f32.xlu2 %v5102_v51  ;;  %v11362_v51 = vld [vmem:[#allocation14_spill] sm:$0xff]  ;;  %v1895_v15 = vmul.f32 %v7718_v36, %v11363_v1  ;;  %v10235_v1 = vsel %vm5834_vm2, 1.0, %v11284_v60  ;;  %v10247_v36 = vpop.xlane.xlu1 %1792 }
0x1490   :  { %7719 = vrcp.f32 %v11362_v51  ;;  %11365 = vst [vmem:[#allocation13_spill] sm:$0xff] %v10235_v1  ;;  %v5999_v29 = vsel %vm1229_vm1, %v10235_v1, 0.0 }
0x1491   :  { %v10232_v51 = vpop.f32.mrf.mxu2  ;;  %11368 = vst [vmem:[#allocation79_spill] sm:$0xff] %v10247_v36 }
0x1492   :  { %11364 = vst [vmem:[#allocation76_spill] sm:$0xff] %v10232_v51  ;;  %v11371_v51 = vld [vmem:[#allocation74_spill] sm:$0xff] }
0x1494   :  { %6851 = vmatmul.msk.f32.gmra.mxu2 %vm1229_vm1, %v1894_v35  ;;  %v10215_v35 = vsel %vm5839_vm15, 1.0, %v11284_v60 }
0x1495   :  { %11361 = vst [vmem:[#allocation12_spill] sm:$0xff] %v10215_v35  ;;  %5109 = vadd.xlane.f32.xlu0 %v5108_v47  ;;  %v6014_v16 = vsel %vm1229_vm1, %v10215_v35, 0.0  ;;  %v10230_v47 = vpop.xlane.xlu2 %3222  ;;  %v6023_v35 = vsel %vm1229_vm1, %v10245_v5, 0.0  ;;  %v6032_v5 = vsel %vm1229_vm1, %v10279_v55, 0.0 }
0x1496   :  { %6015 = vadd.xlane.f32.xlu1 %v6014_v16  ;;  %v7720_v12 = vpop.eup %7719  ;;  %v11370_v16 = vld [vmem:[#allocation93_spill] sm:$0xff] }
0x1497   :  { %5994 = vadd.xlane.f32.xlu2 %v5993_v18  ;;  %v10249_v18 = vpop.xlane.xlu0 %1795  ;;  %7721 = vrcp.f32 %v11370_v16  ;;  %v1896_v19 = vmul.f32 %v7720_v12, %v11371_v51  ;;  %v10267_v51 = vsel %vm5837_vm5, 1.0, %v11284_v60  ;;  %11373 = vst [vmem:[#allocation93_spill] sm:$0xff] %v10274_v40  ;;  %v11376_v16 = vld [vmem:[#allocation20_spill] sm:$0xff] }
0x1498   :  { %11369 = vst [vmem:[#allocation14_spill] sm:$0xff] %v10249_v18  ;;  %7723 = vrcp.f32 %v11376_v16  ;;  %v11379_v18 = vld [vmem:[#allocation8_spill] sm:$0xff]  ;;  %v10299_v16 = vsel %vm5840_vm8, 1.0, %v11284_v60 }
0x1499   :  { %11372 = vst [vmem:[#allocation80_spill] sm:$0xff] %v10267_v51  ;;  %v10276_v6 = vpop.f32.mrf.mxu2  ;;  %7725 = vrcp.f32 %v11383_v17 }
0x149a   :  { %11374 = vst [vmem:[#allocation74_spill] sm:$0xff] %v10276_v6 }
0x149b   :  { %11381 = vst [vmem:[#allocation118_spill] sm:$0xff] %v10299_v16 }
0x149c   :  { %6852 = vmatmul.msk.f32.gmra.mxu2 %vm1229_vm1, %v1895_v15  ;;  %v10242_v15 = vsel %vm5835_vm3, 1.0, %v11284_v60 }
0x149d   :  { %11366 = vst [vmem:[#allocation77_spill] sm:$0xff] %v10242_v15  ;;  %6000 = vadd.xlane.f32.xlu0 %v5999_v29  ;;  %v6002_v27 = vsel %vm1229_vm1, %v10242_v15, 0.0  ;;  %v10264_v29 = vpop.xlane.xlu2 %3231  ;;  %v7722_v12 = vpop.eup %7721 }
0x149e   :  { %6024 = vadd.xlane.f32.xlu1 %v6023_v35  ;;  %v6011_v35 = vsel %vm1229_vm1, %v10274_v40, 0.0  ;;  %v1897_v36 = vmul.f32 %v7722_v12, %v11379_v18  ;;  %v6017_v18 = vsel %vm1229_vm1, %v10299_v16, 0.0  ;;  %v7724_v12 = vpop.eup %7723 }
0x149f   :  { %6003 = vadd.xlane.f32.xlu2 %v6002_v27  ;;  %v10284_v27 = vpop.xlane.xlu1 %1801  ;;  %v10286_v20 = vpop.xlane.xlu0 %1804  ;;  %v1898_v6 = vmul.f32 %v7724_v12, %v11387_v3  ;;  %v11390_v12 = vld [vmem:[#allocation24_spill] sm:$0xff]  ;;  %v11392_v3 = vld [vmem:[#allocation78_spill] sm:$0xff] }
0x14a0   :  { %11377 = vst [vmem:[#allocation20_spill] sm:$0xff] %v10284_v27  ;;  %v7726_v17 = vpop.eup %7725  ;;  %7727 = vrcp.f32 %v11390_v12  ;;  %v10347_v12 = vsel %vm5846_vm12, 1.0, %v11284_v60 }
0x14a1   :  { %11378 = vst [vmem:[#allocation117_spill] sm:$0xff] %v10286_v20  ;;  %v6035_v55 = vsel %vm1229_vm1, %v10347_v12, 0.0 }
0x14a2   :  { %11394 = vst [vmem:[#allocation123_spill] sm:$0xff] %v10347_v12 }
0x14a4   :  { %6853 = vmatmul.msk.f32.gmra.mxu2 %vm1229_vm1, %v1896_v19  ;;  %v6008_v19 = vsel %vm1229_vm1, %v10267_v51, 0.0 }
0x14a5   :  { %6009 = vadd.xlane.f32.xlu0 %v6008_v19  ;;  %v10296_v19 = vpop.xlane.xlu2 %3240 }
0x14a6   :  { %11380 = vst [vmem:[#allocation8_spill] sm:$0xff] %v10296_v19  ;;  %6033 = vadd.xlane.f32.xlu1 %v6032_v5 }
0x14a7   :  { %6012 = vadd.xlane.f32.xlu2 %v6011_v35  ;;  %v10309_v35 = vpop.f32.mrf.mxu2  ;;  %v10313_v5 = vpop.xlane.xlu1 %3207 }
0x14a8   :  { %11384 = vst [vmem:[#allocation18_spill] sm:$0xff] %v10309_v35  ;;  %v10315_v19 = vpop.xlane.xlu0 %3210  ;;  %v4085_v35 = vpop.f32.mrf.mxu3 }
0x14a9   :  { %11385 = vst [vmem:[#allocation120_spill] sm:$0xff] %v10313_v5 }
0x14aa   :  { %11386 = vst [vmem:[#allocation121_spill] sm:$0xff] %v10315_v19 }
0x14ac   :  { %6854 = vmatmul.msk.f32.gmra.mxu2 %vm1229_vm1, %v1897_v36  ;;  %v10306_v36 = vsel %vm5841_vm9, 1.0, %v11284_v60 }
0x14ad   :  { %11382 = vst [vmem:[#allocation119_spill] sm:$0xff] %v10306_v36  ;;  %6018 = vadd.xlane.f32.xlu0 %v6017_v18  ;;  %v6020_v63 = vsel %vm1229_vm1, %v10306_v36, 0.0  ;;  %v10319_v20 = vpop.xlane.xlu2 %3249  ;;  %v10324_v18 = vsel %vm5843_vm10, 1.0, %v11284_v60  ;;  %v11401_v36 = vld [vmem:[#allocation81_spill] sm:$0xff] }
0x14ae   :  { %11388 = vst [vmem:[#allocation82_spill] sm:$0xff] %v10319_v20  ;;  %v6026_v5 = vsel %vm1229_vm1, %v10324_v18, 0.0  ;;  %v1899_v20 = vmul.f32 %v7726_v17, %v11392_v3  ;;  %v11395_v17 = vld [vmem:[#allocation22_spill] sm:$0xff] }
0x14af   :  { %6021 = vadd.xlane.f32.xlu2 %v6020_v63  ;;  %11389 = vst [vmem:[#allocation122_spill] sm:$0xff] %v10324_v18  ;;  %v10334_v63 = vpop.xlane.xlu1 %3216  ;;  %v10341_v27 = vpop.f32.mrf.mxu2  ;;  %7729 = vrcp.f32 %v11395_v17 }
0x14b0   :  { %v10336_v4 = vpop.xlane.xlu0 %3219  ;;  %11393 = vst [vmem:[#allocation78_spill] sm:$0xff] %v10341_v27  ;;  %v4088_v3 = vpop.f32.mrf.mxu3  ;;  %v11396_v27 = vld [vmem:[#allocation6_spill] sm:$0xff] }
0x14b4   :  { %6855 = vmatmul.msk.f32.gmra.mxu2 %vm1229_vm1, %v1898_v6  ;;  %v10332_v6 = vsel %vm5844_vm11, 1.0, %v11284_v60 }
0x14b5   :  { %6027 = vadd.xlane.f32.xlu0 %v6026_v5  ;;  %11391 = vst [vmem:[#allocation24_spill] sm:$0xff] %v10332_v6  ;;  %v6029_v19 = vsel %vm1229_vm1, %v10332_v6, 0.0  ;;  %v4141_v23 = vpop.xlane.xlu2 %4140  ;;  %v7728_v5 = vpop.eup %7727  ;;  %v10360_v6 = vsel %vm5847_vm13, 1.0, %v11284_v60 }
0x14b6   :  { %v1900_v46 = vmul.f32 %v7728_v5, %v11396_v27  ;;  %11397 = vst [vmem:[#allocation22_spill] sm:$0xff] %v10360_v6  ;;  %v6038_v18 = vsel %vm1229_vm1, %v10360_v6, 0.0  ;;  %vm4183_vm3 = vcmp.gt.f32.partialorder %v4141_v23, 0.5 }
0x14b7   :  { %6030 = vadd.xlane.f32.xlu2 %v6029_v19  ;;  %v10365_v17 = vpop.f32.mrf.mxu2 }
0x14b8   :  { %v10356_v19 = vpop.xlane.xlu0 %3228  ;;  %11398 = vst [vmem:[#allocation6_spill] sm:$0xff] %v10365_v17  ;;  %v4091_v27 = vpop.f32.mrf.mxu3 }
0x14bc   :  { %6856 = vmatmul.msk.f32.gmra.mxu2 %vm1229_vm1, %v1899_v20  ;;  %v10354_v20 = vpop.xlane.xlu1 %3225 }
0x14bd   :  { %6036 = vadd.xlane.f32.xlu0 %v6035_v55  ;;  %v7730_v55 = vpop.eup %7729  ;;  %v4150_v12 = vpop.xlane.xlu2 %4149 }
0x14be   :  { %v1901_v16 = vmul.f32 %v7730_v55, %v11401_v36  ;;  %vm4186_vm4 = vcmp.gt.f32.partialorder %v4150_v12, 0.5 }
0x14bf   :  { %6039 = vadd.xlane.f32.xlu2 %v6038_v18  ;;  %v10373_v60 = vpop.f32.mrf.mxu2 }
0x14c0   :  { %v10369_v28 = vpop.xlane.xlu0 %3237  ;;  %11402 = vst [vmem:[#allocation81_spill] sm:$0xff] %v10373_v60 }
0x14c1   :  { %11400 = vst [vmem:[#allocation125_spill] sm:$0xff] %v10369_v28 }
0x14c4   :  { %6857 = vmatmul.msk.f32.gmra.mxu2 %vm1229_vm1, %v1900_v46  ;;  %v10367_v8 = vpop.xlane.xlu1 %3234  ;;  %v4094_v46 = vpop.f32.mrf.mxu3 }
0x14c5   :  { %11399 = vst [vmem:[#allocation124_spill] sm:$0xff] %v10367_v8  ;;  %v10375_v5 = vpop.xlane.xlu2 %4158 }
0x14c6   :  { %vm4189_vm9 = vcmp.gt.f32.partialorder %v10375_v5, 0.5 }
0x14c8   :  { %v10379_v18 = vpop.xlane.xlu0 %3246 }
0x14c9   :  { %11404 = vst [vmem:[#allocation127_spill] sm:$0xff] %v10379_v18 }
0x14cc   :  { %6858 = vmatmul.msk.f32.gmra.mxu2 %vm1229_vm1, %v1901_v16  ;;  %v10377_v6 = vpop.xlane.xlu1 %3243  ;;  %v4097_v55 = vpop.f32.mrf.mxu3 }
0x14cd   :  { %11403 = vst [vmem:[#allocation126_spill] sm:$0xff] %v10377_v6 }
0x14d0   :  { %v4138_v51 = vpop.xlane.xlu0 %4137 }
0x14d1   :  { %v10381_v8 = vpop.xlane.xlu2 %4167  ;;  %vm4182_vm15 = vcmp.gt.f32.partialorder %v4138_v51, 0.5 }
0x14d2   :  { %vm4192_vm10 = vcmp.gt.f32.partialorder %v10381_v8, 0.5 }
0x14d4   :  { %v4135_v40 = vpop.xlane.xlu1 %4134  ;;  %v4100_v15 = vpop.f32.mrf.mxu3 }
0x14d5   :  { %vm4181_vm14 = vcmp.gt.f32.partialorder %v4135_v40, 0.5 }
0x14d7   :  { %v3923_v17 = vpop.f32.mrf.mxu2 }
0x14d8   :  { %v4229_v28 = vsel %vm4181_vm14, %v4085_v35, %v3923_v17  ;;  %v4147_v18 = vpop.xlane.xlu0 %4146 }
0x14d9   :  { %v10384_v60 = vpop.xlane.xlu2 %4176  ;;  %vm4185_vm5 = vcmp.gt.f32.partialorder %v4147_v18, 0.5 }
0x14dc   :  { %v4144_v1 = vpop.xlane.xlu1 %4143  ;;  %v4103_v17 = vpop.f32.mrf.mxu3 }
0x14dd   :  { %vm4184_vm2 = vcmp.gt.f32.partialorder %v4144_v1, 0.5 }
0x14df   :  { %v3926_v36 = vpop.f32.mrf.mxu2 }
0x14e0   :  { %v4230_v16 = vsel %vm4182_vm15, %v4088_v3, %v3926_v36  ;;  %v4156_v3 = vpop.xlane.xlu0 %4155  ;;  %vm4195_vm15 = vcmp.gt.f32.partialorder %v10384_v60, 0.5 }
0x14e1   :  { %v7341_v13 = vpack.i.bf16 %v4230_v16, %v4229_v28  ;;  %vm4188_vm7 = vcmp.gt.f32.partialorder %v4156_v3, 0.5 }
0x14e2   :  { %v10386_v40 = vpop.xlane.xlu2 %5067 }
0x14e3   :  { %7342 = vrot.lane.b32.xlu1 %v7341_v13, %s7824_s0 }
0x14e7   :  { %v3929_v6 = vpop.f32.mrf.mxu2 }
0x14e8   :  { %v4231_v51 = vsel %vm4183_vm3, %v4091_v27, %v3929_v6  ;;  %v4165_v23 = vpop.xlane.xlu0 %4164  ;;  %vm3256_vm3 = vcmp.gt.f32.partialorder %v10336_v4, 0.5 }
0x14e9   :  { %vm4191_vm11 = vcmp.gt.f32.partialorder %v4165_v23, 0.5 }
0x14ea   :  { %v10391_v1 = vpop.xlane.xlu2 %5076 }
0x14eb   :  { %11405 = vst [vmem:[#allocation128_spill] sm:$0xff] %v10391_v1 }
0x14ee   :  { %v4384_v62 = vpop.f32.mrf.mxu0 }
0x14ef   :  { %v3932_v14 = vpop.f32.mrf.mxu2  ;;  %v4390_v16 = vsub.f32 %v8613_v32, %v4384_v62 }
0x14f0   :  { %v4232_v21 = vsel %vm4184_vm2, %v4094_v46, %v3932_v14  ;;  %v4153_v46 = vpop.xlane.xlu1 %4152  ;;  %v4174_v62 = vpop.xlane.xlu0 %4173  ;;  %vm3255_vm2 = vcmp.gt.f32.partialorder %v10334_v63, 0.5 }
0x14f1   :  { %v7346_v35 = vpack.i.bf16 %v4232_v21, %v4231_v51  ;;  %v4106_v21 = vpop.f32.mrf.mxu3  ;;  %vm4187_vm6 = vcmp.gt.f32.partialorder %v4153_v46, 0.5  ;;  %vm4194_vm13 = vcmp.gt.f32.partialorder %v4174_v62, 0.5 }
0x14f3   :  { %7347 = vrot.lane.b32.xlu0 %v7346_v35, %s7824_s0  ;;  %v10396_v35 = vpop.xlane.xlu2 %5085 }
0x14f4   :  { %11406 = vst [vmem:[#allocation129_spill] sm:$0xff] %v10396_v35 }
0x14f6   :  { %v4387_v13 = vpop.f32.mrf.mxu0 }
0x14f7   :  { %v4391_v28 = vsub.f32 %v8610_v22, %v4387_v13  ;;  %v3935_v36 = vpop.f32.mrf.mxu2 }
0x14f8   :  { %v4233_v6 = vsel %vm4185_vm5, %v4097_v55, %v3935_v36  ;;  %v10402_v12 = vpop.xlane.xlu0 %5064  ;;  %vm3258_vm5 = vcmp.gt.f32.partialorder %v10354_v20, 0.5 }
0x14f9   :  { %4412 = vmatpush.msrb.mxu1 %v4391_v28  ;;  %v4109_v28 = vpop.f32.mrf.mxu3 }
0x14fb   :  { %4413 = vmatpush.msrb.mxu1 %v4390_v16  ;;  %v4162_v16 = vpop.xlane.xlu1 %4161 }
0x14fc   :  { %6897 = vmatmul.msk.f32.vlgmr.msrb.gmra.mxu1 %vm1229_vm1, %v9813_v34  ;;  %v10400_v34 = vpop.xlane.xlu2 %5094  ;;  %vm4190_vm8 = vcmp.gt.f32.partialorder %v4162_v16, 0.5 }
0x14fd   :  { %11407 = vst [vmem:[#allocation130_spill] sm:$0xff] %v10400_v34 }
0x14ff   :  { %v3938_v14 = vpop.f32.mrf.mxu2 }
0x1500   :  { %v4234_v27 = vsel %vm4186_vm4, %v4100_v15, %v3938_v14  ;;  %vm3257_vm4 = vcmp.gt.f32.partialorder %v10230_v47, 0.5 }
0x1501   :  { %v7351_v51 = vpack.i.bf16 %v4234_v27, %v4233_v6  ;;  %v4112_v14 = vpop.f32.mrf.mxu3 }
0x1503   :  { %7352 = vrot.lane.b32.xlu2 %v7351_v51, %s7824_s0  ;;  %v4171_v6 = vpop.xlane.xlu1 %4170  ;;  %v10407_v51 = vpop.xlane.xlu0 %5073 }
0x1504   :  { %6898 = vmatmul.msk.f32.gmra.mxu1 %vm1229_vm1, %v9809_v58  ;;  %v10405_v58 = vpop.xlane.xlu2 %5103  ;;  %vm4193_vm12 = vcmp.gt.f32.partialorder %v4171_v6, 0.5 }
0x1505   :  { %11408 = vst [vmem:[#allocation131_spill] sm:$0xff] %v10405_v58 }
0x1507   :  { %v3941_v13 = vpop.f32.mrf.mxu2 }
0x1508   :  { %v4235_v18 = vsel %vm4187_vm6, %v4103_v17, %v3941_v13  ;;  %vm3259_vm6 = vcmp.gt.f32.partialorder %v10356_v19, 0.5 }
0x1509   :  { %v4115_v35 = vpop.f32.mrf.mxu3 }
0x150b   :  { %v4180_v3 = vpop.xlane.xlu1 %4179  ;;  %v10412_v13 = vpop.xlane.xlu0 %5082 }
0x150c   :  { %vm4196_vm14 = vcmp.gt.f32.partialorder %v4180_v3, 0.5 }
0x150f   :  { %v3944_v15 = vpop.f32.mrf.mxu2 }
0x1510   :  { %v4236_v55 = vsel %vm4188_vm7, %v4106_v21, %v3944_v15  ;;  %v10410_v21 = vpop.xlane.xlu2 %5994  ;;  %vm3260_vm7 = vcmp.gt.f32.partialorder %v10264_v29, 0.5 }
0x1511   :  { %v7356_v36 = vpack.i.bf16 %v4236_v55, %v4235_v18  ;;  %11409 = vst [vmem:[#allocation132_spill] sm:$0xff] %v10410_v21  ;;  %v4118_v15 = vpop.f32.mrf.mxu3 }
0x1513   :  { %7357 = vrot.lane.b32.xlu0 %v7356_v36, %s7824_s0  ;;  %v10415_v55 = vpop.xlane.xlu1 %5070  ;;  %v10420_v5 = vpop.xlane.xlu0 %5091 }
0x1517   :  { %v3947_v27 = vpop.f32.mrf.mxu2 }
0x1518   :  { %v4237_v34 = vsel %vm4189_vm9, %v4109_v28, %v3947_v27  ;;  %v10417_v36 = vpop.xlane.xlu2 %6003 }
0x1519   :  { %11410 = vst [vmem:[#allocation133_spill] sm:$0xff] %v10417_v36  ;;  %v4121_v16 = vpop.f32.mrf.mxu3 }
0x151b   :  { %v10422_v27 = vpop.xlane.xlu1 %5079 }
0x151f   :  { %v3950_v46 = vpop.f32.mrf.mxu2 }
0x1520   :  { %v4238_v1 = vsel %vm4190_vm8, %v4112_v14, %v3950_v46  ;;  %v10425_v46 = vpop.xlane.xlu2 %6012 }
0x1521   :  { %v7361_v17 = vpack.i.bf16 %v4238_v1, %v4237_v34  ;;  %11411 = vst [vmem:[#allocation134_spill] sm:$0xff] %v10425_v46  ;;  %v4124_v36 = vpop.f32.mrf.mxu3 }
0x1523   :  { %7362 = vrot.lane.b32.xlu1 %v7361_v17, %s7824_s0  ;;  %v10427_v17 = vpop.xlane.xlu0 %5100  ;;  %v10429_v8 = vpop.xlane.xlu1 %5088 }
0x1527   :  { %v3953_v18 = vpop.f32.mrf.mxu2 }
0x1528   :  { %v4239_v1 = vsel %vm4191_vm11, %v4115_v35, %v3953_v18  ;;  %v10431_v58 = vpop.xlane.xlu2 %6021 }
0x1529   :  { %11412 = vst [vmem:[#allocation135_spill] sm:$0xff] %v10431_v58 }
0x152b   :  { %v10433_v18 = vpop.xlane.xlu0 %5109 }
0x152f   :  { %v3956_v28 = vpop.f32.mrf.mxu2 }
0x1530   :  { %v4240_v34 = vsel %vm4192_vm10, %v4118_v15, %v3956_v28  ;;  %v10438_v46 = vpop.xlane.xlu2 %6030 }
0x1531   :  { %v7366_v14 = vpack.i.bf16 %v4240_v34, %v4239_v1  ;;  %v4127_v1 = vpop.f32.mrf.mxu3  ;;  %v10436_v34 = vpop.xlane.xlu1 %5097  ;;  %11413 = vst [vmem:[#allocation136_spill] sm:$0xff] %v10438_v46 }
0x1533   :  { %7367 = vrot.lane.b32.xlu2 %v7366_v14, %s7824_s0  ;;  %v10440_v6 = vpop.xlane.xlu0 %6000 }
0x1537   :  { %v3959_v21 = vpop.f32.mrf.mxu2 }
0x1538   :  { %v4241_v35 = vsel %vm4193_vm12, %v4121_v16, %v3959_v21  ;;  %vm5112_vm12 = vcmp.gt.f32.partialorder %v10386_v40, 0.5 }
0x1539   :  { %v4130_v62 = vpop.f32.mrf.mxu3  ;;  %v10443_v16 = vpop.xlane.xlu1 %5106 }
0x153f   :  { %v3962_v23 = vpop.f32.mrf.mxu2 }
0x1540   :  { %v4242_v15 = vsel %vm4194_vm13, %v4124_v36, %v3962_v23  ;;  %vm5111_vm13 = vcmp.gt.f32.partialorder %v10402_v12, 0.5 }
0x1541   :  { %v7371_v28 = vpack.i.bf16 %v4242_v15, %v4241_v35  ;;  %v10446_v35 = vpop.xlane.xlu2 %6039  ;;  %v10448_v15 = vpop.xlane.xlu0 %6009 }
0x1543   :  { %7372 = vrot.lane.b32.xlu0 %v7371_v28, %s7824_s0  ;;  %v10450_v28 = vpop.xlane.xlu1 %5997 }
0x1547   :  { %v3965_v14 = vpop.f32.mrf.mxu2 }
0x1548   :  { %v4243_v21 = vsel %vm4195_vm15, %v4127_v1, %v3965_v14  ;;  %v3304_v1 = vsel %vm3256_vm3, %v10022_v61, %v9836_v41  ;;  %vm5114_vm15 = vcmp.gt.f32.partialorder %v10407_v51, 0.5  ;;  %v11462_v51 = vld [vmem:[#allocation128_spill] sm:$0xff] }
0x1549   :  { %v10458_v14 = vpop.xlane.xlu0 %6018  ;;  %vm5115_vm3 = vcmp.gt.f32.partialorder %v11462_v51, 0.5 }
0x154b   :  { %v10466_v63 = vpop.xlane.xlu1 %6006 }
0x154f   :  { %v3968_v58 = vpop.f32.mrf.mxu2 }
0x1550   :  { %v4244_v36 = vsel %vm4196_vm14, %v4130_v62, %v3968_v58  ;;  %v3303_v58 = vsel %vm3255_vm2, %v9987_v49, %v9831_v24  ;;  %vm5113_vm14 = vcmp.gt.f32.partialorder %v10415_v55, 0.5  ;;  %vm5116_vm2 = vcmp.gt.f32.partialorder %v10422_v27, 0.5 }
0x1551   :  { %v7376_v23 = vpack.i.bf16 %v4244_v36, %v4243_v21  ;;  %v10468_v4 = vpop.xlane.xlu0 %6027 }
0x1553   :  { %7377 = vrot.lane.b32.xlu1 %v7376_v23, %s7824_s0  ;;  %v10470_v36 = vpop.xlane.xlu1 %6015 }
0x1559   :  { %v10472_v23 = vpop.xlane.xlu0 %6036 }
0x155a   :  { %11416 = vst [vmem:[#allocation139_spill] sm:$0xff] %v10472_v23  ;;  %v3306_v23 = vsel %vm3258_vm5, %v10107_v50, %v9850_v39  ;;  %v3307_v50 = vsel %vm3259_vm6, %v10150_v25, %v9852_v2  ;;  %vm5117_vm5 = vcmp.gt.f32.partialorder %v10412_v13, 0.5  ;;  %vm5119_vm6 = vcmp.gt.f32.partialorder %v10429_v8, 0.5 }
0x155b   :  { %v10474_v24 = vpop.xlane.xlu1 %6024 }
0x155d   :  { %v7353_v60 = vpop.permute.xlu2 %7352 }
0x155e   :  { %v7355_v3 = vunpack.i.h.bf16 %v7353_v60  ;;  %v7354_v46 = vunpack.i.l.bf16 %v7353_v60 }
0x1560   :  { %v10461_v62 = vsel %vm289_vm0, %v3304_v1, %v7355_v3  ;;  %v10464_v21 = vsel %vm289_vm0, %v3303_v58, %v7354_v46 }
0x1561   :  { %11414 = vst [vmem:[#allocation137_spill] sm:$0xff] %v10461_v62 }
0x1562   :  { %11415 = vst [vmem:[#allocation138_spill] sm:$0xff] %v10464_v21  ;;  %v3305_v21 = vsel %vm3257_vm4, %v10063_v59, %v9844_v54 }
0x1563   :  { %v10478_v3 = vpop.xlane.xlu1 %6033 }
0x1565   :  { %v10476_v61 = vpop.permute.xlu0 %7347 }
0x156b   :  { %v10494_v20 = vpop.permute.xlu1 %7342 }
0x1579   :  { %v4415_v49 = vpop.f32.mrf.mxu1 }
0x157a   :  { %v4421_v46 = vmul.f32 0.25, %v4415_v49 }
0x1581   :  { %v4418_v41 = vpop.f32.mrf.mxu1 }
0x1582   :  { %v4422_v60 = vmul.f32 0.25, %v4418_v41 }
0x1584   :  { %4437 = vmatpush.msrb.mxu0 %v4422_v60 }
0x1585   :  { %v7358_v58 = vpop.permute.xlu0 %7357 }
0x1586   :  { %v7360_v1 = vunpack.i.h.bf16 %v7358_v58  ;;  %v7359_v62 = vunpack.i.l.bf16 %v7358_v58  ;;  %4438 = vmatpush.msrb.mxu0 %v4421_v46 }
0x1587   :  { %6899 = vmatmul.msk.f32.vlgmr.msrb.gmra.mxu0 %vm1229_vm1, %v11303_v43 }
0x1588   :  { %v10489_v41 = vsel %vm289_vm0, %v3306_v23, %v7360_v1  ;;  %v10492_v47 = vsel %vm289_vm0, %v3305_v21, %v7359_v62  ;;  %v3308_v23 = vsel %vm3260_vm7, %v10189_v26, %v9854_v7  ;;  %vm5120_vm7 = vcmp.gt.f32.partialorder %v10420_v5, 0.5 }
0x158f   :  { %6900 = vmatmul.msk.f32.gmra.mxu0 %vm1229_vm1, %v11304_v31 }
0x1595   :  { %v7363_v54 = vpop.permute.xlu1 %7362 }
0x1596   :  { %v7365_v39 = vunpack.i.h.bf16 %v7363_v54  ;;  %v7364_v59 = vunpack.i.l.bf16 %v7363_v54 }
0x1598   :  { %v10505_v62 = vsel %vm289_vm0, %v3308_v23, %v7365_v39  ;;  %v10508_v21 = vsel %vm289_vm0, %v3307_v50, %v7364_v59 }
0x1604   :  { %v4440_v49 = vpop.f32.mrf.mxu0 }
0x1605   :  { %v4446_v29 = vsub.f32 %v8501_v11, %v4440_v49 }
0x160c   :  { %v4443_v58 = vpop.f32.mrf.mxu0 }
0x160d   :  { %v4447_v19 = vsub.f32 %v8498_v30, %v4443_v58 }
0x160f   :  { %4468 = vmatpush.msra.mxu1 %v4447_v19 }
0x1611   :  { %4469 = vmatpush.msra.mxu1 %v4446_v29 }
0x1612   :  { %6901 = vmatmul.msk.f32.vlgmr.msra.gmra.mxu1 %vm1229_vm1, %v4440_v49 }
0x161a   :  { %6902 = vmatmul.msk.f32.gmra.mxu1 %vm1229_vm1, %v4443_v58 }
0x168f   :  { %v4471_v2 = vpop.f32.mrf.mxu1 }
0x1690   :  { %v4477_v25 = vsub.f32 %v8582_v48, %v4471_v2 }
0x1697   :  { %v4474_v7 = vpop.f32.mrf.mxu1 }
0x1698   :  { %v4478_v26 = vsub.f32 %v8576_v53, %v4474_v7 }
0x169a   :  { %4493 = vmatpush.msra.mxu0 %v4478_v26 }
0x169c   :  { %4494 = vmatpush.msra.mxu0 %v4477_v25 }
0x169d   :  { %6903 = vmatmul.msk.f32.vlgmr.msra.gmra.mxu0 %vm1229_vm1, %v4440_v49 }
0x16a5   :  { %6904 = vmatmul.msk.f32.gmra.mxu0 %vm1229_vm1, %v4443_v58 }
0x171a   :  { %v4496_v1 = vpop.f32.mrf.mxu0 }
0x171b   :  { %v4502_v59 = vsub.f32 %v8613_v32, %v4496_v1 }
0x1722   :  { %v4499_v54 = vpop.f32.mrf.mxu0 }
0x1723   :  { %v4503_v39 = vsub.f32 %v8610_v22, %v4499_v54 }
0x1725   :  { %4524 = vmatpush.msrb.mxu1 %v4503_v39 }
0x1727   :  { %4525 = vmatpush.msrb.mxu1 %v4502_v59 }
0x1728   :  { %6905 = vmatmul.msk.f32.vlgmr.msrb.gmra.mxu1 %vm1229_vm1, %v4421_v46 }
0x1730   :  { %6906 = vmatmul.msk.f32.gmra.mxu1 %vm1229_vm1, %v4422_v60 }
0x17a5   :  { %v4527_v50 = vpop.f32.mrf.mxu1 }
0x17a6   :  { %v4533_v29 = vmul.f32 0.25, %v4527_v50 }
0x17ad   :  { %v4530_v23 = vpop.f32.mrf.mxu1 }
0x17ae   :  { %v4534_v19 = vmul.f32 0.25, %v4530_v23 }
0x17b0   :  { %4549 = vmatpush.msrb.mxu0 %v4534_v19 }
0x17b2   :  { %4550 = vmatpush.msrb.mxu0 %v4533_v29 }
0x17b3   :  { %6907 = vmatmul.msk.f32.vlgmr.msrb.gmra.mxu0 %vm1229_vm1, %v11303_v43 }
0x17bb   :  { %6908 = vmatmul.msk.f32.gmra.mxu0 %vm1229_vm1, %v11304_v31 }
0x1830   :  { %v4552_v49 = vpop.f32.mrf.mxu0 }
0x1831   :  { %v4558_v46 = vsub.f32 %v8501_v11, %v4552_v49 }
0x1838   :  { %v4555_v58 = vpop.f32.mrf.mxu0 }
0x1839   :  { %v4559_v2 = vsub.f32 %v8498_v30, %v4555_v58 }
0x183b   :  { %4580 = vmatpush.msra.mxu1 %v4559_v2 }
0x183d   :  { %4581 = vmatpush.msra.mxu1 %v4558_v46 }
0x183e   :  { %6909 = vmatmul.msk.f32.vlgmr.msra.gmra.mxu1 %vm1229_vm1, %v4552_v49 }
0x1846   :  { %6910 = vmatmul.msk.f32.gmra.mxu1 %vm1229_vm1, %v4555_v58 }
0x18bb   :  { %v4583_v60 = vpop.f32.mrf.mxu1 }
0x18bc   :  { %v4589_v25 = vsub.f32 %v8582_v48, %v4583_v60 }
0x18c3   :  { %v4586_v7 = vpop.f32.mrf.mxu1 }
0x18c4   :  { %v4590_v26 = vsub.f32 %v8576_v53, %v4586_v7 }
0x18c6   :  { %4605 = vmatpush.msra.mxu0 %v4590_v26 }
0x18c8   :  { %4606 = vmatpush.msra.mxu0 %v4589_v25  ;;  %v11422_v25 = vld [vmem:[#allocation55_spill] sm:$0xff] }
0x18c9   :  { %6911 = vmatmul.msk.f32.vlgmr.msra.gmra.mxu0 %vm1229_vm1, %v4552_v49 }
0x18d1   :  { %6912 = vmatmul.msk.f32.gmra.mxu0 %vm1229_vm1, %v4555_v58 }
0x1946   :  { %v4608_v1 = vpop.f32.mrf.mxu0 }
0x1947   :  { %v4614_v59 = vsub.f32 %v8613_v32, %v4608_v1 }
0x194e   :  { %v4611_v54 = vpop.f32.mrf.mxu0 }
0x194f   :  { %v4615_v39 = vsub.f32 %v8610_v22, %v4611_v54 }
0x1951   :  { %4636 = vmatpush.msrb.mxu1 %v4615_v39 }
0x1953   :  { %4637 = vmatpush.msrb.mxu1 %v4614_v59 }
0x1954   :  { %6913 = vmatmul.msk.f32.vlgmr.msrb.gmra.mxu1 %vm1229_vm1, %v4533_v29 }
0x195c   :  { %6914 = vmatmul.msk.f32.gmra.mxu1 %vm1229_vm1, %v4534_v19 }
0x19d1   :  { %v4639_v50 = vpop.f32.mrf.mxu1 }
0x19d2   :  { %v4645_v46 = vmul.f32 0.25, %v4639_v50 }
0x19d9   :  { %v4642_v23 = vpop.f32.mrf.mxu1 }
0x19da   :  { %v10538_v2 = vmul.f32 0.25, %v4642_v23  ;;  %v11423_v23 = vld [vmem:[#allocation9_spill] sm:$0xff] }
0x19dc   :  { %4661 = vmatpush.msrb.mxu0 %v10538_v2 }
0x19de   :  { %4662 = vmatpush.msrb.mxu0 %v4645_v46 }
0x19df   :  { %6915 = vmatmul.msk.f32.vlgmr.msrb.gmra.mxu0 %vm1229_vm1, %v11303_v43 }
0x19e7   :  { %6916 = vmatmul.msk.f32.gmra.mxu0 %vm1229_vm1, %v11304_v31  ;;  %v11417_v31 = vld [vmem:[#allocation57_spill] sm:$0xff] }
0x1a5c   :  { %v4664_v49 = vpop.f32.mrf.mxu0 }
0x1a5d   :  { %v4670_v19 = vsub.f32 %v8501_v11, %v4664_v49 }
0x1a64   :  { %v4667_v58 = vpop.f32.mrf.mxu0 }
0x1a65   :  { %v4671_v29 = vsub.f32 %v8498_v30, %v4667_v58 }
0x1a67   :  { %4692 = vmatpush.msra.mxu1 %v4671_v29 }
0x1a69   :  { %4693 = vmatpush.msra.mxu1 %v4670_v19  ;;  %v11425_v19 = vld [vmem:[#allocation88_spill] sm:$0xff] }
0x1a6a   :  { %6917 = vmatmul.msk.f32.vlgmr.msra.gmra.mxu1 %vm1229_vm1, %v4664_v49 }
0x1a72   :  { %6918 = vmatmul.msk.f32.gmra.mxu1 %vm1229_vm1, %v4667_v58 }
0x1ae7   :  { %v4695_v60 = vpop.f32.mrf.mxu1 }
0x1ae8   :  { %v4701_v43 = vsub.f32 %v8582_v48, %v4695_v60 }
0x1aef   :  { %v4698_v7 = vpop.f32.mrf.mxu1 }
0x1af0   :  { %v4702_v26 = vsub.f32 %v8576_v53, %v4698_v7  ;;  %v11426_v7 = vld [vmem:[#allocation15_spill] sm:$0xff] }
0x1af2   :  { %4717 = vmatpush.msra.mxu0 %v4702_v26  ;;  %v11427_v26 = vld [vmem:[#allocation17_spill] sm:$0xff] }
0x1af4   :  { %4718 = vmatpush.msra.mxu0 %v4701_v43 }
0x1af5   :  { %6919 = vmatmul.msk.f32.vlgmr.msra.gmra.mxu0 %vm1229_vm1, %v4664_v49 }
0x1af6   :  { %5012 = vmatpush.msrb.mxu0 %v11319_v42  ;;  %v11419_v42 = vld [vmem:[#allocation48_spill] sm:$0xff] }
0x1af8   :  { %5013 = vmatpush.msrb.mxu0 %v11321_v57  ;;  %v11418_v57 = vld [vmem:[#allocation68_spill] sm:$0xff] }
0x1afd   :  { %6920 = vmatmul.msk.f32.gmra.mxu0 %vm1229_vm1, %v4667_v58  ;;  %v11424_v58 = vld [vmem:[#allocation90_spill] sm:$0xff] }
0x1b05   :  { %6957 = vmatmul.msk.f32.vlgmr.msrb.gmra.mxu0 %vm1229_vm1, %v10031_v0  ;;  %v11421_v0 = vld [vmem:[#allocation5_spill] sm:$0xff] }
0x1b06   :  { %7731 = vrcp.f32 %v11421_v0  ;;  %v5230_v1 = vand.u32 2147483648, %v11421_v0  ;;  %vm5224_vm9 = vweird.f32 %v11421_v0 }
0x1b0d   :  { %6958 = vmatmul.msk.f32.gmra.mxu0 %vm1229_vm1, %v10041_v56 }
0x1b15   :  { %6959 = vmatmul.msk.f32.gmra.mxu0 %vm1229_vm1, %v9984_v52  ;;  %v11420_v52 = vld [vmem:[#allocation71_spill] sm:$0xff] }
0x1b1d   :  { %6960 = vmatmul.msk.f32.gmra.mxu0 %vm1229_vm1, %v10066_v37 }
0x1b25   :  { %6961 = vmatmul.msk.f32.gmra.mxu0 %vm1229_vm1, %v10073_v38 }
0x1b2d   :  { %6962 = vmatmul.msk.f32.gmra.mxu0 %vm1229_vm1, %v10014_v45  ;;  %v7732_v45 = vpop.eup %7731 }
0x1b2e   :  { %v5220_v56 = vmul.f32 %v7732_v45, %v11421_v0  ;;  %vm5225_vm8 = vweird.f32 %v7732_v45 }
0x1b2f   :  { %vm5226_vm10 = vmor %vm5224_vm9, %vm5225_vm8  ;;  %vm5122_vm8 = vcmp.gt.f32.partialorder %v10436_v34, 0.5 }
0x1b30   :  { %v5221_v37 = vsub.f32 1.0, %v5220_v56  ;;  %v11428_v56 = vld [vmem:[#allocation28_spill] sm:$0xff] }
0x1b31   :  { %7733 = vrcp.f32 %v11428_v56 }
0x1b35   :  { %6963 = vmatmul.msk.f32.gmra.mxu0 %vm1229_vm1, %v10098_v9  ;;  %v5222_v9 = vmul.f32 %v7732_v45, %v5221_v37 }
0x1b37   :  { %v7734_v37 = vpop.eup %7733 }
0x1b3d   :  { %6964 = vmatmul.msk.f32.gmra.mxu0 %vm1229_vm1, %v11417_v31 }
0x1b45   :  { %6965 = vmatmul.msk.f32.gmra.mxu0 %vm1229_vm1, %v11418_v57 }
0x1b4d   :  { %6966 = vmatmul.msk.f32.gmra.mxu0 %vm1229_vm1, %v11419_v42 }
0x1b55   :  { %6967 = vmatmul.msk.f32.gmra.mxu0 %vm1229_vm1, %v10142_v33  ;;  %v5223_v33 = vadd.f32 %v7732_v45, %v5222_v9  ;;  %v11429_v9 = vld [vmem:[#allocation31_spill] sm:$0xff] }
0x1b56   :  { %7735 = vrcp.f32 %v11429_v9 }
0x1b57   :  { %v5227_v39 = vsel %vm5226_vm10, %v7732_v45, %v5223_v33 }
0x1b5d   :  { %6968 = vmatmul.msk.f32.gmra.mxu0 %vm1229_vm1, %v11420_v52 }
0x1b65   :  { %6969 = vmatmul.msk.f32.gmra.mxu0 %vm1229_vm1, %v10171_v44  ;;  %v5228_v44 = vand.u32 2147483647, %v11421_v0 }
0x1b67   :  { %vm5229_vm11 = vcmp.eq.f32.partialorder %v5228_v44, 8.507059e+37  ;;  %v7736_v44 = vpop.eup %7735 }
0x1b6d   :  { %6970 = vmatmul.msk.f32.gmra.mxu0 %vm1229_vm1, %v10178_v10  ;;  %v5231_v10 = vor.u32 1.1754944e-38, %v5230_v1  ;;  %v11431_v1 = vld [vmem:[#allocation53_spill] sm:$0xff] }
0x1b6f   :  { %v5232_v49 = vsel %vm5229_vm11, %v5231_v10, %v5227_v39  ;;  %v11433_v39 = vld [vmem:[#allocation27_spill] sm:$0xff]  ;;  %vm5123_vm11 = vcmp.gt.f32.partialorder %v10427_v17, 0.5  ;;  %v10699_v17 = vpop.permute.xlu2 %7367 }
0x1b70   :  { %v10595_v29 = vmul.f32 %v5232_v49, %v11424_v58  ;;  %v10599_v60 = vmul.f32 %v5232_v49, %v11425_v19  ;;  %7737 = vrcp.f32 %v11433_v39  ;;  %v11436_v49 = vld [vmem:[#allocation85_spill] sm:$0xff] }
0x1b72   :  { %v4720_v38 = vpop.f32.mrf.mxu0 }
0x1b73   :  { %v4726_v50 = vsub.f32 %v8613_v32, %v4720_v38 }
0x1b75   :  { %6971 = vmatmul.msk.f32.gmra.mxu0 %vm1229_vm1, %v11422_v25  ;;  %v11430_v25 = vld [vmem:[#allocation83_spill] sm:$0xff] }
0x1b76   :  { %v1902_v33 = vmul.f32 %v7734_v37, %v11430_v25  ;;  %v11439_v37 = vld [vmem:[#allocation42_spill] sm:$0xff] }
0x1b7a   :  { %v4723_v54 = vpop.f32.mrf.mxu0 }
0x1b7b   :  { %v4727_v59 = vsub.f32 %v8610_v22, %v4723_v54  ;;  %v11432_v54 = vld [vmem:[#allocation52_spill] sm:$0xff] }
0x1b7d   :  { %4748 = vmatpush.msrb.mxu1 %v4727_v59  ;;  %6972 = vmatmul.msk.f32.gmra.mxu0 %vm1229_vm1, %v11423_v23  ;;  %v11434_v59 = vld [vmem:[#allocation84_spill] sm:$0xff]  ;;  %v11435_v23 = vld [vmem:[#allocation29_spill] sm:$0xff] }
0x1b7e   :  { %v1903_v10 = vmul.f32 %v7736_v44, %v11434_v59  ;;  %7739 = vrcp.f32 %v11435_v23  ;;  %v11442_v44 = vld [vmem:[#allocation89_spill] sm:$0xff] }
0x1b7f   :  { %4749 = vmatpush.msrb.mxu1 %v4726_v50  ;;  %v7738_v50 = vpop.eup %7737 }
0x1b80   :  { %6921 = vmatmul.msk.f32.vlgmr.msrb.gmra.mxu1 %vm1229_vm1, %v4645_v46  ;;  %v1904_v58 = vmul.f32 %v7738_v50, %v11436_v49  ;;  %v11444_v50 = vld [vmem:[#allocation91_spill] sm:$0xff]  ;;  %v11445_v49 = vld [vmem:[#allocation37_spill] sm:$0xff] }
0x1b81   :  { %5255 = vmatpush.msra.mxu1 %v10595_v29 }
0x1b83   :  { %5256 = vmatpush.msra.mxu1 %v10599_v60 }
0x1b88   :  { %6922 = vmatmul.msk.f32.gmra.mxu1 %vm1229_vm1, %v10538_v2 }
0x1b90   :  { %6973 = vmatmul.msk.f32.vlgmr.msra.gmra.mxu1 %vm1229_vm1, %v11426_v7 }
0x1b98   :  { %6974 = vmatmul.msk.f32.gmra.mxu1 %vm1229_vm1, %v11427_v26 }
0x1bfd   :  { %v4751_v43 = vpop.f32.mrf.mxu1 }
0x1bfe   :  { %v4757_v31 = vmul.f32 0.25, %v4751_v43  ;;  %v7740_v43 = vpop.eup %7739 }
0x1c00   :  { %6923 = vmatmul.msk.f32.vlgmr.msrb.gmra.mxu2 %vm1229_vm1, %v4757_v31  ;;  %v11437_v31 = vld [vmem:[#allocation43_spill] sm:$0xff] }
0x1c01   :  { %7741 = vrcp.f32 %v11437_v31  ;;  %v11448_v31 = vld [vmem:[#allocation95_spill] sm:$0xff] }
0x1c02   :  { %7743 = vrcp.f32 %v11439_v37  ;;  %v11451_v37 = vld [vmem:[#allocation38_spill] sm:$0xff] }
0x1c05   :  { %v4754_v46 = vpop.f32.mrf.mxu1 }
0x1c06   :  { %v4758_v57 = vmul.f32 0.25, %v4754_v46  ;;  %v11438_v46 = vld [vmem:[#allocation86_spill] sm:$0xff] }
0x1c07   :  { %v7742_v56 = vpop.eup %7741 }
0x1c08   :  { %6924 = vmatmul.msk.f32.gmra.mxu2 %vm1229_vm1, %v4758_v57  ;;  %v1905_v57 = vmul.f32 %v7740_v43, %v11438_v46  ;;  %v7744_v25 = vpop.eup %7743 }
0x1c09   :  { %v1907_v39 = vmul.f32 %v7744_v25, %v11442_v44  ;;  %v11454_v44 = vld [vmem:[#allocation96_spill] sm:$0xff] }
0x1c0d   :  { %v5258_v42 = vpop.f32.mrf.mxu1 }
0x1c0e   :  { %v5264_v2 = vsub.f32 %v8501_v11, %v5258_v42 }
0x1c15   :  { %v5261_v52 = vpop.f32.mrf.mxu1 }
0x1c16   :  { %v5265_v0 = vsub.f32 %v8498_v30, %v5261_v52 }
0x1c18   :  { %5286 = vmatpush.msra.mxu2 %v5265_v0 }
0x1c1a   :  { %5287 = vmatpush.msra.mxu2 %v5264_v2 }
0x1c1b   :  { %6975 = vmatmul.msk.f32.vlgmr.msra.gmra.mxu2 %vm1229_vm1, %v5258_v42 }
0x1c23   :  { %6976 = vmatmul.msk.f32.gmra.mxu2 %vm1229_vm1, %v5261_v52 }
0x1c83   :  { %v4782_v45 = vpop.f32.mrf.mxu2 }
0x1c8b   :  { %v4785_v38 = vpop.f32.mrf.mxu2 }
0x1c8c   :  { %4850 = vmatpush.msra.mxu3 %v4785_v38  ;;  %v11440_v38 = vld [vmem:[#allocation87_spill] sm:$0xff] }
0x1c8d   :  { %v1906_v9 = vmul.f32 %v7742_v56, %v11440_v38  ;;  %v11452_v38 = vld [vmem:[#allocation97_spill] sm:$0xff] }
0x1c8e   :  { %4851 = vmatpush.msra.mxu3 %v4782_v45 }
0x1c8f   :  { %6925 = vmatmul.msk.f32.vlgmr.msra.gmra.mxu3 %vm1229_vm1, %v1902_v33  ;;  %v11441_v33 = vld [vmem:[#allocation34_spill] sm:$0xff] }
0x1c90   :  { %5709 = vmatpush.msrb.mxu3 %v11431_v1  ;;  %7745 = vrcp.f32 %v11441_v33  ;;  %v11453_v33 = vld [vmem:[#allocation35_spill] sm:$0xff] }
0x1c92   :  { %5710 = vmatpush.msrb.mxu3 %v11432_v54 }
0x1c96   :  { %v7746_v59 = vpop.eup %7745 }
0x1c97   :  { %6926 = vmatmul.msk.f32.gmra.mxu3 %vm1229_vm1, %v1903_v10  ;;  %v11443_v10 = vld [vmem:[#allocation30_spill] sm:$0xff]  ;;  %v1908_v23 = vmul.f32 %v7746_v59, %v11444_v50 }
0x1c98   :  { %7747 = vrcp.f32 %v11443_v10  ;;  %v11455_v10 = vld [vmem:[#allocation40_spill] sm:$0xff]  ;;  %v11456_v50 = vld [vmem:[#allocation98_spill] sm:$0xff] }
0x1c99   :  { %7749 = vrcp.f32 %v11445_v49  ;;  %v5015_v49 = vpop.f32.mrf.mxu0 }
0x1c9e   :  { %v5289_v19 = vpop.f32.mrf.mxu2 }
0x1c9f   :  { %6927 = vmatmul.msk.f32.gmra.mxu3 %vm1229_vm1, %v1904_v58  ;;  %v5295_v45 = vsub.f32 %v8582_v48, %v5289_v19  ;;  %v11446_v58 = vld [vmem:[#allocation94_spill] sm:$0xff] }
0x1ca6   :  { %v5292_v0 = vpop.f32.mrf.mxu2 }
0x1ca7   :  { %v5296_v2 = vsub.f32 %v8576_v53, %v5292_v0  ;;  %6928 = vmatmul.msk.f32.gmra.mxu3 %vm1229_vm1, %v1905_v57  ;;  %v11449_v0 = vld [vmem:[#allocation33_spill] sm:$0xff] }
0x1ca9   :  { %5311 = vmatpush.msrb.mxu1 %v5296_v2  ;;  %v11450_v2 = vld [vmem:[#allocation92_spill] sm:$0xff] }
0x1cab   :  { %5312 = vmatpush.msrb.mxu1 %v5295_v45 }
0x1cac   :  { %6977 = vmatmul.msk.f32.vlgmr.msrb.gmra.mxu1 %vm1229_vm1, %v5258_v42  ;;  %v7748_v42 = vpop.eup %7747 }
0x1cad   :  { %v1909_v19 = vmul.f32 %v7748_v42, %v11446_v58  ;;  %v7750_v43 = vpop.eup %7749  ;;  %v11457_v58 = vld [vmem:[#allocation39_spill] sm:$0xff] }
0x1cae   :  { %v1910_v46 = vmul.f32 %v7750_v43, %v11448_v31  ;;  %v11459_v31 = vld [vmem:[#allocation36_spill] sm:$0xff] }
0x1caf   :  { %6929 = vmatmul.msk.f32.gmra.mxu3 %vm1229_vm1, %v1906_v9 }
0x1cb4   :  { %6978 = vmatmul.msk.f32.gmra.mxu1 %vm1229_vm1, %v5261_v52  ;;  %v11447_v52 = vld [vmem:[#allocation32_spill] sm:$0xff] }
0x1cb5   :  { %7751 = vrcp.f32 %v11447_v52 }
0x1cb6   :  { %7753 = vrcp.f32 %v11449_v0 }
0x1cb7   :  { %6930 = vmatmul.msk.f32.gmra.mxu3 %vm1229_vm1, %v1907_v39  ;;  %7755 = vrcp.f32 %v11451_v37 }
0x1cb8   :  { %7757 = vrcp.f32 %v11453_v33 }
0x1cb9   :  { %7759 = vrcp.f32 %v11455_v10 }
0x1cba   :  { %7761 = vrcp.f32 %v11457_v58 }
0x1cbb   :  { %v7752_v57 = vpop.eup %7751  ;;  %7763 = vrcp.f32 %v11459_v31 }
0x1cbc   :  { %v1911_v45 = vmul.f32 %v7752_v57, %v11450_v2  ;;  %v7754_v56 = vpop.eup %7753  ;;  %v11460_v57 = vld [vmem:[#allocation25_spill] sm:$0xff] }
0x1cbd   :  { %v1912_v9 = vmul.f32 %v7754_v56, %v11452_v38  ;;  %v7756_v25 = vpop.eup %7755 }
0x1cbe   :  { %v1913_v39 = vmul.f32 %v7756_v25, %v11454_v44  ;;  %v7758_v59 = vpop.eup %7757 }
0x1cbf   :  { %6931 = vmatmul.msk.f32.gmra.mxu3 %vm1229_vm1, %v1908_v23  ;;  %v1914_v23 = vmul.f32 %v7758_v59, %v11456_v50  ;;  %v7760_v42 = vpop.eup %7759 }
0x1cc0   :  { %v7762_v52 = vpop.eup %7761 }
0x1cc1   :  { %v1916_v0 = vmul.f32 %v7762_v52, %v11460_v57  ;;  %v7764_v2 = vpop.eup %7763 }
0x1cc7   :  { %6932 = vmatmul.msk.f32.gmra.mxu3 %vm1229_vm1, %v1909_v19  ;;  %v11458_v19 = vld [vmem:[#allocation100_spill] sm:$0xff] }
0x1cc8   :  { %v1915_v43 = vmul.f32 %v7760_v42, %v11458_v19 }
0x1ccf   :  { %6933 = vmatmul.msk.f32.gmra.mxu3 %vm1229_vm1, %v1910_v46  ;;  %v5018_v46 = vpop.f32.mrf.mxu0 }
0x1cd7   :  { %6934 = vmatmul.msk.f32.gmra.mxu3 %vm1229_vm1, %v1911_v45  ;;  %v11461_v45 = vld [vmem:[#allocation99_spill] sm:$0xff]  ;;  %v5021_v37 = vpop.f32.mrf.mxu0 }
0x1cd8   :  { %v1917_v56 = vmul.f32 %v7764_v2, %v11461_v45 }
0x1cdf   :  { %6935 = vmatmul.msk.f32.gmra.mxu3 %vm1229_vm1, %v1912_v9  ;;  %v5024_v38 = vpop.f32.mrf.mxu0 }
0x1ce7   :  { %6936 = vmatmul.msk.f32.gmra.mxu3 %vm1229_vm1, %v1913_v39  ;;  %v5027_v33 = vpop.f32.mrf.mxu0 }
0x1cef   :  { %6937 = vmatmul.msk.f32.gmra.mxu3 %vm1229_vm1, %v1914_v23  ;;  %v5030_v50 = vpop.f32.mrf.mxu0 }
0x1cf7   :  { %6938 = vmatmul.msk.f32.gmra.mxu3 %vm1229_vm1, %v1915_v43  ;;  %v5033_v12 = vpop.f32.mrf.mxu0 }
0x1cff   :  { %6939 = vmatmul.msk.f32.gmra.mxu3 %vm1229_vm1, %v1916_v0  ;;  %v5036_v55 = vpop.f32.mrf.mxu0 }
0x1d07   :  { %6940 = vmatmul.msk.f32.gmra.mxu3 %vm1229_vm1, %v1917_v56  ;;  %v5039_v56 = vpop.f32.mrf.mxu0 }
0x1d12   :  { %v4853_v9 = vpop.f32.mrf.mxu3 }
0x1d13   :  { %v5159_v44 = vsel %vm5111_vm13, %v5015_v49, %v4853_v9  ;;  %vm5126_vm13 = vcmp.gt.f32.partialorder %v10433_v18, 0.5 }
0x1d1a   :  { %v4856_v25 = vpop.f32.mrf.mxu3 }
0x1d1b   :  { %v5160_v39 = vsel %vm5112_vm12, %v5018_v46, %v4856_v25  ;;  %v5042_v25 = vpop.f32.mrf.mxu0  ;;  %vm5125_vm12 = vcmp.gt.f32.partialorder %v10443_v16, 0.5 }
0x1d1c   :  { %v7381_v59 = vpack.i.bf16 %v5160_v39, %v5159_v44 }
0x1d1e   :  { %7382 = vrot.lane.b32.xlu2 %v7381_v59, %s7825_s24 }
0x1d22   :  { %v4859_v10 = vpop.f32.mrf.mxu3 }
0x1d23   :  { %v5161_v58 = vsel %vm5113_vm14, %v5021_v37, %v4859_v10  ;;  %v11463_v37 = vld [vmem:[#allocation129_spill] sm:$0xff]  ;;  %v5045_v44 = vpop.f32.mrf.mxu0  ;;  %vm6313_vm14 = vcmask 523264  }
0x1d24   :  { %vm5118_vm4 = vcmp.gt.f32.partialorder %v11463_v37, 0.5 }
0x1d29   :  { %v5314_v23 = vpop.f32.mrf.mxu1 }
0x1d2a   :  { %v4862_v42 = vpop.f32.mrf.mxu3  ;;  %v5320_v31 = vsub.f32 %v8613_v32, %v5314_v23  ;;  %v11464_v23 = vld [vmem:[#allocation130_spill] sm:$0xff] }
0x1d2b   :  { %v5162_v40 = vsel %vm5114_vm15, %v5024_v38, %v4862_v42  ;;  %v5048_v13 = vpop.f32.mrf.mxu0  ;;  %vm5121_vm9 = vcmp.gt.f32.partialorder %v11464_v23, 0.5  ;;  %vm6042_vm15 = vcmp.gt.f32.partialorder %v10450_v28, 0.5 }
0x1d2c   :  { %v7386_v19 = vpack.i.bf16 %v5162_v40, %v5161_v58 }
0x1d2e   :  { %7387 = vrot.lane.b32.xlu0 %v7386_v19, %s7825_s24 }
0x1d31   :  { %v5317_v49 = vpop.f32.mrf.mxu1 }
0x1d32   :  { %v5321_v43 = vsub.f32 %v8610_v22, %v5317_v49  ;;  %v4865_v52 = vpop.f32.mrf.mxu3  ;;  %v11465_v49 = vld [vmem:[#allocation131_spill] sm:$0xff] }
0x1d33   :  { %v5163_v57 = vsel %vm5115_vm3, %v5027_v33, %v4865_v52  ;;  %v5051_v58 = vpop.f32.mrf.mxu0  ;;  %vm5124_vm10 = vcmp.gt.f32.partialorder %v11465_v49, 0.5 }
0x1d34   :  { %5342 = vmatpush.msrb.mxu2 %v5321_v43 }
0x1d36   :  { %5343 = vmatpush.msrb.mxu2 %v5320_v31 }
0x1d37   :  { %6979 = vmatmul.msk.f32.vlgmr.msrb.gmra.mxu2 %vm1229_vm1, %v10599_v60 }
0x1d3a   :  { %v4868_v46 = vpop.f32.mrf.mxu3 }
0x1d3b   :  { %v5164_v0 = vsel %vm5116_vm2, %v5030_v50, %v4868_v46  ;;  %v5054_v8 = vpop.f32.mrf.mxu0 }
0x1d3c   :  { %v7391_v2 = vpack.i.bf16 %v5164_v0, %v5163_v57 }
0x1d3e   :  { %7392 = vrot.lane.b32.xlu1 %v7391_v2, %s7825_s24 }
0x1d3f   :  { %6980 = vmatmul.msk.f32.gmra.mxu2 %vm1229_vm1, %v10595_v29 }
0x1d42   :  { %v4871_v45 = vpop.f32.mrf.mxu3 }
0x1d43   :  { %v5165_v27 = vsel %vm5117_vm5, %v5033_v12, %v4871_v45  ;;  %v5057_v34 = vpop.f32.mrf.mxu0  ;;  %vm6046_vm5 = vcmp.gt.f32.partialorder %v10448_v15, 0.5 }
0x1d4a   :  { %v4874_v60 = vpop.f32.mrf.mxu3 }
0x1d4b   :  { %v5166_v38 = vsel %vm5118_vm4, %v5036_v55, %v4874_v60  ;;  %v5060_v46 = vpop.f32.mrf.mxu0  ;;  %vm6045_vm4 = vcmp.gt.f32.partialorder %v10466_v63, 0.5 }
0x1d4c   :  { %v7396_v9 = vpack.i.bf16 %v5166_v38, %v5165_v27 }
0x1d4e   :  { %7397 = vrot.lane.b32.xlu2 %v7396_v9, %s7825_s24 }
0x1d52   :  { %v4877_v33 = vpop.f32.mrf.mxu3 }
0x1d53   :  { %v5167_v39 = vsel %vm5119_vm6, %v5039_v56, %v4877_v33  ;;  %vm6048_vm6 = vcmp.gt.f32.partialorder %v10470_v36, 0.5 }
0x1d5a   :  { %v4880_v29 = vpop.f32.mrf.mxu3 }
0x1d5b   :  { %v5168_v59 = vsel %vm5120_vm7, %v5042_v25, %v4880_v29 }
0x1d5c   :  { %v7401_v10 = vpack.i.bf16 %v5168_v59, %v5167_v39 }
0x1d5e   :  { %7402 = vrot.lane.b32.xlu0 %v7401_v10, %s7825_s24 }
0x1d62   :  { %v4883_v50 = vpop.f32.mrf.mxu3 }
0x1d63   :  { %v5169_v40 = vsel %vm5121_vm9, %v5045_v44, %v4883_v50  ;;  %vm6049_vm9 = vcmp.gt.f32.partialorder %v10458_v14, 0.5 }
0x1d6a   :  { %v4886_v42 = vpop.f32.mrf.mxu3 }
0x1d6b   :  { %v5170_v19 = vsel %vm5122_vm8, %v5048_v13, %v4886_v42 }
0x1d6c   :  { %v7406_v12 = vpack.i.bf16 %v5170_v19, %v5169_v40 }
0x1d6e   :  { %7407 = vrot.lane.b32.xlu1 %v7406_v12, %s7825_s24 }
0x1d72   :  { %v4889_v5 = vpop.f32.mrf.mxu3 }
0x1d73   :  { %v5171_v52 = vsel %vm5123_vm11, %v5051_v58, %v4889_v5  ;;  %vm6052_vm11 = vcmp.gt.f32.partialorder %v10468_v4, 0.5 }
0x1d78   :  { %v10701_v56 = vpop.permute.xlu2 %7382 }
0x1d7a   :  { %v4892_v43 = vpop.f32.mrf.mxu3 }
0x1d7b   :  { %v5172_v31 = vsel %vm5124_vm10, %v5054_v8, %v4892_v43  ;;  %vm6051_vm10 = vcmp.gt.f32.partialorder %v10474_v24, 0.5 }
0x1d7c   :  { %v7411_v51 = vpack.i.bf16 %v5172_v31, %v5171_v52 }
0x1d7e   :  { %7412 = vrot.lane.b32.xlu2 %v7411_v51, %s7825_s24 }
0x1d82   :  { %v4895_v55 = vpop.f32.mrf.mxu3 }
0x1d83   :  { %v5173_v0 = vsel %vm5125_vm12, %v5057_v34, %v4895_v55  ;;  %vm6054_vm12 = vcmp.gt.f32.partialorder %v10478_v3, 0.5  ;;  %v7350_v3 = vunpack.i.h.bf16 %v10476_v61 }
0x1d8a   :  { %v4898_v57 = vpop.f32.mrf.mxu3 }
0x1d8b   :  { %v5174_v2 = vsel %vm5126_vm13, %v5060_v46, %v4898_v57 }
0x1d8c   :  { %v7416_v45 = vpack.i.bf16 %v5174_v2, %v5173_v0 }
0x1d8e   :  { %7417 = vrot.lane.b32.xlu0 %v7416_v45, %s7825_s24 }
0x1da8   :  { %v7398_v37 = vpop.permute.xlu2 %7397 }
0x1da9   :  { %v7400_v60 = vunpack.i.h.bf16 %v7398_v37  ;;  %v7399_v27 = vunpack.i.l.bf16 %v7398_v37 }
0x1dab   :  { %v10705_v16 = vsel %vm6313_vm14, %v10489_v41, %v7400_v60  ;;  %v10709_v18 = vsel %vm6313_vm14, %v10492_v47, %v7399_v27 }
0x1dba   :  { %v5345_v38 = vpop.f32.mrf.mxu2 }
0x1dbb   :  { %v5351_v33 = vmul.f32 0.25, %v5345_v38 }
0x1dc2   :  { %v5348_v9 = vpop.f32.mrf.mxu2 }
0x1dc3   :  { %v5352_v25 = vmul.f32 0.25, %v5348_v9 }
0x1dc5   :  { %5367 = vmatpush.msra.mxu1 %v5352_v25 }
0x1dc7   :  { %5368 = vmatpush.msra.mxu1 %v5351_v33 }
0x1dc8   :  { %6981 = vmatmul.msk.f32.vlgmr.msra.gmra.mxu1 %vm1229_vm1, %v11426_v7 }
0x1dd0   :  { %6982 = vmatmul.msk.f32.gmra.mxu1 %vm1229_vm1, %v11427_v26 }
0x1e45   :  { %v5370_v44 = vpop.f32.mrf.mxu1 }
0x1e46   :  { %v5376_v47 = vsub.f32 %v8501_v11, %v5370_v44 }
0x1e4d   :  { %v5373_v29 = vpop.f32.mrf.mxu1 }
0x1e4e   :  { %v5377_v41 = vsub.f32 %v8498_v30, %v5373_v29 }
0x1e50   :  { %5398 = vmatpush.msra.mxu2 %v5377_v41 }
0x1e52   :  { %5399 = vmatpush.msra.mxu2 %v5376_v47  ;;  %v11473_v47 = vld [vmem:[#allocation12_spill] sm:$0xff] }
0x1e53   :  { %6983 = vmatmul.msk.f32.vlgmr.msra.gmra.mxu2 %vm1229_vm1, %v5370_v44 }
0x1e5b   :  { %6984 = vmatmul.msk.f32.gmra.mxu2 %vm1229_vm1, %v5373_v29 }
0x1ed6   :  { %v5401_v39 = vpop.f32.mrf.mxu2 }
0x1ed7   :  { %v5407_v13 = vsub.f32 %v8582_v48, %v5401_v39  ;;  %v11474_v39 = vld [vmem:[#allocation118_spill] sm:$0xff] }
0x1ede   :  { %v5404_v59 = vpop.f32.mrf.mxu2 }
0x1edf   :  { %v5408_v10 = vsub.f32 %v8576_v53, %v5404_v59  ;;  %v11475_v59 = vld [vmem:[#allocation119_spill] sm:$0xff] }
0x1ee1   :  { %5423 = vmatpush.msrb.mxu1 %v5408_v10  ;;  %v11476_v10 = vld [vmem:[#allocation16_spill] sm:$0xff] }
0x1ee3   :  { %5424 = vmatpush.msrb.mxu1 %v5407_v13  ;;  %v11477_v13 = vld [vmem:[#allocation122_spill] sm:$0xff] }
0x1ee4   :  { %6985 = vmatmul.msk.f32.vlgmr.msrb.gmra.mxu1 %vm1229_vm1, %v5370_v44 }
0x1eec   :  { %6986 = vmatmul.msk.f32.gmra.mxu1 %vm1229_vm1, %v5373_v29 }
0x1f61   :  { %v5426_v50 = vpop.f32.mrf.mxu1 }
0x1f62   :  { %v5432_v58 = vsub.f32 %v8613_v32, %v5426_v50  ;;  %v11478_v50 = vld [vmem:[#allocation24_spill] sm:$0xff] }
0x1f69   :  { %v5429_v23 = vpop.f32.mrf.mxu1 }
0x1f6a   :  { %v5433_v42 = vsub.f32 %v8610_v22, %v5429_v23  ;;  %v11479_v23 = vld [vmem:[#allocation116_spill] sm:$0xff] }
0x1f6c   :  { %5454 = vmatpush.msrb.mxu2 %v5433_v42 }
0x1f6e   :  { %5455 = vmatpush.msrb.mxu2 %v5432_v58  ;;  %v11480_v58 = vld [vmem:[#allocation123_spill] sm:$0xff] }
0x1f6f   :  { %6987 = vmatmul.msk.f32.vlgmr.msrb.gmra.mxu2 %vm1229_vm1, %v5351_v33 }
0x1f77   :  { %6988 = vmatmul.msk.f32.gmra.mxu2 %vm1229_vm1, %v5352_v25 }
0x1ff2   :  { %v5457_v40 = vpop.f32.mrf.mxu2 }
0x1ff3   :  { %v5463_v5 = vmul.f32 0.25, %v5457_v40 }
0x1ffa   :  { %v5460_v19 = vpop.f32.mrf.mxu2 }
0x1ffb   :  { %v5464_v12 = vmul.f32 0.25, %v5460_v19 }
0x1ffd   :  { %5479 = vmatpush.msra.mxu1 %v5464_v12 }
0x1fff   :  { %5480 = vmatpush.msra.mxu1 %v5463_v5 }
0x2000   :  { %6989 = vmatmul.msk.f32.vlgmr.msra.gmra.mxu1 %vm1229_vm1, %v11426_v7 }
0x2008   :  { %6990 = vmatmul.msk.f32.gmra.mxu1 %vm1229_vm1, %v11427_v26 }
0x207d   :  { %v5482_v8 = vpop.f32.mrf.mxu1 }
0x207e   :  { %v5488_v52 = vsub.f32 %v8501_v11, %v5482_v8 }
0x2085   :  { %v5485_v49 = vpop.f32.mrf.mxu1 }
0x2086   :  { %v5489_v43 = vsub.f32 %v8498_v30, %v5485_v49 }
0x2088   :  { %5510 = vmatpush.msra.mxu2 %v5489_v43 }
0x208a   :  { %5511 = vmatpush.msra.mxu2 %v5488_v52 }
0x208b   :  { %6991 = vmatmul.msk.f32.vlgmr.msra.gmra.mxu2 %vm1229_vm1, %v5482_v8 }
0x2093   :  { %6992 = vmatmul.msk.f32.gmra.mxu2 %vm1229_vm1, %v5485_v49 }
0x210e   :  { %v5513_v31 = vpop.f32.mrf.mxu2 }
0x210f   :  { %v5519_v55 = vsub.f32 %v8582_v48, %v5513_v31  ;;  %v11482_v31 = vld [vmem:[#allocation64_spill] sm:$0xff] }
0x2110   :  { %7765 = vrcp.f32 %v11482_v31 }
0x2116   :  { %v5516_v51 = vpop.f32.mrf.mxu2 }
0x2117   :  { %v5520_v34 = vsub.f32 %v8576_v53, %v5516_v51 }
0x2119   :  { %5535 = vmatpush.msrb.mxu1 %v5520_v34  ;;  %v11483_v34 = vld [vmem:[#allocation70_spill] sm:$0xff] }
0x211a   :  { %7767 = vrcp.f32 %v11483_v34 }
0x211b   :  { %5536 = vmatpush.msrb.mxu1 %v5519_v55  ;;  %v11484_v55 = vld [vmem:[#allocation41_spill] sm:$0xff] }
0x211c   :  { %6993 = vmatmul.msk.f32.vlgmr.msrb.gmra.mxu1 %vm1229_vm1, %v5482_v8 }
0x2124   :  { %6994 = vmatmul.msk.f32.gmra.mxu1 %vm1229_vm1, %v5485_v49 }
0x2199   :  { %v5538_v46 = vpop.f32.mrf.mxu1 }
0x219a   :  { %v5544_v2 = vsub.f32 %v8613_v32, %v5538_v46 }
0x21a1   :  { %v5541_v57 = vpop.f32.mrf.mxu1 }
0x21a2   :  { %v5545_v0 = vsub.f32 %v8610_v22, %v5541_v57 }
0x21a4   :  { %5566 = vmatpush.msrb.mxu2 %v5545_v0  ;;  %v11485_v0 = vld [vmem:[#allocation56_spill] sm:$0xff] }
0x21a5   :  { %7769 = vrcp.f32 %v11485_v0  ;;  %v11508_v0 = vld [vmem:[#allocation112_spill] sm:$0xff] }
0x21a6   :  { %5567 = vmatpush.msrb.mxu2 %v5544_v2  ;;  %v11486_v2 = vld [vmem:[#allocation104_spill] sm:$0xff] }
0x21a7   :  { %6995 = vmatmul.msk.f32.vlgmr.msrb.gmra.mxu2 %vm1229_vm1, %v5463_v5  ;;  %v11481_v5 = vld [vmem:[#allocation22_spill] sm:$0xff] }
0x21af   :  { %6996 = vmatmul.msk.f32.gmra.mxu2 %vm1229_vm1, %v5464_v12 }
0x222a   :  { %v5569_v45 = vpop.f32.mrf.mxu2 }
0x222b   :  { %v5575_v27 = vmul.f32 0.25, %v5569_v45 }
0x2232   :  { %v5572_v37 = vpop.f32.mrf.mxu2 }
0x2233   :  { %v5576_v60 = vmul.f32 0.25, %v5572_v37 }
0x2235   :  { %5591 = vmatpush.msra.mxu1 %v5576_v60 }
0x2237   :  { %5592 = vmatpush.msra.mxu1 %v5575_v27 }
0x2238   :  { %6997 = vmatmul.msk.f32.vlgmr.msra.gmra.mxu1 %vm1229_vm1, %v11426_v7 }
0x2240   :  { %6998 = vmatmul.msk.f32.gmra.mxu1 %vm1229_vm1, %v11427_v26  ;;  %v11468_v26 = vld [vmem:[#allocation13_spill] sm:$0xff] }
0x22b5   :  { %v5594_v38 = vpop.f32.mrf.mxu1 }
0x22b6   :  { %v5600_v33 = vsub.f32 %v8501_v11, %v5594_v38  ;;  %v11467_v11 = vld [vmem:[#allocation10_spill] sm:$0xff] }
0x22bd   :  { %v5597_v9 = vpop.f32.mrf.mxu1 }
0x22be   :  { %v5601_v25 = vsub.f32 %v8498_v30, %v5597_v9  ;;  %v11466_v30 = vld [vmem:[#allocation75_spill] sm:$0xff] }
0x22c0   :  { %5622 = vmatpush.msra.mxu2 %v5601_v25  ;;  %v11489_v25 = vld [vmem:[#allocation63_spill] sm:$0xff] }
0x22c2   :  { %5623 = vmatpush.msra.mxu2 %v5600_v33  ;;  %v11490_v33 = vld [vmem:[#allocation103_spill] sm:$0xff] }
0x22c3   :  { %6999 = vmatmul.msk.f32.vlgmr.msra.gmra.mxu2 %vm1229_vm1, %v5594_v38 }
0x22cb   :  { %7000 = vmatmul.msk.f32.gmra.mxu2 %vm1229_vm1, %v5597_v9 }
0x2346   :  { %v5625_v44 = vpop.f32.mrf.mxu2 }
0x2347   :  { %v5631_v7 = vsub.f32 %v8582_v48, %v5625_v44  ;;  %v11470_v48 = vld [vmem:[#allocation7_spill] sm:$0xff] }
0x234e   :  { %v5628_v29 = vpop.f32.mrf.mxu2 }
0x234f   :  { %v5632_v41 = vsub.f32 %v8576_v53, %v5628_v29  ;;  %v11469_v53 = vld [vmem:[#allocation77_spill] sm:$0xff] }
0x2351   :  { %5647 = vmatpush.msrb.mxu1 %v5632_v41  ;;  %v11491_v41 = vld [vmem:[#allocation21_spill] sm:$0xff] }
0x2353   :  { %5648 = vmatpush.msrb.mxu1 %v5631_v7  ;;  %v11492_v7 = vld [vmem:[#allocation107_spill] sm:$0xff] }
0x2354   :  { %7001 = vmatmul.msk.f32.vlgmr.msrb.gmra.mxu1 %vm1229_vm1, %v5594_v38 }
0x2355   :  { %5942 = vmatpush.msra.mxu1 %v11431_v1  ;;  %v11471_v1 = vld [vmem:[#allocation80_spill] sm:$0xff] }
0x2357   :  { %5943 = vmatpush.msra.mxu1 %v11432_v54  ;;  %v11472_v54 = vld [vmem:[#allocation93_spill] sm:$0xff] }
0x235c   :  { %7002 = vmatmul.msk.f32.gmra.mxu1 %vm1229_vm1, %v5597_v9 }
0x2364   :  { %7039 = vmatmul.msk.f32.vlgmr.msra.gmra.mxu1 %vm1229_vm1, %v11466_v30 }
0x236c   :  { %7040 = vmatmul.msk.f32.gmra.mxu1 %vm1229_vm1, %v11467_v11 }
0x2374   :  { %7041 = vmatmul.msk.f32.gmra.mxu1 %vm1229_vm1, %v11468_v26  ;;  %v11493_v26 = vld [vmem:[#allocation26_spill] sm:$0xff] }
0x237c   :  { %7042 = vmatmul.msk.f32.gmra.mxu1 %vm1229_vm1, %v11469_v53  ;;  %v11494_v53 = vld [vmem:[#allocation102_spill] sm:$0xff] }
0x2384   :  { %7043 = vmatmul.msk.f32.gmra.mxu1 %vm1229_vm1, %v11470_v48 }
0x238c   :  { %7044 = vmatmul.msk.f32.gmra.mxu1 %vm1229_vm1, %v11471_v1 }
0x2394   :  { %7045 = vmatmul.msk.f32.gmra.mxu1 %vm1229_vm1, %v11472_v54  ;;  %v11495_v54 = vld [vmem:[#allocation62_spill] sm:$0xff] }
0x239c   :  { %7046 = vmatmul.msk.f32.gmra.mxu1 %vm1229_vm1, %v11473_v47  ;;  %v11496_v47 = vld [vmem:[#allocation106_spill] sm:$0xff] }
0x23a4   :  { %7047 = vmatmul.msk.f32.gmra.mxu1 %vm1229_vm1, %v11474_v39 }
0x23ac   :  { %7048 = vmatmul.msk.f32.gmra.mxu1 %vm1229_vm1, %v11475_v59 }
0x23b4   :  { %7049 = vmatmul.msk.f32.gmra.mxu1 %vm1229_vm1, %v11476_v10  ;;  %v11497_v10 = vld [vmem:[#allocation73_spill] sm:$0xff] }
0x23bc   :  { %7050 = vmatmul.msk.f32.gmra.mxu1 %vm1229_vm1, %v11477_v13  ;;  %v11498_v13 = vld [vmem:[#allocation110_spill] sm:$0xff] }
0x23c4   :  { %7051 = vmatmul.msk.f32.gmra.mxu1 %vm1229_vm1, %v11478_v50 }
0x23cc   :  { %7052 = vmatmul.msk.f32.gmra.mxu1 %vm1229_vm1, %v11479_v23 }
0x23d1   :  { %v5650_v42 = vpop.f32.mrf.mxu1 }
0x23d2   :  { %v5656_v12 = vsub.f32 %v8613_v32, %v5650_v42  ;;  %v7766_v32 = vpop.eup %7765  ;;  %v11499_v42 = vld [vmem:[#allocation11_spill] sm:$0xff] }
0x23d3   :  { %v1918_v46 = vmul.f32 %v7766_v32, %v11484_v55  ;;  %v7768_v57 = vpop.eup %7767  ;;  %v11505_v32 = vld [vmem:[#allocation14_spill] sm:$0xff] }
0x23d4   :  { %7053 = vmatmul.msk.f32.gmra.mxu1 %vm1229_vm1, %v11480_v58  ;;  %v1919_v45 = vmul.f32 %v7768_v57, %v11486_v2  ;;  %v7770_v37 = vpop.eup %7769  ;;  %v11500_v58 = vld [vmem:[#allocation105_spill] sm:$0xff] }
0x23d9   :  { %v5653_v40 = vpop.f32.mrf.mxu1 }
0x23da   :  { %v5657_v19 = vsub.f32 %v8610_v22, %v5653_v40 }
0x23dc   :  { %5678 = vmatpush.msrb.mxu2 %v5657_v19  ;;  %7054 = vmatmul.msk.f32.gmra.mxu1 %vm1229_vm1, %v11481_v5  ;;  %v11502_v5 = vld [vmem:[#allocation109_spill] sm:$0xff] }
0x23de   :  { %5679 = vmatpush.msrb.mxu2 %v5656_v12  ;;  %v11501_v12 = vld [vmem:[#allocation65_spill] sm:$0xff] }
0x23df   :  { %7003 = vmatmul.msk.f32.vlgmr.msrb.gmra.mxu2 %vm1229_vm1, %v5575_v27  ;;  %v11488_v27 = vld [vmem:[#allocation101_spill] sm:$0xff] }
0x23e0   :  { %v1920_v38 = vmul.f32 %v7770_v37, %v11488_v27  ;;  %v11509_v37 = vld [vmem:[#allocation20_spill] sm:$0xff] }
0x23e1   :  { %v5945_v57 = vpop.f32.mrf.mxu1 }
0x23e7   :  { %7004 = vmatmul.msk.f32.gmra.mxu2 %vm1229_vm1, %v5576_v60  ;;  %v11487_v60 = vld [vmem:[#allocation19_spill] sm:$0xff] }
0x23e8   :  { %7771 = vrcp.f32 %v11487_v60  ;;  %v11510_v60 = vld [vmem:[#allocation115_spill] sm:$0xff] }
0x23e9   :  { %7773 = vrcp.f32 %v11489_v25  ;;  %v11511_v25 = vld [vmem:[#allocation117_spill] sm:$0xff] }
0x23ea   :  { %7775 = vrcp.f32 %v11491_v41 }
0x23eb   :  { %7777 = vrcp.f32 %v11493_v26 }
0x23ec   :  { %7779 = vrcp.f32 %v11495_v54 }
0x23ed   :  { %7781 = vrcp.f32 %v11497_v10 }
0x23ee   :  { %v7772_v9 = vpop.eup %7771  ;;  %7783 = vrcp.f32 %v11499_v42 }
0x23ef   :  { %v1921_v44 = vmul.f32 %v7772_v9, %v11490_v33  ;;  %v7774_v29 = vpop.eup %7773  ;;  %7785 = vrcp.f32 %v11501_v12  ;;  %v11512_v33 = vld [vmem:[#allocation111_spill] sm:$0xff] }
0x23f0   :  { %v1922_v30 = vmul.f32 %v7774_v29, %v11492_v7  ;;  %v7776_v11 = vpop.eup %7775  ;;  %v11513_v7 = vld [vmem:[#allocation114_spill] sm:$0xff] }
0x23f1   :  { %v1923_v48 = vmul.f32 %v7776_v11, %v11494_v53  ;;  %v7778_v1 = vpop.eup %7777  ;;  %v11514_v53 = vld [vmem:[#allocation132_spill] sm:$0xff] }
0x23f2   :  { %v1924_v39 = vmul.f32 %v7778_v1, %v11496_v47  ;;  %v7780_v59 = vpop.eup %7779  ;;  %vm6041_vm2 = vcmp.gt.f32.partialorder %v11514_v53, 0.5 }
0x23f3   :  { %v1925_v50 = vmul.f32 %v7780_v59, %v11498_v13  ;;  %v7782_v23 = vpop.eup %7781  ;;  %v11515_v13 = vld [vmem:[#allocation133_spill] sm:$0xff] }
0x23f4   :  { %v1926_v40 = vmul.f32 %v7782_v23, %v11500_v58  ;;  %v7784_v19 = vpop.eup %7783  ;;  %vm6044_vm3 = vcmp.gt.f32.partialorder %v11515_v13, 0.5  ;;  %v11522_v13 = vld [vmem:[#allocation67_spill] sm:$0xff] }
0x2462   :  { %v5681_v8 = vpop.f32.mrf.mxu2 }
0x2463   :  { %v5687_v49 = vmul.f32 0.25, %v5681_v8  ;;  %v1927_v8 = vmul.f32 %v7784_v19, %v11502_v5 }
0x2465   :  { %7005 = vmatmul.msk.f32.vlgmr.msrb.gmra.mxu3 %vm1229_vm1, %v5687_v49  ;;  %v7786_v49 = vpop.eup %7785 }
0x246a   :  { %v5684_v43 = vpop.f32.mrf.mxu2 }
0x246b   :  { %v5688_v52 = vmul.f32 0.25, %v5684_v43  ;;  %v11503_v43 = vld [vmem:[#allocation79_spill] sm:$0xff] }
0x246c   :  { %7787 = vrcp.f32 %v11503_v43 }
0x246d   :  { %7006 = vmatmul.msk.f32.gmra.mxu3 %vm1229_vm1, %v5688_v52  ;;  %v11504_v52 = vld [vmem:[#allocation113_spill] sm:$0xff]  ;;  %7789 = vrcp.f32 %v11505_v32 }
0x2472   :  { %v7788_v31 = vpop.eup %7787 }
0x2473   :  { %v7790_v55 = vpop.eup %7789 }
0x2474   :  { %v1930_v2 = vmul.f32 %v7790_v55, %v11508_v0  ;;  %v11517_v55 = vld [vmem:[#allocation135_spill] sm:$0xff] }
0x2475   :  { %vm6050_vm8 = vcmp.gt.f32.partialorder %v11517_v55, 0.5  ;;  %v7345_v55 = vunpack.i.h.bf16 %v10494_v20 }
0x24e8   :  { %v5712_v22 = vpop.f32.mrf.mxu3 }
0x24f0   :  { %v5715_v51 = vpop.f32.mrf.mxu3 }
0x24f1   :  { %5780 = vmatpush.msra.mxu0 %v5715_v51  ;;  %v11506_v51 = vld [vmem:[#allocation108_spill] sm:$0xff] }
0x24f2   :  { %v1929_v34 = vmul.f32 %v7788_v31, %v11506_v51 }
0x24f3   :  { %5781 = vmatpush.msra.mxu0 %v5712_v22  ;;  %v1928_v22 = vmul.f32 %v7786_v49, %v11504_v52  ;;  %v11516_v52 = vld [vmem:[#allocation134_spill] sm:$0xff] }
0x24f4   :  { %7007 = vmatmul.msk.f32.vlgmr.msra.gmra.mxu0 %vm1229_vm1, %v1918_v46  ;;  %v11507_v46 = vld [vmem:[#allocation49_spill] sm:$0xff]  ;;  %vm6047_vm7 = vcmp.gt.f32.partialorder %v11516_v52, 0.5 }
0x24f5   :  { %7791 = vrcp.f32 %v11507_v46 }
0x24f6   :  { %7793 = vrcp.f32 %v11509_v37 }
0x24f7   :  { %7795 = vrcp.f32 %v11511_v25 }
0x24fc   :  { %7008 = vmatmul.msk.f32.gmra.mxu0 %vm1229_vm1, %v1919_v45  ;;  %v7792_v45 = vpop.eup %7791 }
0x24fd   :  { %v1931_v27 = vmul.f32 %v7792_v45, %v11510_v60  ;;  %v7794_v9 = vpop.eup %7793 }
0x24fe   :  { %v7796_v41 = vpop.eup %7795 }
0x2504   :  { %7009 = vmatmul.msk.f32.gmra.mxu0 %vm1229_vm1, %v1920_v38  ;;  %v5948_v38 = vpop.f32.mrf.mxu1 }
0x250c   :  { %7010 = vmatmul.msk.f32.gmra.mxu0 %vm1229_vm1, %v1921_v44  ;;  %v1932_v44 = vmul.f32 %v7794_v9, %v11512_v33  ;;  %v5951_v29 = vpop.f32.mrf.mxu1  ;;  %v10861_v33 = vpop.permute.xlu1 %7377 }
0x2514   :  { %7011 = vmatmul.msk.f32.gmra.mxu0 %vm1229_vm1, %v1922_v30  ;;  %v1933_v30 = vmul.f32 %v7796_v41, %v11513_v7  ;;  %v5954_v11 = vpop.f32.mrf.mxu1  ;;  %v10865_v41 = vpop.permute.xlu0 %7372 }
0x251c   :  { %7012 = vmatmul.msk.f32.gmra.mxu0 %vm1229_vm1, %v1923_v48  ;;  %v5957_v1 = vpop.f32.mrf.mxu1 }
0x2524   :  { %7013 = vmatmul.msk.f32.gmra.mxu0 %vm1229_vm1, %v1924_v39  ;;  %v5960_v10 = vpop.f32.mrf.mxu1 }
0x252c   :  { %7014 = vmatmul.msk.f32.gmra.mxu0 %vm1229_vm1, %v1925_v50  ;;  %v5963_v58 = vpop.f32.mrf.mxu1 }
0x2534   :  { %7015 = vmatmul.msk.f32.gmra.mxu0 %vm1229_vm1, %v1926_v40  ;;  %v5966_v19 = vpop.f32.mrf.mxu1 }
0x253c   :  { %7016 = vmatmul.msk.f32.gmra.mxu0 %vm1229_vm1, %v1927_v8  ;;  %v5969_v43 = vpop.f32.mrf.mxu1 }
0x2544   :  { %7017 = vmatmul.msk.f32.gmra.mxu0 %vm1229_vm1, %v1928_v22  ;;  %v5972_v63 = vpop.f32.mrf.mxu1 }
0x254c   :  { %7018 = vmatmul.msk.f32.gmra.mxu0 %vm1229_vm1, %v1929_v34  ;;  %v5975_v34 = vpop.f32.mrf.mxu1 }
0x2554   :  { %7019 = vmatmul.msk.f32.gmra.mxu0 %vm1229_vm1, %v1930_v2  ;;  %v5978_v36 = vpop.f32.mrf.mxu1 }
0x255c   :  { %7020 = vmatmul.msk.f32.gmra.mxu0 %vm1229_vm1, %v1931_v27  ;;  %v5981_v60 = vpop.f32.mrf.mxu1 }
0x2564   :  { %7021 = vmatmul.msk.f32.gmra.mxu0 %vm1229_vm1, %v1932_v44  ;;  %v5984_v25 = vpop.f32.mrf.mxu1  ;;  %v11518_v44 = vld [vmem:[#allocation136_spill] sm:$0xff] }
0x2565   :  { %vm6053_vm13 = vcmp.gt.f32.partialorder %v11518_v44, 0.5 }
0x256c   :  { %7022 = vmatmul.msk.f32.gmra.mxu0 %vm1229_vm1, %v1933_v30  ;;  %vm6043_vm1 = vcmp.gt.f32.partialorder %v10440_v6, 0.5  ;;  %v5987_v30 = vpop.f32.mrf.mxu1 }
0x2571   :  { %v5783_v26 = vpop.f32.mrf.mxu0 }
0x2572   :  { %v6089_v54 = vsel %vm6041_vm2, %v5945_v57, %v5783_v26  ;;  %v10868_v26 = vpop.permute.xlu2 %7412 }
0x2579   :  { %v5786_v48 = vpop.f32.mrf.mxu0 }
0x257a   :  { %v6090_v47 = vsel %vm6042_vm15, %v5948_v38, %v5786_v48  ;;  %v7388_v48 = vpop.permute.xlu0 %7387 }
0x257b   :  { %v7421_v39 = vpack.i.bf16 %v6090_v47, %v6089_v54  ;;  %v11520_v54 = vld [vmem:[#allocation72_spill] sm:$0xff]  ;;  %v7349_v47 = vunpack.i.l.bf16 %v10476_v61 }
0x257c   :  { %vm3254_vm2 = vcmp.gt.f32.partialorder %v11520_v54, 0.5 }
0x257d   :  { %7422 = vrot.lane.b32.xlu1 %v7421_v39, %s7826_s6  ;;  %v7390_v39 = vunpack.i.h.bf16 %v7388_v48 }
0x2581   :  { %v5789_v59 = vpop.f32.mrf.mxu0 }
0x2582   :  { %v6091_v23 = vsel %vm6043_vm1, %v5951_v29, %v5789_v59  ;;  %v7389_v59 = vunpack.i.l.bf16 %v7388_v48 }
0x2589   :  { %v5792_v50 = vpop.f32.mrf.mxu0 }
0x258a   :  { %v6092_v42 = vsel %vm6044_vm3, %v5954_v11, %v5792_v50  ;;  %v7393_v11 = vpop.permute.xlu1 %7392  ;;  %vm6056_vm3 = vcmp.gt.f32.partialorder %v10446_v35, 0.5 }
0x258b   :  { %v7426_v28 = vpack.i.bf16 %v6092_v42, %v6091_v23  ;;  %v11523_v42 = vld [vmem:[#allocation44_spill] sm:$0xff]  ;;  %v7394_v48 = vunpack.i.l.bf16 %v7393_v11 }
0x258d   :  { %7427 = vrot.lane.b32.xlu2 %v7426_v28, %s7826_s6  ;;  %v11524_v28 = vld [vmem:[#allocation61_spill] sm:$0xff] }
0x2591   :  { %v5795_v40 = vpop.f32.mrf.mxu0 }
0x2592   :  { %v6093_v5 = vsel %vm6045_vm4, %v5957_v1, %v5795_v40  ;;  %v11519_v1 = vld [vmem:[#allocation121_spill] sm:$0xff]  ;;  %v10876_v23 = vpop.permute.xlu1 %7407  ;;  %v11525_v40 = vld [vmem:[#allocation139_spill] sm:$0xff]  ;;  %vm6330_vm4 = vcmask 785408  }
0x2593   :  { %vm3253_vm15 = vcmp.gt.f32.partialorder %v11519_v1, 0.5  ;;  %vm6055_vm1 = vcmp.gt.f32.partialorder %v11525_v40, 0.5 }
0x2599   :  { %v5798_v12 = vpop.f32.mrf.mxu0 }
0x259a   :  { %v6094_v8 = vsel %vm6046_vm5, %v5960_v10, %v5798_v12  ;;  %v11521_v10 = vld [vmem:[#allocation50_spill] sm:$0xff]  ;;  %v5990_v12 = vpop.f32.mrf.mxu1 }
0x259b   :  { %v7431_v49 = vpack.i.bf16 %v6094_v8, %v6093_v5  ;;  %v3301_v50 = vsel %vm3253_vm15, %v11522_v13, %v11521_v10 }
0x259c   :  { %v6299_v61 = vsel %vm289_vm0, %v3301_v50, %v7349_v47  ;;  %v11532_v47 = vld [vmem:[#allocation138_spill] sm:$0xff] }
0x259d   :  { %7432 = vrot.lane.b32.xlu0 %v7431_v49, %s7826_s6 }
0x25a1   :  { %v5801_v6 = vpop.f32.mrf.mxu0 }
0x25a2   :  { %v6095_v31 = vsel %vm6047_vm7, %v5963_v58, %v5801_v6  ;;  %v3302_v58 = vsel %vm3254_vm2, %v11524_v28, %v11523_v42  ;;  %v6316_v6 = vsel %vm6313_vm14, %v6299_v61, %v7389_v59  ;;  %v11533_v59 = vld [vmem:[#allocation137_spill] sm:$0xff] }
0x25a3   :  { %v6300_v5 = vsel %vm289_vm0, %v3302_v58, %v7350_v3 }
0x25a9   :  { %v5804_v22 = vpop.f32.mrf.mxu0 }
0x25aa   :  { %v6096_v32 = vsel %vm6048_vm6, %v5966_v19, %v5804_v22 }
0x25ab   :  { %v7436_v51 = vpack.i.bf16 %v6096_v32, %v6095_v31 }
0x25ad   :  { %7437 = vrot.lane.b32.xlu1 %v7436_v51, %s7826_s6 }
0x25b1   :  { %v5807_v15 = vpop.f32.mrf.mxu0 }
0x25b2   :  { %v6097_v57 = vsel %vm6049_vm9, %v5969_v43, %v5807_v15  ;;  %v6317_v43 = vsel %vm6313_vm14, %v6300_v5, %v7390_v39  ;;  %v11526_v15 = vld [vmem:[#allocation23_spill] sm:$0xff]  ;;  %v6318_v39 = vsel %vm6313_vm14, %v11532_v47, %v7394_v48 }
0x25b3   :  { %vm3251_vm5 = vcmp.gt.f32.partialorder %v11526_v15, 0.5  ;;  %v7409_v15 = vunpack.i.l.bf16 %v10876_v23 }
0x25b9   :  { %v5810_v46 = vpop.f32.mrf.mxu0 }
0x25ba   :  { %v6098_v0 = vsel %vm6050_vm8, %v5972_v63, %v5810_v46  ;;  %v7344_v46 = vunpack.i.l.bf16 %v10494_v20 }
0x25bb   :  { %v7441_v2 = vpack.i.bf16 %v6098_v0, %v6097_v57  ;;  %v7385_v57 = vunpack.i.h.bf16 %v10701_v56  ;;  %v7384_v0 = vunpack.i.l.bf16 %v10701_v56 }
0x25bd   :  { %7442 = vrot.lane.b32.xlu2 %v7441_v2, %s7826_s6  ;;  %v11528_v2 = vld [vmem:[#allocation54_spill] sm:$0xff] }
0x25c1   :  { %v5813_v45 = vpop.f32.mrf.mxu0 }
0x25c2   :  { %v6099_v27 = vsel %vm6051_vm10, %v5975_v34, %v5813_v45  ;;  %v11527_v34 = vld [vmem:[#allocation120_spill] sm:$0xff] }
0x25c3   :  { %vm3252_vm6 = vcmp.gt.f32.partialorder %v11527_v34, 0.5  ;;  %v11536_v34 = vld [vmem:[#allocation45_spill] sm:$0xff] }
0x25c9   :  { %v5816_v37 = vpop.f32.mrf.mxu0 }
0x25ca   :  { %v6100_v38 = vsel %vm6052_vm11, %v5978_v36, %v5816_v37  ;;  %v11529_v36 = vld [vmem:[#allocation58_spill] sm:$0xff]  ;;  %v11530_v37 = vld [vmem:[#allocation51_spill] sm:$0xff] }
0x25cb   :  { %v7446_v9 = vpack.i.bf16 %v6100_v38, %v6099_v27  ;;  %v3299_v45 = vsel %vm3251_vm5, %v11529_v36, %v11528_v2 }
0x25cd   :  { %7447 = vrot.lane.b32.xlu0 %v7446_v9, %s7826_s6 }
0x25d1   :  { %v5819_v14 = vpop.f32.mrf.mxu0 }
0x25d2   :  { %v6101_v24 = vsel %vm6053_vm13, %v5981_v60, %v5819_v14  ;;  %v11531_v60 = vld [vmem:[#allocation59_spill] sm:$0xff]  ;;  %v6297_v14 = vsel %vm289_vm0, %v3299_v45, %v7344_v46 }
0x25d3   :  { %v3300_v27 = vsel %vm3252_vm6, %v11531_v60, %v11530_v37  ;;  %v6314_v56 = vsel %vm6313_vm14, %v6297_v14, %v7384_v0  ;;  %v11538_v46 = vld [vmem:[#allocation47_spill] sm:$0xff]  ;;  %v11541_v14 = vld [vmem:[#allocation82_spill] sm:$0xff] }
0x25d4   :  { %v6298_v9 = vsel %vm289_vm0, %v3300_v27, %v7345_v55  ;;  %v11537_v55 = vld [vmem:[#allocation76_spill] sm:$0xff]  ;;  %vm3266_vm10 = vcmp.gt.f32.partialorder %v11541_v14, 0.5 }
0x25d5   :  { %v6315_v44 = vsel %vm6313_vm14, %v6298_v9, %v7385_v57  ;;  %v11539_v57 = vld [vmem:[#allocation74_spill] sm:$0xff]  ;;  %v11540_v9 = vld [vmem:[#allocation127_spill] sm:$0xff] }
0x25d6   :  { %vm3265_vm9 = vcmp.gt.f32.partialorder %v11540_v9, 0.5 }
0x25d9   :  { %v5822_v29 = vpop.f32.mrf.mxu0 }
0x25da   :  { %v6102_v4 = vsel %vm6054_vm12, %v5984_v25, %v5822_v29 }
0x25db   :  { %v7451_v7 = vpack.i.bf16 %v6102_v4, %v6101_v24 }
0x25dd   :  { %7452 = vrot.lane.b32.xlu1 %v7451_v7, %s7826_s6  ;;  %v7403_v7 = vpop.permute.xlu0 %7402 }
0x25de   :  { %v7405_v28 = vunpack.i.h.bf16 %v7403_v7  ;;  %v7404_v58 = vunpack.i.l.bf16 %v7403_v7  ;;  %v11544_v7 = vld [vmem:[#allocation69_spill] sm:$0xff] }
0x25e0   :  { %v6323_v5 = vsel %vm6313_vm14, %v10505_v62, %v7405_v28  ;;  %v11535_v62 = vld [vmem:[#allocation125_spill] sm:$0xff]  ;;  %v7375_v28 = vunpack.i.h.bf16 %v10865_v41 }
0x25e1   :  { %v5825_v53 = vpop.f32.mrf.mxu0  ;;  %vm3262_vm8 = vcmp.gt.f32.partialorder %v11535_v62, 0.5 }
0x25e2   :  { %v6103_v22 = vsel %vm6055_vm1, %v5987_v30, %v5825_v53  ;;  %v7395_v53 = vunpack.i.h.bf16 %v7393_v11 }
0x25e4   :  { %v6319_v10 = vsel %vm6313_vm14, %v11533_v59, %v7395_v53  ;;  %v11545_v53 = vld [vmem:[#allocation81_spill] sm:$0xff] }
0x25e5   :  { %v10905_v30 = vpop.permute.xlu0 %7417  ;;  %v3314_v48 = vsel %vm3266_vm10, %v11545_v53, %v11544_v7 }
0x25e7   :  { %v7428_v19 = vpop.permute.xlu2 %7427 }
0x25e8   :  { %v7430_v8 = vunpack.i.h.bf16 %v7428_v19  ;;  %v7429_v49 = vunpack.i.l.bf16 %v7428_v19 }
0x25e9   :  { %v5828_v52 = vpop.f32.mrf.mxu0 }
0x25ea   :  { %v6334_v31 = vsel %vm6330_vm4, %v6317_v43, %v7430_v8  ;;  %v6333_v35 = vsel %vm6330_vm4, %v6316_v6, %v7429_v49  ;;  %v6104_v32 = vsel %vm6056_vm3, %v5990_v12, %v5828_v52  ;;  %v6322_v12 = vsel %vm6313_vm14, %v10508_v21, %v7404_v58  ;;  %v11534_v21 = vld [vmem:[#allocation124_spill] sm:$0xff] }
0x25eb   :  { %v7263_v51 = vpack.c.bf16 %v6334_v31, %v6333_v35  ;;  %v7456_v63 = vpack.i.bf16 %v6104_v32, %v6103_v22  ;;  %vm3261_vm7 = vcmp.gt.f32.partialorder %v11534_v21, 0.5  ;;  %v7370_v32 = vunpack.i.h.bf16 %v10699_v17 }
0x25ec   :  { %v7374_v58 = vunpack.i.l.bf16 %v10865_v41 }
0x25ed   :  { %7326 = vst [vmem:[#allocation2 + $0x8] sm:$0xff] %v7263_v51   ;;  %7457 = vrot.lane.b32.xlu2 %v7456_v63, %s7826_s6  ;;  %v7369_v51 = vunpack.i.l.bf16 %v10699_v17  ;;  %v7410_v63 = vunpack.i.h.bf16 %v10876_v23 }
0x25ef   :  { %v7423_v38 = vpop.permute.xlu1 %7422 }
0x25f0   :  { %v7425_v25 = vunpack.i.h.bf16 %v7423_v38  ;;  %v7424_v20 = vunpack.i.l.bf16 %v7423_v38 }
0x25f2   :  { %v6331_v29 = vsel %vm6330_vm4, %v6314_v56, %v7424_v20  ;;  %v6332_v24 = vsel %vm6330_vm4, %v6315_v44, %v7425_v25  ;;  %v7380_v25 = vunpack.i.h.bf16 %v10861_v33  ;;  %v7379_v20 = vunpack.i.l.bf16 %v10861_v33 }
0x25f3   :  { %v7258_v4 = vpack.c.bf16 %v6332_v24, %v6331_v29  ;;  %v7420_v44 = vunpack.i.h.bf16 %v10905_v30  ;;  %v7419_v56 = vunpack.i.l.bf16 %v10905_v30  ;;  %v11542_v29 = vld [vmem:[#allocation66_spill] sm:$0xff] }
0x25f4   :  { %v11543_v24 = vld [vmem:[#allocation6_spill] sm:$0xff] }
0x25f5   :  { %7259 = vst [vmem:[#allocation2] sm:$0xff] %v7258_v4   ;;  %v3313_v4 = vsel %vm3265_vm9, %v11543_v24, %v11542_v29 }
0x260f   :  { %v7433_v1 = vpop.permute.xlu0 %7432 }
0x2610   :  { %v7435_v54 = vunpack.i.h.bf16 %v7433_v1  ;;  %v7434_v3 = vunpack.i.l.bf16 %v7433_v1 }
0x2612   :  { %v6335_v13 = vsel %vm6330_vm4, %v6318_v39, %v7434_v3  ;;  %v6336_v50 = vsel %vm6330_vm4, %v6319_v10, %v7435_v54  ;;  %v6312_v54 = vsel %vm289_vm0, %v3314_v48, %v7380_v25  ;;  %v6311_v3 = vsel %vm289_vm0, %v3313_v4, %v7379_v20 }
0x2613   :  { %v7268_v42 = vpack.c.bf16 %v6336_v50, %v6335_v13  ;;  %v6328_v33 = vsel %vm6313_vm14, %v6311_v3, %v7419_v56  ;;  %v6329_v59 = vsel %vm6313_vm14, %v6312_v54, %v7420_v44  ;;  %v11546_v50 = vld [vmem:[#allocation8_spill] sm:$0xff] }
0x2614   :  { %vm3263_vm11 = vcmp.gt.f32.partialorder %v11546_v50, 0.5 }
0x2615   :  { %7327 = vst [vmem:[#allocation2 + $0x10] sm:$0xff] %v7268_v42   ;;  %v11547_v42 = vld [vmem:[#allocation126_spill] sm:$0xff] }
0x2616   :  { %vm3264_vm12 = vcmp.gt.f32.partialorder %v11547_v42, 0.5 }
0x2617   :  { %v7443_v40 = vpop.permute.xlu2 %7442 }
0x2618   :  { %v7445_v19 = vunpack.i.h.bf16 %v7443_v40  ;;  %v7444_v11 = vunpack.i.l.bf16 %v7443_v40  ;;  %v7415_v40 = vunpack.i.h.bf16 %v10868_v26 }
0x261a   :  { %v6340_v61 = vsel %vm6330_vm4, %v6323_v5, %v7445_v19  ;;  %v6339_v8 = vsel %vm6330_vm4, %v6322_v12, %v7444_v11  ;;  %v7414_v19 = vunpack.i.l.bf16 %v10868_v26  ;;  %v11548_v11 = vld [vmem:[#allocation46_spill] sm:$0xff] }
0x261b   :  { %v7278_v49 = vpack.c.bf16 %v6340_v61, %v6339_v8  ;;  %v11549_v12 = vld [vmem:[#allocation18_spill] sm:$0xff]  ;;  %v11550_v61 = vld [vmem:[#allocation60_spill] sm:$0xff] }
0x261c   :  { %v3311_v5 = vsel %vm3263_vm11, %v11549_v12, %v11548_v11  ;;  %v11551_v8 = vld [vmem:[#allocation78_spill] sm:$0xff] }
0x261d   :  { %7329 = vst [vmem:[#allocation2 + $0x20] sm:$0xff] %v7278_v49   ;;  %v3312_v49 = vsel %vm3264_vm12, %v11551_v8, %v11550_v61  ;;  %v6309_v41 = vsel %vm289_vm0, %v3311_v5, %v7374_v58 }
0x261f   :  { %v7438_v6 = vpop.permute.xlu1 %7437 }
0x2620   :  { %v7440_v43 = vunpack.i.h.bf16 %v7438_v6  ;;  %v7439_v52 = vunpack.i.l.bf16 %v7438_v6 }
0x2622   :  { %v6337_v22 = vsel %vm6330_vm4, %v10709_v18, %v7439_v52  ;;  %v6338_v31 = vsel %vm6330_vm4, %v10705_v16, %v7440_v43  ;;  %v3309_v18 = vsel %vm3261_vm7, %v11537_v55, %v11536_v34  ;;  %v3310_v16 = vsel %vm3262_vm8, %v11539_v57, %v11538_v46 }
0x2623   :  { %v7273_v35 = vpack.c.bf16 %v6338_v31, %v6337_v22  ;;  %v6308_v2 = vsel %vm289_vm0, %v3310_v16, %v7370_v32  ;;  %v6307_v36 = vsel %vm289_vm0, %v3309_v18, %v7369_v51  ;;  %v6310_v43 = vsel %vm289_vm0, %v3312_v49, %v7375_v28 }
0x2624   :  { %v6324_v60 = vsel %vm6313_vm14, %v6307_v36, %v7409_v15  ;;  %v6325_v17 = vsel %vm6313_vm14, %v6308_v2, %v7410_v63  ;;  %v6327_v26 = vsel %vm6313_vm14, %v6310_v43, %v7415_v40  ;;  %v6326_v31 = vsel %vm6313_vm14, %v6309_v41, %v7414_v19 }
0x2625   :  { %7328 = vst [vmem:[#allocation2 + $0x18] sm:$0xff] %v7273_v35  }
0x263f   :  { %v7448_v0 = vpop.permute.xlu0 %7447 }
0x2640   :  { %v7450_v45 = vunpack.i.h.bf16 %v7448_v0  ;;  %v7449_v37 = vunpack.i.l.bf16 %v7448_v0 }
0x2642   :  { %v6341_v27 = vsel %vm6330_vm4, %v6324_v60, %v7449_v37  ;;  %v6342_v23 = vsel %vm6330_vm4, %v6325_v17, %v7450_v45 }
0x2643   :  { %v7283_v38 = vpack.c.bf16 %v6342_v23, %v6341_v27 }
0x2645   :  { %7330 = vst [vmem:[#allocation2 + $0x28] sm:$0xff] %v7283_v38  }
0x2647   :  { %v7458_v1 = vpop.permute.xlu2 %7457 }
0x2648   :  { %v7460_v47 = vunpack.i.h.bf16 %v7458_v1  ;;  %v7459_v39 = vunpack.i.l.bf16 %v7458_v1 }
0x264a   :  { %v6346_v30 = vsel %vm6330_vm4, %v6329_v59, %v7460_v47  ;;  %v6345_v10 = vsel %vm6330_vm4, %v6328_v33, %v7459_v39 }
0x264b   :  { %v7293_v13 = vpack.c.bf16 %v6346_v30, %v6345_v10 }
0x264d   :  { %7332 = vst [vmem:[#allocation2 + $0x38] sm:$0xff] %v7293_v13  }
0x264f   :  { %v7453_v6 = vpop.permute.xlu1 %7452 }
0x2650   :  { %v7455_v52 = vunpack.i.h.bf16 %v7453_v6  ;;  %v7454_v22 = vunpack.i.l.bf16 %v7453_v6 }
0x2652   :  { %v6343_v35 = vsel %vm6330_vm4, %v6326_v31, %v7454_v22  ;;  %v6344_v21 = vsel %vm6330_vm4, %v6327_v26, %v7455_v52 }
0x2653   :  { %v7288_v62 = vpack.c.bf16 %v6344_v21, %v6343_v35 }
0x2655   :  { %7331 = vst [vmem:[#allocation2 + $0x30] sm:$0xff] %v7288_v62  }
0x2656   :  { %6391 = dma.vmem_to_hbm [thread:$0]  %s6384_s29, 1024, %s6386_s27, [#allocation3], %s7825_s24, %s7825_s24, %s7828_s7  }
0x2657   :  { %7821 = dma.done.wait [#allocation3], 1024  }
0x2658   :  { %7822 = vsyncadd [#allocation3], 4294966272 }
0x2659   :  { %6396 = vsyncpa [#allocation3], 1 }

</bundles_post_ra>
